<compile_context>
chip_gen: v5e
topology: v5e:2x2
jax: 0.10.0
libtpu: 0.0.40
codegen_flags: <defaults>
</compile_context>

<pallas_src>
import functools
import math

import numpy as np

import jax
import jax.numpy as jnp
from jax import lax
from jax.experimental import pallas as pl
from jax.experimental.pallas import tpu as pltpu

BN_EPS = 1e-5
LANE = 128
SUBLANE = 8


def _round_up(x, m):
    return (x + m - 1) // m * m


# ----------------------------------------------------------------------------
# Pallas kernels
# ----------------------------------------------------------------------------

def _conv3d_kernel(xprev_ref, xcur_ref, xnext_ref, w_ref, scale_ref, shift_ref,
                   mask_ref, out_ref, stat_ref, hbuf,
                   *, wi, pad0, mp_pad, dp, relu_pre):
    """One (n, d) output plane of fused [affine(+relu)] -> conv3x3x3 -> stats."""
    d = pl.program_id(1)
    cout = w_ref.shape[-1]

    # hoist the 9 spatial-tap row masks (static lane columns of the mask input)
    tap_mask = [mask_ref[:, j:j + 1] > 0.5 for j in range(9)]

    acc = jnp.zeros((mp_pad, cout), jnp.float32)
    for kd, x_ref in enumerate((xprev_ref, xcur_ref, xnext_ref)):
        # fused pre-transform: previous BatchNorm affine (+ ReLU) on the fly
        h = x_ref[0, 0] * scale_ref[...] + shift_ref[...]
        if relu_pre:
            h = jnp.maximum(h, 0.0)
        # depth zero-padding: d-1 / d+1 planes vanish at the volume edges
        if kd == 0:
            h = jnp.where(d >= 1, h, 0.0)
        elif kd == 2:
            h = jnp.where(d <= dp - 2, h, 0.0)
        # stage the plane with a row halo so the 9 (kh, kw) taps become plain
        # static VMEM slices; out-of-plane rows are killed by tap_mask.
        hbuf[pad0:pad0 + mp_pad, :] = h
        for j in range(9):
            dh, dw = j // 3 - 1, j % 3 - 1
            off = dh * wi + dw
            shifted = hbuf[pad0 + off:pad0 + off + mp_pad, :]
            tap = jnp.where(tap_mask[j], shifted, 0.0)
            acc = acc + jnp.dot(tap, w_ref[kd * 9 + j],
                                preferred_element_type=jnp.float32)

    out_ref[0, 0] = acc
    # per-plane partial (sum, sum of squares) for the next BatchNorm
    row = lax.broadcasted_iota(jnp.int32, (8, 1), 0)
    s = jnp.sum(acc, axis=0, keepdims=True)
    ss = jnp.sum(acc * acc, axis=0, keepdims=True)
    stat_ref[0, 0] = jnp.where(row == 0, s, jnp.where(row == 1, ss, 0.0))


def _bn_add_relu_kernel(y1_ref, s1_ref, b1_ref, y2_ref, s2_ref, b2_ref, o_ref):
    """relu(bn1(y1) + bn_sc(ysc)) on one plane (BNs in per-channel affine form)."""
    z1 = y1_ref[0, 0] * s1_ref[...] + b1_ref[...]
    z2 = y2_ref[0, 0] * s2_ref[...] + b2_ref[...]
    o_ref[0, 0] = jnp.maximum(z1 + z2, 0.0)


# ----------------------------------------------------------------------------
# Pallas wrappers
# ----------------------------------------------------------------------------

def _tap_masks(h, w, mp_pad):
    """(mp_pad, 128) f32; column j = validity of spatial tap j for each row."""
    r = np.arange(mp_pad)
    hh, ww = r // w, r % w
    valid = r < h * w
    cols = []
    for dh in (-1, 0, 1):
        for dw in (-1, 0, 1):
            cols.append(valid & (hh + dh >= 0) & (hh + dh < h)
                        & (ww + dw >= 0) & (ww + dw < w))
    m = np.stack(cols, axis=1).astype(np.float32)            # (mp_pad, 9)
    m = np.pad(m, ((0, 0), (0, LANE - 9)))                   # lane-dense block
    return jnp.asarray(m)


def _conv3d_pallas(x_planes, w27, pre_scale, pre_shift, *, hw, relu_pre):
    """3x3x3 conv (stride 1, pad 1, no bias) on plane-flattened NDHWC input.

    x_planes : (N, Dp, mp_pad, cin_p) f32, rows = flattened (h, w) (padded)
    w27      : (27, cin_p, cout_p)    f32 taps, kd*9 + kh*3 + kw ordering
    pre_*    : (1, cin_p)             per-channel affine folded into the load
    returns  : conv output (N, Dp, mp_pad, cout_p) and per-plane stats
               (N, Dp, 8, cout_p) with row 0 = sum, row 1 = sum of squares.
    """
    n, dp, mp_pad, cin_p = x_planes.shape
    cout_p = w27.shape[-1]
    h, w = hw
    mask = _tap_masks(h, w, mp_pad)
    pad0 = _round_up(w + 1, SUBLANE)
    buf_rows = mp_pad + 2 * pad0

    kernel = functools.partial(_conv3d_kernel, wi=w, pad0=pad0, mp_pad=mp_pad,
                               dp=dp, relu_pre=relu_pre)

    plane = (1, 1, mp_pad, cin_p)
    x_prev = pl.BlockSpec(plane, lambda i, j: (i, jnp.maximum(j - 1, 0), 0, 0))
    x_cur = pl.BlockSpec(plane, lambda i, j: (i, j, 0, 0))
    x_next = pl.BlockSpec(plane, lambda i, j: (i, jnp.minimum(j + 1, dp - 1), 0, 0))

    flops = 2 * n * dp * mp_pad * 27 * cin_p * cout_p
    bytes_accessed = 4 * (3 * n * dp * mp_pad * cin_p
                          + n * dp * (mp_pad + 8) * cout_p
                          + 27 * cin_p * cout_p)

    out, stat = pl.pallas_call(
        kernel,
        out_shape=(jax.ShapeDtypeStruct((n, dp, mp_pad, cout_p), jnp.float32),
                   jax.ShapeDtypeStruct((n, dp, 8, cout_p), jnp.float32)),
        grid_spec=pltpu.PrefetchScalarGridSpec(
            num_scalar_prefetch=0,
            grid=(n, dp),
            in_specs=[
                x_prev, x_cur, x_next,
                # weights / affine / masks are grid-invariant -> DMA'd once
                pl.BlockSpec((27, cin_p, cout_p), lambda i, j: (0, 0, 0)),
                pl.BlockSpec((1, cin_p), lambda i, j: (0, 0)),
                pl.BlockSpec((1, cin_p), lambda i, j: (0, 0)),
                pl.BlockSpec((mp_pad, LANE), lambda i, j: (0, 0)),
            ],
            out_specs=[
                pl.BlockSpec((1, 1, mp_pad, cout_p), lambda i, j: (i, j, 0, 0)),
                pl.BlockSpec((1, 1, 8, cout_p), lambda i, j: (i, j, 0, 0)),
            ],
            scratch_shapes=[pltpu.VMEM((buf_rows, cin_p), jnp.float32)]),
        compiler_params=pltpu.CompilerParams(
            dimension_semantics=("parallel", "parallel")),
        cost_estimate=pl.CostEstimate(flops=flops, transcendentals=0,
                                      bytes_accessed=bytes_accessed),
    )(x_planes, x_planes, x_planes, w27, pre_scale, pre_shift, mask)
    return out, stat


def _bn_add_relu_pallas(y1, s1, b1, ysc, ssc, bsc):
    n, dp, mp_pad, cp = y1.shape
    blk = pl.BlockSpec((1, 1, mp_pad, cp), lambda i, j: (i, j, 0, 0))
    vec = pl.BlockSpec((1, cp), lambda i, j: (0, 0))
    return pl.pallas_call(
        _bn_add_relu_kernel,
        out_shape=jax.ShapeDtypeStruct((n, dp, mp_pad, cp), jnp.float32),
        grid_spec=pltpu.PrefetchScalarGridSpec(
            num_scalar_prefetch=0,
            grid=(n, dp),
            in_specs=[blk, vec, vec, blk, vec, vec],
            out_specs=blk),
        compiler_params=pltpu.CompilerParams(
            dimension_semantics=("parallel", "parallel")),
    )(y1, s1, b1, ysc, ssc, bsc)


# ----------------------------------------------------------------------------
# layout / BN glue
# ----------------------------------------------------------------------------

def _to_planes(x_ndhwc, cp):
    n, d, h, w, c = x_ndhwc.shape
    mp = h * w
    mp_pad = _round_up(mp, SUBLANE)
    x = x_ndhwc.reshape(n, d, mp, c)
    return jnp.pad(x, ((0, 0), (0, 0), (0, mp_pad - mp), (0, cp - c)))


def _prep_weight(w_dhwio, cin_p, cout_p):
    kd, kh, kw, ci, co = w_dhwio.shape
    wp = jnp.pad(w_dhwio.astype(jnp.float32),
                 ((0, 0), (0, 0), (0, 0), (0, cin_p - ci), (0, cout_p - co)))
    return wp.reshape(kd * kh * kw, cin_p, cout_p)


def _bn_affine(stat, gamma, beta, count, cp):
    """Reduce per-plane (sum, sum^2) partials to BN scale/shift vectors."""
    s = jnp.sum(stat[:, :, 0, :], axis=(0, 1))
    ss = jnp.sum(stat[:, :, 1, :], axis=(0, 1))
    mean = s / count
    var = jnp.maximum(ss / count - mean * mean, 0.0)
    g = jnp.pad(gamma.astype(jnp.float32), (0, cp - gamma.shape[0]))
    b = jnp.pad(beta.astype(jnp.float32), (0, cp - beta.shape[0]))
    scale = g * lax.rsqrt(var + BN_EPS)
    shift = b - mean * scale
    return scale.reshape(1, cp), shift.reshape(1, cp)


def _upsample_planes(planes, s, d, h, w):
    # TODO(synk): fold into the conv kernel's index math instead of jnp.repeat.
    n, _, _, cp = planes.shape
    x = planes[:, :, :h * w, :].reshape(n, d, h, w, cp)
    x = jnp.repeat(jnp.repeat(jnp.repeat(x, s, axis=1), s, axis=2), s, axis=3)
    return _to_planes(x, cp)


# ----------------------------------------------------------------------------
# module
# ----------------------------------------------------------------------------

def init_params(key, in_planes, stride=1, out_channels=None, dtype=jnp.float32):
    if out_channels is not None and stride != 1:
        planes = out_channels
    else:
        planes = int(in_planes / stride)
    k = jax.random.split(key, 5)

    def conv_w(kk, cin, cout):
        bound = 1.0 / math.sqrt(cin * 27)
        return jax.random.uniform(kk, (3, 3, 3, cin, cout), dtype, -bound, bound)

    def conv_b(kk, cin, cout):
        bound = 1.0 / math.sqrt(cin * 27)
        return jax.random.uniform(kk, (cout,), dtype, -bound, bound)

    return dict(
        # conv2 = conv3x3x3(in_planes, in_planes), bias=False ; bn2
        w2=conv_w(k[0], in_planes, in_planes),
        g2=jnp.ones((in_planes,), dtype), be2=jnp.zeros((in_planes,), dtype),
        # conv1 = ResizeConv3d(in_planes, planes) (bias=True) ; bn1
        w1=conv_w(k[1], in_planes, planes), b1=conv_b(k[2], in_planes, planes),
        g1=jnp.ones((planes,), dtype), be1=jnp.zeros((planes,), dtype),
        # shortcut = ResizeConv3d(in_planes, planes) (bias=True) + BatchNorm3d
        wsc=conv_w(k[3], in_planes, planes), bsc=conv_b(k[4], in_planes, planes),
        gsc=jnp.ones((planes,), dtype), besc=jnp.zeros((planes,), dtype),
    )


def basic_decoder_block(x_ncdhw, params, stride=1):
    """Forward pass of BasicDecoderBlock (BatchNorm in training-mode forward)."""
    n, cin, d, h, w = x_ncdhw.shape
    planes = params["w1"].shape[-1]
    cin_p = _round_up(cin, LANE)
    cout_p = _round_up(planes, LANE)

    x = jnp.transpose(x_ncdhw, (0, 2, 3, 4, 1)).astype(jnp.float32)     # NDHWC
    xpl = _to_planes(x, cin_p)                                          # (n,d,mp_pad,cin_p)

    ident_scale = jnp.ones((1, cin_p), jnp.float32)
    ident_shift = jnp.zeros((1, cin_p), jnp.float32)

    # out = relu(bn2(conv2(x))): conv + fused stats; the normalisation itself is
    # folded into the next conv's input load (one HBM round trip saved).
    w2 = _prep_weight(params["w2"], cin_p, cin_p)
    y2, st2 = _conv3d_pallas(xpl, w2, ident_scale, ident_shift,
                             hw=(h, w), relu_pre=False)
    sc2, sh2 = _bn_affine(st2, params["g2"], params["be2"], n * d * h * w, cin_p)

    if stride > 1:
        # nearest upsample commutes with the per-channel bn2+relu transform, so
        # the raw conv2 output can be upsampled before the fused normalise.
        y2u = _upsample_planes(y2, stride, d, h, w)
        xu = _upsample_planes(xpl, stride, d, h, w)
        du, hu, wu = d * stride, h * stride, w * stride
    else:
        y2u, xu, du, hu, wu = y2, xpl, d, h, w

    # conv1 (bn2+relu fused into the load) and shortcut conv.  Their biases are
    # dropped: a bias followed by training-mode BatchNorm cancels exactly.
    w1 = _prep_weight(params["w1"], cin_p, cout_p)
    wsc = _prep_weight(params["wsc"], cin_p, cout_p)
    y1, st1 = _conv3d_pallas(y2u, w1, sc2, sh2, hw=(hu, wu), relu_pre=True)
    ysc, stsc = _conv3d_pallas(xu, wsc, ident_scale, ident_shift,
                               hw=(hu, wu), relu_pre=False)

    cnt = n * du * hu * wu
    sc1, sh1 = _bn_affine(st1, params["g1"], params["be1"], cnt, cout_p)
    scs, shs = _bn_affine(stsc, params["gsc"], params["besc"], cnt, cout_p)

    # out = relu(bn1(y1) + bn_sc(ysc))
    out = _bn_add_relu_pallas(y1, sc1, sh1, ysc, scs, shs)

    out = out[:, :, :hu * wu, :planes].reshape(n, du, hu, wu, planes)
    return jnp.transpose(out, (0, 4, 1, 2, 3))                          # NCDHW


# ----------------------------------------------------------------------------
# reference (pure jnp / XLA)
# ----------------------------------------------------------------------------

def _reference(x_ncdhw, params, stride=1):
    def conv(x, wt, b=None):
        y = lax.conv_general_dilated(
            x, wt, window_strides=(1, 1, 1), padding=((1, 1), (1, 1), (1, 1)),
            dimension_numbers=("NDHWC", "DHWIO", "NDHWC"))
        return y if b is None else y + b

    def bn(y, g, b):
        mean = y.mean(axis=(0, 1, 2, 3), keepdims=True)
        var = ((y - mean) ** 2).mean(axis=(0, 1, 2, 3), keepdims=True)
        return (y - mean) * lax.rsqrt(var + BN_EPS) * g + b

    def up(x, s):
        if s == 1:
            return x
        x = jnp.repeat(x, s, axis=1)
        x = jnp.repeat(x, s, axis=2)
        return jnp.repeat(x, s, axis=3)

    x = jnp.transpose(x_ncdhw, (0, 2, 3, 4, 1))
    hidden = jnp.maximum(bn(conv(x, params["w2"]), params["g2"], params["be2"]), 0.0)
    y1 = conv(up(hidden, stride), params["w1"], params["b1"])
    ysc = conv(up(x, stride), params["wsc"], params["bsc"])
    out = jnp.maximum(bn(y1, params["g1"], params["be1"])
                      + bn(ysc, params["gsc"], params["besc"]), 0.0)
    return jnp.transpose(out, (0, 4, 1, 2, 3))


if __name__ == "__main__":
    N, C, D, H, W = 2, 4, 8, 8, 8
    stride = 1                      # module default (planes == in_planes)
    key = jax.random.PRNGKey(0)
    kx, kp = jax.random.split(key)
    x = jax.random.normal(kx, (N, C, D, H, W), jnp.float32)
    params = init_params(kp, in_planes=C, stride=stride)

    fwd = jax.jit(functools.partial(basic_decoder_block, stride=stride))
    y = jax.block_until_ready(fwd(x, params))
    assert y.shape == (N, C, D * stride, H * stride, W * stride), y.shape

    y_ref = _reference(x, params, stride=stride)
    err = float(jnp.max(jnp.abs(y - y_ref)))
    assert jnp.allclose(y, y_ref, atol=1e-3, rtol=1e-3), f"max abs err = {err}"
    print("KERNEL_OK")
</pallas_src>

<mosaic_0001>
module attributes {stable_mosaic.version = 11 : i64} {
  func.func @_conv3d_kernel(%arg0: i32, %arg1: i32, %arg2: memref<1x1x64x128xf32, #tpu.memory_space<vmem>>, %arg3: memref<1x1x64x128xf32, #tpu.memory_space<vmem>>, %arg4: memref<1x1x64x128xf32, #tpu.memory_space<vmem>>, %arg5: memref<27x128x128xf32, #tpu.memory_space<vmem>>, %arg6: memref<1x128xf32, #tpu.memory_space<vmem>>, %arg7: memref<1x128xf32, #tpu.memory_space<vmem>>, %arg8: memref<64x128xf32, #tpu.memory_space<vmem>>, %arg9: memref<1x1x64x128xf32, #tpu.memory_space<vmem>>, %arg10: memref<1x1x8x128xf32, #tpu.memory_space<vmem>>, %arg11: memref<96x128xf32, #tpu.memory_space<vmem>>) attributes {dimension_semantics = [#tpu.dimension_semantics<parallel>, #tpu.dimension_semantics<parallel>], iteration_bounds = array<i64: 2, 8>, scalar_prefetch = 0 : i64, scratch_operands = 1 : i64, tpu.core_type = #tpu.core_type<tc>, window_params = [{transform_indices = @transform_0, window_bounds = array<i64: 1, 1, 64, 128>}, {transform_indices = @transform_1, window_bounds = array<i64: 1, 1, 64, 128>}, {transform_indices = @transform_2, window_bounds = array<i64: 1, 1, 64, 128>}, {pipeline_mode = #tpu.pipeline_mode<synchronous>, transform_indices = @transform_3, window_bounds = array<i64: 27, 128, 128>}, {pipeline_mode = #tpu.pipeline_mode<synchronous>, transform_indices = @transform_4, window_bounds = array<i64: 1, 128>}, {pipeline_mode = #tpu.pipeline_mode<synchronous>, transform_indices = @transform_5, window_bounds = array<i64: 1, 128>}, {pipeline_mode = #tpu.pipeline_mode<synchronous>, transform_indices = @transform_6, window_bounds = array<i64: 64, 128>}, {transform_indices = @transform_7, window_bounds = array<i64: 1, 1, 64, 128>}, {transform_indices = @transform_8, window_bounds = array<i64: 1, 1, 8, 128>}]} {
    %c0 = arith.constant 0 : index
    %c0_0 = arith.constant 0 : index
    %0 = vector.load %arg8[%c0, %c0_0] : memref<64x128xf32, #tpu.memory_space<vmem>>, vector<64x1xf32>
    %cst = arith.constant 5.000000e-01 : f32
    %1 = vector.broadcast %cst : f32 to vector<64x1xf32>
    %2 = arith.cmpf ogt, %0, %1 : vector<64x1xf32>
    %c0_1 = arith.constant 0 : index
    %c1 = arith.constant 1 : index
    %3 = vector.load %arg8[%c0_1, %c1] : memref<64x128xf32, #tpu.memory_space<vmem>>, vector<64x1xf32>
    %cst_2 = arith.constant 5.000000e-01 : f32
    %4 = vector.broadcast %cst_2 : f32 to vector<64x1xf32>
    %5 = arith.cmpf ogt, %3, %4 : vector<64x1xf32>
    %c0_3 = arith.constant 0 : index
    %c2 = arith.constant 2 : index
    %6 = vector.load %arg8[%c0_3, %c2] : memref<64x128xf32, #tpu.memory_space<vmem>>, vector<64x1xf32>
    %cst_4 = arith.constant 5.000000e-01 : f32
    %7 = vector.broadcast %cst_4 : f32 to vector<64x1xf32>
    %8 = arith.cmpf ogt, %6, %7 : vector<64x1xf32>
    %c0_5 = arith.constant 0 : index
    %c3 = arith.constant 3 : index
    %9 = vector.load %arg8[%c0_5, %c3] : memref<64x128xf32, #tpu.memory_space<vmem>>, vector<64x1xf32>
    %cst_6 = arith.constant 5.000000e-01 : f32
    %10 = vector.broadcast %cst_6 : f32 to vector<64x1xf32>
    %11 = arith.cmpf ogt, %9, %10 : vector<64x1xf32>
    %c0_7 = arith.constant 0 : index
    %c4 = arith.constant 4 : index
    %12 = vector.load %arg8[%c0_7, %c4] : memref<64x128xf32, #tpu.memory_space<vmem>>, vector<64x1xf32>
    %cst_8 = arith.constant 5.000000e-01 : f32
    %13 = vector.broadcast %cst_8 : f32 to vector<64x1xf32>
    %14 = arith.cmpf ogt, %12, %13 : vector<64x1xf32>
    %c0_9 = arith.constant 0 : index
    %c5 = arith.constant 5 : index
    %15 = vector.load %arg8[%c0_9, %c5] : memref<64x128xf32, #tpu.memory_space<vmem>>, vector<64x1xf32>
    %cst_10 = arith.constant 5.000000e-01 : f32
    %16 = vector.broadcast %cst_10 : f32 to vector<64x1xf32>
    %17 = arith.cmpf ogt, %15, %16 : vector<64x1xf32>
    %c0_11 = arith.constant 0 : index
    %c6 = arith.constant 6 : index
    %18 = vector.load %arg8[%c0_11, %c6] : memref<64x128xf32, #tpu.memory_space<vmem>>, vector<64x1xf32>
    %cst_12 = arith.constant 5.000000e-01 : f32
    %19 = vector.broadcast %cst_12 : f32 to vector<64x1xf32>
    %20 = arith.cmpf ogt, %18, %19 : vector<64x1xf32>
    %c0_13 = arith.constant 0 : index
    %c7 = arith.constant 7 : index
    %21 = vector.load %arg8[%c0_13, %c7] : memref<64x128xf32, #tpu.memory_space<vmem>>, vector<64x1xf32>
    %cst_14 = arith.constant 5.000000e-01 : f32
    %22 = vector.broadcast %cst_14 : f32 to vector<64x1xf32>
    %23 = arith.cmpf ogt, %21, %22 : vector<64x1xf32>
    %c0_15 = arith.constant 0 : index
    %c8 = arith.constant 8 : index
    %24 = vector.load %arg8[%c0_15, %c8] : memref<64x128xf32, #tpu.memory_space<vmem>>, vector<64x1xf32>
    %cst_16 = arith.constant 5.000000e-01 : f32
    %25 = vector.broadcast %cst_16 : f32 to vector<64x1xf32>
    %26 = arith.cmpf ogt, %24, %25 : vector<64x1xf32>
    %cst_17 = arith.constant 0.000000e+00 : f32
    %27 = vector.broadcast %cst_17 : f32 to vector<64x128xf32>
    %c0_18 = arith.constant 0 : index
    %c0_19 = arith.constant 0 : index
    %c0_20 = arith.constant 0 : index
    %c0_21 = arith.constant 0 : index
    %28 = vector.load %arg2[%c0_18, %c0_19, %c0_20, %c0_21] : memref<1x1x64x128xf32, #tpu.memory_space<vmem>>, vector<1x1x64x128xf32>
    %29 = vector.shape_cast %28 : vector<1x1x64x128xf32> to vector<64x128xf32>
    %c0_22 = arith.constant 0 : index
    %c0_23 = arith.constant 0 : index
    %30 = vector.load %arg6[%c0_22, %c0_23] : memref<1x128xf32, #tpu.memory_space<vmem>>, vector<1x128xf32>
    %31 = vector.broadcast %30 : vector<1x128xf32> to vector<64x128xf32>
    %32 = arith.mulf %29, %31 : vector<64x128xf32>
    %c0_24 = arith.constant 0 : index
    %c0_25 = arith.constant 0 : index
    %33 = vector.load %arg7[%c0_24, %c0_25] : memref<1x128xf32, #tpu.memory_space<vmem>>, vector<1x128xf32>
    %34 = vector.broadcast %33 : vector<1x128xf32> to vector<64x128xf32>
    %35 = arith.addf %32, %34 : vector<64x128xf32>
    %cst_26 = arith.constant 0.000000e+00 : f32
    %36 = vector.broadcast %cst_26 : f32 to vector<64x128xf32>
    %37 = arith.maximumf %35, %36 : vector<64x128xf32>
    %c1_i32 = arith.constant 1 : i32
    %38 = arith.cmpi sge, %arg1, %c1_i32 : i32
    %cst_27 = arith.constant 0.000000e+00 : f32
    %39 = vector.broadcast %cst_27 : f32 to vector<64x128xf32>
    %40 = arith.select %38, %37, %39 : vector<64x128xf32>
    %c16 = arith.constant 16 : index
    %c0_28 = arith.constant 0 : index
    %41 = vector.load %arg11[%c16, %c0_28] : memref<96x128xf32, #tpu.memory_space<vmem>>, vector<64x128xf32>
    tpu.vector_store %arg11[%c16, %c0_28], %40 {strides = array<i32>} : memref<96x128xf32, #tpu.memory_space<vmem>>, vector<64x128xf32>,
    %c7_29 = arith.constant 7 : index
    %c0_30 = arith.constant 0 : index
    %42 = vector.load %arg11[%c7_29, %c0_30] : memref<96x128xf32, #tpu.memory_space<vmem>>, vector<64x128xf32>
    %cst_31 = arith.constant 0.000000e+00 : f32
    %43 = vector.shape_cast %2 : vector<64x1xi1> to vector<64x1xi1>
    %44 = vector.broadcast %43 : vector<64x1xi1> to vector<64x128xi1>
    %45 = vector.broadcast %cst_31 : f32 to vector<64x128xf32>
    %46 = arith.select %44, %42, %45 : vector<64x128xi1>, vector<64x128xf32>
    %c0_32 = arith.constant 0 : index
    %c0_33 = arith.constant 0 : index
    %c0_34 = arith.constant 0 : index
    %47 = vector.load %arg5[%c0_32, %c0_33, %c0_34] : memref<27x128x128xf32, #tpu.memory_space<vmem>>, vector<1x128x128xf32>
    %48 = vector.shape_cast %47 : vector<1x128x128xf32> to vector<128x128xf32>
    %cst_35 = arith.constant dense<0.000000e+00> : vector<64x128xf32>
    %49 = tpu.matmul %46, %48, %cst_35 {dimension_numbers = #tpu.dot_dimension_numbers<[1], [0], [0], [1], [0, 0, 1, 1], [], []>} : vector<64x128xf32>, vector<128x128xf32>, vector<64x128xf32> -> vector<64x128xf32>
    %50 = arith.addf %27, %49 : vector<64x128xf32>
    %c8_36 = arith.constant 8 : index
    %c0_37 = arith.constant 0 : index
    %51 = vector.load %arg11[%c8_36, %c0_37] : memref<96x128xf32, #tpu.memory_space<vmem>>, vector<64x128xf32>
    %cst_38 = arith.constant 0.000000e+00 : f32
    %52 = vector.shape_cast %5 : vector<64x1xi1> to vector<64x1xi1>
    %53 = vector.broadcast %52 : vector<64x1xi1> to vector<64x128xi1>
    %54 = vector.broadcast %cst_38 : f32 to vector<64x128xf32>
    %55 = arith.select %53, %51, %54 : vector<64x128xi1>, vector<64x128xf32>
    %c1_39 = arith.constant 1 : index
    %c0_40 = arith.constant 0 : index
    %c0_41 = arith.constant 0 : index
    %56 = vector.load %arg5[%c1_39, %c0_40, %c0_41] : memref<27x128x128xf32, #tpu.memory_space<vmem>>, vector<1x128x128xf32>
    %57 = vector.shape_cast %56 : vector<1x128x128xf32> to vector<128x128xf32>
    %cst_42 = arith.constant dense<0.000000e+00> : vector<64x128xf32>
    %58 = tpu.matmul %55, %57, %cst_42 {dimension_numbers = #tpu.dot_dimension_numbers<[1], [0], [0], [1], [0, 0, 1, 1], [], []>} : vector<64x128xf32>, vector<128x128xf32>, vector<64x128xf32> -> vector<64x128xf32>
    %59 = arith.addf %50, %58 : vector<64x128xf32>
    %c9 = arith.constant 9 : index
    %c0_43 = arith.constant 0 : index
    %60 = vector.load %arg11[%c9, %c0_43] : memref<96x128xf32, #tpu.memory_space<vmem>>, vector<64x128xf32>
    %cst_44 = arith.constant 0.000000e+00 : f32
    %61 = vector.shape_cast %8 : vector<64x1xi1> to vector<64x1xi1>
    %62 = vector.broadcast %61 : vector<64x1xi1> to vector<64x128xi1>
    %63 = vector.broadcast %cst_44 : f32 to vector<64x128xf32>
    %64 = arith.select %62, %60, %63 : vector<64x128xi1>, vector<64x128xf32>
    %c2_45 = arith.constant 2 : index
    %c0_46 = arith.constant 0 : index
    %c0_47 = arith.constant 0 : index
    %65 = vector.load %arg5[%c2_45, %c0_46, %c0_47] : memref<27x128x128xf32, #tpu.memory_space<vmem>>, vector<1x128x128xf32>
    %66 = vector.shape_cast %65 : vector<1x128x128xf32> to vector<128x128xf32>
    %cst_48 = arith.constant dense<0.000000e+00> : vector<64x128xf32>
    %67 = tpu.matmul %64, %66, %cst_48 {dimension_numbers = #tpu.dot_dimension_numbers<[1], [0], [0], [1], [0, 0, 1, 1], [], []>} : vector<64x128xf32>, vector<128x128xf32>, vector<64x128xf32> -> vector<64x128xf32>
    %68 = arith.addf %59, %67 : vector<64x128xf32>
    %c15 = arith.constant 15 : index
    %c0_49 = arith.constant 0 : index
    %69 = vector.load %arg11[%c15, %c0_49] : memref<96x128xf32, #tpu.memory_space<vmem>>, vector<64x128xf32>
    %cst_50 = arith.constant 0.000000e+00 : f32
    %70 = vector.shape_cast %11 : vector<64x1xi1> to vector<64x1xi1>
    %71 = vector.broadcast %70 : vector<64x1xi1> to vector<64x128xi1>
    %72 = vector.broadcast %cst_50 : f32 to vector<64x128xf32>
    %73 = arith.select %71, %69, %72 : vector<64x128xi1>, vector<64x128xf32>
    %c3_51 = arith.constant 3 : index
    %c0_52 = arith.constant 0 : index
    %c0_53 = arith.constant 0 : index
    %74 = vector.load %arg5[%c3_51, %c0_52, %c0_53] : memref<27x128x128xf32, #tpu.memory_space<vmem>>, vector<1x128x128xf32>
    %75 = vector.shape_cast %74 : vector<1x128x128xf32> to vector<128x128xf32>
    %cst_54 = arith.constant dense<0.000000e+00> : vector<64x128xf32>
    %76 = tpu.matmul %73, %75, %cst_54 {dimension_numbers = #tpu.dot_dimension_numbers<[1], [0], [0], [1], [0, 0, 1, 1], [], []>} : vector<64x128xf32>, vector<128x128xf32>, vector<64x128xf32> -> vector<64x128xf32>
    %77 = arith.addf %68, %76 : vector<64x128xf32>
    %c16_55 = arith.constant 16 : index
    %c0_56 = arith.constant 0 : index
    %78 = vector.load %arg11[%c16_55, %c0_56] : memref<96x128xf32, #tpu.memory_space<vmem>>, vector<64x128xf32>
    %cst_57 = arith.constant 0.000000e+00 : f32
    %79 = vector.shape_cast %14 : vector<64x1xi1> to vector<64x1xi1>
    %80 = vector.broadcast %79 : vector<64x1xi1> to vector<64x128xi1>
    %81 = vector.broadcast %cst_57 : f32 to vector<64x128xf32>
    %82 = arith.select %80, %78, %81 : vector<64x128xi1>, vector<64x128xf32>
    %c4_58 = arith.constant 4 : index
    %c0_59 = arith.constant 0 : index
    %c0_60 = arith.constant 0 : index
    %83 = vector.load %arg5[%c4_58, %c0_59, %c0_60] : memref<27x128x128xf32, #tpu.memory_space<vmem>>, vector<1x128x128xf32>
    %84 = vector.shape_cast %83 : vector<1x128x128xf32> to vector<128x128xf32>
    %cst_61 = arith.constant dense<0.000000e+00> : vector<64x128xf32>
    %85 = tpu.matmul %82, %84, %cst_61 {dimension_numbers = #tpu.dot_dimension_numbers<[1], [0], [0], [1], [0, 0, 1, 1], [], []>} : vector<64x128xf32>, vector<128x128xf32>, vector<64x128xf32> -> vector<64x128xf32>
    %86 = arith.addf %77, %85 : vector<64x128xf32>
    %c17 = arith.constant 17 : index
    %c0_62 = arith.constant 0 : index
    %87 = vector.load %arg11[%c17, %c0_62] : memref<96x128xf32, #tpu.memory_space<vmem>>, vector<64x128xf32>
    %cst_63 = arith.constant 0.000000e+00 : f32
    %88 = vector.shape_cast %17 : vector<64x1xi1> to vector<64x1xi1>
    %89 = vector.broadcast %88 : vector<64x1xi1> to vector<64x128xi1>
    %90 = vector.broadcast %cst_63 : f32 to vector<64x128xf32>
    %91 = arith.select %89, %87, %90 : vector<64x128xi1>, vector<64x128xf32>
    %c5_64 = arith.constant 5 : index
    %c0_65 = arith.constant 0 : index
    %c0_66 = arith.constant 0 : index
    %92 = vector.load %arg5[%c5_64, %c0_65, %c0_66] : memref<27x128x128xf32, #tpu.memory_space<vmem>>, vector<1x128x128xf32>
    %93 = vector.shape_cast %92 : vector<1x128x128xf32> to vector<128x128xf32>
    %cst_67 = arith.constant dense<0.000000e+00> : vector<64x128xf32>
    %94 = tpu.matmul %91, %93, %cst_67 {dimension_numbers = #tpu.dot_dimension_numbers<[1], [0], [0], [1], [0, 0, 1, 1], [], []>} : vector<64x128xf32>, vector<128x128xf32>, vector<64x128xf32> -> vector<64x128xf32>
    %95 = arith.addf %86, %94 : vector<64x128xf32>
    %c23 = arith.constant 23 : index
    %c0_68 = arith.constant 0 : index
    %96 = vector.load %arg11[%c23, %c0_68] : memref<96x128xf32, #tpu.memory_space<vmem>>, vector<64x128xf32>
    %cst_69 = arith.constant 0.000000e+00 : f32
    %97 = vector.shape_cast %20 : vector<64x1xi1> to vector<64x1xi1>
    %98 = vector.broadcast %97 : vector<64x1xi1> to vector<64x128xi1>
    %99 = vector.broadcast %cst_69 : f32 to vector<64x128xf32>
    %100 = arith.select %98, %96, %99 : vector<64x128xi1>, vector<64x128xf32>
    %c6_70 = arith.constant 6 : index
    %c0_71 = arith.constant 0 : index
    %c0_72 = arith.constant 0 : index
    %101 = vector.load %arg5[%c6_70, %c0_71, %c0_72] : memref<27x128x128xf32, #tpu.memory_space<vmem>>, vector<1x128x128xf32>
    %102 = vector.shape_cast %101 : vector<1x128x128xf32> to vector<128x128xf32>
    %cst_73 = arith.constant dense<0.000000e+00> : vector<64x128xf32>
    %103 = tpu.matmul %100, %102, %cst_73 {dimension_numbers = #tpu.dot_dimension_numbers<[1], [0], [0], [1], [0, 0, 1, 1], [], []>} : vector<64x128xf32>, vector<128x128xf32>, vector<64x128xf32> -> vector<64x128xf32>
    %104 = arith.addf %95, %103 : vector<64x128xf32>
    %c24 = arith.constant 24 : index
    %c0_74 = arith.constant 0 : index
    %105 = vector.load %arg11[%c24, %c0_74] : memref<96x128xf32, #tpu.memory_space<vmem>>, vector<64x128xf32>
    %cst_75 = arith.constant 0.000000e+00 : f32
    %106 = vector.shape_cast %23 : vector<64x1xi1> to vector<64x1xi1>
    %107 = vector.broadcast %106 : vector<64x1xi1> to vector<64x128xi1>
    %108 = vector.broadcast %cst_75 : f32 to vector<64x128xf32>
    %109 = arith.select %107, %105, %108 : vector<64x128xi1>, vector<64x128xf32>
    %c7_76 = arith.constant 7 : index
    %c0_77 = arith.constant 0 : index
    %c0_78 = arith.constant 0 : index
    %110 = vector.load %arg5[%c7_76, %c0_77, %c0_78] : memref<27x128x128xf32, #tpu.memory_space<vmem>>, vector<1x128x128xf32>
    %111 = vector.shape_cast %110 : vector<1x128x128xf32> to vector<128x128xf32>
    %cst_79 = arith.constant dense<0.000000e+00> : vector<64x128xf32>
    %112 = tpu.matmul %109, %111, %cst_79 {dimension_numbers = #tpu.dot_dimension_numbers<[1], [0], [0], [1], [0, 0, 1, 1], [], []>} : vector<64x128xf32>, vector<128x128xf32>, vector<64x128xf32> -> vector<64x128xf32>
    %113 = arith.addf %104, %112 : vector<64x128xf32>
    %c25 = arith.constant 25 : index
    %c0_80 = arith.constant 0 : index
    %114 = vector.load %arg11[%c25, %c0_80] : memref<96x128xf32, #tpu.memory_space<vmem>>, vector<64x128xf32>
    %cst_81 = arith.constant 0.000000e+00 : f32
    %115 = vector.shape_cast %26 : vector<64x1xi1> to vector<64x1xi1>
    %116 = vector.broadcast %115 : vector<64x1xi1> to vector<64x128xi1>
    %117 = vector.broadcast %cst_81 : f32 to vector<64x128xf32>
    %118 = arith.select %116, %114, %117 : vector<64x128xi1>, vector<64x128xf32>
    %c8_82 = arith.constant 8 : index
    %c0_83 = arith.constant 0 : index
    %c0_84 = arith.constant 0 : index
    %119 = vector.load %arg5[%c8_82, %c0_83, %c0_84] : memref<27x128x128xf32, #tpu.memory_space<vmem>>, vector<1x128x128xf32>
    %120 = vector.shape_cast %119 : vector<1x128x128xf32> to vector<128x128xf32>
    %cst_85 = arith.constant dense<0.000000e+00> : vector<64x128xf32>
    %121 = tpu.matmul %118, %120, %cst_85 {dimension_numbers = #tpu.dot_dimension_numbers<[1], [0], [0], [1], [0, 0, 1, 1], [], []>} : vector<64x128xf32>, vector<128x128xf32>, vector<64x128xf32> -> vector<64x128xf32>
    %122 = arith.addf %113, %121 : vector<64x128xf32>
    %c0_86 = arith.constant 0 : index
    %c0_87 = arith.constant 0 : index
    %c0_88 = arith.constant 0 : index
    %c0_89 = arith.constant 0 : index
    %123 = vector.load %arg3[%c0_86, %c0_87, %c0_88, %c0_89] : memref<1x1x64x128xf32, #tpu.memory_space<vmem>>, vector<1x1x64x128xf32>
    %124 = vector.shape_cast %123 : vector<1x1x64x128xf32> to vector<64x128xf32>
    %c0_90 = arith.constant 0 : index
    %c0_91 = arith.constant 0 : index
    %125 = vector.load %arg6[%c0_90, %c0_91] : memref<1x128xf32, #tpu.memory_space<vmem>>, vector<1x128xf32>
    %126 = vector.broadcast %125 : vector<1x128xf32> to vector<64x128xf32>
    %127 = arith.mulf %124, %126 : vector<64x128xf32>
    %c0_92 = arith.constant 0 : index
    %c0_93 = arith.constant 0 : index
    %128 = vector.load %arg7[%c0_92, %c0_93] : memref<1x128xf32, #tpu.memory_space<vmem>>, vector<1x128xf32>
    %129 = vector.broadcast %128 : vector<1x128xf32> to vector<64x128xf32>
    %130 = arith.addf %127, %129 : vector<64x128xf32>
    %cst_94 = arith.constant 0.000000e+00 : f32
    %131 = vector.broadcast %cst_94 : f32 to vector<64x128xf32>
    %132 = arith.maximumf %130, %131 : vector<64x128xf32>
    %c16_95 = arith.constant 16 : index
    %c0_96 = arith.constant 0 : index
    %133 = vector.load %arg11[%c16_95, %c0_96] : memref<96x128xf32, #tpu.memory_space<vmem>>, vector<64x128xf32>
    tpu.vector_store %arg11[%c16_95, %c0_96], %132 {strides = array<i32>} : memref<96x128xf32, #tpu.memory_space<vmem>>, vector<64x128xf32>,
    %c7_97 = arith.constant 7 : index
    %c0_98 = arith.constant 0 : index
    %134 = vector.load %arg11[%c7_97, %c0_98] : memref<96x128xf32, #tpu.memory_space<vmem>>, vector<64x128xf32>
    %cst_99 = arith.constant 0.000000e+00 : f32
    %135 = vector.shape_cast %2 : vector<64x1xi1> to vector<64x1xi1>
    %136 = vector.broadcast %135 : vector<64x1xi1> to vector<64x128xi1>
    %137 = vector.broadcast %cst_99 : f32 to vector<64x128xf32>
    %138 = arith.select %136, %134, %137 : vector<64x128xi1>, vector<64x128xf32>
    %c9_100 = arith.constant 9 : index
    %c0_101 = arith.constant 0 : index
    %c0_102 = arith.constant 0 : index
    %139 = vector.load %arg5[%c9_100, %c0_101, %c0_102] : memref<27x128x128xf32, #tpu.memory_space<vmem>>, vector<1x128x128xf32>
    %140 = vector.shape_cast %139 : vector<1x128x128xf32> to vector<128x128xf32>
    %cst_103 = arith.constant dense<0.000000e+00> : vector<64x128xf32>
    %141 = tpu.matmul %138, %140, %cst_103 {dimension_numbers = #tpu.dot_dimension_numbers<[1], [0], [0], [1], [0, 0, 1, 1], [], []>} : vector<64x128xf32>, vector<128x128xf32>, vector<64x128xf32> -> vector<64x128xf32>
    %142 = arith.addf %122, %141 : vector<64x128xf32>
    %c8_104 = arith.constant 8 : index
    %c0_105 = arith.constant 0 : index
    %143 = vector.load %arg11[%c8_104, %c0_105] : memref<96x128xf32, #tpu.memory_space<vmem>>, vector<64x128xf32>
    %cst_106 = arith.constant 0.000000e+00 : f32
    %144 = vector.shape_cast %5 : vector<64x1xi1> to vector<64x1xi1>
    %145 = vector.broadcast %144 : vector<64x1xi1> to vector<64x128xi1>
    %146 = vector.broadcast %cst_106 : f32 to vector<64x128xf32>
    %147 = arith.select %145, %143, %146 : vector<64x128xi1>, vector<64x128xf32>
    %c10 = arith.constant 10 : index
    %c0_107 = arith.constant 0 : index
    %c0_108 = arith.constant 0 : index
    %148 = vector.load %arg5[%c10, %c0_107, %c0_108] : memref<27x128x128xf32, #tpu.memory_space<vmem>>, vector<1x128x128xf32>
    %149 = vector.shape_cast %148 : vector<1x128x128xf32> to vector<128x128xf32>
    %cst_109 = arith.constant dense<0.000000e+00> : vector<64x128xf32>
    %150 = tpu.matmul %147, %149, %cst_109 {dimension_numbers = #tpu.dot_dimension_numbers<[1], [0], [0], [1], [0, 0, 1, 1], [], []>} : vector<64x128xf32>, vector<128x128xf32>, vector<64x128xf32> -> vector<64x128xf32>
    %151 = arith.addf %142, %150 : vector<64x128xf32>
    %c9_110 = arith.constant 9 : index
    %c0_111 = arith.constant 0 : index
    %152 = vector.load %arg11[%c9_110, %c0_111] : memref<96x128xf32, #tpu.memory_space<vmem>>, vector<64x128xf32>
    %cst_112 = arith.constant 0.000000e+00 : f32
    %153 = vector.shape_cast %8 : vector<64x1xi1> to vector<64x1xi1>
    %154 = vector.broadcast %153 : vector<64x1xi1> to vector<64x128xi1>
    %155 = vector.broadcast %cst_112 : f32 to vector<64x128xf32>
    %156 = arith.select %154, %152, %155 : vector<64x128xi1>, vector<64x128xf32>
    %c11 = arith.constant 11 : index
    %c0_113 = arith.constant 0 : index
    %c0_114 = arith.constant 0 : index
    %157 = vector.load %arg5[%c11, %c0_113, %c0_114] : memref<27x128x128xf32, #tpu.memory_space<vmem>>, vector<1x128x128xf32>
    %158 = vector.shape_cast %157 : vector<1x128x128xf32> to vector<128x128xf32>
    %cst_115 = arith.constant dense<0.000000e+00> : vector<64x128xf32>
    %159 = tpu.matmul %156, %158, %cst_115 {dimension_numbers = #tpu.dot_dimension_numbers<[1], [0], [0], [1], [0, 0, 1, 1], [], []>} : vector<64x128xf32>, vector<128x128xf32>, vector<64x128xf32> -> vector<64x128xf32>
    %160 = arith.addf %151, %159 : vector<64x128xf32>
    %c15_116 = arith.constant 15 : index
    %c0_117 = arith.constant 0 : index
    %161 = vector.load %arg11[%c15_116, %c0_117] : memref<96x128xf32, #tpu.memory_space<vmem>>, vector<64x128xf32>
    %cst_118 = arith.constant 0.000000e+00 : f32
    %162 = vector.shape_cast %11 : vector<64x1xi1> to vector<64x1xi1>
    %163 = vector.broadcast %162 : vector<64x1xi1> to vector<64x128xi1>
    %164 = vector.broadcast %cst_118 : f32 to vector<64x128xf32>
    %165 = arith.select %163, %161, %164 : vector<64x128xi1>, vector<64x128xf32>
    %c12 = arith.constant 12 : index
    %c0_119 = arith.constant 0 : index
    %c0_120 = arith.constant 0 : index
    %166 = vector.load %arg5[%c12, %c0_119, %c0_120] : memref<27x128x128xf32, #tpu.memory_space<vmem>>, vector<1x128x128xf32>
    %167 = vector.shape_cast %166 : vector<1x128x128xf32> to vector<128x128xf32>
    %cst_121 = arith.constant dense<0.000000e+00> : vector<64x128xf32>
    %168 = tpu.matmul %165, %167, %cst_121 {dimension_numbers = #tpu.dot_dimension_numbers<[1], [0], [0], [1], [0, 0, 1, 1], [], []>} : vector<64x128xf32>, vector<128x128xf32>, vector<64x128xf32> -> vector<64x128xf32>
    %169 = arith.addf %160, %168 : vector<64x128xf32>
    %c16_122 = arith.constant 16 : index
    %c0_123 = arith.constant 0 : index
    %170 = vector.load %arg11[%c16_122, %c0_123] : memref<96x128xf32, #tpu.memory_space<vmem>>, vector<64x128xf32>
    %cst_124 = arith.constant 0.000000e+00 : f32
    %171 = vector.shape_cast %14 : vector<64x1xi1> to vector<64x1xi1>
    %172 = vector.broadcast %171 : vector<64x1xi1> to vector<64x128xi1>
    %173 = vector.broadcast %cst_124 : f32 to vector<64x128xf32>
    %174 = arith.select %172, %170, %173 : vector<64x128xi1>, vector<64x128xf32>
    %c13 = arith.constant 13 : index
    %c0_125 = arith.constant 0 : index
    %c0_126 = arith.constant 0 : index
    %175 = vector.load %arg5[%c13, %c0_125, %c0_126] : memref<27x128x128xf32, #tpu.memory_space<vmem>>, vector<1x128x128xf32>
    %176 = vector.shape_cast %175 : vector<1x128x128xf32> to vector<128x128xf32>
    %cst_127 = arith.constant dense<0.000000e+00> : vector<64x128xf32>
    %177 = tpu.matmul %174, %176, %cst_127 {dimension_numbers = #tpu.dot_dimension_numbers<[1], [0], [0], [1], [0, 0, 1, 1], [], []>} : vector<64x128xf32>, vector<128x128xf32>, vector<64x128xf32> -> vector<64x128xf32>
    %178 = arith.addf %169, %177 : vector<64x128xf32>
    %c17_128 = arith.constant 17 : index
    %c0_129 = arith.constant 0 : index
    %179 = vector.load %arg11[%c17_128, %c0_129] : memref<96x128xf32, #tpu.memory_space<vmem>>, vector<64x128xf32>
    %cst_130 = arith.constant 0.000000e+00 : f32
    %180 = vector.shape_cast %17 : vector<64x1xi1> to vector<64x1xi1>
    %181 = vector.broadcast %180 : vector<64x1xi1> to vector<64x128xi1>
    %182 = vector.broadcast %cst_130 : f32 to vector<64x128xf32>
    %183 = arith.select %181, %179, %182 : vector<64x128xi1>, vector<64x128xf32>
    %c14 = arith.constant 14 : index
    %c0_131 = arith.constant 0 : index
    %c0_132 = arith.constant 0 : index
    %184 = vector.load %arg5[%c14, %c0_131, %c0_132] : memref<27x128x128xf32, #tpu.memory_space<vmem>>, vector<1x128x128xf32>
    %185 = vector.shape_cast %184 : vector<1x128x128xf32> to vector<128x128xf32>
    %cst_133 = arith.constant dense<0.000000e+00> : vector<64x128xf32>
    %186 = tpu.matmul %183, %185, %cst_133 {dimension_numbers = #tpu.dot_dimension_numbers<[1], [0], [0], [1], [0, 0, 1, 1], [], []>} : vector<64x128xf32>, vector<128x128xf32>, vector<64x128xf32> -> vector<64x128xf32>
    %187 = arith.addf %178, %186 : vector<64x128xf32>
    %c23_134 = arith.constant 23 : index
    %c0_135 = arith.constant 0 : index
    %188 = vector.load %arg11[%c23_134, %c0_135] : memref<96x128xf32, #tpu.memory_space<vmem>>, vector<64x128xf32>
    %cst_136 = arith.constant 0.000000e+00 : f32
    %189 = vector.shape_cast %20 : vector<64x1xi1> to vector<64x1xi1>
    %190 = vector.broadcast %189 : vector<64x1xi1> to vector<64x128xi1>
    %191 = vector.broadcast %cst_136 : f32 to vector<64x128xf32>
    %192 = arith.select %190, %188, %191 : vector<64x128xi1>, vector<64x128xf32>
    %c15_137 = arith.constant 15 : index
    %c0_138 = arith.constant 0 : index
    %c0_139 = arith.constant 0 : index
    %193 = vector.load %arg5[%c15_137, %c0_138, %c0_139] : memref<27x128x128xf32, #tpu.memory_space<vmem>>, vector<1x128x128xf32>
    %194 = vector.shape_cast %193 : vector<1x128x128xf32> to vector<128x128xf32>
    %cst_140 = arith.constant dense<0.000000e+00> : vector<64x128xf32>
    %195 = tpu.matmul %192, %194, %cst_140 {dimension_numbers = #tpu.dot_dimension_numbers<[1], [0], [0], [1], [0, 0, 1, 1], [], []>} : vector<64x128xf32>, vector<128x128xf32>, vector<64x128xf32> -> vector<64x128xf32>
    %196 = arith.addf %187, %195 : vector<64x128xf32>
    %c24_141 = arith.constant 24 : index
    %c0_142 = arith.constant 0 : index
    %197 = vector.load %arg11[%c24_141, %c0_142] : memref<96x128xf32, #tpu.memory_space<vmem>>, vector<64x128xf32>
    %cst_143 = arith.constant 0.000000e+00 : f32
    %198 = vector.shape_cast %23 : vector<64x1xi1> to vector<64x1xi1>
    %199 = vector.broadcast %198 : vector<64x1xi1> to vector<64x128xi1>
    %200 = vector.broadcast %cst_143 : f32 to vector<64x128xf32>
    %201 = arith.select %199, %197, %200 : vector<64x128xi1>, vector<64x128xf32>
    %c16_144 = arith.constant 16 : index
    %c0_145 = arith.constant 0 : index
    %c0_146 = arith.constant 0 : index
    %202 = vector.load %arg5[%c16_144, %c0_145, %c0_146] : memref<27x128x128xf32, #tpu.memory_space<vmem>>, vector<1x128x128xf32>
    %203 = vector.shape_cast %202 : vector<1x128x128xf32> to vector<128x128xf32>
    %cst_147 = arith.constant dense<0.000000e+00> : vector<64x128xf32>
    %204 = tpu.matmul %201, %203, %cst_147 {dimension_numbers = #tpu.dot_dimension_numbers<[1], [0], [0], [1], [0, 0, 1, 1], [], []>} : vector<64x128xf32>, vector<128x128xf32>, vector<64x128xf32> -> vector<64x128xf32>
    %205 = arith.addf %196, %204 : vector<64x128xf32>
    %c25_148 = arith.constant 25 : index
    %c0_149 = arith.constant 0 : index
    %206 = vector.load %arg11[%c25_148, %c0_149] : memref<96x128xf32, #tpu.memory_space<vmem>>, vector<64x128xf32>
    %cst_150 = arith.constant 0.000000e+00 : f32
    %207 = vector.shape_cast %26 : vector<64x1xi1> to vector<64x1xi1>
    %208 = vector.broadcast %207 : vector<64x1xi1> to vector<64x128xi1>
    %209 = vector.broadcast %cst_150 : f32 to vector<64x128xf32>
    %210 = arith.select %208, %206, %209 : vector<64x128xi1>, vector<64x128xf32>
    %c17_151 = arith.constant 17 : index
    %c0_152 = arith.constant 0 : index
    %c0_153 = arith.constant 0 : index
    %211 = vector.load %arg5[%c17_151, %c0_152, %c0_153] : memref<27x128x128xf32, #tpu.memory_space<vmem>>, vector<1x128x128xf32>
    %212 = vector.shape_cast %211 : vector<1x128x128xf32> to vector<128x128xf32>
    %cst_154 = arith.constant dense<0.000000e+00> : vector<64x128xf32>
    %213 = tpu.matmul %210, %212, %cst_154 {dimension_numbers = #tpu.dot_dimension_numbers<[1], [0], [0], [1], [0, 0, 1, 1], [], []>} : vector<64x128xf32>, vector<128x128xf32>, vector<64x128xf32> -> vector<64x128xf32>
    %214 = arith.addf %205, %213 : vector<64x128xf32>
    %c0_155 = arith.constant 0 : index
    %c0_156 = arith.constant 0 : index
    %c0_157 = arith.constant 0 : index
    %c0_158 = arith.constant 0 : index
    %215 = vector.load %arg4[%c0_155, %c0_156, %c0_157, %c0_158] : memref<1x1x64x128xf32, #tpu.memory_space<vmem>>, vector<1x1x64x128xf32>
    %216 = vector.shape_cast %215 : vector<1x1x64x128xf32> to vector<64x128xf32>
    %c0_159 = arith.constant 0 : index
    %c0_160 = arith.constant 0 : index
    %217 = vector.load %arg6[%c0_159, %c0_160] : memref<1x128xf32, #tpu.memory_space<vmem>>, vector<1x128xf32>
    %218 = vector.broadcast %217 : vector<1x128xf32> to vector<64x128xf32>
    %219 = arith.mulf %216, %218 : vector<64x128xf32>
    %c0_161 = arith.constant 0 : index
    %c0_162 = arith.constant 0 : index
    %220 = vector.load %arg7[%c0_161, %c0_162] : memref<1x128xf32, #tpu.memory_space<vmem>>, vector<1x128xf32>
    %221 = vector.broadcast %220 : vector<1x128xf32> to vector<64x128xf32>
    %222 = arith.addf %219, %221 : vector<64x128xf32>
    %cst_163 = arith.constant 0.000000e+00 : f32
    %223 = vector.broadcast %cst_163 : f32 to vector<64x128xf32>
    %224 = arith.maximumf %222, %223 : vector<64x128xf32>
    %c6_i32 = arith.constant 6 : i32
    %225 = arith.cmpi sle, %arg1, %c6_i32 : i32
    %cst_164 = arith.constant 0.000000e+00 : f32
    %226 = vector.broadcast %cst_164 : f32 to vector<64x128xf32>
    %227 = arith.select %225, %224, %226 : vector<64x128xf32>
    %c16_165 = arith.constant 16 : index
    %c0_166 = arith.constant 0 : index
    %228 = vector.load %arg11[%c16_165, %c0_166] : memref<96x128xf32, #tpu.memory_space<vmem>>, vector<64x128xf32>
    tpu.vector_store %arg11[%c16_165, %c0_166], %227 {strides = array<i32>} : memref<96x128xf32, #tpu.memory_space<vmem>>, vector<64x128xf32>,
    %c7_167 = arith.constant 7 : index
    %c0_168 = arith.constant 0 : index
    %229 = vector.load %arg11[%c7_167, %c0_168] : memref<96x128xf32, #tpu.memory_space<vmem>>, vector<64x128xf32>
    %cst_169 = arith.constant 0.000000e+00 : f32
    %230 = vector.shape_cast %2 : vector<64x1xi1> to vector<64x1xi1>
    %231 = vector.broadcast %230 : vector<64x1xi1> to vector<64x128xi1>
    %232 = vector.broadcast %cst_169 : f32 to vector<64x128xf32>
    %233 = arith.select %231, %229, %232 : vector<64x128xi1>, vector<64x128xf32>
    %c18 = arith.constant 18 : index
    %c0_170 = arith.constant 0 : index
    %c0_171 = arith.constant 0 : index
    %234 = vector.load %arg5[%c18, %c0_170, %c0_171] : memref<27x128x128xf32, #tpu.memory_space<vmem>>, vector<1x128x128xf32>
    %235 = vector.shape_cast %234 : vector<1x128x128xf32> to vector<128x128xf32>
    %cst_172 = arith.constant dense<0.000000e+00> : vector<64x128xf32>
    %236 = tpu.matmul %233, %235, %cst_172 {dimension_numbers = #tpu.dot_dimension_numbers<[1], [0], [0], [1], [0, 0, 1, 1], [], []>} : vector<64x128xf32>, vector<128x128xf32>, vector<64x128xf32> -> vector<64x128xf32>
    %237 = arith.addf %214, %236 : vector<64x128xf32>
    %c8_173 = arith.constant 8 : index
    %c0_174 = arith.constant 0 : index
    %238 = vector.load %arg11[%c8_173, %c0_174] : memref<96x128xf32, #tpu.memory_space<vmem>>, vector<64x128xf32>
    %cst_175 = arith.constant 0.000000e+00 : f32
    %239 = vector.shape_cast %5 : vector<64x1xi1> to vector<64x1xi1>
    %240 = vector.broadcast %239 : vector<64x1xi1> to vector<64x128xi1>
    %241 = vector.broadcast %cst_175 : f32 to vector<64x128xf32>
    %242 = arith.select %240, %238, %241 : vector<64x128xi1>, vector<64x128xf32>
    %c19 = arith.constant 19 : index
    %c0_176 = arith.constant 0 : index
    %c0_177 = arith.constant 0 : index
    %243 = vector.load %arg5[%c19, %c0_176, %c0_177] : memref<27x128x128xf32, #tpu.memory_space<vmem>>, vector<1x128x128xf32>
    %244 = vector.shape_cast %243 : vector<1x128x128xf32> to vector<128x128xf32>
    %cst_178 = arith.constant dense<0.000000e+00> : vector<64x128xf32>
    %245 = tpu.matmul %242, %244, %cst_178 {dimension_numbers = #tpu.dot_dimension_numbers<[1], [0], [0], [1], [0, 0, 1, 1], [], []>} : vector<64x128xf32>, vector<128x128xf32>, vector<64x128xf32> -> vector<64x128xf32>
    %246 = arith.addf %237, %245 : vector<64x128xf32>
    %c9_179 = arith.constant 9 : index
    %c0_180 = arith.constant 0 : index
    %247 = vector.load %arg11[%c9_179, %c0_180] : memref<96x128xf32, #tpu.memory_space<vmem>>, vector<64x128xf32>
    %cst_181 = arith.constant 0.000000e+00 : f32
    %248 = vector.shape_cast %8 : vector<64x1xi1> to vector<64x1xi1>
    %249 = vector.broadcast %248 : vector<64x1xi1> to vector<64x128xi1>
    %250 = vector.broadcast %cst_181 : f32 to vector<64x128xf32>
    %251 = arith.select %249, %247, %250 : vector<64x128xi1>, vector<64x128xf32>
    %c20 = arith.constant 20 : index
    %c0_182 = arith.constant 0 : index
    %c0_183 = arith.constant 0 : index
    %252 = vector.load %arg5[%c20, %c0_182, %c0_183] : memref<27x128x128xf32, #tpu.memory_space<vmem>>, vector<1x128x128xf32>
    %253 = vector.shape_cast %252 : vector<1x128x128xf32> to vector<128x128xf32>
    %cst_184 = arith.constant dense<0.000000e+00> : vector<64x128xf32>
    %254 = tpu.matmul %251, %253, %cst_184 {dimension_numbers = #tpu.dot_dimension_numbers<[1], [0], [0], [1], [0, 0, 1, 1], [], []>} : vector<64x128xf32>, vector<128x128xf32>, vector<64x128xf32> -> vector<64x128xf32>
    %255 = arith.addf %246, %254 : vector<64x128xf32>
    %c15_185 = arith.constant 15 : index
    %c0_186 = arith.constant 0 : index
    %256 = vector.load %arg11[%c15_185, %c0_186] : memref<96x128xf32, #tpu.memory_space<vmem>>, vector<64x128xf32>
    %cst_187 = arith.constant 0.000000e+00 : f32
    %257 = vector.shape_cast %11 : vector<64x1xi1> to vector<64x1xi1>
    %258 = vector.broadcast %257 : vector<64x1xi1> to vector<64x128xi1>
    %259 = vector.broadcast %cst_187 : f32 to vector<64x128xf32>
    %260 = arith.select %258, %256, %259 : vector<64x128xi1>, vector<64x128xf32>
    %c21 = arith.constant 21 : index
    %c0_188 = arith.constant 0 : index
    %c0_189 = arith.constant 0 : index
    %261 = vector.load %arg5[%c21, %c0_188, %c0_189] : memref<27x128x128xf32, #tpu.memory_space<vmem>>, vector<1x128x128xf32>
    %262 = vector.shape_cast %261 : vector<1x128x128xf32> to vector<128x128xf32>
    %cst_190 = arith.constant dense<0.000000e+00> : vector<64x128xf32>
    %263 = tpu.matmul %260, %262, %cst_190 {dimension_numbers = #tpu.dot_dimension_numbers<[1], [0], [0], [1], [0, 0, 1, 1], [], []>} : vector<64x128xf32>, vector<128x128xf32>, vector<64x128xf32> -> vector<64x128xf32>
    %264 = arith.addf %255, %263 : vector<64x128xf32>
    %c16_191 = arith.constant 16 : index
    %c0_192 = arith.constant 0 : index
    %265 = vector.load %arg11[%c16_191, %c0_192] : memref<96x128xf32, #tpu.memory_space<vmem>>, vector<64x128xf32>
    %cst_193 = arith.constant 0.000000e+00 : f32
    %266 = vector.shape_cast %14 : vector<64x1xi1> to vector<64x1xi1>
    %267 = vector.broadcast %266 : vector<64x1xi1> to vector<64x128xi1>
    %268 = vector.broadcast %cst_193 : f32 to vector<64x128xf32>
    %269 = arith.select %267, %265, %268 : vector<64x128xi1>, vector<64x128xf32>
    %c22 = arith.constant 22 : index
    %c0_194 = arith.constant 0 : index
    %c0_195 = arith.constant 0 : index
    %270 = vector.load %arg5[%c22, %c0_194, %c0_195] : memref<27x128x128xf32, #tpu.memory_space<vmem>>, vector<1x128x128xf32>
    %271 = vector.shape_cast %270 : vector<1x128x128xf32> to vector<128x128xf32>
    %cst_196 = arith.constant dense<0.000000e+00> : vector<64x128xf32>
    %272 = tpu.matmul %269, %271, %cst_196 {dimension_numbers = #tpu.dot_dimension_numbers<[1], [0], [0], [1], [0, 0, 1, 1], [], []>} : vector<64x128xf32>, vector<128x128xf32>, vector<64x128xf32> -> vector<64x128xf32>
    %273 = arith.addf %264, %272 : vector<64x128xf32>
    %c17_197 = arith.constant 17 : index
    %c0_198 = arith.constant 0 : index
    %274 = vector.load %arg11[%c17_197, %c0_198] : memref<96x128xf32, #tpu.memory_space<vmem>>, vector<64x128xf32>
    %cst_199 = arith.constant 0.000000e+00 : f32
    %275 = vector.shape_cast %17 : vector<64x1xi1> to vector<64x1xi1>
    %276 = vector.broadcast %275 : vector<64x1xi1> to vector<64x128xi1>
    %277 = vector.broadcast %cst_199 : f32 to vector<64x128xf32>
    %278 = arith.select %276, %274, %277 : vector<64x128xi1>, vector<64x128xf32>
    %c23_200 = arith.constant 23 : index
    %c0_201 = arith.constant 0 : index
    %c0_202 = arith.constant 0 : index
    %279 = vector.load %arg5[%c23_200, %c0_201, %c0_202] : memref<27x128x128xf32, #tpu.memory_space<vmem>>, vector<1x128x128xf32>
    %280 = vector.shape_cast %279 : vector<1x128x128xf32> to vector<128x128xf32>
    %cst_203 = arith.constant dense<0.000000e+00> : vector<64x128xf32>
    %281 = tpu.matmul %278, %280, %cst_203 {dimension_numbers = #tpu.dot_dimension_numbers<[1], [0], [0], [1], [0, 0, 1, 1], [], []>} : vector<64x128xf32>, vector<128x128xf32>, vector<64x128xf32> -> vector<64x128xf32>
    %282 = arith.addf %273, %281 : vector<64x128xf32>
    %c23_204 = arith.constant 23 : index
    %c0_205 = arith.constant 0 : index
    %283 = vector.load %arg11[%c23_204, %c0_205] : memref<96x128xf32, #tpu.memory_space<vmem>>, vector<64x128xf32>
    %cst_206 = arith.constant 0.000000e+00 : f32
    %284 = vector.shape_cast %20 : vector<64x1xi1> to vector<64x1xi1>
    %285 = vector.broadcast %284 : vector<64x1xi1> to vector<64x128xi1>
    %286 = vector.broadcast %cst_206 : f32 to vector<64x128xf32>
    %287 = arith.select %285, %283, %286 : vector<64x128xi1>, vector<64x128xf32>
    %c24_207 = arith.constant 24 : index
    %c0_208 = arith.constant 0 : index
    %c0_209 = arith.constant 0 : index
    %288 = vector.load %arg5[%c24_207, %c0_208, %c0_209] : memref<27x128x128xf32, #tpu.memory_space<vmem>>, vector<1x128x128xf32>
    %289 = vector.shape_cast %288 : vector<1x128x128xf32> to vector<128x128xf32>
    %cst_210 = arith.constant dense<0.000000e+00> : vector<64x128xf32>
    %290 = tpu.matmul %287, %289, %cst_210 {dimension_numbers = #tpu.dot_dimension_numbers<[1], [0], [0], [1], [0, 0, 1, 1], [], []>} : vector<64x128xf32>, vector<128x128xf32>, vector<64x128xf32> -> vector<64x128xf32>
    %291 = arith.addf %282, %290 : vector<64x128xf32>
    %c24_211 = arith.constant 24 : index
    %c0_212 = arith.constant 0 : index
    %292 = vector.load %arg11[%c24_211, %c0_212] : memref<96x128xf32, #tpu.memory_space<vmem>>, vector<64x128xf32>
    %cst_213 = arith.constant 0.000000e+00 : f32
    %293 = vector.shape_cast %23 : vector<64x1xi1> to vector<64x1xi1>
    %294 = vector.broadcast %293 : vector<64x1xi1> to vector<64x128xi1>
    %295 = vector.broadcast %cst_213 : f32 to vector<64x128xf32>
    %296 = arith.select %294, %292, %295 : vector<64x128xi1>, vector<64x128xf32>
    %c25_214 = arith.constant 25 : index
    %c0_215 = arith.constant 0 : index
    %c0_216 = arith.constant 0 : index
    %297 = vector.load %arg5[%c25_214, %c0_215, %c0_216] : memref<27x128x128xf32, #tpu.memory_space<vmem>>, vector<1x128x128xf32>
    %298 = vector.shape_cast %297 : vector<1x128x128xf32> to vector<128x128xf32>
    %cst_217 = arith.constant dense<0.000000e+00> : vector<64x128xf32>
    %299 = tpu.matmul %296, %298, %cst_217 {dimension_numbers = #tpu.dot_dimension_numbers<[1], [0], [0], [1], [0, 0, 1, 1], [], []>} : vector<64x128xf32>, vector<128x128xf32>, vector<64x128xf32> -> vector<64x128xf32>
    %300 = arith.addf %291, %299 : vector<64x128xf32>
    %c25_218 = arith.constant 25 : index
    %c0_219 = arith.constant 0 : index
    %301 = vector.load %arg11[%c25_218, %c0_219] : memref<96x128xf32, #tpu.memory_space<vmem>>, vector<64x128xf32>
    %cst_220 = arith.constant 0.000000e+00 : f32
    %302 = vector.shape_cast %26 : vector<64x1xi1> to vector<64x1xi1>
    %303 = vector.broadcast %302 : vector<64x1xi1> to vector<64x128xi1>
    %304 = vector.broadcast %cst_220 : f32 to vector<64x128xf32>
    %305 = arith.select %303, %301, %304 : vector<64x128xi1>, vector<64x128xf32>
    %c26 = arith.constant 26 : index
    %c0_221 = arith.constant 0 : index
    %c0_222 = arith.constant 0 : index
    %306 = vector.load %arg5[%c26, %c0_221, %c0_222] : memref<27x128x128xf32, #tpu.memory_space<vmem>>, vector<1x128x128xf32>
    %307 = vector.shape_cast %306 : vector<1x128x128xf32> to vector<128x128xf32>
    %cst_223 = arith.constant dense<0.000000e+00> : vector<64x128xf32>
    %308 = tpu.matmul %305, %307, %cst_223 {dimension_numbers = #tpu.dot_dimension_numbers<[1], [0], [0], [1], [0, 0, 1, 1], [], []>} : vector<64x128xf32>, vector<128x128xf32>, vector<64x128xf32> -> vector<64x128xf32>
    %309 = arith.addf %300, %308 : vector<64x128xf32>
    %c0_224 = arith.constant 0 : index
    %c0_225 = arith.constant 0 : index
    %c0_226 = arith.constant 0 : index
    %c0_227 = arith.constant 0 : index
    %310 = vector.load %arg9[%c0_224, %c0_225, %c0_226, %c0_227] : memref<1x1x64x128xf32, #tpu.memory_space<vmem>>, vector<1x1x64x128xf32>
    %311 = vector.shape_cast %310 : vector<1x1x64x128xf32> to vector<64x128xf32>
    %312 = vector.shape_cast %309 : vector<64x128xf32> to vector<1x1x64x128xf32>
    tpu.vector_store %arg9[%c0_224, %c0_225, %c0_226, %c0_227], %312 {strides = array<i32>} : memref<1x1x64x128xf32, #tpu.memory_space<vmem>>, vector<1x1x64x128xf32>,
    %313 = tpu.iota {dimensions = array<i32: 0>} : vector<8x1xi32>
    %cst_228 = arith.constant dense<0.000000e+00> : vector<128xf32>
    %314 = vector.multi_reduction <add>, %309, %cst_228 [0] : vector<64x128xf32> to vector<128xf32>
    %315 = vector.shape_cast %314 : vector<128xf32> to vector<1x128xf32>
    %316 = arith.mulf %309, %309 : vector<64x128xf32>
    %cst_229 = arith.constant dense<0.000000e+00> : vector<128xf32>
    %317 = vector.multi_reduction <add>, %316, %cst_229 [0] : vector<64x128xf32> to vector<128xf32>
    %318 = vector.shape_cast %317 : vector<128xf32> to vector<1x128xf32>
    %c0_i32 = arith.constant 0 : i32
    %319 = vector.broadcast %c0_i32 : i32 to vector<8x1xi32>
    %320 = arith.cmpi eq, %313, %319 : vector<8x1xi32>
    %c1_i32_230 = arith.constant 1 : i32
    %321 = vector.broadcast %c1_i32_230 : i32 to vector<8x1xi32>
    %322 = arith.cmpi eq, %313, %321 : vector<8x1xi32>
    %cst_231 = arith.constant 0.000000e+00 : f32
    %323 = vector.shape_cast %322 : vector<8x1xi1> to vector<8x1xi1>
    %324 = vector.broadcast %323 : vector<8x1xi1> to vector<8x128xi1>
    %325 = vector.shape_cast %318 : vector<1x128xf32> to vector<1x128xf32>
    %326 = vector.broadcast %325 : vector<1x128xf32> to vector<8x128xf32>
    %327 = vector.broadcast %cst_231 : f32 to vector<8x128xf32>
    %328 = arith.select %324, %326, %327 : vector<8x128xi1>, vector<8x128xf32>
    %329 = vector.shape_cast %320 : vector<8x1xi1> to vector<8x1xi1>
    %330 = vector.broadcast %329 : vector<8x1xi1> to vector<8x128xi1>
    %331 = vector.shape_cast %315 : vector<1x128xf32> to vector<1x128xf32>
    %332 = vector.broadcast %331 : vector<1x128xf32> to vector<8x128xf32>
    %333 = arith.select %330, %332, %328 : vector<8x128xi1>, vector<8x128xf32>
    %c0_232 = arith.constant 0 : index
    %c0_233 = arith.constant 0 : index
    %c0_234 = arith.constant 0 : index
    %c0_235 = arith.constant 0 : index
    %334 = vector.load %arg10[%c0_232, %c0_233, %c0_234, %c0_235] : memref<1x1x8x128xf32, #tpu.memory_space<vmem>>, vector<1x1x8x128xf32>
    %335 = vector.shape_cast %334 : vector<1x1x8x128xf32> to vector<8x128xf32>
    %336 = vector.shape_cast %333 : vector<8x128xf32> to vector<1x1x8x128xf32>
    tpu.vector_store %arg10[%c0_232, %c0_233, %c0_234, %c0_235], %336 {strides = array<i32>} : memref<1x1x8x128xf32, #tpu.memory_space<vmem>>, vector<1x1x8x128xf32>,
    return
  }
  func.func @transform_0(%arg0: i32, %arg1: i32) -> (i32, i32, i32, i32) {
    %c1_i32 = arith.constant 1 : i32
    %0 = arith.subi %arg1, %c1_i32 : i32
    %c0_i32 = arith.constant 0 : i32
    %1 = arith.maxsi %0, %c0_i32 : i32
    %c0_i32_0 = arith.constant 0 : i32
    %c0_i32_1 = arith.constant 0 : i32
    %c0_i32_2 = arith.constant 0 : i32
    return %arg0, %1, %c0_i32_0, %c0_i32_1 : i32, i32, i32, i32
  }
  func.func @transform_1(%arg0: i32, %arg1: i32) -> (i32, i32, i32, i32) {
    %c0_i32 = arith.constant 0 : i32
    %c0_i32_0 = arith.constant 0 : i32
    %c0_i32_1 = arith.constant 0 : i32
    return %arg0, %arg1, %c0_i32, %c0_i32_0 : i32, i32, i32, i32
  }
  func.func @transform_2(%arg0: i32, %arg1: i32) -> (i32, i32, i32, i32) {
    %c1_i32 = arith.constant 1 : i32
    %0 = arith.addi %arg1, %c1_i32 : i32
    %c7_i32 = arith.constant 7 : i32
    %1 = arith.minsi %0, %c7_i32 : i32
    %c0_i32 = arith.constant 0 : i32
    %c0_i32_0 = arith.constant 0 : i32
    %c0_i32_1 = arith.constant 0 : i32
    return %arg0, %1, %c0_i32, %c0_i32_0 : i32, i32, i32, i32
  }
  func.func @transform_3(%arg0: i32, %arg1: i32) -> (i32, i32, i32) {
    %c0_i32 = arith.constant 0 : i32
    %c0_i32_0 = arith.constant 0 : i32
    %c0_i32_1 = arith.constant 0 : i32
    %c0_i32_2 = arith.constant 0 : i32
    return %c0_i32, %c0_i32_0, %c0_i32_1 : i32, i32, i32
  }
  func.func @transform_4(%arg0: i32, %arg1: i32) -> (i32, i32) {
    %c0_i32 = arith.constant 0 : i32
    %c0_i32_0 = arith.constant 0 : i32
    %c0_i32_1 = arith.constant 0 : i32
    return %c0_i32, %c0_i32_0 : i32, i32
  }
  func.func @transform_5(%arg0: i32, %arg1: i32) -> (i32, i32) {
    %c0_i32 = arith.constant 0 : i32
    %c0_i32_0 = arith.constant 0 : i32
    %c0_i32_1 = arith.constant 0 : i32
    return %c0_i32, %c0_i32_0 : i32, i32
  }
  func.func @transform_6(%arg0: i32, %arg1: i32) -> (i32, i32) {
    %c0_i32 = arith.constant 0 : i32
    %c0_i32_0 = arith.constant 0 : i32
    %c0_i32_1 = arith.constant 0 : i32
    return %c0_i32, %c0_i32_0 : i32, i32
  }
  func.func @transform_7(%arg0: i32, %arg1: i32) -> (i32, i32, i32, i32) {
    %c0_i32 = arith.constant 0 : i32
    %c0_i32_0 = arith.constant 0 : i32
    %c0_i32_1 = arith.constant 0 : i32
    return %arg0, %arg1, %c0_i32, %c0_i32_0 : i32, i32, i32, i32
  }
  func.func @transform_8(%arg0: i32, %arg1: i32) -> (i32, i32, i32, i32) {
    %c0_i32 = arith.constant 0 : i32
    %c0_i32_0 = arith.constant 0 : i32
    %c0_i32_1 = arith.constant 0 : i32
    return %arg0, %arg1, %c0_i32, %c0_i32_0 : i32, i32, i32, i32
  }
}

module attributes {stable_mosaic.version = 11 : i64} {
  func.func @_conv3d_kernel(%arg0: i32, %arg1: i32, %arg2: memref<1x1x64x128xf32, #tpu.memory_space<vmem>>, %arg3: memref<1x1x64x128xf32, #tpu.memory_space<vmem>>, %arg4: memref<1x1x64x128xf32, #tpu.memory_space<vmem>>, %arg5: memref<27x128x128xf32, #tpu.memory_space<vmem>>, %arg6: memref<1x128xf32, #tpu.memory_space<vmem>>, %arg7: memref<1x128xf32, #tpu.memory_space<vmem>>, %arg8: memref<64x128xf32, #tpu.memory_space<vmem>>, %arg9: memref<1x1x64x128xf32, #tpu.memory_space<vmem>>, %arg10: memref<1x1x8x128xf32, #tpu.memory_space<vmem>>, %arg11: memref<96x128xf32, #tpu.memory_space<vmem>>) attributes {dimension_semantics = [#tpu.dimension_semantics<parallel>, #tpu.dimension_semantics<parallel>], iteration_bounds = array<i64: 2, 8>, scalar_prefetch = 0 : i64, scratch_operands = 1 : i64, tpu.core_type = #tpu.core_type<tc>, window_params = [{transform_indices = @transform_0, window_bounds = array<i64: 1, 1, 64, 128>}, {transform_indices = @transform_1, window_bounds = array<i64: 1, 1, 64, 128>}, {transform_indices = @transform_2, window_bounds = array<i64: 1, 1, 64, 128>}, {pipeline_mode = #tpu.pipeline_mode<synchronous>, transform_indices = @transform_3, window_bounds = array<i64: 27, 128, 128>}, {pipeline_mode = #tpu.pipeline_mode<synchronous>, transform_indices = @transform_4, window_bounds = array<i64: 1, 128>}, {pipeline_mode = #tpu.pipeline_mode<synchronous>, transform_indices = @transform_5, window_bounds = array<i64: 1, 128>}, {pipeline_mode = #tpu.pipeline_mode<synchronous>, transform_indices = @transform_6, window_bounds = array<i64: 64, 128>}, {transform_indices = @transform_7, window_bounds = array<i64: 1, 1, 64, 128>}, {transform_indices = @transform_8, window_bounds = array<i64: 1, 1, 8, 128>}]} {
    %c0 = arith.constant 0 : index
    %c0_0 = arith.constant 0 : index
    %0 = vector.load %arg8[%c0, %c0_0] : memref<64x128xf32, #tpu.memory_space<vmem>>, vector<64x1xf32>
    %cst = arith.constant 5.000000e-01 : f32
    %1 = vector.broadcast %cst : f32 to vector<64x1xf32>
    %2 = arith.cmpf ogt, %0, %1 : vector<64x1xf32>
    %c0_1 = arith.constant 0 : index
    %c1 = arith.constant 1 : index
    %3 = vector.load %arg8[%c0_1, %c1] : memref<64x128xf32, #tpu.memory_space<vmem>>, vector<64x1xf32>
    %cst_2 = arith.constant 5.000000e-01 : f32
    %4 = vector.broadcast %cst_2 : f32 to vector<64x1xf32>
    %5 = arith.cmpf ogt, %3, %4 : vector<64x1xf32>
    %c0_3 = arith.constant 0 : index
    %c2 = arith.constant 2 : index
    %6 = vector.load %arg8[%c0_3, %c2] : memref<64x128xf32, #tpu.memory_space<vmem>>, vector<64x1xf32>
    %cst_4 = arith.constant 5.000000e-01 : f32
    %7 = vector.broadcast %cst_4 : f32 to vector<64x1xf32>
    %8 = arith.cmpf ogt, %6, %7 : vector<64x1xf32>
    %c0_5 = arith.constant 0 : index
    %c3 = arith.constant 3 : index
    %9 = vector.load %arg8[%c0_5, %c3] : memref<64x128xf32, #tpu.memory_space<vmem>>, vector<64x1xf32>
    %cst_6 = arith.constant 5.000000e-01 : f32
    %10 = vector.broadcast %cst_6 : f32 to vector<64x1xf32>
    %11 = arith.cmpf ogt, %9, %10 : vector<64x1xf32>
    %c0_7 = arith.constant 0 : index
    %c4 = arith.constant 4 : index
    %12 = vector.load %arg8[%c0_7, %c4] : memref<64x128xf32, #tpu.memory_space<vmem>>, vector<64x1xf32>
    %cst_8 = arith.constant 5.000000e-01 : f32
    %13 = vector.broadcast %cst_8 : f32 to vector<64x1xf32>
    %14 = arith.cmpf ogt, %12, %13 : vector<64x1xf32>
    %c0_9 = arith.constant 0 : index
    %c5 = arith.constant 5 : index
    %15 = vector.load %arg8[%c0_9, %c5] : memref<64x128xf32, #tpu.memory_space<vmem>>, vector<64x1xf32>
    %cst_10 = arith.constant 5.000000e-01 : f32
    %16 = vector.broadcast %cst_10 : f32 to vector<64x1xf32>
    %17 = arith.cmpf ogt, %15, %16 : vector<64x1xf32>
    %c0_11 = arith.constant 0 : index
    %c6 = arith.constant 6 : index
    %18 = vector.load %arg8[%c0_11, %c6] : memref<64x128xf32, #tpu.memory_space<vmem>>, vector<64x1xf32>
    %cst_12 = arith.constant 5.000000e-01 : f32
    %19 = vector.broadcast %cst_12 : f32 to vector<64x1xf32>
    %20 = arith.cmpf ogt, %18, %19 : vector<64x1xf32>
    %c0_13 = arith.constant 0 : index
    %c7 = arith.constant 7 : index
    %21 = vector.load %arg8[%c0_13, %c7] : memref<64x128xf32, #tpu.memory_space<vmem>>, vector<64x1xf32>
    %cst_14 = arith.constant 5.000000e-01 : f32
    %22 = vector.broadcast %cst_14 : f32 to vector<64x1xf32>
    %23 = arith.cmpf ogt, %21, %22 : vector<64x1xf32>
    %c0_15 = arith.constant 0 : index
    %c8 = arith.constant 8 : index
    %24 = vector.load %arg8[%c0_15, %c8] : memref<64x128xf32, #tpu.memory_space<vmem>>, vector<64x1xf32>
    %cst_16 = arith.constant 5.000000e-01 : f32
    %25 = vector.broadcast %cst_16 : f32 to vector<64x1xf32>
    %26 = arith.cmpf ogt, %24, %25 : vector<64x1xf32>
    %cst_17 = arith.constant 0.000000e+00 : f32
    %27 = vector.broadcast %cst_17 : f32 to vector<64x128xf32>
    %c0_18 = arith.constant 0 : index
    %c0_19 = arith.constant 0 : index
    %c0_20 = arith.constant 0 : index
    %c0_21 = arith.constant 0 : index
    %28 = vector.load %arg2[%c0_18, %c0_19, %c0_20, %c0_21] : memref<1x1x64x128xf32, #tpu.memory_space<vmem>>, vector<1x1x64x128xf32>
    %29 = vector.shape_cast %28 : vector<1x1x64x128xf32> to vector<64x128xf32>
    %c0_22 = arith.constant 0 : index
    %c0_23 = arith.constant 0 : index
    %30 = vector.load %arg6[%c0_22, %c0_23] : memref<1x128xf32, #tpu.memory_space<vmem>>, vector<1x128xf32>
    %31 = vector.broadcast %30 : vector<1x128xf32> to vector<64x128xf32>
    %32 = arith.mulf %29, %31 : vector<64x128xf32>
    %c0_24 = arith.constant 0 : index
    %c0_25 = arith.constant 0 : index
    %33 = vector.load %arg7[%c0_24, %c0_25] : memref<1x128xf32, #tpu.memory_space<vmem>>, vector<1x128xf32>
    %34 = vector.broadcast %33 : vector<1x128xf32> to vector<64x128xf32>
    %35 = arith.addf %32, %34 : vector<64x128xf32>
    %c1_i32 = arith.constant 1 : i32
    %36 = arith.cmpi sge, %arg1, %c1_i32 : i32
    %cst_26 = arith.constant 0.000000e+00 : f32
    %37 = vector.broadcast %cst_26 : f32 to vector<64x128xf32>
    %38 = arith.select %36, %35, %37 : vector<64x128xf32>
    %c16 = arith.constant 16 : index
    %c0_27 = arith.constant 0 : index
    %39 = vector.load %arg11[%c16, %c0_27] : memref<96x128xf32, #tpu.memory_space<vmem>>, vector<64x128xf32>
    tpu.vector_store %arg11[%c16, %c0_27], %38 {strides = array<i32>} : memref<96x128xf32, #tpu.memory_space<vmem>>, vector<64x128xf32>,
    %c7_28 = arith.constant 7 : index
    %c0_29 = arith.constant 0 : index
    %40 = vector.load %arg11[%c7_28, %c0_29] : memref<96x128xf32, #tpu.memory_space<vmem>>, vector<64x128xf32>
    %cst_30 = arith.constant 0.000000e+00 : f32
    %41 = vector.shape_cast %2 : vector<64x1xi1> to vector<64x1xi1>
    %42 = vector.broadcast %41 : vector<64x1xi1> to vector<64x128xi1>
    %43 = vector.broadcast %cst_30 : f32 to vector<64x128xf32>
    %44 = arith.select %42, %40, %43 : vector<64x128xi1>, vector<64x128xf32>
    %c0_31 = arith.constant 0 : index
    %c0_32 = arith.constant 0 : index
    %c0_33 = arith.constant 0 : index
    %45 = vector.load %arg5[%c0_31, %c0_32, %c0_33] : memref<27x128x128xf32, #tpu.memory_space<vmem>>, vector<1x128x128xf32>
    %46 = vector.shape_cast %45 : vector<1x128x128xf32> to vector<128x128xf32>
    %cst_34 = arith.constant dense<0.000000e+00> : vector<64x128xf32>
    %47 = tpu.matmul %44, %46, %cst_34 {dimension_numbers = #tpu.dot_dimension_numbers<[1], [0], [0], [1], [0, 0, 1, 1], [], []>} : vector<64x128xf32>, vector<128x128xf32>, vector<64x128xf32> -> vector<64x128xf32>
    %48 = arith.addf %27, %47 : vector<64x128xf32>
    %c8_35 = arith.constant 8 : index
    %c0_36 = arith.constant 0 : index
    %49 = vector.load %arg11[%c8_35, %c0_36] : memref<96x128xf32, #tpu.memory_space<vmem>>, vector<64x128xf32>
    %cst_37 = arith.constant 0.000000e+00 : f32
    %50 = vector.shape_cast %5 : vector<64x1xi1> to vector<64x1xi1>
    %51 = vector.broadcast %50 : vector<64x1xi1> to vector<64x128xi1>
    %52 = vector.broadcast %cst_37 : f32 to vector<64x128xf32>
    %53 = arith.select %51, %49, %52 : vector<64x128xi1>, vector<64x128xf32>
    %c1_38 = arith.constant 1 : index
    %c0_39 = arith.constant 0 : index
    %c0_40 = arith.constant 0 : index
    %54 = vector.load %arg5[%c1_38, %c0_39, %c0_40] : memref<27x128x128xf32, #tpu.memory_space<vmem>>, vector<1x128x128xf32>
    %55 = vector.shape_cast %54 : vector<1x128x128xf32> to vector<128x128xf32>
    %cst_41 = arith.constant dense<0.000000e+00> : vector<64x128xf32>
    %56 = tpu.matmul %53, %55, %cst_41 {dimension_numbers = #tpu.dot_dimension_numbers<[1], [0], [0], [1], [0, 0, 1, 1], [], []>} : vector<64x128xf32>, vector<128x128xf32>, vector<64x128xf32> -> vector<64x128xf32>
    %57 = arith.addf %48, %56 : vector<64x128xf32>
    %c9 = arith.constant 9 : index
    %c0_42 = arith.constant 0 : index
    %58 = vector.load %arg11[%c9, %c0_42] : memref<96x128xf32, #tpu.memory_space<vmem>>, vector<64x128xf32>
    %cst_43 = arith.constant 0.000000e+00 : f32
    %59 = vector.shape_cast %8 : vector<64x1xi1> to vector<64x1xi1>
    %60 = vector.broadcast %59 : vector<64x1xi1> to vector<64x128xi1>
    %61 = vector.broadcast %cst_43 : f32 to vector<64x128xf32>
    %62 = arith.select %60, %58, %61 : vector<64x128xi1>, vector<64x128xf32>
    %c2_44 = arith.constant 2 : index
    %c0_45 = arith.constant 0 : index
    %c0_46 = arith.constant 0 : index
    %63 = vector.load %arg5[%c2_44, %c0_45, %c0_46] : memref<27x128x128xf32, #tpu.memory_space<vmem>>, vector<1x128x128xf32>
    %64 = vector.shape_cast %63 : vector<1x128x128xf32> to vector<128x128xf32>
    %cst_47 = arith.constant dense<0.000000e+00> : vector<64x128xf32>
    %65 = tpu.matmul %62, %64, %cst_47 {dimension_numbers = #tpu.dot_dimension_numbers<[1], [0], [0], [1], [0, 0, 1, 1], [], []>} : vector<64x128xf32>, vector<128x128xf32>, vector<64x128xf32> -> vector<64x128xf32>
    %66 = arith.addf %57, %65 : vector<64x128xf32>
    %c15 = arith.constant 15 : index
    %c0_48 = arith.constant 0 : index
    %67 = vector.load %arg11[%c15, %c0_48] : memref<96x128xf32, #tpu.memory_space<vmem>>, vector<64x128xf32>
    %cst_49 = arith.constant 0.000000e+00 : f32
    %68 = vector.shape_cast %11 : vector<64x1xi1> to vector<64x1xi1>
    %69 = vector.broadcast %68 : vector<64x1xi1> to vector<64x128xi1>
    %70 = vector.broadcast %cst_49 : f32 to vector<64x128xf32>
    %71 = arith.select %69, %67, %70 : vector<64x128xi1>, vector<64x128xf32>
    %c3_50 = arith.constant 3 : index
    %c0_51 = arith.constant 0 : index
    %c0_52 = arith.constant 0 : index
    %72 = vector.load %arg5[%c3_50, %c0_51, %c0_52] : memref<27x128x128xf32, #tpu.memory_space<vmem>>, vector<1x128x128xf32>
    %73 = vector.shape_cast %72 : vector<1x128x128xf32> to vector<128x128xf32>
    %cst_53 = arith.constant dense<0.000000e+00> : vector<64x128xf32>
    %74 = tpu.matmul %71, %73, %cst_53 {dimension_numbers = #tpu.dot_dimension_numbers<[1], [0], [0], [1], [0, 0, 1, 1], [], []>} : vector<64x128xf32>, vector<128x128xf32>, vector<64x128xf32> -> vector<64x128xf32>
    %75 = arith.addf %66, %74 : vector<64x128xf32>
    %c16_54 = arith.constant 16 : index
    %c0_55 = arith.constant 0 : index
    %76 = vector.load %arg11[%c16_54, %c0_55] : memref<96x128xf32, #tpu.memory_space<vmem>>, vector<64x128xf32>
    %cst_56 = arith.constant 0.000000e+00 : f32
    %77 = vector.shape_cast %14 : vector<64x1xi1> to vector<64x1xi1>
    %78 = vector.broadcast %77 : vector<64x1xi1> to vector<64x128xi1>
    %79 = vector.broadcast %cst_56 : f32 to vector<64x128xf32>
    %80 = arith.select %78, %76, %79 : vector<64x128xi1>, vector<64x128xf32>
    %c4_57 = arith.constant 4 : index
    %c0_58 = arith.constant 0 : index
    %c0_59 = arith.constant 0 : index
    %81 = vector.load %arg5[%c4_57, %c0_58, %c0_59] : memref<27x128x128xf32, #tpu.memory_space<vmem>>, vector<1x128x128xf32>
    %82 = vector.shape_cast %81 : vector<1x128x128xf32> to vector<128x128xf32>
    %cst_60 = arith.constant dense<0.000000e+00> : vector<64x128xf32>
    %83 = tpu.matmul %80, %82, %cst_60 {dimension_numbers = #tpu.dot_dimension_numbers<[1], [0], [0], [1], [0, 0, 1, 1], [], []>} : vector<64x128xf32>, vector<128x128xf32>, vector<64x128xf32> -> vector<64x128xf32>
    %84 = arith.addf %75, %83 : vector<64x128xf32>
    %c17 = arith.constant 17 : index
    %c0_61 = arith.constant 0 : index
    %85 = vector.load %arg11[%c17, %c0_61] : memref<96x128xf32, #tpu.memory_space<vmem>>, vector<64x128xf32>
    %cst_62 = arith.constant 0.000000e+00 : f32
    %86 = vector.shape_cast %17 : vector<64x1xi1> to vector<64x1xi1>
    %87 = vector.broadcast %86 : vector<64x1xi1> to vector<64x128xi1>
    %88 = vector.broadcast %cst_62 : f32 to vector<64x128xf32>
    %89 = arith.select %87, %85, %88 : vector<64x128xi1>, vector<64x128xf32>
    %c5_63 = arith.constant 5 : index
    %c0_64 = arith.constant 0 : index
    %c0_65 = arith.constant 0 : index
    %90 = vector.load %arg5[%c5_63, %c0_64, %c0_65] : memref<27x128x128xf32, #tpu.memory_space<vmem>>, vector<1x128x128xf32>
    %91 = vector.shape_cast %90 : vector<1x128x128xf32> to vector<128x128xf32>
    %cst_66 = arith.constant dense<0.000000e+00> : vector<64x128xf32>
    %92 = tpu.matmul %89, %91, %cst_66 {dimension_numbers = #tpu.dot_dimension_numbers<[1], [0], [0], [1], [0, 0, 1, 1], [], []>} : vector<64x128xf32>, vector<128x128xf32>, vector<64x128xf32> -> vector<64x128xf32>
    %93 = arith.addf %84, %92 : vector<64x128xf32>
    %c23 = arith.constant 23 : index
    %c0_67 = arith.constant 0 : index
    %94 = vector.load %arg11[%c23, %c0_67] : memref<96x128xf32, #tpu.memory_space<vmem>>, vector<64x128xf32>
    %cst_68 = arith.constant 0.000000e+00 : f32
    %95 = vector.shape_cast %20 : vector<64x1xi1> to vector<64x1xi1>
    %96 = vector.broadcast %95 : vector<64x1xi1> to vector<64x128xi1>
    %97 = vector.broadcast %cst_68 : f32 to vector<64x128xf32>
    %98 = arith.select %96, %94, %97 : vector<64x128xi1>, vector<64x128xf32>
    %c6_69 = arith.constant 6 : index
    %c0_70 = arith.constant 0 : index
    %c0_71 = arith.constant 0 : index
    %99 = vector.load %arg5[%c6_69, %c0_70, %c0_71] : memref<27x128x128xf32, #tpu.memory_space<vmem>>, vector<1x128x128xf32>
    %100 = vector.shape_cast %99 : vector<1x128x128xf32> to vector<128x128xf32>
    %cst_72 = arith.constant dense<0.000000e+00> : vector<64x128xf32>
    %101 = tpu.matmul %98, %100, %cst_72 {dimension_numbers = #tpu.dot_dimension_numbers<[1], [0], [0], [1], [0, 0, 1, 1], [], []>} : vector<64x128xf32>, vector<128x128xf32>, vector<64x128xf32> -> vector<64x128xf32>
    %102 = arith.addf %93, %101 : vector<64x128xf32>
    %c24 = arith.constant 24 : index
    %c0_73 = arith.constant 0 : index
    %103 = vector.load %arg11[%c24, %c0_73] : memref<96x128xf32, #tpu.memory_space<vmem>>, vector<64x128xf32>
    %cst_74 = arith.constant 0.000000e+00 : f32
    %104 = vector.shape_cast %23 : vector<64x1xi1> to vector<64x1xi1>
    %105 = vector.broadcast %104 : vector<64x1xi1> to vector<64x128xi1>
    %106 = vector.broadcast %cst_74 : f32 to vector<64x128xf32>
    %107 = arith.select %105, %103, %106 : vector<64x128xi1>, vector<64x128xf32>
    %c7_75 = arith.constant 7 : index
    %c0_76 = arith.constant 0 : index
    %c0_77 = arith.constant 0 : index
    %108 = vector.load %arg5[%c7_75, %c0_76, %c0_77] : memref<27x128x128xf32, #tpu.memory_space<vmem>>, vector<1x128x128xf32>
    %109 = vector.shape_cast %108 : vector<1x128x128xf32> to vector<128x128xf32>
    %cst_78 = arith.constant dense<0.000000e+00> : vector<64x128xf32>
    %110 = tpu.matmul %107, %109, %cst_78 {dimension_numbers = #tpu.dot_dimension_numbers<[1], [0], [0], [1], [0, 0, 1, 1], [], []>} : vector<64x128xf32>, vector<128x128xf32>, vector<64x128xf32> -> vector<64x128xf32>
    %111 = arith.addf %102, %110 : vector<64x128xf32>
    %c25 = arith.constant 25 : index
    %c0_79 = arith.constant 0 : index
    %112 = vector.load %arg11[%c25, %c0_79] : memref<96x128xf32, #tpu.memory_space<vmem>>, vector<64x128xf32>
    %cst_80 = arith.constant 0.000000e+00 : f32
    %113 = vector.shape_cast %26 : vector<64x1xi1> to vector<64x1xi1>
    %114 = vector.broadcast %113 : vector<64x1xi1> to vector<64x128xi1>
    %115 = vector.broadcast %cst_80 : f32 to vector<64x128xf32>
    %116 = arith.select %114, %112, %115 : vector<64x128xi1>, vector<64x128xf32>
    %c8_81 = arith.constant 8 : index
    %c0_82 = arith.constant 0 : index
    %c0_83 = arith.constant 0 : index
    %117 = vector.load %arg5[%c8_81, %c0_82, %c0_83] : memref<27x128x128xf32, #tpu.memory_space<vmem>>, vector<1x128x128xf32>
    %118 = vector.shape_cast %117 : vector<1x128x128xf32> to vector<128x128xf32>
    %cst_84 = arith.constant dense<0.000000e+00> : vector<64x128xf32>
    %119 = tpu.matmul %116, %118, %cst_84 {dimension_numbers = #tpu.dot_dimension_numbers<[1], [0], [0], [1], [0, 0, 1, 1], [], []>} : vector<64x128xf32>, vector<128x128xf32>, vector<64x128xf32> -> vector<64x128xf32>
    %120 = arith.addf %111, %119 : vector<64x128xf32>
    %c0_85 = arith.constant 0 : index
    %c0_86 = arith.constant 0 : index
    %c0_87 = arith.constant 0 : index
    %c0_88 = arith.constant 0 : index
    %121 = vector.load %arg3[%c0_85, %c0_86, %c0_87, %c0_88] : memref<1x1x64x128xf32, #tpu.memory_space<vmem>>, vector<1x1x64x128xf32>
    %122 = vector.shape_cast %121 : vector<1x1x64x128xf32> to vector<64x128xf32>
    %c0_89 = arith.constant 0 : index
    %c0_90 = arith.constant 0 : index
    %123 = vector.load %arg6[%c0_89, %c0_90] : memref<1x128xf32, #tpu.memory_space<vmem>>, vector<1x128xf32>
    %124 = vector.broadcast %123 : vector<1x128xf32> to vector<64x128xf32>
    %125 = arith.mulf %122, %124 : vector<64x128xf32>
    %c0_91 = arith.constant 0 : index
    %c0_92 = arith.constant 0 : index
    %126 = vector.load %arg7[%c0_91, %c0_92] : memref<1x128xf32, #tpu.memory_space<vmem>>, vector<1x128xf32>
    %127 = vector.broadcast %126 : vector<1x128xf32> to vector<64x128xf32>
    %128 = arith.addf %125, %127 : vector<64x128xf32>
    %c16_93 = arith.constant 16 : index
    %c0_94 = arith.constant 0 : index
    %129 = vector.load %arg11[%c16_93, %c0_94] : memref<96x128xf32, #tpu.memory_space<vmem>>, vector<64x128xf32>
    tpu.vector_store %arg11[%c16_93, %c0_94], %128 {strides = array<i32>} : memref<96x128xf32, #tpu.memory_space<vmem>>, vector<64x128xf32>,
    %c7_95 = arith.constant 7 : index
    %c0_96 = arith.constant 0 : index
    %130 = vector.load %arg11[%c7_95, %c0_96] : memref<96x128xf32, #tpu.memory_space<vmem>>, vector<64x128xf32>
    %cst_97 = arith.constant 0.000000e+00 : f32
    %131 = vector.shape_cast %2 : vector<64x1xi1> to vector<64x1xi1>
    %132 = vector.broadcast %131 : vector<64x1xi1> to vector<64x128xi1>
    %133 = vector.broadcast %cst_97 : f32 to vector<64x128xf32>
    %134 = arith.select %132, %130, %133 : vector<64x128xi1>, vector<64x128xf32>
    %c9_98 = arith.constant 9 : index
    %c0_99 = arith.constant 0 : index
    %c0_100 = arith.constant 0 : index
    %135 = vector.load %arg5[%c9_98, %c0_99, %c0_100] : memref<27x128x128xf32, #tpu.memory_space<vmem>>, vector<1x128x128xf32>
    %136 = vector.shape_cast %135 : vector<1x128x128xf32> to vector<128x128xf32>
    %cst_101 = arith.constant dense<0.000000e+00> : vector<64x128xf32>
    %137 = tpu.matmul %134, %136, %cst_101 {dimension_numbers = #tpu.dot_dimension_numbers<[1], [0], [0], [1], [0, 0, 1, 1], [], []>} : vector<64x128xf32>, vector<128x128xf32>, vector<64x128xf32> -> vector<64x128xf32>
    %138 = arith.addf %120, %137 : vector<64x128xf32>
    %c8_102 = arith.constant 8 : index
    %c0_103 = arith.constant 0 : index
    %139 = vector.load %arg11[%c8_102, %c0_103] : memref<96x128xf32, #tpu.memory_space<vmem>>, vector<64x128xf32>
    %cst_104 = arith.constant 0.000000e+00 : f32
    %140 = vector.shape_cast %5 : vector<64x1xi1> to vector<64x1xi1>
    %141 = vector.broadcast %140 : vector<64x1xi1> to vector<64x128xi1>
    %142 = vector.broadcast %cst_104 : f32 to vector<64x128xf32>
    %143 = arith.select %141, %139, %142 : vector<64x128xi1>, vector<64x128xf32>
    %c10 = arith.constant 10 : index
    %c0_105 = arith.constant 0 : index
    %c0_106 = arith.constant 0 : index
    %144 = vector.load %arg5[%c10, %c0_105, %c0_106] : memref<27x128x128xf32, #tpu.memory_space<vmem>>, vector<1x128x128xf32>
    %145 = vector.shape_cast %144 : vector<1x128x128xf32> to vector<128x128xf32>
    %cst_107 = arith.constant dense<0.000000e+00> : vector<64x128xf32>
    %146 = tpu.matmul %143, %145, %cst_107 {dimension_numbers = #tpu.dot_dimension_numbers<[1], [0], [0], [1], [0, 0, 1, 1], [], []>} : vector<64x128xf32>, vector<128x128xf32>, vector<64x128xf32> -> vector<64x128xf32>
    %147 = arith.addf %138, %146 : vector<64x128xf32>
    %c9_108 = arith.constant 9 : index
    %c0_109 = arith.constant 0 : index
    %148 = vector.load %arg11[%c9_108, %c0_109] : memref<96x128xf32, #tpu.memory_space<vmem>>, vector<64x128xf32>
    %cst_110 = arith.constant 0.000000e+00 : f32
    %149 = vector.shape_cast %8 : vector<64x1xi1> to vector<64x1xi1>
    %150 = vector.broadcast %149 : vector<64x1xi1> to vector<64x128xi1>
    %151 = vector.broadcast %cst_110 : f32 to vector<64x128xf32>
    %152 = arith.select %150, %148, %151 : vector<64x128xi1>, vector<64x128xf32>
    %c11 = arith.constant 11 : index
    %c0_111 = arith.constant 0 : index
    %c0_112 = arith.constant 0 : index
    %153 = vector.load %arg5[%c11, %c0_111, %c0_112] : memref<27x128x128xf32, #tpu.memory_space<vmem>>, vector<1x128x128xf32>
    %154 = vector.shape_cast %153 : vector<1x128x128xf32> to vector<128x128xf32>
    %cst_113 = arith.constant dense<0.000000e+00> : vector<64x128xf32>
    %155 = tpu.matmul %152, %154, %cst_113 {dimension_numbers = #tpu.dot_dimension_numbers<[1], [0], [0], [1], [0, 0, 1, 1], [], []>} : vector<64x128xf32>, vector<128x128xf32>, vector<64x128xf32> -> vector<64x128xf32>
    %156 = arith.addf %147, %155 : vector<64x128xf32>
    %c15_114 = arith.constant 15 : index
    %c0_115 = arith.constant 0 : index
    %157 = vector.load %arg11[%c15_114, %c0_115] : memref<96x128xf32, #tpu.memory_space<vmem>>, vector<64x128xf32>
    %cst_116 = arith.constant 0.000000e+00 : f32
    %158 = vector.shape_cast %11 : vector<64x1xi1> to vector<64x1xi1>
    %159 = vector.broadcast %158 : vector<64x1xi1> to vector<64x128xi1>
    %160 = vector.broadcast %cst_116 : f32 to vector<64x128xf32>
    %161 = arith.select %159, %157, %160 : vector<64x128xi1>, vector<64x128xf32>
    %c12 = arith.constant 12 : index
    %c0_117 = arith.constant 0 : index
    %c0_118 = arith.constant 0 : index
    %162 = vector.load %arg5[%c12, %c0_117, %c0_118] : memref<27x128x128xf32, #tpu.memory_space<vmem>>, vector<1x128x128xf32>
    %163 = vector.shape_cast %162 : vector<1x128x128xf32> to vector<128x128xf32>
    %cst_119 = arith.constant dense<0.000000e+00> : vector<64x128xf32>
    %164 = tpu.matmul %161, %163, %cst_119 {dimension_numbers = #tpu.dot_dimension_numbers<[1], [0], [0], [1], [0, 0, 1, 1], [], []>} : vector<64x128xf32>, vector<128x128xf32>, vector<64x128xf32> -> vector<64x128xf32>
    %165 = arith.addf %156, %164 : vector<64x128xf32>
    %c16_120 = arith.constant 16 : index
    %c0_121 = arith.constant 0 : index
    %166 = vector.load %arg11[%c16_120, %c0_121] : memref<96x128xf32, #tpu.memory_space<vmem>>, vector<64x128xf32>
    %cst_122 = arith.constant 0.000000e+00 : f32
    %167 = vector.shape_cast %14 : vector<64x1xi1> to vector<64x1xi1>
    %168 = vector.broadcast %167 : vector<64x1xi1> to vector<64x128xi1>
    %169 = vector.broadcast %cst_122 : f32 to vector<64x128xf32>
    %170 = arith.select %168, %166, %169 : vector<64x128xi1>, vector<64x128xf32>
    %c13 = arith.constant 13 : index
    %c0_123 = arith.constant 0 : index
    %c0_124 = arith.constant 0 : index
    %171 = vector.load %arg5[%c13, %c0_123, %c0_124] : memref<27x128x128xf32, #tpu.memory_space<vmem>>, vector<1x128x128xf32>
    %172 = vector.shape_cast %171 : vector<1x128x128xf32> to vector<128x128xf32>
    %cst_125 = arith.constant dense<0.000000e+00> : vector<64x128xf32>
    %173 = tpu.matmul %170, %172, %cst_125 {dimension_numbers = #tpu.dot_dimension_numbers<[1], [0], [0], [1], [0, 0, 1, 1], [], []>} : vector<64x128xf32>, vector<128x128xf32>, vector<64x128xf32> -> vector<64x128xf32>
    %174 = arith.addf %165, %173 : vector<64x128xf32>
    %c17_126 = arith.constant 17 : index
    %c0_127 = arith.constant 0 : index
    %175 = vector.load %arg11[%c17_126, %c0_127] : memref<96x128xf32, #tpu.memory_space<vmem>>, vector<64x128xf32>
    %cst_128 = arith.constant 0.000000e+00 : f32
    %176 = vector.shape_cast %17 : vector<64x1xi1> to vector<64x1xi1>
    %177 = vector.broadcast %176 : vector<64x1xi1> to vector<64x128xi1>
    %178 = vector.broadcast %cst_128 : f32 to vector<64x128xf32>
    %179 = arith.select %177, %175, %178 : vector<64x128xi1>, vector<64x128xf32>
    %c14 = arith.constant 14 : index
    %c0_129 = arith.constant 0 : index
    %c0_130 = arith.constant 0 : index
    %180 = vector.load %arg5[%c14, %c0_129, %c0_130] : memref<27x128x128xf32, #tpu.memory_space<vmem>>, vector<1x128x128xf32>
    %181 = vector.shape_cast %180 : vector<1x128x128xf32> to vector<128x128xf32>
    %cst_131 = arith.constant dense<0.000000e+00> : vector<64x128xf32>
    %182 = tpu.matmul %179, %181, %cst_131 {dimension_numbers = #tpu.dot_dimension_numbers<[1], [0], [0], [1], [0, 0, 1, 1], [], []>} : vector<64x128xf32>, vector<128x128xf32>, vector<64x128xf32> -> vector<64x128xf32>
    %183 = arith.addf %174, %182 : vector<64x128xf32>
    %c23_132 = arith.constant 23 : index
    %c0_133 = arith.constant 0 : index
    %184 = vector.load %arg11[%c23_132, %c0_133] : memref<96x128xf32, #tpu.memory_space<vmem>>, vector<64x128xf32>
    %cst_134 = arith.constant 0.000000e+00 : f32
    %185 = vector.shape_cast %20 : vector<64x1xi1> to vector<64x1xi1>
    %186 = vector.broadcast %185 : vector<64x1xi1> to vector<64x128xi1>
    %187 = vector.broadcast %cst_134 : f32 to vector<64x128xf32>
    %188 = arith.select %186, %184, %187 : vector<64x128xi1>, vector<64x128xf32>
    %c15_135 = arith.constant 15 : index
    %c0_136 = arith.constant 0 : index
    %c0_137 = arith.constant 0 : index
    %189 = vector.load %arg5[%c15_135, %c0_136, %c0_137] : memref<27x128x128xf32, #tpu.memory_space<vmem>>, vector<1x128x128xf32>
    %190 = vector.shape_cast %189 : vector<1x128x128xf32> to vector<128x128xf32>
    %cst_138 = arith.constant dense<0.000000e+00> : vector<64x128xf32>
    %191 = tpu.matmul %188, %190, %cst_138 {dimension_numbers = #tpu.dot_dimension_numbers<[1], [0], [0], [1], [0, 0, 1, 1], [], []>} : vector<64x128xf32>, vector<128x128xf32>, vector<64x128xf32> -> vector<64x128xf32>
    %192 = arith.addf %183, %191 : vector<64x128xf32>
    %c24_139 = arith.constant 24 : index
    %c0_140 = arith.constant 0 : index
    %193 = vector.load %arg11[%c24_139, %c0_140] : memref<96x128xf32, #tpu.memory_space<vmem>>, vector<64x128xf32>
    %cst_141 = arith.constant 0.000000e+00 : f32
    %194 = vector.shape_cast %23 : vector<64x1xi1> to vector<64x1xi1>
    %195 = vector.broadcast %194 : vector<64x1xi1> to vector<64x128xi1>
    %196 = vector.broadcast %cst_141 : f32 to vector<64x128xf32>
    %197 = arith.select %195, %193, %196 : vector<64x128xi1>, vector<64x128xf32>
    %c16_142 = arith.constant 16 : index
    %c0_143 = arith.constant 0 : index
    %c0_144 = arith.constant 0 : index
    %198 = vector.load %arg5[%c16_142, %c0_143, %c0_144] : memref<27x128x128xf32, #tpu.memory_space<vmem>>, vector<1x128x128xf32>
    %199 = vector.shape_cast %198 : vector<1x128x128xf32> to vector<128x128xf32>
    %cst_145 = arith.constant dense<0.000000e+00> : vector<64x128xf32>
    %200 = tpu.matmul %197, %199, %cst_145 {dimension_numbers = #tpu.dot_dimension_numbers<[1], [0], [0], [1], [0, 0, 1, 1], [], []>} : vector<64x128xf32>, vector<128x128xf32>, vector<64x128xf32> -> vector<64x128xf32>
    %201 = arith.addf %192, %200 : vector<64x128xf32>
    %c25_146 = arith.constant 25 : index
    %c0_147 = arith.constant 0 : index
    %202 = vector.load %arg11[%c25_146, %c0_147] : memref<96x128xf32, #tpu.memory_space<vmem>>, vector<64x128xf32>
    %cst_148 = arith.constant 0.000000e+00 : f32
    %203 = vector.shape_cast %26 : vector<64x1xi1> to vector<64x1xi1>
    %204 = vector.broadcast %203 : vector<64x1xi1> to vector<64x128xi1>
    %205 = vector.broadcast %cst_148 : f32 to vector<64x128xf32>
    %206 = arith.select %204, %202, %205 : vector<64x128xi1>, vector<64x128xf32>
    %c17_149 = arith.constant 17 : index
    %c0_150 = arith.constant 0 : index
    %c0_151 = arith.constant 0 : index
    %207 = vector.load %arg5[%c17_149, %c0_150, %c0_151] : memref<27x128x128xf32, #tpu.memory_space<vmem>>, vector<1x128x128xf32>
    %208 = vector.shape_cast %207 : vector<1x128x128xf32> to vector<128x128xf32>
    %cst_152 = arith.constant dense<0.000000e+00> : vector<64x128xf32>
    %209 = tpu.matmul %206, %208, %cst_152 {dimension_numbers = #tpu.dot_dimension_numbers<[1], [0], [0], [1], [0, 0, 1, 1], [], []>} : vector<64x128xf32>, vector<128x128xf32>, vector<64x128xf32> -> vector<64x128xf32>
    %210 = arith.addf %201, %209 : vector<64x128xf32>
    %c0_153 = arith.constant 0 : index
    %c0_154 = arith.constant 0 : index
    %c0_155 = arith.constant 0 : index
    %c0_156 = arith.constant 0 : index
    %211 = vector.load %arg4[%c0_153, %c0_154, %c0_155, %c0_156] : memref<1x1x64x128xf32, #tpu.memory_space<vmem>>, vector<1x1x64x128xf32>
    %212 = vector.shape_cast %211 : vector<1x1x64x128xf32> to vector<64x128xf32>
    %c0_157 = arith.constant 0 : index
    %c0_158 = arith.constant 0 : index
    %213 = vector.load %arg6[%c0_157, %c0_158] : memref<1x128xf32, #tpu.memory_space<vmem>>, vector<1x128xf32>
    %214 = vector.broadcast %213 : vector<1x128xf32> to vector<64x128xf32>
    %215 = arith.mulf %212, %214 : vector<64x128xf32>
    %c0_159 = arith.constant 0 : index
    %c0_160 = arith.constant 0 : index
    %216 = vector.load %arg7[%c0_159, %c0_160] : memref<1x128xf32, #tpu.memory_space<vmem>>, vector<1x128xf32>
    %217 = vector.broadcast %216 : vector<1x128xf32> to vector<64x128xf32>
    %218 = arith.addf %215, %217 : vector<64x128xf32>
    %c6_i32 = arith.constant 6 : i32
    %219 = arith.cmpi sle, %arg1, %c6_i32 : i32
    %cst_161 = arith.constant 0.000000e+00 : f32
    %220 = vector.broadcast %cst_161 : f32 to vector<64x128xf32>
    %221 = arith.select %219, %218, %220 : vector<64x128xf32>
    %c16_162 = arith.constant 16 : index
    %c0_163 = arith.constant 0 : index
    %222 = vector.load %arg11[%c16_162, %c0_163] : memref<96x128xf32, #tpu.memory_space<vmem>>, vector<64x128xf32>
    tpu.vector_store %arg11[%c16_162, %c0_163], %221 {strides = array<i32>} : memref<96x128xf32, #tpu.memory_space<vmem>>, vector<64x128xf32>,
    %c7_164 = arith.constant 7 : index
    %c0_165 = arith.constant 0 : index
    %223 = vector.load %arg11[%c7_164, %c0_165] : memref<96x128xf32, #tpu.memory_space<vmem>>, vector<64x128xf32>
    %cst_166 = arith.constant 0.000000e+00 : f32
    %224 = vector.shape_cast %2 : vector<64x1xi1> to vector<64x1xi1>
    %225 = vector.broadcast %224 : vector<64x1xi1> to vector<64x128xi1>
    %226 = vector.broadcast %cst_166 : f32 to vector<64x128xf32>
    %227 = arith.select %225, %223, %226 : vector<64x128xi1>, vector<64x128xf32>
    %c18 = arith.constant 18 : index
    %c0_167 = arith.constant 0 : index
    %c0_168 = arith.constant 0 : index
    %228 = vector.load %arg5[%c18, %c0_167, %c0_168] : memref<27x128x128xf32, #tpu.memory_space<vmem>>, vector<1x128x128xf32>
    %229 = vector.shape_cast %228 : vector<1x128x128xf32> to vector<128x128xf32>
    %cst_169 = arith.constant dense<0.000000e+00> : vector<64x128xf32>
    %230 = tpu.matmul %227, %229, %cst_169 {dimension_numbers = #tpu.dot_dimension_numbers<[1], [0], [0], [1], [0, 0, 1, 1], [], []>} : vector<64x128xf32>, vector<128x128xf32>, vector<64x128xf32> -> vector<64x128xf32>
    %231 = arith.addf %210, %230 : vector<64x128xf32>
    %c8_170 = arith.constant 8 : index
    %c0_171 = arith.constant 0 : index
    %232 = vector.load %arg11[%c8_170, %c0_171] : memref<96x128xf32, #tpu.memory_space<vmem>>, vector<64x128xf32>
    %cst_172 = arith.constant 0.000000e+00 : f32
    %233 = vector.shape_cast %5 : vector<64x1xi1> to vector<64x1xi1>
    %234 = vector.broadcast %233 : vector<64x1xi1> to vector<64x128xi1>
    %235 = vector.broadcast %cst_172 : f32 to vector<64x128xf32>
    %236 = arith.select %234, %232, %235 : vector<64x128xi1>, vector<64x128xf32>
    %c19 = arith.constant 19 : index
    %c0_173 = arith.constant 0 : index
    %c0_174 = arith.constant 0 : index
    %237 = vector.load %arg5[%c19, %c0_173, %c0_174] : memref<27x128x128xf32, #tpu.memory_space<vmem>>, vector<1x128x128xf32>
    %238 = vector.shape_cast %237 : vector<1x128x128xf32> to vector<128x128xf32>
    %cst_175 = arith.constant dense<0.000000e+00> : vector<64x128xf32>
    %239 = tpu.matmul %236, %238, %cst_175 {dimension_numbers = #tpu.dot_dimension_numbers<[1], [0], [0], [1], [0, 0, 1, 1], [], []>} : vector<64x128xf32>, vector<128x128xf32>, vector<64x128xf32> -> vector<64x128xf32>
    %240 = arith.addf %231, %239 : vector<64x128xf32>
    %c9_176 = arith.constant 9 : index
    %c0_177 = arith.constant 0 : index
    %241 = vector.load %arg11[%c9_176, %c0_177] : memref<96x128xf32, #tpu.memory_space<vmem>>, vector<64x128xf32>
    %cst_178 = arith.constant 0.000000e+00 : f32
    %242 = vector.shape_cast %8 : vector<64x1xi1> to vector<64x1xi1>
    %243 = vector.broadcast %242 : vector<64x1xi1> to vector<64x128xi1>
    %244 = vector.broadcast %cst_178 : f32 to vector<64x128xf32>
    %245 = arith.select %243, %241, %244 : vector<64x128xi1>, vector<64x128xf32>
    %c20 = arith.constant 20 : index
    %c0_179 = arith.constant 0 : index
    %c0_180 = arith.constant 0 : index
    %246 = vector.load %arg5[%c20, %c0_179, %c0_180] : memref<27x128x128xf32, #tpu.memory_space<vmem>>, vector<1x128x128xf32>
    %247 = vector.shape_cast %246 : vector<1x128x128xf32> to vector<128x128xf32>
    %cst_181 = arith.constant dense<0.000000e+00> : vector<64x128xf32>
    %248 = tpu.matmul %245, %247, %cst_181 {dimension_numbers = #tpu.dot_dimension_numbers<[1], [0], [0], [1], [0, 0, 1, 1], [], []>} : vector<64x128xf32>, vector<128x128xf32>, vector<64x128xf32> -> vector<64x128xf32>
    %249 = arith.addf %240, %248 : vector<64x128xf32>
    %c15_182 = arith.constant 15 : index
    %c0_183 = arith.constant 0 : index
    %250 = vector.load %arg11[%c15_182, %c0_183] : memref<96x128xf32, #tpu.memory_space<vmem>>, vector<64x128xf32>
    %cst_184 = arith.constant 0.000000e+00 : f32
    %251 = vector.shape_cast %11 : vector<64x1xi1> to vector<64x1xi1>
    %252 = vector.broadcast %251 : vector<64x1xi1> to vector<64x128xi1>
    %253 = vector.broadcast %cst_184 : f32 to vector<64x128xf32>
    %254 = arith.select %252, %250, %253 : vector<64x128xi1>, vector<64x128xf32>
    %c21 = arith.constant 21 : index
    %c0_185 = arith.constant 0 : index
    %c0_186 = arith.constant 0 : index
    %255 = vector.load %arg5[%c21, %c0_185, %c0_186] : memref<27x128x128xf32, #tpu.memory_space<vmem>>, vector<1x128x128xf32>
    %256 = vector.shape_cast %255 : vector<1x128x128xf32> to vector<128x128xf32>
    %cst_187 = arith.constant dense<0.000000e+00> : vector<64x128xf32>
    %257 = tpu.matmul %254, %256, %cst_187 {dimension_numbers = #tpu.dot_dimension_numbers<[1], [0], [0], [1], [0, 0, 1, 1], [], []>} : vector<64x128xf32>, vector<128x128xf32>, vector<64x128xf32> -> vector<64x128xf32>
    %258 = arith.addf %249, %257 : vector<64x128xf32>
    %c16_188 = arith.constant 16 : index
    %c0_189 = arith.constant 0 : index
    %259 = vector.load %arg11[%c16_188, %c0_189] : memref<96x128xf32, #tpu.memory_space<vmem>>, vector<64x128xf32>
    %cst_190 = arith.constant 0.000000e+00 : f32
    %260 = vector.shape_cast %14 : vector<64x1xi1> to vector<64x1xi1>
    %261 = vector.broadcast %260 : vector<64x1xi1> to vector<64x128xi1>
    %262 = vector.broadcast %cst_190 : f32 to vector<64x128xf32>
    %263 = arith.select %261, %259, %262 : vector<64x128xi1>, vector<64x128xf32>
    %c22 = arith.constant 22 : index
    %c0_191 = arith.constant 0 : index
    %c0_192 = arith.constant 0 : index
    %264 = vector.load %arg5[%c22, %c0_191, %c0_192] : memref<27x128x128xf32, #tpu.memory_space<vmem>>, vector<1x128x128xf32>
    %265 = vector.shape_cast %264 : vector<1x128x128xf32> to vector<128x128xf32>
    %cst_193 = arith.constant dense<0.000000e+00> : vector<64x128xf32>
    %266 = tpu.matmul %263, %265, %cst_193 {dimension_numbers = #tpu.dot_dimension_numbers<[1], [0], [0], [1], [0, 0, 1, 1], [], []>} : vector<64x128xf32>, vector<128x128xf32>, vector<64x128xf32> -> vector<64x128xf32>
    %267 = arith.addf %258, %266 : vector<64x128xf32>
    %c17_194 = arith.constant 17 : index
    %c0_195 = arith.constant 0 : index
    %268 = vector.load %arg11[%c17_194, %c0_195] : memref<96x128xf32, #tpu.memory_space<vmem>>, vector<64x128xf32>
    %cst_196 = arith.constant 0.000000e+00 : f32
    %269 = vector.shape_cast %17 : vector<64x1xi1> to vector<64x1xi1>
    %270 = vector.broadcast %269 : vector<64x1xi1> to vector<64x128xi1>
    %271 = vector.broadcast %cst_196 : f32 to vector<64x128xf32>
    %272 = arith.select %270, %268, %271 : vector<64x128xi1>, vector<64x128xf32>
    %c23_197 = arith.constant 23 : index
    %c0_198 = arith.constant 0 : index
    %c0_199 = arith.constant 0 : index
    %273 = vector.load %arg5[%c23_197, %c0_198, %c0_199] : memref<27x128x128xf32, #tpu.memory_space<vmem>>, vector<1x128x128xf32>
    %274 = vector.shape_cast %273 : vector<1x128x128xf32> to vector<128x128xf32>
    %cst_200 = arith.constant dense<0.000000e+00> : vector<64x128xf32>
    %275 = tpu.matmul %272, %274, %cst_200 {dimension_numbers = #tpu.dot_dimension_numbers<[1], [0], [0], [1], [0, 0, 1, 1], [], []>} : vector<64x128xf32>, vector<128x128xf32>, vector<64x128xf32> -> vector<64x128xf32>
    %276 = arith.addf %267, %275 : vector<64x128xf32>
    %c23_201 = arith.constant 23 : index
    %c0_202 = arith.constant 0 : index
    %277 = vector.load %arg11[%c23_201, %c0_202] : memref<96x128xf32, #tpu.memory_space<vmem>>, vector<64x128xf32>
    %cst_203 = arith.constant 0.000000e+00 : f32
    %278 = vector.shape_cast %20 : vector<64x1xi1> to vector<64x1xi1>
    %279 = vector.broadcast %278 : vector<64x1xi1> to vector<64x128xi1>
    %280 = vector.broadcast %cst_203 : f32 to vector<64x128xf32>
    %281 = arith.select %279, %277, %280 : vector<64x128xi1>, vector<64x128xf32>
    %c24_204 = arith.constant 24 : index
    %c0_205 = arith.constant 0 : index
    %c0_206 = arith.constant 0 : index
    %282 = vector.load %arg5[%c24_204, %c0_205, %c0_206] : memref<27x128x128xf32, #tpu.memory_space<vmem>>, vector<1x128x128xf32>
    %283 = vector.shape_cast %282 : vector<1x128x128xf32> to vector<128x128xf32>
    %cst_207 = arith.constant dense<0.000000e+00> : vector<64x128xf32>
    %284 = tpu.matmul %281, %283, %cst_207 {dimension_numbers = #tpu.dot_dimension_numbers<[1], [0], [0], [1], [0, 0, 1, 1], [], []>} : vector<64x128xf32>, vector<128x128xf32>, vector<64x128xf32> -> vector<64x128xf32>
    %285 = arith.addf %276, %284 : vector<64x128xf32>
    %c24_208 = arith.constant 24 : index
    %c0_209 = arith.constant 0 : index
    %286 = vector.load %arg11[%c24_208, %c0_209] : memref<96x128xf32, #tpu.memory_space<vmem>>, vector<64x128xf32>
    %cst_210 = arith.constant 0.000000e+00 : f32
    %287 = vector.shape_cast %23 : vector<64x1xi1> to vector<64x1xi1>
    %288 = vector.broadcast %287 : vector<64x1xi1> to vector<64x128xi1>
    %289 = vector.broadcast %cst_210 : f32 to vector<64x128xf32>
    %290 = arith.select %288, %286, %289 : vector<64x128xi1>, vector<64x128xf32>
    %c25_211 = arith.constant 25 : index
    %c0_212 = arith.constant 0 : index
    %c0_213 = arith.constant 0 : index
    %291 = vector.load %arg5[%c25_211, %c0_212, %c0_213] : memref<27x128x128xf32, #tpu.memory_space<vmem>>, vector<1x128x128xf32>
    %292 = vector.shape_cast %291 : vector<1x128x128xf32> to vector<128x128xf32>
    %cst_214 = arith.constant dense<0.000000e+00> : vector<64x128xf32>
    %293 = tpu.matmul %290, %292, %cst_214 {dimension_numbers = #tpu.dot_dimension_numbers<[1], [0], [0], [1], [0, 0, 1, 1], [], []>} : vector<64x128xf32>, vector<128x128xf32>, vector<64x128xf32> -> vector<64x128xf32>
    %294 = arith.addf %285, %293 : vector<64x128xf32>
    %c25_215 = arith.constant 25 : index
    %c0_216 = arith.constant 0 : index
    %295 = vector.load %arg11[%c25_215, %c0_216] : memref<96x128xf32, #tpu.memory_space<vmem>>, vector<64x128xf32>
    %cst_217 = arith.constant 0.000000e+00 : f32
    %296 = vector.shape_cast %26 : vector<64x1xi1> to vector<64x1xi1>
    %297 = vector.broadcast %296 : vector<64x1xi1> to vector<64x128xi1>
    %298 = vector.broadcast %cst_217 : f32 to vector<64x128xf32>
    %299 = arith.select %297, %295, %298 : vector<64x128xi1>, vector<64x128xf32>
    %c26 = arith.constant 26 : index
    %c0_218 = arith.constant 0 : index
    %c0_219 = arith.constant 0 : index
    %300 = vector.load %arg5[%c26, %c0_218, %c0_219] : memref<27x128x128xf32, #tpu.memory_space<vmem>>, vector<1x128x128xf32>
    %301 = vector.shape_cast %300 : vector<1x128x128xf32> to vector<128x128xf32>
    %cst_220 = arith.constant dense<0.000000e+00> : vector<64x128xf32>
    %302 = tpu.matmul %299, %301, %cst_220 {dimension_numbers = #tpu.dot_dimension_numbers<[1], [0], [0], [1], [0, 0, 1, 1], [], []>} : vector<64x128xf32>, vector<128x128xf32>, vector<64x128xf32> -> vector<64x128xf32>
    %303 = arith.addf %294, %302 : vector<64x128xf32>
    %c0_221 = arith.constant 0 : index
    %c0_222 = arith.constant 0 : index
    %c0_223 = arith.constant 0 : index
    %c0_224 = arith.constant 0 : index
    %304 = vector.load %arg9[%c0_221, %c0_222, %c0_223, %c0_224] : memref<1x1x64x128xf32, #tpu.memory_space<vmem>>, vector<1x1x64x128xf32>
    %305 = vector.shape_cast %304 : vector<1x1x64x128xf32> to vector<64x128xf32>
    %306 = vector.shape_cast %303 : vector<64x128xf32> to vector<1x1x64x128xf32>
    tpu.vector_store %arg9[%c0_221, %c0_222, %c0_223, %c0_224], %306 {strides = array<i32>} : memref<1x1x64x128xf32, #tpu.memory_space<vmem>>, vector<1x1x64x128xf32>,
    %307 = tpu.iota {dimensions = array<i32: 0>} : vector<8x1xi32>
    %cst_225 = arith.constant dense<0.000000e+00> : vector<128xf32>
    %308 = vector.multi_reduction <add>, %303, %cst_225 [0] : vector<64x128xf32> to vector<128xf32>
    %309 = vector.shape_cast %308 : vector<128xf32> to vector<1x128xf32>
    %310 = arith.mulf %303, %303 : vector<64x128xf32>
    %cst_226 = arith.constant dense<0.000000e+00> : vector<128xf32>
    %311 = vector.multi_reduction <add>, %310, %cst_226 [0] : vector<64x128xf32> to vector<128xf32>
    %312 = vector.shape_cast %311 : vector<128xf32> to vector<1x128xf32>
    %c0_i32 = arith.constant 0 : i32
    %313 = vector.broadcast %c0_i32 : i32 to vector<8x1xi32>
    %314 = arith.cmpi eq, %307, %313 : vector<8x1xi32>
    %c1_i32_227 = arith.constant 1 : i32
    %315 = vector.broadcast %c1_i32_227 : i32 to vector<8x1xi32>
    %316 = arith.cmpi eq, %307, %315 : vector<8x1xi32>
    %cst_228 = arith.constant 0.000000e+00 : f32
    %317 = vector.shape_cast %316 : vector<8x1xi1> to vector<8x1xi1>
    %318 = vector.broadcast %317 : vector<8x1xi1> to vector<8x128xi1>
    %319 = vector.shape_cast %312 : vector<1x128xf32> to vector<1x128xf32>
    %320 = vector.broadcast %319 : vector<1x128xf32> to vector<8x128xf32>
    %321 = vector.broadcast %cst_228 : f32 to vector<8x128xf32>
    %322 = arith.select %318, %320, %321 : vector<8x128xi1>, vector<8x128xf32>
    %323 = vector.shape_cast %314 : vector<8x1xi1> to vector<8x1xi1>
    %324 = vector.broadcast %323 : vector<8x1xi1> to vector<8x128xi1>
    %325 = vector.shape_cast %309 : vector<1x128xf32> to vector<1x128xf32>
    %326 = vector.broadcast %325 : vector<1x128xf32> to vector<8x128xf32>
    %327 = arith.select %324, %326, %322 : vector<8x128xi1>, vector<8x128xf32>
    %c0_229 = arith.constant 0 : index
    %c0_230 = arith.constant 0 : index
    %c0_231 = arith.constant 0 : index
    %c0_232 = arith.constant 0 : index
    %328 = vector.load %arg10[%c0_229, %c0_230, %c0_231, %c0_232] : memref<1x1x8x128xf32, #tpu.memory_space<vmem>>, vector<1x1x8x128xf32>
    %329 = vector.shape_cast %328 : vector<1x1x8x128xf32> to vector<8x128xf32>
    %330 = vector.shape_cast %327 : vector<8x128xf32> to vector<1x1x8x128xf32>
    tpu.vector_store %arg10[%c0_229, %c0_230, %c0_231, %c0_232], %330 {strides = array<i32>} : memref<1x1x8x128xf32, #tpu.memory_space<vmem>>, vector<1x1x8x128xf32>,
    return
  }
  func.func @transform_0(%arg0: i32, %arg1: i32) -> (i32, i32, i32, i32) {
    %c1_i32 = arith.constant 1 : i32
    %0 = arith.subi %arg1, %c1_i32 : i32
    %c0_i32 = arith.constant 0 : i32
    %1 = arith.maxsi %0, %c0_i32 : i32
    %c0_i32_0 = arith.constant 0 : i32
    %c0_i32_1 = arith.constant 0 : i32
    %c0_i32_2 = arith.constant 0 : i32
    return %arg0, %1, %c0_i32_0, %c0_i32_1 : i32, i32, i32, i32
  }
  func.func @transform_1(%arg0: i32, %arg1: i32) -> (i32, i32, i32, i32) {
    %c0_i32 = arith.constant 0 : i32
    %c0_i32_0 = arith.constant 0 : i32
    %c0_i32_1 = arith.constant 0 : i32
    return %arg0, %arg1, %c0_i32, %c0_i32_0 : i32, i32, i32, i32
  }
  func.func @transform_2(%arg0: i32, %arg1: i32) -> (i32, i32, i32, i32) {
    %c1_i32 = arith.constant 1 : i32
    %0 = arith.addi %arg1, %c1_i32 : i32
    %c7_i32 = arith.constant 7 : i32
    %1 = arith.minsi %0, %c7_i32 : i32
    %c0_i32 = arith.constant 0 : i32
    %c0_i32_0 = arith.constant 0 : i32
    %c0_i32_1 = arith.constant 0 : i32
    return %arg0, %1, %c0_i32, %c0_i32_0 : i32, i32, i32, i32
  }
  func.func @transform_3(%arg0: i32, %arg1: i32) -> (i32, i32, i32) {
    %c0_i32 = arith.constant 0 : i32
    %c0_i32_0 = arith.constant 0 : i32
    %c0_i32_1 = arith.constant 0 : i32
    %c0_i32_2 = arith.constant 0 : i32
    return %c0_i32, %c0_i32_0, %c0_i32_1 : i32, i32, i32
  }
  func.func @transform_4(%arg0: i32, %arg1: i32) -> (i32, i32) {
    %c0_i32 = arith.constant 0 : i32
    %c0_i32_0 = arith.constant 0 : i32
    %c0_i32_1 = arith.constant 0 : i32
    return %c0_i32, %c0_i32_0 : i32, i32
  }
  func.func @transform_5(%arg0: i32, %arg1: i32) -> (i32, i32) {
    %c0_i32 = arith.constant 0 : i32
    %c0_i32_0 = arith.constant 0 : i32
    %c0_i32_1 = arith.constant 0 : i32
    return %c0_i32, %c0_i32_0 : i32, i32
  }
  func.func @transform_6(%arg0: i32, %arg1: i32) -> (i32, i32) {
    %c0_i32 = arith.constant 0 : i32
    %c0_i32_0 = arith.constant 0 : i32
    %c0_i32_1 = arith.constant 0 : i32
    return %c0_i32, %c0_i32_0 : i32, i32
  }
  func.func @transform_7(%arg0: i32, %arg1: i32) -> (i32, i32, i32, i32) {
    %c0_i32 = arith.constant 0 : i32
    %c0_i32_0 = arith.constant 0 : i32
    %c0_i32_1 = arith.constant 0 : i32
    return %arg0, %arg1, %c0_i32, %c0_i32_0 : i32, i32, i32, i32
  }
  func.func @transform_8(%arg0: i32, %arg1: i32) -> (i32, i32, i32, i32) {
    %c0_i32 = arith.constant 0 : i32
    %c0_i32_0 = arith.constant 0 : i32
    %c0_i32_1 = arith.constant 0 : i32
    return %arg0, %arg1, %c0_i32, %c0_i32_0 : i32, i32, i32, i32
  }
}

module attributes {stable_mosaic.version = 11 : i64} {
  func.func @_bn_add_relu_kernel(%arg0: i32, %arg1: i32, %arg2: memref<1x1x64x128xf32, #tpu.memory_space<vmem>>, %arg3: memref<1x128xf32, #tpu.memory_space<vmem>>, %arg4: memref<1x128xf32, #tpu.memory_space<vmem>>, %arg5: memref<1x1x64x128xf32, #tpu.memory_space<vmem>>, %arg6: memref<1x128xf32, #tpu.memory_space<vmem>>, %arg7: memref<1x128xf32, #tpu.memory_space<vmem>>, %arg8: memref<1x1x64x128xf32, #tpu.memory_space<vmem>>) attributes {dimension_semantics = [#tpu.dimension_semantics<parallel>, #tpu.dimension_semantics<parallel>], iteration_bounds = array<i64: 2, 8>, scalar_prefetch = 0 : i64, scratch_operands = 0 : i64, tpu.core_type = #tpu.core_type<tc>, window_params = [{transform_indices = @transform_0, window_bounds = array<i64: 1, 1, 64, 128>}, {pipeline_mode = #tpu.pipeline_mode<synchronous>, transform_indices = @transform_1, window_bounds = array<i64: 1, 128>}, {pipeline_mode = #tpu.pipeline_mode<synchronous>, transform_indices = @transform_2, window_bounds = array<i64: 1, 128>}, {transform_indices = @transform_3, window_bounds = array<i64: 1, 1, 64, 128>}, {pipeline_mode = #tpu.pipeline_mode<synchronous>, transform_indices = @transform_4, window_bounds = array<i64: 1, 128>}, {pipeline_mode = #tpu.pipeline_mode<synchronous>, transform_indices = @transform_5, window_bounds = array<i64: 1, 128>}, {transform_indices = @transform_6, window_bounds = array<i64: 1, 1, 64, 128>}]} {
    %c0 = arith.constant 0 : index
    %c0_0 = arith.constant 0 : index
    %c0_1 = arith.constant 0 : index
    %c0_2 = arith.constant 0 : index
    %0 = vector.load %arg2[%c0, %c0_0, %c0_1, %c0_2] : memref<1x1x64x128xf32, #tpu.memory_space<vmem>>, vector<1x1x64x128xf32>
    %1 = vector.shape_cast %0 : vector<1x1x64x128xf32> to vector<64x128xf32>
    %c0_3 = arith.constant 0 : index
    %c0_4 = arith.constant 0 : index
    %2 = vector.load %arg3[%c0_3, %c0_4] : memref<1x128xf32, #tpu.memory_space<vmem>>, vector<1x128xf32>
    %3 = vector.broadcast %2 : vector<1x128xf32> to vector<64x128xf32>
    %4 = arith.mulf %1, %3 : vector<64x128xf32>
    %c0_5 = arith.constant 0 : index
    %c0_6 = arith.constant 0 : index
    %5 = vector.load %arg4[%c0_5, %c0_6] : memref<1x128xf32, #tpu.memory_space<vmem>>, vector<1x128xf32>
    %6 = vector.broadcast %5 : vector<1x128xf32> to vector<64x128xf32>
    %7 = arith.addf %4, %6 : vector<64x128xf32>
    %c0_7 = arith.constant 0 : index
    %c0_8 = arith.constant 0 : index
    %c0_9 = arith.constant 0 : index
    %c0_10 = arith.constant 0 : index
    %8 = vector.load %arg5[%c0_7, %c0_8, %c0_9, %c0_10] : memref<1x1x64x128xf32, #tpu.memory_space<vmem>>, vector<1x1x64x128xf32>
    %9 = vector.shape_cast %8 : vector<1x1x64x128xf32> to vector<64x128xf32>
    %c0_11 = arith.constant 0 : index
    %c0_12 = arith.constant 0 : index
    %10 = vector.load %arg6[%c0_11, %c0_12] : memref<1x128xf32, #tpu.memory_space<vmem>>, vector<1x128xf32>
    %11 = vector.broadcast %10 : vector<1x128xf32> to vector<64x128xf32>
    %12 = arith.mulf %9, %11 : vector<64x128xf32>
    %c0_13 = arith.constant 0 : index
    %c0_14 = arith.constant 0 : index
    %13 = vector.load %arg7[%c0_13, %c0_14] : memref<1x128xf32, #tpu.memory_space<vmem>>, vector<1x128xf32>
    %14 = vector.broadcast %13 : vector<1x128xf32> to vector<64x128xf32>
    %15 = arith.addf %12, %14 : vector<64x128xf32>
    %16 = arith.addf %7, %15 : vector<64x128xf32>
    %cst = arith.constant 0.000000e+00 : f32
    %17 = vector.broadcast %cst : f32 to vector<64x128xf32>
    %18 = arith.maximumf %16, %17 : vector<64x128xf32>
    %c0_15 = arith.constant 0 : index
    %c0_16 = arith.constant 0 : index
    %c0_17 = arith.constant 0 : index
    %c0_18 = arith.constant 0 : index
    %19 = vector.load %arg8[%c0_15, %c0_16, %c0_17, %c0_18] : memref<1x1x64x128xf32, #tpu.memory_space<vmem>>, vector<1x1x64x128xf32>
    %20 = vector.shape_cast %19 : vector<1x1x64x128xf32> to vector<64x128xf32>
    %21 = vector.shape_cast %18 : vector<64x128xf32> to vector<1x1x64x128xf32>
    tpu.vector_store %arg8[%c0_15, %c0_16, %c0_17, %c0_18], %21 {strides = array<i32>} : memref<1x1x64x128xf32, #tpu.memory_space<vmem>>, vector<1x1x64x128xf32>,
    return
  }
  func.func @transform_0(%arg0: i32, %arg1: i32) -> (i32, i32, i32, i32) {
    %c0_i32 = arith.constant 0 : i32
    %c0_i32_0 = arith.constant 0 : i32
    %c0_i32_1 = arith.constant 0 : i32
    return %arg0, %arg1, %c0_i32, %c0_i32_0 : i32, i32, i32, i32
  }
  func.func @transform_1(%arg0: i32, %arg1: i32) -> (i32, i32) {
    %c0_i32 = arith.constant 0 : i32
    %c0_i32_0 = arith.constant 0 : i32
    %c0_i32_1 = arith.constant 0 : i32
    return %c0_i32, %c0_i32_0 : i32, i32
  }
  func.func @transform_2(%arg0: i32, %arg1: i32) -> (i32, i32) {
    %c0_i32 = arith.constant 0 : i32
    %c0_i32_0 = arith.constant 0 : i32
    %c0_i32_1 = arith.constant 0 : i32
    return %c0_i32, %c0_i32_0 : i32, i32
  }
  func.func @transform_3(%arg0: i32, %arg1: i32) -> (i32, i32, i32, i32) {
    %c0_i32 = arith.constant 0 : i32
    %c0_i32_0 = arith.constant 0 : i32
    %c0_i32_1 = arith.constant 0 : i32
    return %arg0, %arg1, %c0_i32, %c0_i32_0 : i32, i32, i32, i32
  }
  func.func @transform_4(%arg0: i32, %arg1: i32) -> (i32, i32) {
    %c0_i32 = arith.constant 0 : i32
    %c0_i32_0 = arith.constant 0 : i32
    %c0_i32_1 = arith.constant 0 : i32
    return %c0_i32, %c0_i32_0 : i32, i32
  }
  func.func @transform_5(%arg0: i32, %arg1: i32) -> (i32, i32) {
    %c0_i32 = arith.constant 0 : i32
    %c0_i32_0 = arith.constant 0 : i32
    %c0_i32_1 = arith.constant 0 : i32
    return %c0_i32, %c0_i32_0 : i32, i32
  }
  func.func @transform_6(%arg0: i32, %arg1: i32) -> (i32, i32, i32, i32) {
    %c0_i32 = arith.constant 0 : i32
    %c0_i32_0 = arith.constant 0 : i32
    %c0_i32_1 = arith.constant 0 : i32
    return %arg0, %arg1, %c0_i32, %c0_i32_0 : i32, i32, i32, i32
  }
}

</mosaic_0001>

<bundles_post_ra>
// kernel: basic_decoder_block.7
= control target key start
LH: loop header
LB: loop body
LE: loop exit
PB: predicated region body
PF: predicated region fallthrough
CT: control target
= control target key end

     0   :  { %s661_s21 = smov 0   ;;  %s663_s22 = smov 0   ;;  %s782_s0 = inlined_call_operand.vmem [shape: f32[2,8,64,128], index: 0, kind: input, shape index: {}]   ;;  %s783_s1 = inlined_call_operand.vmem [shape: f32[1,128], index: 1, kind: input, shape index: {}]   ;;  %s784_s2 = inlined_call_operand.vmem [shape: f32[1,128], index: 2, kind: input, shape index: {}]   ;;  %s785_s3 = inlined_call_operand.vmem [shape: f32[2,8,64,128], index: 3, kind: input, shape index: {}]   ;;  %s786_s4 = inlined_call_operand.vmem [shape: f32[1,128], index: 4, kind: input, shape index: {}]   ;;  %s787_s5 = inlined_call_operand.vmem [shape: f32[1,128], index: 5, kind: input, shape index: {}]   ;;  %s788_s6 = inlined_call_operand.vmem [shape: f32[2,8,64,128], index: 6, kind: output, shape index: {}]  }
   0x1   :  { %s665_s23 = smov 0   ;;  %s667_s24 = smov 0  }
   0x2   :  { %s669_s25 = smov 0  }
   0x3 LB: > { %s25_s26 = sadd.s32 1, %s616_s23  ;;  %s28_s27 = sadd.s32 1, %s620_s24  ;;  %s624_s25 = sphi %s669_s25, %s16_s25   ;;  %s620_s24 = sphi %s667_s24, %s792_s24   ;;  %s616_s23 = sphi %s665_s23, %s791_s23   ;;  %s612_s22 = sphi %s663_s22, %s790_s22   ;;  %s608_s21 = sphi %s661_s21, %s789_s21  }
   0x4   : > { %p26_p0 = scmp.ge.s32.totalorder %s25_s26, 8  ;;  %p530_p1 = scmp.ge.s32.totalorder %s624_s25, 1 }
   0x5   : > { %p248_p2 = scmp.lt.s32.totalorder %s624_s25, 17 }
   0x6   : > { %s794_s26 = smov (%p26_p0, %s25_s26), 0  ;;  %s796_s27 = smov (!%p26_p0, %s28_s27), %s620_s24 }
   0x7   : > { %p249_p3 = pnand %p530_p1, %p248_p2  ;;  %p30_p4 = scmp.ge.s32.totalorder %s796_s27, 2 }
   0x8   : > { %p295_p5 = scmp.lt.s32.totalorder (!%p249_p3), %s612_s22, 1  ;;  %p297_p6 = scmp.lt.s32.totalorder (!%p249_p3), %s608_s21, 7 }
   0x9   : > { %s798_s27 = smov (%p30_p4, %s796_s27), 0  ;;  %252 = sbr.rel (%p249_p3) target bundleno = 38 (0x26), region = 44 }
   0xe   : > { %s800_s22 = smov (!%p295_p5, %s612_s22), 1  ;;  %s802_s21 = smov (!%p297_p6, %s608_s21), 7  ;;  %v582_v0 = vld [vmem:[%s783_s1] ss:$0 sm:$0xff] }
   0xf   : > { %s532_s28 = sshll.u32 %s800_s22, 6  ;;  %s531_s29 = sshll.u32 %s802_s21, 3  ;;  %v584_v1 = vld [vmem:[%s786_s4] ss:$0 sm:$0xff] }
  0x10   : > { %s301_s30 = sadd.s32 %s532_s28, %s531_s29  ;;  %v714_v2 = vld [vmem:[%s784_s2] ss:$0 sm:$0xff] }
  0x11   : > { %s697_s11 = sshll.u32 %s301_s30, 3  ;;  %v719_v3 = vld [vmem:[%s787_s5] ss:$0 sm:$0xff] }
  0x12   : > { %s703_s14 = scalar_lea.vmem %s782_s0, %s697_s11  ;;  %s709_s17 = scalar_lea.vmem %s785_s3, %s697_s11 }
  0x13   : > { %v322_v4 = vld [vmem:[%s703_s14] sm:$0xff]  ;;  %v323_v6 = vld [vmem:[%s703_s14 + $0x8] sm:$0xff]  ;;  %v324_v11 = vld [vmem:[%s703_s14 + $0x10] sm:$0xff]  ;;  %s744_s29 = scalar_lea.vmem %s788_s6, %s697_s11 }
  0x14   : > { %v354_v5 = vld [vmem:[%s709_s17] sm:$0xff]  ;;  %v334_v7 = vmul.f32 %v582_v0, %v322_v4  ;;  %v335_v9 = vmul.f32 %v582_v0, %v323_v6  ;;  %v355_v10 = vld [vmem:[%s709_s17 + $0x8] sm:$0xff]  ;;  %v356_v12 = vld [vmem:[%s709_s17 + $0x10] sm:$0xff]  ;;  %v336_v14 = vmul.f32 %v582_v0, %v324_v11 }
  0x15   : > { %v366_v8 = vmul.f32 %v584_v1, %v354_v5  ;;  %v367_v13 = vmul.f32 %v584_v1, %v355_v10  ;;  %v368_v15 = vmul.f32 %v584_v1, %v356_v12  ;;  %v325_v16 = vld [vmem:[%s703_s14 + $0x18] sm:$0xff]  ;;  %v326_v18 = vld [vmem:[%s703_s14 + $0x20] sm:$0xff]  ;;  %v327_v24 = vld [vmem:[%s703_s14 + $0x28] sm:$0xff] }
  0x16   : > { %v357_v17 = vld [vmem:[%s709_s17 + $0x18] sm:$0xff]  ;;  %v346_v19 = vadd.f32 %v714_v2, %v334_v7  ;;  %v347_v21 = vadd.f32 %v714_v2, %v335_v9  ;;  %v337_v22 = vmul.f32 %v582_v0, %v325_v16  ;;  %v358_v23 = vld [vmem:[%s709_s17 + $0x20] sm:$0xff]  ;;  %v348_v26 = vadd.f32 %v714_v2, %v336_v14  ;;  %v359_v29 = vld [vmem:[%s709_s17 + $0x28] sm:$0xff] }
  0x17   : > { %v378_v20 = vadd.f32 %v719_v3, %v366_v8  ;;  %v379_v25 = vadd.f32 %v719_v3, %v367_v13  ;;  %v380_v27 = vadd.f32 %v719_v3, %v368_v15  ;;  %v369_v28 = vmul.f32 %v584_v1, %v357_v17  ;;  %v328_v38 = vld [vmem:[%s703_s14 + $0x30] sm:$0xff]  ;;  %v329_v44 = vld [vmem:[%s703_s14 + $0x38] sm:$0xff] }
  0x18   : > { %v349_v31 = vadd.f32 %v714_v2, %v337_v22  ;;  %v338_v32 = vmul.f32 %v582_v0, %v326_v18  ;;  %v370_v33 = vmul.f32 %v584_v1, %v358_v23  ;;  %v339_v37 = vmul.f32 %v582_v0, %v327_v24  ;;  %v360_v39 = vld [vmem:[%s709_s17 + $0x30] sm:$0xff]  ;;  %v361_v45 = vld [vmem:[%s709_s17 + $0x38] sm:$0xff] }
  0x19   : > { %v386_v30 = vadd.f32 %v378_v20, %v346_v19  ;;  %v387_v34 = vadd.f32 %v379_v25, %v347_v21  ;;  %v388_v35 = vadd.f32 %v380_v27, %v348_v26  ;;  %v381_v36 = vadd.f32 %v719_v3, %v369_v28 }
  0x1a   : > { %v350_v41 = vadd.f32 %v714_v2, %v338_v32  ;;  %v382_v42 = vadd.f32 %v719_v3, %v370_v33  ;;  %v371_v43 = vmul.f32 %v584_v1, %v359_v29  ;;  %v351_v49 = vadd.f32 %v714_v2, %v339_v37 }
  0x1b   : > { %v394_v40 = vmax.f32 %v386_v30, 0.0  ;;  %v395_v46 = vmax.f32 %v387_v34, 0.0  ;;  %v396_v47 = vmax.f32 %v388_v35, 0.0  ;;  %v389_v48 = vadd.f32 %v381_v36, %v349_v31 }
  0x1c   : > { %v390_v50 = vadd.f32 %v382_v42, %v350_v41  ;;  %v383_v51 = vadd.f32 %v719_v3, %v371_v43  ;;  %v340_v52 = vmul.f32 %v582_v0, %v328_v38  ;;  %v372_v53 = vmul.f32 %v584_v1, %v360_v39 }
  0x1d   : > { %402 = vst [vmem:[%s744_s29] sm:$0xff] %v394_v40  ;;  %v397_v54 = vmax.f32 %v389_v48, 0.0  ;;  %v341_v55 = vmul.f32 %v582_v0, %v329_v44  ;;  %v373_v56 = vmul.f32 %v584_v1, %v361_v45 }
  0x1e   : > { %403 = vst [vmem:[%s744_s29 + $0x8] sm:$0xff] %v395_v46  ;;  %v398_v57 = vmax.f32 %v390_v50, 0.0  ;;  %v391_v58 = vadd.f32 %v383_v51, %v351_v49  ;;  %v352_v59 = vadd.f32 %v714_v2, %v340_v52  ;;  %v384_v60 = vadd.f32 %v719_v3, %v372_v53 }
  0x1f   : > { %404 = vst [vmem:[%s744_s29 + $0x10] sm:$0xff] %v396_v47  ;;  %v353_v61 = vadd.f32 %v714_v2, %v341_v55  ;;  %v385_v62 = vadd.f32 %v719_v3, %v373_v56 }
  0x20   : > { %405 = vst [vmem:[%s744_s29 + $0x18] sm:$0xff] %v397_v54  ;;  %v399_v63 = vmax.f32 %v391_v58, 0.0  ;;  %v392_v4 = vadd.f32 %v384_v60, %v352_v59 }
  0x21   : > { %406 = vst [vmem:[%s744_s29 + $0x20] sm:$0xff] %v398_v57  ;;  %v393_v5 = vadd.f32 %v385_v62, %v353_v61 }
  0x22   : > { %407 = vst [vmem:[%s744_s29 + $0x28] sm:$0xff] %v399_v63  ;;  %v400_v0 = vmax.f32 %v392_v4, 0.0 }
  0x23   : > { %v401_v1 = vmax.f32 %v393_v5, 0.0 }
  0x24   : > { %408 = vst [vmem:[%s744_s29 + $0x30] sm:$0xff] %v400_v0 }
  0x25   : > { %409 = vst [vmem:[%s744_s29 + $0x38] sm:$0xff] %v401_v1 }
  0x26 PF: > { %s16_s25 = sadd.s32 1, %s624_s25   ;;  %s789_s21 = smov %s616_s23 }
  0x27   : > { %p13_p7 = scmp.ge.s32.totalorder %s16_s25, 18   ;;  %s790_s22 = smov %s620_s24 }
  0x28   : > { %s791_s23 = smov %s794_s26  ;;  %s792_s24 = smov %s798_s27 }
  0x29   :  { %15 = sbr.rel (!%p13_p7) target bundleno = 3 (0x3), region = 77 }

// kernel: basic_decoder_block.5
= control target key start
LH: loop header
LB: loop body
LE: loop exit
PB: predicated region body
PF: predicated region fallthrough
CT: control target
= control target key end

     0   :  { %s4325_s27 = smov 0   ;;  %s4327_s28 = smov 0   ;;  %s7492_s0 = inlined_call_operand.vmem [shape: f32[2,8,64,128], index: 0, kind: input, shape index: {}, may-alias: {0,1,2}]   ;;  %s7493_s1 = inlined_call_operand.vmem [shape: f32[2,8,64,128], index: 1, kind: input, shape index: {}, may-alias: {0,1,2}]   ;;  %s7494_s2 = inlined_call_operand.vmem [shape: f32[2,8,64,128], index: 2, kind: input, shape index: {}, may-alias: {0,1,2}]   ;;  %s7495_s3 = inlined_call_operand.vmem [shape: f32[27,128,128], index: 3, kind: input, shape index: {}]   ;;  %s7496_s4 = inlined_call_operand.vmem [shape: f32[1,128], index: 4, kind: input, shape index: {}]   ;;  %s7497_s5 = inlined_call_operand.vmem [shape: f32[1,128], index: 5, kind: input, shape index: {}]   ;;  %s7498_s6 = inlined_call_operand.vmem [shape: f32[64,128], index: 6, kind: input, shape index: {}]   ;;  %s7499_s7 = inlined_call_operand.vmem [shape: f32[2,8,64,128], index: 7, kind: output, shape index: {0}]   ;;  %s7500_s8 = inlined_call_operand.vmem [shape: f32[2,8,8,128], index: 8, kind: output, shape index: {1}]  }
   0x1   :  { %s4329_s29 = smov 0   ;;  %s4331_s30 = smov 0  }
   0x2   :  { %s4333_s9 = smov 0  }
   0x3 LB: > { %s28_s10 = sadd.s32 1, %s4261_s29  ;;  %s31_s11 = sadd.s32 1, %s4265_s30  ;;  %s4269_s9 = sphi %s4333_s9, %s19_s9   ;;  %s4265_s30 = sphi %s4331_s30, %s8043_s30   ;;  %s4261_s29 = sphi %s4329_s29, %s8042_s29   ;;  %s4257_s28 = sphi %s4327_s28, %s8041_s28   ;;  %s4253_s27 = sphi %s4325_s27, %s8040_s27  }
   0x4   : > { %p29_p0 = scmp.ge.s32.totalorder %s28_s10, 8  ;;  %p3393_p1 = scmp.ge.s32.totalorder %s4269_s9, 1 }
   0x5   : > { %p343_p2 = scmp.lt.s32.totalorder %s4269_s9, 17 }
   0x6   : > { %s8045_s10 = smov (%p29_p0, %s28_s10), 0  ;;  %s8047_s11 = smov (!%p29_p0, %s31_s11), %s4265_s30 }
   0x7   : > { %p344_p3 = pnand %p3393_p1, %p343_p2  ;;  %p33_p4 = scmp.ge.s32.totalorder %s8047_s11, 2 }
   0x9   : > { %s8049_s11 = smov (%p33_p4, %s8047_s11), 0  ;;  %347 = sbr.rel (%p344_p3) target bundleno = 813 (0x32d), region = 48 }
   0xe   : > { %v474_v0 = vld [vmem:[%s7498_s6 + $0x8] sm:$0xff]  ;;  %v473_v1 = vld [vmem:[%s7498_s6] sm:$0xff]  ;;  %v4271_v2 = vmov 1   ;;  %v4272_v3 = vmov 0   ;;  %v475_v8 = vld [vmem:[%s7498_s6 + $0x10] sm:$0xff]  ;;  %v4273_v9 = vmov 2  }
   0xf   : > { %4152 = vset.pattern.permute.xlu1 %v4271_v2  ;;  %4150 = vset.pattern.permute.xlu0 %v4271_v2  ;;  %vm482_vm0 = vcmp.gt.f32.partialorder %v474_v0, 0.5  ;;  %vm481_vm1 = vcmp.gt.f32.partialorder %v473_v1, 0.5  ;;  %v477_v6 = vld [vmem:[%s7498_s6 + $0x20] sm:$0xff]  ;;  %v476_v10 = vld [vmem:[%s7498_s6 + $0x18] sm:$0xff]  ;;  %vm483_vm3 = vcmp.gt.f32.partialorder %v475_v8, 0.5  ;;  %v478_v11 = vld [vmem:[%s7498_s6 + $0x28] sm:$0xff] }
  0x10   : > { %v4366_v4 = vsel %vm482_vm0, 1, %v4272_v3  ;;  %v4369_v5 = vsel %vm481_vm1, 1, %v4272_v3  ;;  %4153 = vset.pattern.permute.xlu2 %v4272_v3  ;;  %vm485_vm2 = vcmp.gt.f32.partialorder %v477_v6, 0.5  ;;  %vm484_vm4 = vcmp.gt.f32.partialorder %v476_v10, 0.5  ;;  %v479_v16 = vld [vmem:[%s7498_s6 + $0x30] sm:$0xff]  ;;  %v480_v18 = vld [vmem:[%s7498_s6 + $0x38] sm:$0xff] }
  0x11   : > { %633 = vperm.xlu1 %4152, %v4366_v4   ;;  %630 = vperm.xlu0 %4150, %v4369_v5   ;;  %v4379_v7 = vsel %vm485_vm2, 1, %v4272_v3  ;;  %v4396_v12 = vsel %vm483_vm3, 1, %v4272_v3  ;;  %vm486_vm5 = vcmp.gt.f32.partialorder %v478_v11, 0.5  ;;  %v4399_v13 = vsel %vm484_vm4, 1, %v4272_v3  ;;  %v3432_v20 = vld [vmem:[%s7495_s3 + $0xf8] sm:$0xff]  ;;  %s4438_s15 = sadd.s32 4294967295, %s4253_s27 }
  0x12   : > { %566 = vperm.xlu2 %4153, %v4369_v5   ;;  %v4403_v14 = vsel %vm486_vm5, 1, %v4272_v3  ;;  %v4274_v15 = vmov 4   ;;  %vm487_vm6 = vcmp.gt.f32.partialorder %v479_v16, 0.5  ;;  %vm488_vm7 = vcmp.gt.f32.partialorder %v480_v18, 0.5  ;;  %686 = vmatpush.msra.mxu0 %v3432_v20  ;;  %p418_p5 = scmp.gt.s32.totalorder %s4438_s15, 0  ;;  %v3431_v22 = vld [vmem:[%s7495_s3 + $0xf0] sm:$0xff] }
  0x13   : > { %v4416_v17 = vsel %vm487_vm6, 1, %v4272_v3  ;;  %v4427_v19 = vsel %vm488_vm7, 1, %v4272_v3  ;;  %4053 = vmatpush.msra.mxu3 %v3432_v20  ;;  %v7507_v21 = vmov 6   ;;  %v3430_v23 = vld [vmem:[%s7495_s3 + $0xe8] sm:$0xff]  ;;  %v620_v24 = vld [vmem:[%s7495_s3 + $0x78] sm:$0xff]  ;;  %v3429_v25 = vld [vmem:[%s7495_s3 + $0xe0] sm:$0xff] }
  0x14   : > { %687 = vmatpush.msra.mxu0 %v3431_v22  ;;  %727 = vmatpush.msra.mxu1 %v620_v24  ;;  %v619_v26 = vld [vmem:[%s7495_s3 + $0x70] sm:$0xff]  ;;  %v3464_v27 = vld [vmem:[%s7495_s3 + $0x178] sm:$0xff]  ;;  %p420_p6 = scmp.lt.s32.totalorder %s4257_s28, 1  ;;  %p3395_p7 = scmp.lt.s32.totalorder %s4438_s15, 7  ;;  %v4276_v29 = vmov 3   ;;  %v618_v31 = vld [vmem:[%s7495_s3 + $0x68] sm:$0xff] }
  0x15   : > { %4054 = vmatpush.msra.mxu3 %v3431_v22  ;;  %833 = vmatpush.msra.mxu2 %v3464_v27  ;;  %s419_s13 = scalar_select %p418_p5, %s4438_s15, 0  ;;  %v3428_v28 = vld [vmem:[%s7495_s3 + $0xd8] sm:$0xff]  ;;  %v3427_v30 = vld [vmem:[%s7495_s3 + $0xd0] sm:$0xff]  ;;  %v3426_v33 = vld [vmem:[%s7495_s3 + $0xc8] sm:$0xff] }
  0x16   : > { %688 = vmatpush.msra.mxu0 %v3430_v23  ;;  %728 = vmatpush.msra.mxu1 %v619_v26  ;;  %s8051_s28 = smov (!%p420_p6, %s4257_s28), 1  ;;  %v3463_v32 = vld [vmem:[%s7495_s3 + $0x170] sm:$0xff]  ;;  %v617_v34 = vld [vmem:[%s7495_s3 + $0x60] sm:$0xff]  ;;  %v3462_v35 = vld [vmem:[%s7495_s3 + $0x168] sm:$0xff]  ;;  %p434_p8 = scmp.lt.s32.totalorder %s4253_s27, 7 }
  0x17   : > { %4055 = vmatpush.msra.mxu3 %v3430_v23  ;;  %s8053_s13 = smov (!%p3395_p7, %s419_s13), 7  ;;  %834 = vmatpush.msra.mxu2 %v3463_v32  ;;  %v3425_v36 = vld [vmem:[%s7495_s3 + $0xc0] sm:$0xff]  ;;  %v616_v37 = vld [vmem:[%s7495_s3 + $0x58] sm:$0xff]  ;;  %s4513_s20 = sshll.u32 %s8051_s28, 6  ;;  %v615_v40 = vld [vmem:[%s7495_s3 + $0x50] sm:$0xff] }
  0x18   : > { %689 = vmatpush.msra.mxu0 %v3429_v25  ;;  %729 = vmatpush.msra.mxu1 %v618_v31  ;;  %s3400_s19 = sshll.u32 %s8053_s13, 3  ;;  %v3461_v38 = vld [vmem:[%s7495_s3 + $0x160] sm:$0xff]  ;;  %v3424_v39 = vld [vmem:[%s7495_s3 + $0xb8] sm:$0xff]  ;;  %v3423_v42 = vld [vmem:[%s7495_s3 + $0xb0] sm:$0xff]  ;;  %p529_p9 = scmp.ge.s32.totalorder %s4253_s27, 1 }
  0x19   : > { %642 = vperm.xlu1 %4152, %v4379_v7   ;;  %4151 = vset.pattern.permute.xlu0 %v4273_v9  ;;  %v3460_v41 = vld [vmem:[%s7495_s3 + $0x158] sm:$0xff]  ;;  %s426_s12 = sadd.s32 %s4513_s20, %s3400_s19  ;;  %v614_v43 = vld [vmem:[%s7495_s3 + $0x48] sm:$0xff]  ;;  %v3459_v44 = vld [vmem:[%s7495_s3 + $0x150] sm:$0xff]  ;;  %s441_s13 = sadd.s32 1, %s4253_s27 }
  0x1a   : > { %777 = vperm.xlu0 %4151, %v4369_v5   ;;  %4154 = vset.pattern.permute.xlu2 %v4273_v9  ;;  %s3402_s19 = sshll.u32 %s426_s12, 3  ;;  %v3422_v45 = vld [vmem:[%s7495_s3 + $0xa8] sm:$0xff]  ;;  %v613_v46 = vld [vmem:[%s7495_s3 + $0x40] sm:$0xff]  ;;  %v612_v49 = vld [vmem:[%s7495_s3 + $0x38] sm:$0xff]  ;;  %p4601_p10 = scmp.lt.s32.totalorder %s441_s13, 7 }
  0x1b   : > { %780 = vperm.xlu2 %4154, %v4366_v4   ;;  %690 = vmatpush.msra.mxu0 %v3428_v28  ;;  %v3458_v47 = vld [vmem:[%s7495_s3 + $0x148] sm:$0xff]  ;;  %v3421_v48 = vld [vmem:[%s7495_s3 + $0xa0] sm:$0xff]  ;;  %s4560_s22 = scalar_lea.vmem %s7492_s0, %s3402_s19  ;;  %v3420_v51 = vld [vmem:[%s7495_s3 + $0x98] sm:$0xff]  ;;  %p2392_p11 = scmp.le.s32.totalorder %s4253_s27, 6 }
  0x1c   : > { %4056 = vmatpush.msra.mxu3 %v3429_v25  ;;  %730 = vmatpush.msra.mxu1 %v617_v34  ;;  %v3457_v50 = vld [vmem:[%s7495_s3 + $0x140] sm:$0xff]  ;;  %v611_v52 = vld [vmem:[%s7495_s3 + $0x30] sm:$0xff]  ;;  %s4577_s14 = scalar_select %p434_p8, %s4253_s27, 7  ;;  %v3456_v55 = vld [vmem:[%s7495_s3 + $0x138] sm:$0xff] }
  0x1d   : > { %691 = vmatpush.msra.mxu0 %v3427_v30  ;;  %835 = vmatpush.msra.mxu2 %v3462_v35  ;;  %v489_v53 = vld [vmem:[%s4560_s22] sm:$0xff]  ;;  %s530_s23 = scalar_select %p529_p9, 1, 0  ;;  %v3419_v57 = vld [vmem:[%s7495_s3 + $0x90] sm:$0xff]  ;;  %v610_v59 = vld [vmem:[%s7495_s3 + $0x28] sm:$0xff] }
  0x1e   : > { %4057 = vmatpush.msra.mxu3 %v3428_v28  ;;  %731 = vmatpush.msra.mxu1 %v616_v37  ;;  %v4583_v54 = vld [vmem:[%s7496_s4] ss:$0 sm:$0xff]  ;;  %v3455_v60 = vld [vmem:[%s7495_s3 + $0x130] sm:$0xff]  ;;  %v3418_v61 = vld [vmem:[%s7495_s3 + $0x88] sm:$0xff]  ;;  %s3403_s12 = sshll.u32 %s4577_s14, 3  ;;  %s8055_s13 = smov (!%p4601_p10, %s441_s13), 7 }
  0x1f   : > { %692 = vmatpush.msra.mxu0 %v3426_v33  ;;  %836 = vmatpush.msra.mxu2 %v3461_v38  ;;  %v4592_v56 = vld [vmem:[%s7497_s5] ss:$0 sm:$0xff]  ;;  %v501_v58 = vmul.f32 %v4583_v54, %v489_v53  ;;  %v3454_v0 = vld [vmem:[%s7495_s3 + $0x128] sm:$0xff]  ;;  %v531_v1 = vstv %s530_s23  ;;  %v608_v10 = vld [vmem:[%s7495_s3 + $0x18] sm:$0xff]  ;;  %s4650_s24 = sadd.s32 %s3403_s12, %s4513_s20  ;;  %s8057_s13 = smov (!%p4601_p10, %s8055_s13), 7 }
  0x20   : > { %4058 = vmatpush.msra.mxu3 %v3427_v30  ;;  %732 = vmatpush.msra.mxu1 %v615_v40  ;;  %v609_v63 = vld [vmem:[%s7495_s3 + $0x20] sm:$0xff]  ;;  %vm4631_vm8 = vcmp.eq.s32.totalorder %v531_v1, 1  ;;  %v492_v18 = vld [vmem:[%s4560_s22 + $0x18] sm:$0xff]  ;;  %v490_v20 = vld [vmem:[%s4560_s22 + $0x8] sm:$0xff]  ;;  %s3405_s18 = sshll.u32 %s4650_s24, 3  ;;  %s3409_s26 = sshll.u32 %s8057_s13, 3 }
  0x21   : > { %636 = vperm.xlu1 %4152, %v4396_v12   ;;  %693 = vmatpush.msra.mxu0 %v3425_v36  ;;  %v513_v62 = vadd.f32 %v4592_v56, %v501_v58  ;;  %v3417_v8 = vld [vmem:[%s7495_s3 + $0x80] sm:$0xff]  ;;  %v607_v22 = vld [vmem:[%s7495_s3 + $0x10] sm:$0xff]  ;;  %v504_v23 = vmul.f32 %v4583_v54, %v492_v18  ;;  %v502_v24 = vmul.f32 %v4583_v54, %v490_v20  ;;  %v3452_v25 = vld [vmem:[%s7495_s3 + $0x118] sm:$0xff]  ;;  %s4692_s19 = scalar_lea.vmem %s7493_s1, %s3405_s18  ;;  %s450_s13 = sadd.s32 %s3409_s26, %s4513_s20 }
  0x22   : > { %786 = vperm.xlu0 %4151, %v4399_v13   ;;  %837 = vmatpush.msra.mxu2 %v3460_v41  ;;  %v3453_v11 = vld [vmem:[%s7495_s3 + $0x120] sm:$0xff]  ;;  %v606_v26 = vld [vmem:[%s7495_s3 + $0x8] sm:$0xff]  ;;  %v3451_v30 = vld [vmem:[%s7495_s3 + $0x110] sm:$0xff]  ;;  %s3411_s20 = sshll.u32 %s450_s13, 3  ;;  %s7459_s23 = scalar_lea.vmem %s7499_s7, %s3405_s18 }
  0x23   : > { %4155 = vset.pattern.permute.xlu2 %v4271_v2  ;;  %694 = vmatpush.msra.mxu0 %v3424_v39  ;;  %v516_v27 = vadd.f32 %v4592_v56, %v504_v23  ;;  %v514_v28 = vadd.f32 %v4592_v56, %v502_v24  ;;  %v605_v32 = vld [vmem:[%s7495_s3] sm:$0xff]  ;;  %v3450_v35 = vld [vmem:[%s7495_s3 + $0x108] sm:$0xff]  ;;  %v1569_v37 = vld [vmem:[%s4692_s19 + $0x18] sm:$0xff]  ;;  %s4753_s13 = scalar_lea.vmem %s7494_s2, %s3411_s20  ;;  %v7511_v24 = vmov 5   ;;  %s3415_s24 = sshll.u32 %s8051_s28, 3 }
  0x24   : > { %645 = vperm.xlu2 %4155, %v4403_v14   ;;  %733 = vmatpush.msra.mxu1 %v614_v43  ;;  %v1570_v40 = vld [vmem:[%s4692_s19 + $0x20] sm:$0xff]  ;;  %v1571_v41 = vld [vmem:[%s4692_s19 + $0x28] sm:$0xff]  ;;  %v1573_v43 = vld [vmem:[%s4692_s19 + $0x38] sm:$0xff]  ;;  %s2393_s20 = scalar_select %p2392_p11, 1, 0 }
  0x25   : > { %695 = vmatpush.msra.mxu0 %v3423_v42  ;;  %838 = vmatpush.msra.mxu2 %v3459_v44  ;;  %v522_v34 = vmax.f32 %v514_v28, 0.0  ;;  %v4714_v44 = vld [vmem:[%s7496_s4] ss:$0 sm:$0xff]  ;;  %v3508_v23 = vld [vmem:[%s7495_s3 + $0x258] sm:$0xff]  ;;  %v3487_v28 = vld [vmem:[%s7495_s3 + $0x1f0] sm:$0xff]  ;;  %s470_s18 = sadd.s32 %s3415_s24, %s4577_s14 }
  0x26   : > { %4059 = vmatpush.msra.mxu3 %v3426_v33  ;;  %734 = vmatpush.msra.mxu1 %v613_v46  ;;  %v524_v33 = vmax.f32 %v516_v27, 0.0  ;;  %v1583_v46 = vmul.f32 %v4714_v44, %v1571_v41  ;;  %v493_v18 = vld [vmem:[%s4560_s22 + $0x20] sm:$0xff]  ;;  %v3488_v27 = vld [vmem:[%s7495_s3 + $0x1f8] sm:$0xff]  ;;  %v3558_v6 = vld [vmem:[%s7495_s3 + $0x368] sm:$0xff] }
  0x27   : > { %696 = vmatpush.msra.mxu0 %v3422_v45  ;;  %839 = vmatpush.msra.mxu2 %v3458_v47 }
  0x28   : > { %4060 = vmatpush.msra.mxu3 %v3425_v36  ;;  %735 = vmatpush.msra.mxu1 %v612_v49  ;;  %v549_v36 = vld [vmem:[#allocation2 + $0x7] sm:$0xff]  ;;  %v4697_v38 = vsel %vm4631_vm8, %v524_v33, 0.0 }
  0x29   : > { %4156 = vset.pattern.permute.xlu1 %v4273_v9  ;;  %697 = vmatpush.msra.mxu0 %v3421_v48  ;;  %544 = vst [vmem:[#allocation2 + $0x28] sm:$0xff] %v4697_v38  ;;  %v3449_v49 = vld [vmem:[%s7495_s3 + $0x100] sm:$0xff]  ;;  %v494_v33 = vld [vmem:[%s4560_s22 + $0x28] sm:$0xff] }
  0x2a   : > { %783 = vperm.xlu1 %4156, %v4396_v12   ;;  %4166 = vset.pattern.permute.xlu0 %v4274_v15 }
  0x2b   : > { %1011 = vperm.xlu0 %4166, %v4396_v12   ;;  %840 = vmatpush.msra.mxu2 %v3457_v50  ;;  %v1585_v50 = vmul.f32 %v4714_v44, %v1573_v43 }
  0x2c   : > { %639 = vperm.xlu2 %4155, %v4399_v13   ;;  %4061 = vmatpush.msra.mxu3 %v3424_v39  ;;  %v4701_v39 = vsel %vm4631_vm8, %v522_v34, 0.0  ;;  %v1566_v34 = vld [vmem:[%s4692_s19] sm:$0xff] }
  0x2d   : > { %698 = vmatpush.msra.mxu0 %v3420_v51  ;;  %736 = vmatpush.msra.mxu1 %v611_v52  ;;  %542 = vst [vmem:[#allocation2 + $0x18] sm:$0xff] %v4701_v39 }
  0x2e   : > { %841 = vmatpush.msra.mxu2 %v3456_v55  ;;  %4062 = vmatpush.msra.mxu3 %v3423_v42  ;;  %v1572_v42 = vld [vmem:[%s4692_s19 + $0x30] sm:$0xff] }
  0x2f   : > { %699 = vmatpush.msra.mxu0 %v3419_v57  ;;  %737 = vmatpush.msra.mxu1 %v610_v59  ;;  %v1584_v47 = vmul.f32 %v4714_v44, %v1572_v42  ;;  %v2359_v59 = vld [vmem:[%s4753_s13 + $0x38] sm:$0xff] }
  0x30   : > { %842 = vmatpush.msra.mxu2 %v3455_v60  ;;  %4063 = vmatpush.msra.mxu3 %v3422_v45  ;;  %v1581_v45 = vmul.f32 %v4714_v44, %v1569_v37  ;;  %v3512_v60 = vld [vmem:[%s7495_s3 + $0x278] sm:$0xff]  ;;  %v621_v37 = vld [vmem:[#allocation2 + $0x8] sm:$0xff] }
  0x31   : > { %700 = vmatpush.msra.mxu0 %v3418_v61  ;;  %738 = vmatpush.msra.mxu1 %v609_v63 }
  0x32   : > { %4157 = vset.pattern.permute.xlu1 %v4271_v2  ;;  %v521_v2 = vmax.f32 %v513_v62, 0.0  ;;  %843 = vmatpush.msra.mxu2 %v3454_v0  ;;  %v3511_v62 = vld [vmem:[%s7495_s3 + $0x270] sm:$0xff]  ;;  %v4218_v0 = vld [vmem:[%s7497_s5] ss:$0 sm:$0xff] }
  0x33   : > { %648 = vperm.xlu1 %4157, %v4416_v17   ;;  %4167 = vset.pattern.permute.xlu0 %v4272_v3 }
  0x34   : > { %569 = vperm.xlu0 %4167, %v4366_v4   ;;  %4158 = vset.pattern.permute.xlu2 %v4272_v3  ;;  %v4646_v16 = vsel %vm4631_vm8, %v521_v2, 0.0  ;;  %v2394_v2 = vstv %s2393_s20 }
  0x35   : > { %572 = vperm.xlu2 %4158, %v4396_v12   ;;  %4064 = vmatpush.msra.mxu3 %v3421_v48  ;;  %541 = vst [vmem:[#allocation2 + $0x10] sm:$0xff] %v4646_v16  ;;  %v4727_v48 = vld [vmem:[%s7497_s5] ss:$0 sm:$0xff]  ;;  %vm4784_vm10 = vcmp.eq.s32.totalorder %v2394_v2, 1 }
  0x36   : > { %701 = vmatpush.msra.mxu0 %v3417_v8  ;;  %739 = vmatpush.msra.mxu1 %v608_v10  ;;  %v4743_v53 = vadd.f32 %v4727_v48, %v1583_v46  ;;  %v4746_v55 = vadd.f32 %v4727_v48, %v1584_v47  ;;  %v4756_v58 = vadd.f32 %v4727_v48, %v1585_v50  ;;  %v491_v10 = vld [vmem:[%s4560_s22 + $0x10] sm:$0xff] }
  0x37   : > { %844 = vmatpush.msra.mxu2 %v3453_v11  ;;  %4065 = vmatpush.msra.mxu3 %v3420_v51  ;;  %v4737_v51 = vadd.f32 %v4727_v48, %v1581_v45  ;;  %v3506_v45 = vld [vmem:[%s7495_s3 + $0x248] sm:$0xff]  ;;  %v1578_v46 = vmul.f32 %v4714_v44, %v1566_v34 }
  0x38   : > { %740 = vmatpush.msra.mxu1 %v607_v22  ;;  %1061 = vmatpush.msrb.mxu0 %v3512_v60 }
  0x39   : > { %845 = vmatpush.msra.mxu2 %v3452_v25  ;;  %4066 = vmatpush.msra.mxu3 %v3419_v57  ;;  %v1590_v2 = vadd.f32 %v4727_v48, %v1578_v46 }
  0x3a   : > { %741 = vmatpush.msra.mxu1 %v606_v26  ;;  %1062 = vmatpush.msrb.mxu0 %v3511_v62  ;;  %v503_v26 = vmul.f32 %v4583_v54, %v491_v10  ;;  %v3505_v62 = vld [vmem:[%s7495_s3 + $0x240] sm:$0xff]  ;;  %v3504_v10 = vld [vmem:[%s7495_s3 + $0x238] sm:$0xff] }
  0x3b   : > { %651 = vperm.xlu1 %4157, %v4427_v19   ;;  %846 = vmatpush.msra.mxu2 %v3451_v30  ;;  %v505_v30 = vmul.f32 %v4583_v54, %v493_v18 }
  0x3c   : > { %584 = vperm.xlu0 %4167, %v4416_v17   ;;  %4067 = vmatpush.msra.mxu3 %v3418_v61  ;;  %v4217_v61 = vld [vmem:[%s7496_s4] ss:$0 sm:$0xff]  ;;  %v4919_v46 = vld [vmem:[#allocation2 + $0x17] sm:$0xff] }
  0x3d   : > { %4159 = vset.pattern.permute.xlu2 %v4274_v15  ;;  %742 = vmatpush.msra.mxu1 %v605_v32  ;;  %v2371_v63 = vmul.f32 %v4217_v61, %v2359_v59  ;;  %v3507_v32 = vld [vmem:[%s7495_s3 + $0x250] sm:$0xff]  ;;  %v3486_v61 = vld [vmem:[%s7495_s3 + $0x1e8] sm:$0xff] }
  0x3e   : > { %1005 = vperm.xlu2 %4159, %v4369_v5   ;;  %847 = vmatpush.msra.mxu2 %v3450_v35  ;;  %v515_v35 = vadd.f32 %v4592_v56, %v503_v26 }
  0x3f   : > { %4068 = vmatpush.msra.mxu3 %v3417_v8  ;;  %v2383_v1 = vadd.f32 %v4218_v0, %v2371_v63  ;;  %v3510_v8 = vld [vmem:[%s7495_s3 + $0x268] sm:$0xff] }
  0x40   : > { %848 = vmatpush.msra.mxu2 %v3449_v49  ;;  %1063 = vmatpush.msrb.mxu0 %v3510_v8  ;;  %v523_v43 = vmax.f32 %v515_v35, 0.0  ;;  %v1567_v63 = vld [vmem:[%s4692_s19 + $0x8] sm:$0xff]  ;;  %v3485_v8 = vld [vmem:[%s7495_s3 + $0x1e0] sm:$0xff] }
  0x41   : > { %v2391_v11 = vmax.f32 %v2383_v1, 0.0  ;;  %947 = vmatpush.msrb.mxu3 %v3488_v27  ;;  %v495_v1 = vld [vmem:[%s4560_s22 + $0x30] sm:$0xff]  ;;  %v1579_v27 = vmul.f32 %v4714_v44, %v1567_v63  ;;  %v3502_v35 = vld [vmem:[%s7495_s3 + $0x228] sm:$0xff] }
  0x42   : > { %v4835_v49 = vsel %vm4631_vm8, %v523_v43, 0.0  ;;  %v507_v18 = vmul.f32 %v4583_v54, %v495_v1 }
  0x43   : > { %4160 = vset.pattern.permute.xlu1 %v4272_v3  ;;  %v4799_v25 = vsel %vm4784_vm10, %v2391_v11, 0.0  ;;  %948 = vmatpush.msrb.mxu3 %v3487_v28  ;;  %543 = vst [vmem:[#allocation2 + $0x20] sm:$0xff] %v4835_v49  ;;  %v3484_v11 = vld [vmem:[%s7495_s3 + $0x1d8] sm:$0xff]  ;;  %v768_v28 = vld [vmem:[#allocation2 + $0x9] sm:$0xff] }
  0x44   : > { %575 = vperm.xlu1 %4160, %v4399_v13   ;;  %4176 = vset.pattern.permute.xlu0 %v7507_v21  ;;  %7685 = vst [vmem:[#allocation6_spill] sm:$0xff] %v4799_v25  ;;  %v7712_v25 = vmov 6  }
  0x45   : > { %1233 = vperm.xlu0 %4176, %v4369_v5   ;;  %949 = vmatpush.msrb.mxu3 %v3486_v61  ;;  %v1568_v61 = vld [vmem:[%s4692_s19 + $0x10] sm:$0xff] }
  0x46   : > { %4161 = vset.pattern.permute.xlu2 %v4273_v9  ;;  %v1580_v1 = vmul.f32 %v4714_v44, %v1568_v61 }
  0x47   : > { %789 = vperm.xlu2 %4161, %v4379_v7   ;;  %950 = vmatpush.msrb.mxu3 %v3485_v8 }
  0x49   : > { %951 = vmatpush.msrb.mxu3 %v3484_v11 }
  0x4a   : > { %v4957_v11 = vld [vmem:[#allocation2 + $0x19] sm:$0xff] }
  0x4c   : > { %4162 = vset.pattern.permute.xlu1 %v4274_v15 }
  0x4d   : > { %1008 = vperm.xlu1 %4162, %v4366_v4   ;;  %4177 = vset.pattern.permute.xlu0 %v4276_v29 }
  0x4e   : > { %891 = vperm.xlu0 %4177, %v4369_v5  }
  0x4f   : > { %4163 = vset.pattern.permute.xlu2 %v4272_v3 }
  0x50   : > { %578 = vperm.xlu2 %4163, %v4379_v7  }
  0x55   : > { %4164 = vset.pattern.permute.xlu1 %v4273_v9 }
  0x56   : > { %792 = vperm.xlu1 %4164, %v4403_v14   ;;  %906 = vperm.xlu0 %4177, %v4403_v14  }
  0x58   : > { %4165 = vset.pattern.permute.xlu2 %v4276_v29 }
  0x59   : > { %894 = vperm.xlu2 %4165, %v4366_v4  }
  0x5e   : > { %4168 = vset.pattern.permute.xlu1 %v4272_v3  ;;  %4186 = vset.pattern.permute.xlu0 %v4274_v15 }
  0x5f   : > { %581 = vperm.xlu1 %4168, %v4403_v14   ;;  %1026 = vperm.xlu0 %4186, %v4427_v19  }
  0x61   : > { %4169 = vset.pattern.permute.xlu2 %v4273_v9 }
  0x62   : > { %795 = vperm.xlu2 %4169, %v4416_v17  }
  0x67   : > { %4170 = vset.pattern.permute.xlu1 %v4276_v29  ;;  %4191 = vset.pattern.permute.xlu0 %v7511_v24 }
  0x68   : > { %897 = vperm.xlu1 %4170, %v4396_v12   ;;  %1128 = vperm.xlu0 %4191, %v4399_v13  }
  0x6a   : > { %4171 = vset.pattern.permute.xlu2 %v4274_v15 }
  0x6b   : > { %1014 = vperm.xlu2 %4171, %v4399_v13  }
  0x6c   : > { %v4678_v31 = vpop.permute.xlu2 %566 }
  0x6d   : > { %7680 = vst [vmem:[#allocation3_spill] sm:$0xff] %v4678_v31  ;;  %vm589_vm9 = vcmp.eq.s32.totalorder %v4678_v31, 1 }
  0x6e   : > { %3441 = vmatmul.msk.f32.vlgmr.msra.gmra.mxu1 %vm589_vm9, %v549_v36  ;;  %v506_v36 = vmul.f32 %v4583_v54, %v494_v33  ;;  %v3483_v33 = vld [vmem:[%s7495_s3 + $0x1d0] sm:$0xff] }
  0x6f   : > { %952 = vmatpush.msrb.mxu3 %v3483_v33 }
  0x70   : > { %4172 = vset.pattern.permute.xlu1 %v4273_v9  ;;  %v1582_v9 = vmul.f32 %v4714_v44, %v1570_v40  ;;  %v517_v40 = vadd.f32 %v4592_v56, %v505_v30  ;;  %4196 = vset.pattern.permute.xlu0 %v7507_v21  ;;  %v3499_v44 = vld [vmem:[%s7495_s3 + $0x210] sm:$0xff] }
  0x71   : > { %798 = vperm.xlu1 %4172, %v4427_v19   ;;  %1248 = vperm.xlu0 %4196, %v4403_v14  }
  0x72   : > { %v4740_v52 = vadd.f32 %v4727_v48, %v1582_v9  ;;  %v518_v9 = vadd.f32 %v4592_v56, %v506_v36  ;;  %v525_v47 = vmax.f32 %v517_v40, 0.0  ;;  %v4900_v36 = vld [vmem:[#allocation2 + $0x11] sm:$0xff] }
  0x73   : > { %4173 = vset.pattern.permute.xlu2 %v4276_v29 }
  0x74   : > { %900 = vperm.xlu2 %4173, %v4399_v13   ;;  %v526_v50 = vmax.f32 %v518_v9, 0.0  ;;  %v4843_v60 = vsel %vm4631_vm8, %v525_v47, 0.0  ;;  %v3501_v9 = vld [vmem:[%s7495_s3 + $0x220] sm:$0xff]  ;;  %v1591_v47 = vadd.f32 %v4727_v48, %v1579_v27 }
  0x75   : > { %v4748_v57 = vpop.permute.xlu2 %780  ;;  %545 = vst [vmem:[#allocation2 + $0x30] sm:$0xff] %v4843_v60 }
  0x76   : > { %7681 = vst [vmem:[#allocation4_spill] sm:$0xff] %v4748_v57  ;;  %v4855_v0 = vsel %vm4631_vm8, %v526_v50, 0.0  ;;  %v3481_v50 = vld [vmem:[%s7495_s3 + $0x1c0] sm:$0xff]  ;;  %vm7510_vm15 = vcmp.eq.s32.totalorder %v4748_v57, 1 }
  0x77   : > { %546 = vst [vmem:[#allocation2 + $0x38] sm:$0xff] %v4855_v0 }
  0x79   : > { %4174 = vset.pattern.permute.xlu1 %v4274_v15 }
  0x7a   : > { %1017 = vperm.xlu1 %4174, %v4379_v7  }
  0x7c   : > { %4175 = vset.pattern.permute.xlu2 %v4272_v3  ;;  %v3509_v3 = vld [vmem:[%s7495_s3 + $0x260] sm:$0xff] }
  0x7d   : > { %587 = vperm.xlu2 %4175, %v4427_v19   ;;  %1064 = vmatpush.msrb.mxu0 %v3509_v3  ;;  %v3503_v3 = vld [vmem:[%s7495_s3 + $0x230] sm:$0xff] }
  0x7e   : > { %v4788_v22 = vpop.permute.xlu2 %645 }
  0x7f   : > { %7684 = vst [vmem:[#allocation5_spill] sm:$0xff] %v4788_v22  ;;  %1065 = vmatpush.msrb.mxu0 %v3508_v23  ;;  %v519_v23 = vadd.f32 %v4592_v56, %v507_v18  ;;  %vm7597_vm0 = vcmp.eq.s32.totalorder %v4788_v22, 1  ;;  %v3498_v18 = vld [vmem:[%s7495_s3 + $0x208] sm:$0xff] }
  0x81   : > { %1066 = vmatpush.msrb.mxu0 %v3507_v32  ;;  %v1598_v32 = vmax.f32 %v1590_v2, 0.0  ;;  %v527_v34 = vmax.f32 %v519_v23, 0.0  ;;  %v1599_v2 = vmax.f32 %v1591_v47, 0.0  ;;  %v1592_v23 = vadd.f32 %v4727_v48, %v1580_v1  ;;  %v4997_v47 = vld [vmem:[#allocation2 + $0x27] sm:$0xff] }
  0x82   : > { %4178 = vset.pattern.permute.xlu1 %v4276_v29  ;;  %v7516_v1 = vmov 7  }
  0x83   : > { %903 = vperm.xlu1 %4178, %v4379_v7   ;;  %v4820_v41 = vpop.permute.xlu1 %633  ;;  %v4822_v42 = vpop.permute.xlu0 %630  ;;  %1067 = vmatpush.msrb.mxu0 %v3506_v45  ;;  %v4908_v40 = vsel %vm4631_vm8, %v527_v34, 0.0  ;;  %v4913_v45 = vld [vmem:[#allocation2 + $0xf] sm:$0xff]  ;;  %v1600_v48 = vmax.f32 %v1592_v23, 0.0  ;;  %v3477_v34 = vld [vmem:[%s7495_s3 + $0x1a0] sm:$0xff] }
  0x84   : > { %7686 = vst [vmem:[#allocation7_spill] sm:$0xff] %v4820_v41  ;;  %vm7609_vm11 = vcmp.eq.s32.totalorder %v4822_v42, 1  ;;  %vm7614_vm12 = vcmp.eq.s32.totalorder %v4820_v41, 1  ;;  %4201 = vset.pattern.permute.xlu0 %v7516_v1  ;;  %v3742_v41 = vld [vmem:[%s7495_s3 + $0x728] sm:$0xff] }
  0x85   : > { %7687 = vst [vmem:[#allocation8_spill] sm:$0xff] %v4822_v42  ;;  %3433 = vmatmul.msk.f32.vlgmr.msra.gmra.mxu0 %vm7609_vm11, %v621_v37  ;;  %4179 = vset.pattern.permute.xlu2 %v4274_v15  ;;  %v3482_v37 = vld [vmem:[%s7495_s3 + $0x1c8] sm:$0xff]  ;;  %v3800_v42 = vld [vmem:[%s7495_s3 + $0x878] sm:$0xff] }
  0x86   : > { %1020 = vperm.xlu2 %4179, %v4403_v14   ;;  %v4838_v59 = vpop.permute.xlu2 %639  ;;  %1068 = vmatpush.msrb.mxu0 %v3505_v62  ;;  %547 = vst [vmem:[#allocation2 + $0x40] sm:$0xff] %v4908_v40  ;;  %v3500_v62 = vld [vmem:[%s7495_s3 + $0x218] sm:$0xff] }
  0x87   : > { %7688 = vst [vmem:[#allocation9_spill] sm:$0xff] %v4838_v59  ;;  %953 = vmatpush.msrb.mxu3 %v3482_v37  ;;  %vm656_vm2 = vcmp.eq.s32.totalorder %v4838_v59, 1  ;;  %v3476_v37 = vld [vmem:[%s7495_s3 + $0x198] sm:$0xff]  ;;  %1353 = vperm.xlu0 %4201, %v4396_v12  }
  0x88   : > { %1069 = vmatpush.msrb.mxu0 %v3504_v10  ;;  %1606 = vst [vmem:[#allocation2 + $0x10] sm:$0xff] %v1598_v32  ;;  %v3480_v10 = vld [vmem:[%s7495_s3 + $0x1b8] sm:$0xff]  ;;  %v3497_v32 = vld [vmem:[%s7495_s3 + $0x200] sm:$0xff] }
  0x89   : > { %954 = vmatpush.msrb.mxu3 %v3481_v50  ;;  %v3475_v50 = vld [vmem:[%s7495_s3 + $0x190] sm:$0xff] }
  0x8a   : > { %1070 = vmatpush.msrb.mxu0 %v3503_v3  ;;  %v4963_v3 = vld [vmem:[#allocation2 + $0x1f] sm:$0xff] }
  0x8b   : > { %4180 = vset.pattern.permute.xlu1 %v7511_v24  ;;  %v4877_v26 = vpop.permute.xlu1 %642  ;;  %955 = vmatpush.msrb.mxu3 %v3480_v10  ;;  %1607 = vst [vmem:[#allocation2 + $0x18] sm:$0xff] %v1599_v2  ;;  %v3473_v10 = vld [vmem:[%s7495_s3 + $0x180] sm:$0xff] }
  0x8c   : > { %7689 = vst [vmem:[#allocation10_spill] sm:$0xff] %v4877_v26  ;;  %vm7640_vm13 = vcmp.eq.s32.totalorder %v4877_v26, 1  ;;  %1119 = vperm.xlu1 %4180, %v4369_v5   ;;  %v4883_v30 = vpop.permute.xlu0 %777  ;;  %1071 = vmatpush.msrb.mxu0 %v3502_v35 }
  0x8d   : > { %7690 = vst [vmem:[#allocation11_spill] sm:$0xff] %v4883_v30  ;;  %vm800_vm14 = vcmp.eq.s32.totalorder %v4883_v30, 1  ;;  %3434 = vmatmul.msk.f32.gmra.mxu0 %vm7614_vm12, %v4646_v16  ;;  %3437 = vmatmul.msk.f32.vlgmr.msra.gmra.mxu3 %vm7640_vm13, %v4697_v38 }
  0x8e   : > { %3465 = vmatmul.msk.f32.vlgmr.msra.gmra.mxu2 %vm800_vm14, %v768_v28  ;;  %4181 = vset.pattern.permute.xlu2 %v7507_v21  ;;  %v3478_v28 = vld [vmem:[%s7495_s3 + $0x1a8] sm:$0xff] }
  0x8f   : > { %1236 = vperm.xlu2 %4181, %v4366_v4   ;;  %v4911_v43 = vpop.permute.xlu2 %572  ;;  %1072 = vmatpush.msrb.mxu0 %v3501_v9  ;;  %v4995_v9 = vld [vmem:[#allocation2 + $0x21] sm:$0xff] }
  0x90   : > { %7691 = vst [vmem:[#allocation12_spill] sm:$0xff] %v4911_v43 }
  0x91   : > { %1073 = vmatpush.msrb.mxu0 %v3500_v62  ;;  %1608 = vst [vmem:[#allocation2 + $0x20] sm:$0xff] %v1600_v48  ;;  %v3474_v62 = vld [vmem:[%s7495_s3 + $0x188] sm:$0xff] }
  0x93   : > { %v4931_v63 = vpop.permute.xlu1 %636  ;;  %1074 = vmatpush.msrb.mxu0 %v3499_v44 }
  0x94   : > { %7692 = vst [vmem:[#allocation13_spill] sm:$0xff] %v4931_v63  ;;  %vm7623_vm1 = vcmp.eq.s32.totalorder %v4931_v63, 1  ;;  %4182 = vset.pattern.permute.xlu1 %v4274_v15  ;;  %v4936_v8 = vpop.permute.xlu0 %786  ;;  %v3479_v15 = vld [vmem:[%s7495_s3 + $0x1b0] sm:$0xff]  ;;  %v3774_v63 = vld [vmem:[%s7495_s3 + $0x7e8] sm:$0xff] }
  0x95   : > { %7693 = vst [vmem:[#allocation14_spill] sm:$0xff] %v4936_v8  ;;  %1023 = vperm.xlu1 %4182, %v4416_v17   ;;  %3435 = vmatmul.msk.f32.gmra.mxu0 %vm7623_vm1, %v4701_v39  ;;  %vm7502_vm5 = vcmp.eq.s32.totalorder %v4936_v8, 1 }
  0x96   : > { %3466 = vmatmul.msk.f32.gmra.mxu2 %vm7510_vm15, %v4900_v36  ;;  %3438 = vmatmul.msk.f32.gmra.mxu3 %vm7597_vm0, %v4843_v60 }
  0x97   : > { %4183 = vset.pattern.permute.xlu2 %v7511_v24  ;;  %956 = vmatpush.msrb.mxu3 %v3479_v15  ;;  %v5041_v15 = vld [vmem:[#allocation2 + $0x29] sm:$0xff] }
  0x98   : > { %1122 = vperm.xlu2 %4183, %v4366_v4   ;;  %v4967_v27 = vpop.permute.xlu2 %1005  ;;  %1075 = vmatpush.msrb.mxu0 %v3498_v18  ;;  %v7518_v18 = vmov 8  }
  0x99   : > { %7694 = vst [vmem:[#allocation15_spill] sm:$0xff] %v4967_v27  ;;  %957 = vmatpush.msrb.mxu3 %v3478_v28  ;;  %vm7501_vm4 = vcmp.eq.s32.totalorder %v4967_v27, 1  ;;  %4206 = vset.pattern.permute.xlu0 %v7518_v18  ;;  %v5266_v27 = vld [vmem:[#allocation2 + $0x3f] sm:$0xff] }
  0x9a   : > { %1076 = vmatpush.msrb.mxu0 %v3497_v32  ;;  %1473 = vperm.xlu0 %4206, %v4379_v7  }
  0x9b   : > { %958 = vmatpush.msrb.mxu3 %v3477_v34 }
  0x9c   : > { %v4976_v33 = vpop.permute.xlu1 %783 }
  0x9d   : > { %7695 = vst [vmem:[#allocation16_spill] sm:$0xff] %v4976_v33  ;;  %vm7503_vm3 = vcmp.eq.s32.totalorder %v4976_v33, 1  ;;  %4184 = vset.pattern.permute.xlu1 %v7507_v21  ;;  %v4983_v35 = vpop.permute.xlu0 %1011  ;;  %3436 = vmatmul.msk.f32.gmra.mxu0 %vm656_vm2, %v4835_v49 }
  0x9e   : > { %7696 = vst [vmem:[#allocation17_spill] sm:$0xff] %v4983_v35  ;;  %1239 = vperm.xlu1 %4184, %v4396_v12   ;;  %3467 = vmatmul.msk.f32.gmra.mxu2 %vm7503_vm3, %v4957_v11 }
  0x9f   : > { %959 = vmatpush.msrb.mxu3 %v3476_v37 }
  0xa0   : > { %4185 = vset.pattern.permute.xlu2 %v4276_v29 }
  0xa1   : > { %909 = vperm.xlu2 %4185, %v4416_v17   ;;  %v5004_v61 = vpop.permute.xlu2 %789  ;;  %960 = vmatpush.msrb.mxu3 %v3475_v50 }
  0xa2   : > { %7697 = vst [vmem:[#allocation18_spill] sm:$0xff] %v5004_v61  ;;  %1479 = vperm.xlu0 %4206, %v4416_v17  }
  0xa3   : > { %961 = vmatpush.msrb.mxu3 %v3474_v62 }
  0xa5   : > { %v5013_v2 = vpop.permute.xlu1 %648  ;;  %3513 = vmatmul.msk.f32.vlgmr.msrb.gmra.mxu0 %vm7501_vm4, %v4646_v16  ;;  %962 = vmatpush.msrb.mxu3 %v3473_v10  ;;  %vm7504_vm4 = vcmp.eq.s32.totalorder %v5004_v61, 1  ;;  %v3608_v61 = vld [vmem:[%s7495_s3 + $0x478] sm:$0xff] }
  0xa6   : > { %7698 = vst [vmem:[#allocation19_spill] sm:$0xff] %v5013_v2  ;;  %vm7506_vm6 = vcmp.eq.s32.totalorder %v5013_v2, 1  ;;  %4187 = vset.pattern.permute.xlu1 %v7511_v24  ;;  %v5023_v44 = vpop.permute.xlu0 %569  ;;  %3468 = vmatmul.msk.f32.gmra.mxu2 %vm7502_vm5, %v4995_v9  ;;  %vm591_vm5 = vcmp.eq.s32.totalorder %v4911_v43, 1  ;;  %v3739_v43 = vld [vmem:[%s7495_s3 + $0x710] sm:$0xff] }
  0xa7   : > { %7699 = vst [vmem:[#allocation20_spill] sm:$0xff] %v5023_v44  ;;  %vm590_vm7 = vcmp.eq.s32.totalorder %v5023_v44, 1  ;;  %1125 = vperm.xlu1 %4187, %v4396_v12   ;;  %3439 = vmatmul.msk.f32.gmra.mxu3 %vm7506_vm6, %v4855_v0  ;;  %v3795_v44 = vld [vmem:[%s7495_s3 + $0x850] sm:$0xff] }
  0xa8   : > { %3442 = vmatmul.msk.f32.gmra.mxu1 %vm590_vm7, %v4913_v45  ;;  %1517 = vmatpush.msra.mxu0 %v3608_v61  ;;  %v3607_v61 = vld [vmem:[%s7495_s3 + $0x470] sm:$0xff] }
  0xa9   : > { %4188 = vset.pattern.permute.xlu2 %v7507_v21 }
  0xaa   : > { %1242 = vperm.xlu2 %4188, %v4399_v13   ;;  %v5038_v16 = vpop.permute.xlu2 %578  ;;  %4211 = vset.pattern.permute.xlu0 %v7516_v1 }
  0xab   : > { %7700 = vst [vmem:[#allocation21_spill] sm:$0xff] %v5038_v16  ;;  %1368 = vperm.xlu0 %4211, %v4427_v19   ;;  %1518 = vmatpush.msra.mxu0 %v3607_v61  ;;  %v3605_v61 = vld [vmem:[%s7495_s3 + $0x460] sm:$0xff] }
  0xad   : > { %v5045_v23 = vpop.permute.xlu1 %651 }
  0xae   : > { %7701 = vst [vmem:[#allocation22_spill] sm:$0xff] %v5045_v23  ;;  %vm7505_vm3 = vcmp.eq.s32.totalorder %v5045_v23, 1  ;;  %v5049_v28 = vpop.permute.xlu0 %584  ;;  %3469 = vmatmul.msk.f32.gmra.mxu2 %vm7504_vm4, %v5041_v15 }
  0xaf   : > { %4189 = vset.pattern.permute.xlu1 %v4276_v29  ;;  %3440 = vmatmul.msk.f32.gmra.mxu3 %vm7505_vm3, %v4908_v40  ;;  %v496_v29 = vld [vmem:[%s4560_s22 + $0x38] sm:$0xff]  ;;  %vm7513_vm3 = vcmp.eq.s32.totalorder %v5038_v16, 1 }
  0xb0   : > { %912 = vperm.xlu1 %4189, %v4427_v19   ;;  %3443 = vmatmul.msk.f32.gmra.mxu1 %vm591_vm5, %v4919_v46  ;;  %v508_v37 = vmul.f32 %v4583_v54, %v496_v29  ;;  %v3560_v54 = vld [vmem:[%s7495_s3 + $0x378] sm:$0xff]  ;;  %v3559_v29 = vld [vmem:[%s7495_s3 + $0x370] sm:$0xff] }
  0xb1   : > { %1289 = vmatpush.msrb.mxu2 %v3560_v54  ;;  %v3557_v54 = vld [vmem:[%s7495_s3 + $0x360] sm:$0xff] }
  0xb2   : > { %4190 = vset.pattern.permute.xlu2 %v7518_v18  ;;  %v520_v50 = vadd.f32 %v4592_v56, %v508_v37  ;;  %v3536_v56 = vld [vmem:[%s7495_s3 + $0x2f8] sm:$0xff] }
  0xb3   : > { %1461 = vperm.xlu2 %4190, %v4369_v5   ;;  %v5064_v32 = vpop.permute.xlu2 %894  ;;  %1175 = vmatpush.msrb.mxu1 %v3536_v56  ;;  %v3556_v56 = vld [vmem:[%s7495_s3 + $0x358] sm:$0xff] }
  0xb4   : > { %7702 = vst [vmem:[#allocation23_spill] sm:$0xff] %v5064_v32  ;;  %v528_v62 = vmax.f32 %v520_v50, 0.0  ;;  %1290 = vmatpush.msrb.mxu2 %v3559_v29  ;;  %v3534_v29 = vld [vmem:[%s7495_s3 + $0x2e8] sm:$0xff]  ;;  %4212 = vset.pattern.permute.xlu0 %v7518_v18  ;;  %vm7520_vm15 = vcmp.eq.s32.totalorder %v5064_v32, 1 }
  0xb6   : > { %v5067_v48 = vpop.permute.xlu1 %575  ;;  %1291 = vmatpush.msrb.mxu2 %v3558_v6  ;;  %v3555_v6 = vld [vmem:[%s7495_s3 + $0x350] sm:$0xff] }
  0xb7   : > { %vm592_vm4 = vcmp.eq.s32.totalorder %v5067_v48, 1  ;;  %v5071_v34 = vpop.permute.xlu0 %1233  ;;  %v3909_v48 = vld [vmem:[%s7495_s3 + $0xaa0] sm:$0xff] }
  0xb8   : > { %7703 = vst [vmem:[#allocation24_spill] sm:$0xff] %v5071_v34  ;;  %4192 = vset.pattern.permute.xlu1 %v7507_v21  ;;  %3444 = vmatmul.msk.f32.gmra.mxu1 %vm592_vm4, %v4963_v3 }
  0xb9   : > { %1245 = vperm.xlu1 %4192, %v4379_v7   ;;  %1292 = vmatpush.msrb.mxu2 %v3557_v54  ;;  %v3532_v54 = vld [vmem:[%s7495_s3 + $0x2d8] sm:$0xff] }
  0xbb   : > { %4193 = vset.pattern.permute.xlu2 %v7516_v1  ;;  %1293 = vmatpush.msrb.mxu2 %v3556_v56  ;;  %v3531_v56 = vld [vmem:[%s7495_s3 + $0x2d0] sm:$0xff] }
  0xbc   : > { %1347 = vperm.xlu2 %4193, %v4369_v5   ;;  %v5082_v10 = vpop.permute.xlu2 %795  ;;  %v5096_v5 = vsel %vm4631_vm8, %v528_v62, 0.0  ;;  %v3535_v62 = vld [vmem:[%s7495_s3 + $0x2f0] sm:$0xff] }
  0xbd   : > { %7704 = vst [vmem:[#allocation25_spill] sm:$0xff] %v5082_v10  ;;  %1176 = vmatpush.msrb.mxu1 %v3535_v62  ;;  %v5145_v62 = vld [vmem:[#allocation2 + $0x31] sm:$0xff]  ;;  %1294 = vmatpush.msrb.mxu2 %v3555_v6  ;;  %v3530_v6 = vld [vmem:[%s7495_s3 + $0x2c8] sm:$0xff] }
  0xbe   : > { %548 = vst [vmem:[#allocation2 + $0x48] sm:$0xff] %v5096_v5 }
  0xbf   : > { %v5101_v37 = vpop.permute.xlu1 %1008  ;;  %1177 = vmatpush.msrb.mxu1 %v3534_v29  ;;  %v3554_v29 = vld [vmem:[%s7495_s3 + $0x348] sm:$0xff] }
  0xc0   : > { %7705 = vst [vmem:[#allocation26_spill] sm:$0xff] %v5101_v37  ;;  %vm7509_vm6 = vcmp.eq.s32.totalorder %v5101_v37, 1  ;;  %v5104_v50 = vpop.permute.xlu0 %891  ;;  %3445 = vmatmul.msk.f32.gmra.mxu1 %vm7513_vm3, %v4997_v47  ;;  %1295 = vmatpush.msrb.mxu2 %v3554_v29  ;;  %v5186_v29 = vld [vmem:[#allocation2 + $0x39] sm:$0xff]  ;;  %v7714_v37 = vmov 8  }
  0xc1   : > { %7706 = vst [vmem:[#allocation27_spill] sm:$0xff] %v5104_v50  ;;  %vm7639_vm8 = vcmp.eq.s32.totalorder %v5104_v50, 1  ;;  %4194 = vset.pattern.permute.xlu1 %v7518_v18  ;;  %3514 = vmatmul.msk.f32.gmra.mxu0 %vm7509_vm6, %v4701_v39  ;;  %vm7514_vm6 = vcmp.eq.s32.totalorder %v4983_v35, 1 }
  0xc2   : > { %1464 = vperm.xlu1 %4194, %v4366_v4   ;;  %3489 = vmatmul.msk.f32.vlgmr.msrb.gmra.mxu3 %vm7639_vm8, %v4913_v45  ;;  %v3533_v45 = vld [vmem:[%s7495_s3 + $0x2e0] sm:$0xff] }
  0xc3   : > { %1178 = vmatpush.msrb.mxu1 %v3533_v45  ;;  %v3553_v45 = vld [vmem:[%s7495_s3 + $0x340] sm:$0xff] }
  0xc4   : > { %4195 = vset.pattern.permute.xlu2 %v7511_v24  ;;  %1296 = vmatpush.msrb.mxu2 %v3553_v45  ;;  %v3528_v45 = vld [vmem:[%s7495_s3 + $0x2b8] sm:$0xff] }
  0xc5   : > { %1131 = vperm.xlu2 %4195, %v4379_v7   ;;  %v5135_v21 = vpop.permute.xlu2 %1014  ;;  %1179 = vmatpush.msrb.mxu1 %v3532_v54  ;;  %v3552_v54 = vld [vmem:[%s7495_s3 + $0x338] sm:$0xff] }
  0xc6   : > { %7707 = vst [vmem:[#allocation28_spill] sm:$0xff] %v5135_v21  ;;  %1297 = vmatpush.msrb.mxu2 %v3552_v54  ;;  %v3549_v54 = vld [vmem:[%s7495_s3 + $0x320] sm:$0xff] }
  0xc7   : > { %1180 = vmatpush.msrb.mxu1 %v3531_v56  ;;  %v3551_v56 = vld [vmem:[%s7495_s3 + $0x330] sm:$0xff]  ;;  %v7815_v20 = vld [vmem:[#allocation26_spill] sm:$0xff] }
  0xc8   : > { %v5148_v24 = vpop.permute.xlu1 %792  ;;  %1298 = vmatpush.msrb.mxu2 %v3551_v56  ;;  %v3548_v56 = vld [vmem:[%s7495_s3 + $0x318] sm:$0xff] }
  0xc9   : > { %7708 = vst [vmem:[#allocation29_spill] sm:$0xff] %v5148_v24  ;;  %vm7515_vm3 = vcmp.eq.s32.totalorder %v5148_v24, 1  ;;  %3515 = vmatmul.msk.f32.gmra.mxu0 %vm7514_vm6, %v4835_v49  ;;  %vm7524_vm6 = vcmp.eq.s32.totalorder %v5135_v21, 1  ;;  %1181 = vmatpush.msrb.mxu1 %v3530_v6  ;;  %v7711_v6 = vmov 5   ;;  %v3526_v21 = vld [vmem:[%s7495_s3 + $0x2a8] sm:$0xff]  ;;  %v3545_v24 = vld [vmem:[%s7495_s3 + $0x300] sm:$0xff] }
  0xca   : > { %4197 = vset.pattern.permute.xlu1 %v7516_v1  ;;  %3470 = vmatmul.msk.f32.gmra.mxu2 %vm7515_vm3, %v5145_v62  ;;  %vm7529_vm3 = vcmp.eq.s32.totalorder %v5082_v10, 1  ;;  %v3529_v1 = vld [vmem:[%s7495_s3 + $0x2c0] sm:$0xff] }
  0xcb   : > { %3490 = vmatmul.msk.f32.gmra.mxu3 %vm7520_vm15, %v4919_v46  ;;  %1350 = vperm.xlu1 %4197, %v4366_v4   ;;  %v3525_v10 = vld [vmem:[%s7495_s3 + $0x2a0] sm:$0xff] }
  0xcc   : > { %1182 = vmatpush.msrb.mxu1 %v3529_v1  ;;  %v3527_v1 = vld [vmem:[%s7495_s3 + $0x2b0] sm:$0xff] }
  0xcd   : > { %4198 = vset.pattern.permute.xlu2 %v7518_v18  ;;  %v5191_v18 = vld [vmem:[#allocation2 + $0x2f] sm:$0xff] }
  0xce   : > { %1467 = vperm.xlu2 %4198, %v4396_v12   ;;  %v5180_v4 = vpop.permute.xlu2 %900  ;;  %1183 = vmatpush.msrb.mxu1 %v3528_v45  ;;  %v5231_v45 = vld [vmem:[#allocation2 + $0x37] sm:$0xff] }
  0xcf   : > { %7709 = vst [vmem:[#allocation30_spill] sm:$0xff] %v5180_v4 }
  0xd0   : > { %1184 = vmatpush.msrb.mxu1 %v3527_v1  ;;  %v3547_v1 = vld [vmem:[%s7495_s3 + $0x310] sm:$0xff] }
  0xd1   : > { %v5193_v12 = vpop.permute.xlu1 %581  ;;  %3516 = vmatmul.msk.f32.gmra.mxu0 %vm7524_vm6, %v4697_v38  ;;  %v3550_v38 = vld [vmem:[%s7495_s3 + $0x328] sm:$0xff]  ;;  %vm7534_vm6 = vcmp.eq.s32.totalorder %v5049_v28, 1 }
  0xd2   : > { %7710 = vst [vmem:[#allocation31_spill] sm:$0xff] %v5193_v12  ;;  %vm7542_vm15 = vcmp.eq.s32.totalorder %v5193_v12, 1  ;;  %3471 = vmatmul.msk.f32.gmra.mxu2 %vm7529_vm3, %v5186_v29  ;;  %1185 = vmatpush.msrb.mxu1 %v3526_v21  ;;  %v3524_v21 = vld [vmem:[%s7495_s3 + $0x298] sm:$0xff] }
  0xd3   : > { %4199 = vset.pattern.permute.xlu1 %v7711_v6  ;;  %3446 = vmatmul.msk.f32.gmra.mxu1 %vm7542_vm15, %v5191_v18 }
  0xd4   : > { %1134 = vperm.xlu1 %4199, %v4403_v14   ;;  %1299 = vmatpush.msrb.mxu2 %v3550_v38 }
  0xd5   : > { %1186 = vmatpush.msrb.mxu1 %v3525_v10 }
  0xd6   : > { %4200 = vset.pattern.permute.xlu2 %v7712_v25  ;;  %1300 = vmatpush.msrb.mxu2 %v3549_v54  ;;  %v3546_v54 = vld [vmem:[%s7495_s3 + $0x308] sm:$0xff] }
  0xd7   : > { %1251 = vperm.xlu2 %4200, %v4416_v17   ;;  %v5233_v35 = vpop.permute.xlu2 %587  ;;  %1187 = vmatpush.msrb.mxu1 %v3524_v21  ;;  %v5275_v21 = vld [vmem:[#allocation2 + $0x41] sm:$0xff] }
  0xd8   : > { %1301 = vmatpush.msrb.mxu2 %v3548_v56  ;;  %v3523_v56 = vld [vmem:[%s7495_s3 + $0x290] sm:$0xff] }
  0xd9   : > { %1188 = vmatpush.msrb.mxu1 %v3523_v56 }
  0xda   : > { %v5235_v38 = vpop.permute.xlu1 %897  ;;  %1302 = vmatpush.msrb.mxu2 %v3547_v1  ;;  %v3522_v1 = vld [vmem:[%s7495_s3 + $0x288] sm:$0xff] }
  0xdb   : > { %7713 = vst [vmem:[#allocation32_spill] sm:$0xff] %v5235_v38  ;;  %vm7537_vm3 = vcmp.eq.s32.totalorder %v5235_v38, 1  ;;  %3447 = vmatmul.msk.f32.gmra.mxu1 %vm7534_vm6, %v5231_v45  ;;  %vm7543_vm6 = vcmp.eq.s32.totalorder %v5233_v35, 1 }
  0xdc   : > { %4202 = vset.pattern.permute.xlu1 %v7714_v37  ;;  %3491 = vmatmul.msk.f32.gmra.mxu3 %vm7537_vm3, %v4963_v3  ;;  %vm7547_vm3 = vcmp.eq.s32.totalorder %v5180_v4, 1 }
  0xdd   : > { %1470 = vperm.xlu1 %4202, %v4399_v13   ;;  %1303 = vmatpush.msrb.mxu2 %v3546_v54  ;;  %v3521_v54 = vld [vmem:[%s7495_s3 + $0x280] sm:$0xff] }
  0xde   : > { %1189 = vmatpush.msrb.mxu1 %v3522_v1  ;;  %v3606_v1 = vld [vmem:[%s7495_s3 + $0x468] sm:$0xff] }
  0xdf   : > { %4203 = vset.pattern.permute.xlu2 %v7711_v6  ;;  %1304 = vmatpush.msrb.mxu2 %v3545_v24  ;;  %v7717_v24 = vmov 7  }
  0xe0   : > { %1137 = vperm.xlu2 %4203, %v4416_v17   ;;  %v5269_v10 = vpop.permute.xlu2 %1020  ;;  %1190 = vmatpush.msrb.mxu1 %v3521_v54  ;;  %v3583_v54 = vld [vmem:[%s7495_s3 + $0x3f0] sm:$0xff] }
  0xe1   : > { %7715 = vst [vmem:[#allocation33_spill] sm:$0xff] %v5269_v10  ;;  %1519 = vmatpush.msra.mxu0 %v3606_v1 }
  0xe3   : > { %v5280_v8 = vpop.permute.xlu1 %798  ;;  %3448 = vmatmul.msk.f32.gmra.mxu1 %vm7543_vm6, %v5266_v27  ;;  %vm7545_vm6 = vcmp.eq.s32.totalorder %v5071_v34, 1  ;;  %1520 = vmatpush.msra.mxu0 %v3605_v61  ;;  %v3603_v61 = vld [vmem:[%s7495_s3 + $0x450] sm:$0xff] }
  0xe4   : > { %7716 = vst [vmem:[#allocation34_spill] sm:$0xff] %v5280_v8  ;;  %vm7544_vm15 = vcmp.eq.s32.totalorder %v5280_v8, 1  ;;  %3492 = vmatmul.msk.f32.gmra.mxu3 %vm7547_vm3, %v4997_v47 }
  0xe5   : > { %4204 = vset.pattern.permute.xlu1 %v7712_v25  ;;  %3472 = vmatmul.msk.f32.gmra.mxu2 %vm7544_vm15, %v5275_v21  ;;  %v3584_v25 = vld [vmem:[%s7495_s3 + $0x3f8] sm:$0xff] }
  0xe6   : > { %1254 = vperm.xlu1 %4204, %v4427_v19   ;;  %1403 = vmatpush.msra.mxu3 %v3584_v25  ;;  %v3582_v25 = vld [vmem:[%s7495_s3 + $0x3e8] sm:$0xff] }
  0xe8   : > { %4205 = vset.pattern.permute.xlu2 %v7717_v24  ;;  %1404 = vmatpush.msra.mxu3 %v3583_v54  ;;  %v3579_v54 = vld [vmem:[%s7495_s3 + $0x3d0] sm:$0xff] }
  0xe9   : > { %1356 = vperm.xlu2 %4205, %v4399_v13   ;;  %v5302_v56 = vpop.permute.xlu2 %1236 }
  0xea   : > { %7718 = vst [vmem:[#allocation35_spill] sm:$0xff] %v5302_v56  ;;  %1405 = vmatpush.msra.mxu3 %v3582_v25  ;;  %v3602_v25 = vld [vmem:[%s7495_s3 + $0x448] sm:$0xff] }
  0xec   : > { %v5314_v13 = vpop.permute.xlu1 %1017 }
  0xed   : > { %7719 = vst [vmem:[#allocation36_spill] sm:$0xff] %v5314_v13  ;;  %vm7546_vm15 = vcmp.eq.s32.totalorder %v5314_v13, 1  ;;  %3561 = vmatmul.msk.f32.vlgmr.msrb.gmra.mxu2 %vm7545_vm6, %v4919_v46  ;;  %vm7549_vm6 = vcmp.eq.s32.totalorder %v5302_v56, 1  ;;  %v3700_v56 = vld [vmem:[%s7495_s3 + $0x658] sm:$0xff] }
  0xee   : > { %4207 = vset.pattern.permute.xlu1 %v7711_v6  ;;  %3517 = vmatmul.msk.f32.gmra.mxu0 %vm7546_vm15, %v4843_v60  ;;  %v3581_v60 = vld [vmem:[%s7495_s3 + $0x3e0] sm:$0xff]  ;;  %vm7548_vm15 = vcmp.eq.s32.totalorder %v5269_v10, 1  ;;  %v3580_v6 = vld [vmem:[%s7495_s3 + $0x3d8] sm:$0xff]  ;;  %v3678_v10 = vld [vmem:[%s7495_s3 + $0x5e8] sm:$0xff] }
  0xef   : > { %1140 = vperm.xlu1 %4207, %v4427_v19   ;;  %1406 = vmatpush.msra.mxu3 %v3581_v60  ;;  %v3577_v60 = vld [vmem:[%s7495_s3 + $0x3c0] sm:$0xff] }
  0xf1   : > { %1359 = vperm.xlu2 %4205, %v4379_v7   ;;  %v3604_v7 = vld [vmem:[%s7495_s3 + $0x458] sm:$0xff]  ;;  %1407 = vmatpush.msra.mxu3 %v3580_v6 }
  0xf2   : > { %v5333_v46 = vpop.permute.xlu2 %1122  ;;  %1521 = vmatpush.msra.mxu0 %v3604_v7  ;;  %v3601_v7 = vld [vmem:[%s7495_s3 + $0x440] sm:$0xff] }
  0xf3   : > { %7720 = vst [vmem:[#allocation37_spill] sm:$0xff] %v5333_v46  ;;  %1408 = vmatpush.msra.mxu3 %v3579_v54  ;;  %v3600_v54 = vld [vmem:[%s7495_s3 + $0x438] sm:$0xff] }
  0xf4   : > { %1522 = vmatpush.msra.mxu0 %v3603_v61 }
  0xf5   : > { %v5345_v1 = vpop.permute.xlu1 %903  ;;  %3562 = vmatmul.msk.f32.gmra.mxu2 %vm7549_vm6, %v4963_v3  ;;  %v5365_v3 = vpop.permute.xlu0 %906 }
  0xf6   : > { %7721 = vst [vmem:[#allocation38_spill] sm:$0xff] %v5345_v1  ;;  %vm7551_vm3 = vcmp.eq.s32.totalorder %v5345_v1, 1  ;;  %3518 = vmatmul.msk.f32.gmra.mxu0 %vm7548_vm15, %v4855_v0  ;;  %v3578_v0 = vld [vmem:[%s7495_s3 + $0x3c8] sm:$0xff]  ;;  %vm7550_vm15 = vcmp.eq.s32.totalorder %v5365_v3, 1 }
  0xf7   : > { %4208 = vset.pattern.permute.xlu1 %v7714_v37  ;;  %3493 = vmatmul.msk.f32.gmra.mxu3 %vm7551_vm3, %v5191_v18  ;;  %7722 = vst [vmem:[#allocation39_spill] sm:$0xff] %v5365_v3  ;;  %vm7555_vm3 = vcmp.eq.s32.totalorder %v5333_v46, 1 }
  0xf8   : > { %1476 = vperm.xlu1 %4208, %v4403_v14   ;;  %1409 = vmatpush.msra.mxu3 %v3578_v0  ;;  %v3575_v0 = vld [vmem:[%s7495_s3 + $0x3b0] sm:$0xff] }
  0xf9   : > { %1362 = vperm.xlu2 %4205, %v4403_v14   ;;  %1523 = vmatpush.msra.mxu0 %v3602_v25  ;;  %v3576_v14 = vld [vmem:[%s7495_s3 + $0x3b8] sm:$0xff]  ;;  %v3599_v25 = vld [vmem:[%s7495_s3 + $0x430] sm:$0xff] }
  0xfa   : > { %1410 = vmatpush.msra.mxu3 %v3577_v60  ;;  %v3574_v60 = vld [vmem:[%s7495_s3 + $0x3a8] sm:$0xff] }
  0xfb   : > { %v5384_v6 = vpop.permute.xlu2 %909  ;;  %1524 = vmatpush.msra.mxu0 %v3601_v7 }
  0xfc   : > { %7723 = vst [vmem:[#allocation40_spill] sm:$0xff] %v5384_v6  ;;  %1411 = vmatpush.msra.mxu3 %v3576_v14  ;;  %v3596_v14 = vld [vmem:[%s7495_s3 + $0x418] sm:$0xff] }
  0xfd   : > { %1525 = vmatpush.msra.mxu0 %v3600_v54  ;;  %v3571_v54 = vld [vmem:[%s7495_s3 + $0x390] sm:$0xff] }
  0xfe   : > { %v5389_v61 = vpop.permute.xlu1 %1119  ;;  %1412 = vmatpush.msra.mxu3 %v3575_v0  ;;  %v3656_v0 = vld [vmem:[%s7495_s3 + $0x578] sm:$0xff] }
  0xff   : > { %7724 = vst [vmem:[#allocation41_spill] sm:$0xff] %v5389_v61  ;;  %vm7552_vm6 = vcmp.eq.s32.totalorder %v5389_v61, 1  ;;  %3494 = vmatmul.msk.f32.gmra.mxu3 %vm7550_vm15, %v5231_v45  ;;  %1526 = vmatpush.msra.mxu0 %v3599_v25  ;;  %vm7554_vm15 = vcmp.eq.s32.totalorder %v5384_v6, 1  ;;  %v3595_v25 = vld [vmem:[%s7495_s3 + $0x410] sm:$0xff] }
 0x100   : > { %4209 = vset.pattern.permute.xlu1 %v7717_v24  ;;  %3537 = vmatmul.msk.f32.vlgmr.msrb.gmra.mxu1 %vm7552_vm6, %v4900_v36  ;;  %v3598_v24 = vld [vmem:[%s7495_s3 + $0x428] sm:$0xff]  ;;  %v3573_v36 = vld [vmem:[%s7495_s3 + $0x3a0] sm:$0xff] }
 0x101   : > { %1365 = vperm.xlu1 %4209, %v4416_v17   ;;  %4210 = vset.pattern.permute.xlu2 %v7714_v37  ;;  %v3597_v37 = vld [vmem:[%s7495_s3 + $0x420] sm:$0xff] }
 0x102   : > { %1482 = vperm.xlu2 %4210, %v4427_v19   ;;  %1413 = vmatpush.msra.mxu3 %v3574_v60  ;;  %v3572_v19 = vld [vmem:[%s7495_s3 + $0x398] sm:$0xff]  ;;  %v3570_v60 = vld [vmem:[%s7495_s3 + $0x388] sm:$0xff] }
 0x103   : > { %1527 = vmatpush.msra.mxu0 %v3598_v24  ;;  %1729 = vmatpush.msra.mxu2 %v3656_v0  ;;  %v3594_v24 = vld [vmem:[%s7495_s3 + $0x408] sm:$0xff] }
 0x104   : > { %v5418_v17 = vpop.permute.xlu2 %1242  ;;  %1414 = vmatpush.msra.mxu3 %v3573_v36  ;;  %v3569_v36 = vld [vmem:[%s7495_s3 + $0x380] sm:$0xff]  ;;  %v3654_v0 = vld [vmem:[%s7495_s3 + $0x568] sm:$0xff] }
 0x105   : > { %7725 = vst [vmem:[#allocation42_spill] sm:$0xff] %v5418_v17  ;;  %1528 = vmatpush.msra.mxu0 %v3597_v37 }
 0x106   : > { %1415 = vmatpush.msra.mxu3 %v3572_v19  ;;  %v5465_v19 = vpop.permute.xlu0 %1026 }
 0x107   : > { %v5427_v7 = vpop.permute.xlu1 %1023  ;;  %3495 = vmatmul.msk.f32.gmra.mxu3 %vm7554_vm15, %v5266_v27  ;;  %1529 = vmatpush.msra.mxu0 %v3596_v14  ;;  %7728 = vst [vmem:[#allocation45_spill] sm:$0xff] %v5465_v19  ;;  %v3593_v14 = vld [vmem:[%s7495_s3 + $0x400] sm:$0xff] }
 0x108   : > { %7726 = vst [vmem:[#allocation43_spill] sm:$0xff] %v5427_v7  ;;  %vm7553_vm6 = vcmp.eq.s32.totalorder %v5427_v7, 1  ;;  %3538 = vmatmul.msk.f32.gmra.mxu1 %vm7555_vm3, %v4957_v11  ;;  %1416 = vmatpush.msra.mxu3 %v3571_v54  ;;  %v3632_v54 = vld [vmem:[%s7495_s3 + $0x4f8] sm:$0xff] }
 0x109   : > { %3519 = vmatmul.msk.f32.gmra.mxu0 %vm7553_vm6, %v4908_v40  ;;  %v3655_v40 = vld [vmem:[%s7495_s3 + $0x570] sm:$0xff]  ;;  %vm7556_vm6 = vcmp.eq.s32.totalorder %v5465_v19, 1  ;;  %1647 = vmatpush.msra.mxu1 %v3632_v54  ;;  %v3629_v54 = vld [vmem:[%s7495_s3 + $0x4e0] sm:$0xff]  ;;  %v3680_v7 = vld [vmem:[%s7495_s3 + $0x5f8] sm:$0xff] }
 0x10a   : > { %1530 = vmatpush.msra.mxu0 %v3595_v25  ;;  %1417 = vmatpush.msra.mxu3 %v3570_v60  ;;  %v3631_v60 = vld [vmem:[%s7495_s3 + $0x4f0] sm:$0xff]  ;;  %v3625_v19 = vld [vmem:[%s7495_s3 + $0x4c0] sm:$0xff] }
 0x10b   : > { %1730 = vmatpush.msra.mxu2 %v3655_v40  ;;  %1648 = vmatpush.msra.mxu1 %v3631_v60  ;;  %v3652_v40 = vld [vmem:[%s7495_s3 + $0x558] sm:$0xff]  ;;  %v5523_v60 = vld [vmem:[#allocation2 + $0x47] sm:$0xff] }
 0x10c   : > { %1531 = vmatpush.msra.mxu0 %v3594_v24  ;;  %1418 = vmatpush.msra.mxu3 %v3569_v36  ;;  %v3653_v24 = vld [vmem:[%s7495_s3 + $0x560] sm:$0xff] }
 0x10d   : > { %v5463_v37 = vpop.permute.xlu2 %1461  ;;  %1731 = vmatpush.msra.mxu2 %v3654_v0  ;;  %v3651_v0 = vld [vmem:[%s7495_s3 + $0x550] sm:$0xff] }
 0x10e   : > { %7727 = vst [vmem:[#allocation44_spill] sm:$0xff] %v5463_v37  ;;  %1532 = vmatpush.msra.mxu0 %v3593_v14  ;;  %vm7558_vm3 = vcmp.eq.s32.totalorder %v5463_v37, 1  ;;  %1811 = vmatpush.msrb.mxu3 %v3680_v7  ;;  %v5597_v7 = vld [vmem:[#allocation2 + $0x30] sm:$0xff] }
 0x10f   : > { %1732 = vmatpush.msra.mxu2 %v3653_v24 }
 0x110   : > { %v5477_v25 = vpop.permute.xlu1 %1239 }
 0x111   : > { %7729 = vst [vmem:[#allocation46_spill] sm:$0xff] %v5477_v25  ;;  %vm7557_vm15 = vcmp.eq.s32.totalorder %v5477_v25, 1  ;;  %3520 = vmatmul.msk.f32.gmra.mxu0 %vm7556_vm6, %v5096_v5  ;;  %vm7561_vm6 = vcmp.eq.s32.totalorder %v5418_v17, 1  ;;  %1733 = vmatpush.msra.mxu2 %v3652_v40  ;;  %v3627_v40 = vld [vmem:[%s7495_s3 + $0x4d0] sm:$0xff]  ;;  %v3702_v25 = vld [vmem:[%s7495_s3 + $0x668] sm:$0xff] }
 0x112   : > { %3563 = vmatmul.msk.f32.gmra.mxu2 %vm7557_vm15, %v4997_v47  ;;  %v3630_v47 = vld [vmem:[%s7495_s3 + $0x4e8] sm:$0xff]  ;;  %v3647_v17 = vld [vmem:[%s7495_s3 + $0x530] sm:$0xff] }
 0x113   : > { %1649 = vmatpush.msra.mxu1 %v3630_v47  ;;  %1734 = vmatpush.msra.mxu2 %v3651_v0  ;;  %v3650_v47 = vld [vmem:[%s7495_s3 + $0x548] sm:$0xff]  ;;  %v3704_v0 = vld [vmem:[%s7495_s3 + $0x678] sm:$0xff] }
 0x114   : > { %1893 = vmatpush.msrb.mxu0 %v3704_v0 }
 0x115   : > { %1650 = vmatpush.msra.mxu1 %v3629_v54  ;;  %1735 = vmatpush.msra.mxu2 %v3650_v47  ;;  %v3649_v54 = vld [vmem:[%s7495_s3 + $0x540] sm:$0xff]  ;;  %v5554_v47 = vld [vmem:[#allocation2 + $0x28] sm:$0xff] }
 0x116   : > { %v5493_v36 = vpop.permute.xlu2 %1347 }
 0x117   : > { %7730 = vst [vmem:[#allocation47_spill] sm:$0xff] %v5493_v36  ;;  %1736 = vmatpush.msra.mxu2 %v3649_v54  ;;  %v3626_v54 = vld [vmem:[%s7495_s3 + $0x4c8] sm:$0xff] }
 0x119   : > { %v5502_v14 = vpop.permute.xlu1 %1125  ;;  %3609 = vmatmul.msk.f32.vlgmr.msra.gmra.mxu0 %vm7558_vm3, %v4957_v11  ;;  %v5520_v11 = vpop.permute.xlu0 %1128 }
 0x11a   : > { %7731 = vst [vmem:[#allocation48_spill] sm:$0xff] %v5502_v14  ;;  %vm7562_vm15 = vcmp.eq.s32.totalorder %v5502_v14, 1  ;;  %3564 = vmatmul.msk.f32.gmra.mxu2 %vm7561_vm6, %v5191_v18  ;;  %vm7572_vm3 = vcmp.eq.s32.totalorder %v5520_v11, 1  ;;  %v3628_v18 = vld [vmem:[%s7495_s3 + $0x4d8] sm:$0xff] }
 0x11b   : > { %3539 = vmatmul.msk.f32.gmra.mxu1 %vm7562_vm15, %v4995_v9  ;;  %7732 = vst [vmem:[#allocation49_spill] sm:$0xff] %v5520_v11 }
 0x11c   : > { %1651 = vmatpush.msra.mxu1 %v3628_v18  ;;  %v5549_v18 = vmax.f32 %v4737_v51, 0.0  ;;  %v3648_v51 = vld [vmem:[%s7495_s3 + $0x538] sm:$0xff] }
 0x11d   : > { %1737 = vmatpush.msra.mxu2 %v3648_v51  ;;  %v5588_v51 = vmax.f32 %v4740_v52, 0.0 }
 0x11e   : > { %1652 = vmatpush.msra.mxu1 %v3627_v40  ;;  %1609 = vst [vmem:[#allocation2 + $0x28] sm:$0xff] %v5549_v18  ;;  %v3703_v40 = vld [vmem:[%s7495_s3 + $0x670] sm:$0xff] }
 0x11f   : > { %v5525_v24 = vpop.permute.xlu2 %1131  ;;  %1894 = vmatpush.msrb.mxu0 %v3703_v40  ;;  %1738 = vmatpush.msra.mxu2 %v3647_v17  ;;  %v5600_v40 = vmax.f32 %v4743_v53, 0.0  ;;  %1610 = vst [vmem:[#allocation2 + $0x30] sm:$0xff] %v5588_v51  ;;  %v3701_v53 = vld [vmem:[%s7495_s3 + $0x660] sm:$0xff] }
 0x120   : > { %7733 = vst [vmem:[#allocation50_spill] sm:$0xff] %v5525_v24  ;;  %vm7583_vm15 = vcmp.eq.s32.totalorder %v5525_v24, 1  ;;  %1653 = vmatpush.msra.mxu1 %v3626_v54 }
 0x121   : > { %1895 = vmatpush.msrb.mxu0 %v3702_v25  ;;  %v5605_v17 = vpop.permute.xlu0 %1248  ;;  %v3623_v25 = vld [vmem:[%s7495_s3 + $0x4b0] sm:$0xff] }
 0x122   : > { %v5542_v37 = vpop.permute.xlu1 %912  ;;  %1654 = vmatpush.msra.mxu1 %v3625_v19  ;;  %7738 = vst [vmem:[#allocation55_spill] sm:$0xff] %v5605_v17  ;;  %v3679_v19 = vld [vmem:[%s7495_s3 + $0x5f0] sm:$0xff] }
 0x123   : > { %7734 = vst [vmem:[#allocation51_spill] sm:$0xff] %v5542_v37  ;;  %vm7563_vm6 = vcmp.eq.s32.totalorder %v5542_v37, 1  ;;  %3540 = vmatmul.msk.f32.gmra.mxu1 %vm7572_vm3, %v5041_v15  ;;  %1812 = vmatpush.msrb.mxu3 %v3679_v19  ;;  %v3644_v19 = vld [vmem:[%s7495_s3 + $0x518] sm:$0xff] }
 0x124   : > { %3496 = vmatmul.msk.f32.gmra.mxu3 %vm7563_vm6, %v5523_v60  ;;  %vm7580_vm6 = vcmp.eq.s32.totalorder %v5493_v36, 1  ;;  %1896 = vmatpush.msrb.mxu0 %v3701_v53  ;;  %v3677_v53 = vld [vmem:[%s7495_s3 + $0x5e0] sm:$0xff] }
 0x125   : > { %1813 = vmatpush.msrb.mxu3 %v3678_v10  ;;  %v3621_v10 = vld [vmem:[%s7495_s3 + $0x4a0] sm:$0xff] }
 0x126   : > { %1897 = vmatpush.msrb.mxu0 %v3700_v56  ;;  %v3643_v56 = vld [vmem:[%s7495_s3 + $0x510] sm:$0xff]  ;;  %v6046_v59 = vld [vmem:[#allocation2 + $0x27] sm:$0xff] }
 0x127   : > { %1814 = vmatpush.msrb.mxu3 %v3677_v53 }
 0x128   : > { %v5557_v0 = vpop.permute.xlu2 %1467 }
 0x129   : > { %7735 = vst [vmem:[#allocation52_spill] sm:$0xff] %v5557_v0 }
 0x12b   : > { %v5582_v54 = vpop.permute.xlu1 %1245  ;;  %3541 = vmatmul.msk.f32.gmra.mxu1 %vm7583_vm15, %v5145_v62 }
 0x12c   : > { %7736 = vst [vmem:[#allocation53_spill] sm:$0xff] %v5582_v54  ;;  %vm7573_vm3 = vcmp.eq.s32.totalorder %v5582_v54, 1  ;;  %3585 = vmatmul.msk.f32.vlgmr.msra.gmra.mxu3 %vm7580_vm6, %v4701_v39  ;;  %v3624_v39 = vld [vmem:[%s7495_s3 + $0x4b8] sm:$0xff]  ;;  %v3645_v54 = vld [vmem:[%s7495_s3 + $0x520] sm:$0xff] }
 0x12d   : > { %3565 = vmatmul.msk.f32.gmra.mxu2 %vm7573_vm3, %v5231_v45  ;;  %v3646_v45 = vld [vmem:[%s7495_s3 + $0x528] sm:$0xff]  ;;  %vm7581_vm3 = vcmp.eq.s32.totalorder %v5605_v17, 1  ;;  %1655 = vmatpush.msra.mxu1 %v3624_v39  ;;  %v5629_v39 = vld [vmem:[#allocation2 + $0x38] sm:$0xff] }
 0x12e   : > { %1739 = vmatpush.msra.mxu2 %v3646_v45  ;;  %1611 = vst [vmem:[#allocation2 + $0x38] sm:$0xff] %v5600_v40  ;;  %v3750_v17 = vld [vmem:[%s7495_s3 + $0x768] sm:$0xff] }
 0x12f   : > { %1656 = vmatpush.msra.mxu1 %v3623_v25  ;;  %v3676_v25 = vld [vmem:[%s7495_s3 + $0x5d8] sm:$0xff] }
 0x130   : > { %1740 = vmatpush.msra.mxu2 %v3645_v54  ;;  %v3622_v54 = vld [vmem:[%s7495_s3 + $0x4a8] sm:$0xff]  ;;  %1815 = vmatpush.msrb.mxu3 %v3676_v25  ;;  %v3641_v25 = vld [vmem:[%s7495_s3 + $0x500] sm:$0xff] }
 0x131   : > { %v5603_v52 = vpop.permute.xlu2 %1251  ;;  %1657 = vmatpush.msra.mxu1 %v3622_v54  ;;  %v5670_v54 = vmax.f32 %v4746_v55, 0.0  ;;  %v5685_v55 = vmax.f32 %v4756_v58, 0.0  ;;  %v3620_v58 = vld [vmem:[%s7495_s3 + $0x498] sm:$0xff] }
 0x132   : > { %7737 = vst [vmem:[#allocation54_spill] sm:$0xff] %v5603_v52  ;;  %1741 = vmatpush.msra.mxu2 %v3644_v19  ;;  %v3698_v19 = vld [vmem:[%s7495_s3 + $0x648] sm:$0xff] }
 0x133   : > { %1658 = vmatpush.msra.mxu1 %v3621_v10  ;;  %7742 = vst [vmem:[#allocation59_spill] sm:$0xff] %v5685_v55  ;;  %v5696_v10 = vpop.permute.xlu0 %1353 }
 0x134   : > { %v5631_v45 = vpop.permute.xlu1 %1464  ;;  %1742 = vmatpush.msra.mxu2 %v3643_v56  ;;  %7743 = vst [vmem:[#allocation60_spill] sm:$0xff] %v5696_v10  ;;  %v5707_v56 = vld [vmem:[#allocation2 + $0x4f] sm:$0xff] }
 0x135   : > { %7739 = vst [vmem:[#allocation56_spill] sm:$0xff] %v5631_v45  ;;  %vm7582_vm6 = vcmp.eq.s32.totalorder %v5631_v45, 1  ;;  %3566 = vmatmul.msk.f32.gmra.mxu2 %vm7581_vm3, %v5266_v27  ;;  %vm7587_vm3 = vcmp.eq.s32.totalorder %v5603_v52, 1  ;;  %v3699_v27 = vld [vmem:[%s7495_s3 + $0x650] sm:$0xff]  ;;  %1659 = vmatpush.msra.mxu1 %v3620_v58  ;;  %v3696_v58 = vld [vmem:[%s7495_s3 + $0x638] sm:$0xff]  ;;  %v3694_v52 = vld [vmem:[%s7495_s3 + $0x628] sm:$0xff] }
 0x136   : > { %3610 = vmatmul.msk.f32.gmra.mxu0 %vm7582_vm6, %v4995_v9  ;;  %vm7586_vm6 = vcmp.eq.s32.totalorder %v5557_v0, 1  ;;  %v3674_v0 = vld [vmem:[%s7495_s3 + $0x5c8] sm:$0xff]  ;;  %v3728_v45 = vld [vmem:[%s7495_s3 + $0x6f8] sm:$0xff] }
 0x137   : > { %1898 = vmatpush.msrb.mxu0 %v3699_v27  ;;  %v5690_v27 = vld [vmem:[#allocation2 + $0x40] sm:$0xff] }
 0x138   : > { %1612 = vst [vmem:[#allocation2 + $0x40] sm:$0xff] %v5670_v54 }
 0x139   : > { %1899 = vmatpush.msrb.mxu0 %v3698_v19  ;;  %v5712_v19 = vld [vmem:[#allocation2 + $0x49] sm:$0xff] }
 0x13a   : > { %v5658_v9 = vpop.permute.xlu2 %1137  ;;  %1613 = vst [vmem:[#allocation2 + $0x48] sm:$0xff] %v5685_v55  ;;  %v6048_v55 = vld [vmem:[#allocation2 + $0x19] sm:$0xff] }
 0x13b   : > { %7740 = vst [vmem:[#allocation57_spill] sm:$0xff] %v5658_v9 }
 0x13d   : > { %v5675_v53 = vpop.permute.xlu1 %1350  ;;  %3567 = vmatmul.msk.f32.gmra.mxu2 %vm7587_vm3, %v5523_v60  ;;  %v3642_v60 = vld [vmem:[%s7495_s3 + $0x508] sm:$0xff] }
 0x13e   : > { %7741 = vst [vmem:[#allocation58_spill] sm:$0xff] %v5675_v53  ;;  %vm7591_vm15 = vcmp.eq.s32.totalorder %v5675_v53, 1  ;;  %3611 = vmatmul.msk.f32.gmra.mxu0 %vm7586_vm6, %v5041_v15  ;;  %1743 = vmatpush.msra.mxu2 %v3642_v60  ;;  %v3697_v15 = vld [vmem:[%s7495_s3 + $0x640] sm:$0xff]  ;;  %v3619_v60 = vld [vmem:[%s7495_s3 + $0x490] sm:$0xff]  ;;  %vm7588_vm6 = vcmp.eq.s32.totalorder %v5696_v10, 1 }
 0x13f   : > { %3586 = vmatmul.msk.f32.gmra.mxu3 %vm7591_vm15, %v4835_v49  ;;  %v3675_v49 = vld [vmem:[%s7495_s3 + $0x5d0] sm:$0xff]  ;;  %1900 = vmatpush.msrb.mxu0 %v3697_v15  ;;  %vm1148_vm15 = vcmp.eq.s32.totalorder %v5658_v9, 1 }
 0x140   : > { %1816 = vmatpush.msrb.mxu3 %v3675_v49  ;;  %1744 = vmatpush.msra.mxu2 %v3641_v25  ;;  %v3618_v25 = vld [vmem:[%s7495_s3 + $0x488] sm:$0xff]  ;;  %v3919_v9 = vld [vmem:[%s7495_s3 + $0xaf0] sm:$0xff] }
 0x141   : > { %1660 = vmatpush.msra.mxu1 %v3619_v60  ;;  %1901 = vmatpush.msrb.mxu0 %v3696_v58  ;;  %v3695_v60 = vld [vmem:[%s7495_s3 + $0x630] sm:$0xff]  ;;  %v3617_v58 = vld [vmem:[%s7495_s3 + $0x480] sm:$0xff] }
 0x142   : > { %1817 = vmatpush.msrb.mxu3 %v3674_v0  ;;  %v3673_v0 = vld [vmem:[%s7495_s3 + $0x5c0] sm:$0xff] }
 0x143   : > { %v5725_v49 = vpop.permute.xlu2 %1356  ;;  %1661 = vmatpush.msra.mxu1 %v3618_v25  ;;  %1902 = vmatpush.msrb.mxu0 %v3695_v60  ;;  %v3672_v25 = vld [vmem:[%s7495_s3 + $0x5b8] sm:$0xff]  ;;  %v5761_v60 = vpop.f32.mrf.mxu0 }
 0x144   : > { %7744 = vst [vmem:[#allocation61_spill] sm:$0xff] %v5725_v49  ;;  %1818 = vmatpush.msrb.mxu3 %v3673_v0  ;;  %v3751_v0 = vld [vmem:[%s7495_s3 + $0x770] sm:$0xff] }
 0x145   : > { %1662 = vmatpush.msra.mxu1 %v3617_v58  ;;  %7746 = vst [vmem:[#allocation63_spill] sm:$0xff] %v5761_v60  ;;  %1903 = vmatpush.msrb.mxu0 %v3694_v52  ;;  %v3693_v58 = vld [vmem:[%s7495_s3 + $0x620] sm:$0xff] }
 0x146   : > { %v5727_v15 = vpop.permute.xlu1 %1134  ;;  %1819 = vmatpush.msrb.mxu3 %v3672_v25 }
 0x147   : > { %7745 = vst [vmem:[#allocation62_spill] sm:$0xff] %v5727_v15  ;;  %vm7596_vm3 = vcmp.eq.s32.totalorder %v5727_v15, 1  ;;  %3587 = vmatmul.msk.f32.gmra.mxu3 %vm7588_vm6, %v5554_v47  ;;  %v3752_v47 = vld [vmem:[%s7495_s3 + $0x778] sm:$0xff]  ;;  %vm7601_vm6 = vcmp.eq.s32.totalorder %v5725_v49, 1  ;;  %1975 = vmatpush.msrb.mxu1 %v3728_v45  ;;  %v5790_v45 = vpop.f32.mrf.mxu3 }
 0x148   : > { %3542 = vmatmul.msk.f32.gmra.mxu1 %vm7596_vm3, %v5186_v29  ;;  %2057 = vmatpush.msrb.mxu2 %v3752_v47  ;;  %v3671_v47 = vld [vmem:[%s7495_s3 + $0x5b0] sm:$0xff]  ;;  %7749 = vst [vmem:[#allocation66_spill] sm:$0xff] %v5790_v45 }
 0x149   : > { %1904 = vmatpush.msrb.mxu0 %v3693_v58  ;;  %1820 = vmatpush.msrb.mxu3 %v3671_v47  ;;  %v3727_v47 = vld [vmem:[%s7495_s3 + $0x6f0] sm:$0xff]  ;;  %v5802_v58 = vpop.permute.xlu0 %1473 }
 0x14a   : > { %2058 = vmatpush.msrb.mxu2 %v3751_v0  ;;  %v3692_v0 = vld [vmem:[%s7495_s3 + $0x618] sm:$0xff]  ;;  %7750 = vst [vmem:[#allocation67_spill] sm:$0xff] %v5802_v58  ;;  %v3691_v45 = vld [vmem:[%s7495_s3 + $0x610] sm:$0xff]  ;;  %1976 = vmatpush.msrb.mxu1 %v3727_v47 }
 0x14b   : > { %v5781_v52 = vpop.permute.xlu2 %1359  ;;  %1905 = vmatpush.msrb.mxu0 %v3692_v0  ;;  %v3748_v0 = vld [vmem:[%s7495_s3 + $0x758] sm:$0xff]  ;;  %v5822_v60 = vpop.f32.mrf.mxu0 }
 0x14c   : > { %7748 = vst [vmem:[#allocation65_spill] sm:$0xff] %v5781_v52  ;;  %2059 = vmatpush.msrb.mxu2 %v3750_v17  ;;  %vm7602_vm0 = vcmp.eq.s32.totalorder %v5781_v52, 1  ;;  %v3669_v17 = vld [vmem:[%s7495_s3 + $0x5a0] sm:$0xff] }
 0x14d   : > { %7752 = vst [vmem:[#allocation69_spill] sm:$0xff] %v5822_v60  ;;  %1906 = vmatpush.msrb.mxu0 %v3691_v45  ;;  %v3668_v45 = vld [vmem:[%s7495_s3 + $0x598] sm:$0xff]  ;;  %v5964_v60 = vld [vmem:[#allocation2 + $0xf] sm:$0xff] }
 0x14e   : > { %v6044_v52 = vld [vmem:[#allocation2 + $0x1f] sm:$0xff] }
 0x14f   : > { %v5776_v25 = vpop.permute.xlu1 %1470  ;;  %3588 = vmatmul.msk.f32.gmra.mxu3 %vm7601_vm6, %v5597_v7  ;;  %v3670_v7 = vld [vmem:[%s7495_s3 + $0x5a8] sm:$0xff] }
 0x150   : > { %7747 = vst [vmem:[#allocation64_spill] sm:$0xff] %v5776_v25  ;;  %vm7600_vm3 = vcmp.eq.s32.totalorder %v5776_v25, 1  ;;  %3543 = vmatmul.msk.f32.gmra.mxu1 %vm1148_vm15, %v5275_v21  ;;  %1821 = vmatpush.msrb.mxu3 %v3670_v7  ;;  %v5813_v25 = vpop.f32.mrf.mxu1  ;;  %v3726_v7 = vld [vmem:[%s7495_s3 + $0x6e8] sm:$0xff] }
 0x151   : > { %3612 = vmatmul.msk.f32.gmra.mxu0 %vm7600_vm3, %v5145_v62  ;;  %v3749_v62 = vld [vmem:[%s7495_s3 + $0x760] sm:$0xff]  ;;  %7751 = vst [vmem:[#allocation68_spill] sm:$0xff] %v5813_v25  ;;  %vm7605_vm3 = vcmp.eq.s32.totalorder %v5802_v58, 1  ;;  %1977 = vmatpush.msrb.mxu1 %v3726_v7 }
 0x152   : > { %2060 = vmatpush.msrb.mxu2 %v3749_v62  ;;  %1822 = vmatpush.msrb.mxu3 %v3669_v17  ;;  %v5835_v62 = vpop.f32.mrf.mxu3  ;;  %v3690_v17 = vld [vmem:[%s7495_s3 + $0x608] sm:$0xff] }
 0x153   : > { %v5830_v47 = vpop.permute.xlu2 %1362  ;;  %7755 = vst [vmem:[#allocation72_spill] sm:$0xff] %v5835_v62  ;;  %1907 = vmatpush.msrb.mxu0 %v3690_v17  ;;  %v3667_v62 = vld [vmem:[%s7495_s3 + $0x590] sm:$0xff]  ;;  %v3724_v17 = vld [vmem:[%s7495_s3 + $0x6d8] sm:$0xff]  ;;  %v5869_v58 = vpop.f32.mrf.mxu0 }
 0x154   : > { %7754 = vst [vmem:[#allocation71_spill] sm:$0xff] %v5830_v47  ;;  %2061 = vmatpush.msrb.mxu2 %v3748_v0  ;;  %1823 = vmatpush.msrb.mxu3 %v3668_v45  ;;  %v1696_v0 = vld [vmem:[#allocation2 + $0x8] sm:$0xff]  ;;  %v3689_v45 = vld [vmem:[%s7495_s3 + $0x600] sm:$0xff] }
 0x155   : > { %7758 = vst [vmem:[#allocation75_spill] sm:$0xff] %v5869_v58  ;;  %1908 = vmatpush.msrb.mxu0 %v3689_v45  ;;  %v3722_v58 = vld [vmem:[%s7495_s3 + $0x6c8] sm:$0xff] }
 0x156   : > { %1824 = vmatpush.msrb.mxu3 %v3667_v62  ;;  %v3665_v62 = vld [vmem:[%s7495_s3 + $0x580] sm:$0xff] }
 0x157   : > { %3589 = vmatmul.msk.f32.gmra.mxu3 %vm7602_vm0, %v5629_v39  ;;  %v5840_v39 = vpop.f32.mrf.mxu2  ;;  %vm1375_vm0 = vcmp.eq.s32.totalorder %v5830_v47, 1  ;;  %2221 = vmatpush.msra.mxu0 %v3800_v42  ;;  %v4219_v42 = vld [vmem:[#allocation2 + $0x10] sm:$0xff] }
 0x158   : > { %v5827_v25 = vpop.permute.xlu1 %1254  ;;  %7756 = vst [vmem:[#allocation73_spill] sm:$0xff] %v5840_v39  ;;  %v5855_v7 = vpop.f32.mrf.mxu1  ;;  %v5968_v39 = vld [vmem:[#allocation2 + $0x18] sm:$0xff] }
 0x159   : > { %7753 = vst [vmem:[#allocation70_spill] sm:$0xff] %v5827_v25  ;;  %vm1263_vm6 = vcmp.eq.s32.totalorder %v5827_v25, 1  ;;  %3613 = vmatmul.msk.f32.gmra.mxu0 %vm7605_vm3, %v5186_v29  ;;  %v3725_v29 = vld [vmem:[%s7495_s3 + $0x6e0] sm:$0xff] }
 0x15a   : > { %3568 = vmatmul.msk.f32.gmra.mxu2 %vm1263_vm6, %v5707_v56  ;;  %v3747_v56 = vld [vmem:[%s7495_s3 + $0x750] sm:$0xff]  ;;  %7757 = vst [vmem:[#allocation74_spill] sm:$0xff] %v5855_v7  ;;  %1978 = vmatpush.msrb.mxu1 %v3725_v29  ;;  %v5888_v45 = vpop.f32.mrf.mxu3  ;;  %v3744_v7 = vld [vmem:[%s7495_s3 + $0x738] sm:$0xff] }
 0x15b   : > { %2062 = vmatpush.msrb.mxu2 %v3747_v56  ;;  %v3666_v56 = vld [vmem:[%s7495_s3 + $0x588] sm:$0xff]  ;;  %7760 = vst [vmem:[#allocation77_spill] sm:$0xff] %v5888_v45 }
 0x15c   : > { %1979 = vmatpush.msrb.mxu1 %v3724_v17  ;;  %1825 = vmatpush.msrb.mxu3 %v3666_v56  ;;  %v3745_v17 = vld [vmem:[%s7495_s3 + $0x740] sm:$0xff] }
 0x15d   : > { %v5901_v56 = vld [vmem:[#allocation2 + $0x7] sm:$0xff] }
 0x15e   : > { %1826 = vmatpush.msrb.mxu3 %v3665_v62  ;;  %7762 = vst [vmem:[#allocation79_spill] sm:$0xff] %v5901_v56 }
 0x15f   : > { %3590 = vmatmul.msk.f32.gmra.mxu3 %vm1375_vm0, %v5690_v27  ;;  %v3746_v27 = vld [vmem:[%s7495_s3 + $0x748] sm:$0xff] }
 0x160   : > { %2063 = vmatpush.msrb.mxu2 %v3746_v27  ;;  %v5899_v27 = vpop.f32.mrf.mxu2  ;;  %v5903_v25 = vpop.f32.mrf.mxu1 }
 0x161   : > { %v5871_v29 = vpop.permute.xlu1 %1140  ;;  %7761 = vst [vmem:[#allocation78_spill] sm:$0xff] %v5899_v27  ;;  %v3799_v27 = vld [vmem:[%s7495_s3 + $0x870] sm:$0xff] }
 0x162   : > { %7759 = vst [vmem:[#allocation76_spill] sm:$0xff] %v5871_v29  ;;  %vm1149_vm3 = vcmp.eq.s32.totalorder %v5871_v29, 1  ;;  %3657 = vmatmul.msk.f32.vlgmr.msra.gmra.mxu2 %vm7609_vm11, %v1696_v0  ;;  %v3723_v0 = vld [vmem:[%s7495_s3 + $0x6d0] sm:$0xff]  ;;  %2222 = vmatpush.msra.mxu0 %v3799_v27  ;;  %v3776_v27 = vld [vmem:[%s7495_s3 + $0x7f8] sm:$0xff]  ;;  %v3917_v29 = vld [vmem:[%s7495_s3 + $0xae0] sm:$0xff] }
 0x163   : > { %3544 = vmatmul.msk.f32.gmra.mxu1 %vm1149_vm3, %v5712_v19  ;;  %2064 = vmatpush.msrb.mxu2 %v3745_v17  ;;  %7763 = vst [vmem:[#allocation80_spill] sm:$0xff] %v5903_v25  ;;  %v5919_v17 = vpop.f32.mrf.mxu0  ;;  %v5962_v25 = vpop.permute.xlu0 %1479 }
 0x164   : > { %1980 = vmatpush.msrb.mxu1 %v3723_v0  ;;  %v2354_v0 = vld [vmem:[%s4753_s13 + $0x10] sm:$0xff]  ;;  %7765 = vst [vmem:[#allocation82_spill] sm:$0xff] %v5919_v17  ;;  %2139 = vmatpush.msra.mxu3 %v3776_v27  ;;  %v5957_v17 = vld [vmem:[%s7496_s4] ss:$0 sm:$0xff] }
 0x165   : > { %2065 = vmatpush.msrb.mxu2 %v3744_v7  ;;  %v3743_v7 = vld [vmem:[%s7495_s3 + $0x730] sm:$0xff]  ;;  %v2366_v27 = vmul.f32 %v5957_v17, %v2354_v0  ;;  %7768 = vst [vmem:[#allocation85_spill] sm:$0xff] %v5962_v25  ;;  %v5976_v0 = vld [vmem:[%s7497_s5] ss:$0 sm:$0xff] }
 0x166   : > { %1981 = vmatpush.msrb.mxu1 %v3722_v58  ;;  %v3721_v58 = vld [vmem:[%s7495_s3 + $0x6c0] sm:$0xff] }
 0x167   : > { %2066 = vmatpush.msrb.mxu2 %v3743_v7  ;;  %v3797_v7 = vld [vmem:[%s7495_s3 + $0x860] sm:$0xff] }
 0x168   : > { %1982 = vmatpush.msrb.mxu1 %v3721_v58  ;;  %v3775_v58 = vld [vmem:[%s7495_s3 + $0x7f0] sm:$0xff] }
 0x169   : > { %2067 = vmatpush.msrb.mxu2 %v3742_v41  ;;  %2140 = vmatpush.msra.mxu3 %v3775_v58 }
 0x16a   : > { %v5914_v62 = vpop.permute.xlu1 %1476  ;;  %3658 = vmatmul.msk.f32.gmra.mxu2 %vm7614_vm12, %v4219_v42  ;;  %v3798_v42 = vld [vmem:[%s7495_s3 + $0x868] sm:$0xff] }
 0x16b   : > { %7764 = vst [vmem:[#allocation81_spill] sm:$0xff] %v5914_v62  ;;  %vm7613_vm11 = vcmp.eq.s32.totalorder %v5914_v62, 1  ;;  %3633 = vmatmul.msk.f32.vlgmr.msra.gmra.mxu1 %vm589_vm9, %v5901_v56  ;;  %v5943_v62 = vpop.f32.mrf.mxu3  ;;  %2223 = vmatpush.msra.mxu0 %v3798_v42  ;;  %v5960_v42 = vpop.f32.mrf.mxu2 }
 0x16c   : > { %3614 = vmatmul.msk.f32.gmra.mxu0 %vm7613_vm11, %v5275_v21  ;;  %v3720_v21 = vld [vmem:[%s7495_s3 + $0x6b8] sm:$0xff]  ;;  %7766 = vst [vmem:[#allocation83_spill] sm:$0xff] %v5943_v62  ;;  %v5966_v62 = vpop.f32.mrf.mxu1  ;;  %v5979_v41 = vpop.f32.mrf.mxu0  ;;  %vm7622_vm11 = vcmp.eq.s32.totalorder %v5962_v25, 1  ;;  %2141 = vmatpush.msra.mxu3 %v3774_v63 }
 0x16d   : > { %7767 = vst [vmem:[#allocation84_spill] sm:$0xff] %v5960_v42  ;;  %1983 = vmatpush.msrb.mxu1 %v3720_v21  ;;  %2224 = vmatpush.msra.mxu0 %v3797_v7  ;;  %v2378_v21 = vadd.f32 %v5976_v0, %v2366_v27  ;;  %v3719_v7 = vld [vmem:[%s7495_s3 + $0x6b0] sm:$0xff]  ;;  %v3741_v27 = vld [vmem:[%s7495_s3 + $0x720] sm:$0xff]  ;;  %v6012_v47 = vpop.permute.xlu0 %1368  ;;  %v3740_v63 = vld [vmem:[%s7495_s3 + $0x718] sm:$0xff] }
 0x16e   : > { %7769 = vst [vmem:[#allocation86_spill] sm:$0xff] %v5966_v62  ;;  %v6008_v62 = vpop.permute.xlu2 %1482  ;;  %2068 = vmatpush.msrb.mxu2 %v3741_v27  ;;  %v2356_v27 = vld [vmem:[%s4753_s13 + $0x20] sm:$0xff] }
 0x16f   : > { %7770 = vst [vmem:[#allocation87_spill] sm:$0xff] %v5979_v41  ;;  %1984 = vmatpush.msrb.mxu1 %v3719_v7  ;;  %v2386_v42 = vmax.f32 %v2378_v21, 0.0  ;;  %v1459_v7 = vld [vmem:[#allocation2 + $0x51] sm:$0xff]  ;;  %v3773_v21 = vld [vmem:[%s7495_s3 + $0x7e0] sm:$0xff] }
 0x170   : > { %7773 = vst [vmem:[#allocation90_spill] sm:$0xff] %v6008_v62  ;;  %2069 = vmatpush.msrb.mxu2 %v3740_v63  ;;  %2142 = vmatpush.msra.mxu3 %v3773_v21  ;;  %v3772_v63 = vld [vmem:[%s7495_s3 + $0x7d8] sm:$0xff]  ;;  %v3738_v21 = vld [vmem:[%s7495_s3 + $0x708] sm:$0xff] }
 0x171   : > { %7775 = vst [vmem:[#allocation92_spill] sm:$0xff] %v6012_v47  ;;  %v2398_v45 = vsel %vm4784_vm10, %v2386_v42, 0.0  ;;  %v3717_v42 = vld [vmem:[%s7495_s3 + $0x6a0] sm:$0xff] }
 0x172   : > { %3659 = vmatmul.msk.f32.gmra.mxu2 %vm7623_vm1, %v5968_v39  ;;  %vm1377_vm1 = vcmp.eq.s32.totalorder %v6012_v47, 1  ;;  %2143 = vmatpush.msra.mxu3 %v3772_v63  ;;  %v3716_v47 = vld [vmem:[%s7495_s3 + $0x698] sm:$0xff] }
 0x173   : > { %v5982_v58 = vpop.permute.xlu1 %1365  ;;  %3634 = vmatmul.msk.f32.gmra.mxu1 %vm590_vm7, %v5964_v60  ;;  %v6006_v25 = vpop.f32.mrf.mxu3  ;;  %2070 = vmatpush.msrb.mxu2 %v3739_v43  ;;  %v3771_v43 = vld [vmem:[%s7495_s3 + $0x7d0] sm:$0xff] }
 0x174   : > { %7771 = vst [vmem:[#allocation88_spill] sm:$0xff] %v5982_v58  ;;  %vm1376_vm12 = vcmp.eq.s32.totalorder %v5982_v58, 1  ;;  %3615 = vmatmul.msk.f32.gmra.mxu0 %vm7622_vm11, %v5712_v19  ;;  %v3796_v19 = vld [vmem:[%s7495_s3 + $0x858] sm:$0xff]  ;;  %v6010_v41 = vpop.f32.mrf.mxu2  ;;  %v2352_v58 = vld [vmem:[%s4753_s13] sm:$0xff]  ;;  %vm7652_vm11 = vcmp.eq.s32.totalorder %v6008_v62, 1  ;;  %v6051_v31 = vpop.f32.mrf.mxu1  ;;  %v2368_v62 = vmul.f32 %v5957_v17, %v2356_v27  ;;  %2144 = vmatpush.msra.mxu3 %v3771_v43 }
 0x175   : > { %3591 = vmatmul.msk.f32.gmra.mxu3 %vm1376_vm12, %v5096_v5  ;;  %7772 = vst [vmem:[#allocation89_spill] sm:$0xff] %v6006_v25  ;;  %2225 = vmatpush.msra.mxu0 %v3796_v19  ;;  %v6015_v5 = vld [vmem:[#allocation2 + $0x17] sm:$0xff]  ;;  %v3718_v25 = vld [vmem:[%s7495_s3 + $0x6a8] sm:$0xff]  ;;  %v6028_v19 = vld [vmem:[#allocation2 + $0x20] sm:$0xff]  ;;  %v6064_v56 = vpop.f32.mrf.mxu0 }
 0x176   : > { %7774 = vst [vmem:[#allocation91_spill] sm:$0xff] %v6010_v41  ;;  %v6034_v41 = vld [vmem:[#allocation2 + $0x50] sm:$0xff]  ;;  %1985 = vmatpush.msrb.mxu1 %v3718_v25  ;;  %v2364_v25 = vmul.f32 %v5957_v17, %v2352_v58  ;;  %v3794_v58 = vld [vmem:[%s7495_s3 + $0x848] sm:$0xff]  ;;  %2071 = vmatpush.msrb.mxu2 %v3738_v21  ;;  %v3793_v27 = vld [vmem:[%s7495_s3 + $0x840] sm:$0xff]  ;;  %v2380_v63 = vadd.f32 %v5976_v0, %v2368_v62 }
 0x177   : > { %7776 = vst [vmem:[#allocation93_spill] sm:$0xff] %v6034_v41  ;;  %2226 = vmatpush.msra.mxu0 %v3795_v44  ;;  %v3770_v62 = vld [vmem:[%s7495_s3 + $0x7c8] sm:$0xff]  ;;  %v3792_v43 = vld [vmem:[%s7495_s3 + $0x838] sm:$0xff] }
 0x178   : > { %7777 = vst [vmem:[#allocation94_spill] sm:$0xff] %v6051_v31  ;;  %1986 = vmatpush.msrb.mxu1 %v3717_v42  ;;  %v2376_v44 = vadd.f32 %v5976_v0, %v2364_v25  ;;  %v3737_v25 = vld [vmem:[%s7495_s3 + $0x700] sm:$0xff]  ;;  %v2357_v42 = vld [vmem:[%s4753_s13 + $0x28] sm:$0xff]  ;;  %2145 = vmatpush.msra.mxu3 %v3770_v62 }
 0x179   : > { %7778 = vst [vmem:[#allocation95_spill] sm:$0xff] %v6064_v56  ;;  %2227 = vmatpush.msra.mxu0 %v3794_v58  ;;  %2072 = vmatpush.msrb.mxu2 %v3737_v25  ;;  %v2388_v25 = vmax.f32 %v2380_v63, 0.0  ;;  %v6145_v63 = vld [vmem:[#allocation2 + $0x11] sm:$0xff] }
 0x17a   : > { %3660 = vmatmul.msk.f32.gmra.mxu2 %vm656_vm2, %v6028_v19  ;;  %1987 = vmatpush.msrb.mxu1 %v3716_v47  ;;  %v2384_v58 = vmax.f32 %v2376_v44, 0.0  ;;  %v3715_v47 = vld [vmem:[%s7495_s3 + $0x690] sm:$0xff] }
 0x17b   : > { %3635 = vmatmul.msk.f32.gmra.mxu1 %vm591_vm5, %v6015_v5  ;;  %v6079_v31 = vpop.f32.mrf.mxu3  ;;  %2228 = vmatpush.msra.mxu0 %v3793_v27  ;;  %v3791_v27 = vld [vmem:[%s7495_s3 + $0x830] sm:$0xff] }
 0x17c   : > { %3616 = vmatmul.msk.f32.gmra.mxu0 %vm7652_vm11, %v1459_v7  ;;  %v6072_v7 = vld [vmem:[#allocation2 + $0x21] sm:$0xff]  ;;  %v6081_v56 = vpop.f32.mrf.mxu2  ;;  %v6103_v21 = vpop.f32.mrf.mxu1  ;;  %1988 = vmatpush.msrb.mxu1 %v3715_v47  ;;  %v6124_v50 = vsel %vm4784_vm10, %v2384_v58, 0.0  ;;  %v2358_v47 = vld [vmem:[%s4753_s13 + $0x30] sm:$0xff]  ;;  %vm7798_vm11 = vcmp.eq.s32.totalorder %v5180_v4, 1 }
 0x17d   : > { %3592 = vmatmul.msk.f32.gmra.mxu3 %vm1377_vm1, %v6034_v41  ;;  %2406 = vst [vmem:[#allocation2 + $0x20] sm:$0xff] %v2398_v45  ;;  %v1778_v45 = vld [vmem:[#allocation2 + $0x9] sm:$0xff]  ;;  %v6117_v44 = vpop.f32.mrf.mxu0  ;;  %2229 = vmatpush.msra.mxu0 %v3792_v43  ;;  %v3713_v58 = vld [vmem:[%s7495_s3 + $0x680] sm:$0xff]  ;;  %v2400_v43 = vsel %vm4784_vm10, %v2388_v25, 0.0 }
 0x17e   : > { %7779 = vst [vmem:[#allocation96_spill] sm:$0xff] %v6081_v56  ;;  %v3790_v25 = vld [vmem:[%s7495_s3 + $0x828] sm:$0xff] }
 0x17f   : > { %7780 = vst [vmem:[#allocation97_spill] sm:$0xff] %v6103_v21  ;;  %v3714_v21 = vld [vmem:[%s7495_s3 + $0x688] sm:$0xff]  ;;  %2230 = vmatpush.msra.mxu0 %v3791_v27  ;;  %v6177_v27 = vld [vmem:[#allocation2 + $0x37] sm:$0xff] }
 0x180   : > { %7781 = vst [vmem:[#allocation98_spill] sm:$0xff] %v6117_v44  ;;  %1989 = vmatpush.msrb.mxu1 %v3714_v21  ;;  %v6150_v21 = vld [vmem:[#allocation2 + $0x10] sm:$0xff]  ;;  %v3842_v4 = vld [vmem:[%s7495_s3 + $0x948] sm:$0xff] }
 0x181   : > { %7782 = vst [vmem:[#allocation99_spill] sm:$0xff] %v6124_v50  ;;  %2231 = vmatpush.msra.mxu0 %v3790_v25 }
 0x182   : > { %3661 = vmatmul.msk.f32.gmra.mxu2 %vm7640_vm13, %v5549_v18  ;;  %vm7786_vm13 = vcmp.eq.s32.totalorder %v5038_v16, 1  ;;  %2404 = vst [vmem:[#allocation2 + $0x10] sm:$0xff] %v6124_v50  ;;  %1990 = vmatpush.msrb.mxu1 %v3713_v58  ;;  %v2370_v50 = vmul.f32 %v5957_v17, %v2358_v47  ;;  %v3767_v16 = vld [vmem:[%s7495_s3 + $0x7b0] sm:$0xff]  ;;  %v3789_v58 = vld [vmem:[%s7495_s3 + $0x820] sm:$0xff] }
 0x183   : > { %3636 = vmatmul.msk.f32.gmra.mxu1 %vm592_vm4, %v6044_v52  ;;  %v6126_v26 = vpop.f32.mrf.mxu3  ;;  %2232 = vmatpush.msra.mxu0 %v3789_v58  ;;  %v3845_v58 = vld [vmem:[%s7495_s3 + $0x960] sm:$0xff] }
 0x184   : > { %3705 = vmatmul.msk.f32.vlgmr.msrb.gmra.mxu0 %vm7639_vm8, %v5964_v60  ;;  %v2369_v60 = vmul.f32 %v5957_v17, %v2357_v42  ;;  %7783 = vst [vmem:[#allocation100_spill] sm:$0xff] %v6126_v26  ;;  %v6131_v56 = vpop.f32.mrf.mxu2  ;;  %v3848_v42 = vld [vmem:[%s7495_s3 + $0x978] sm:$0xff]  ;;  %vm7785_vm8 = vcmp.eq.s32.totalorder %v4788_v22, 1  ;;  %v6159_v22 = vld [vmem:[#allocation2 + $0x2f] sm:$0xff]  ;;  %v2382_v25 = vadd.f32 %v5976_v0, %v2370_v50 }
 0x185   : > { %3681 = vmatmul.msk.f32.vlgmr.msrb.gmra.mxu3 %vm800_vm14, %v1778_v45  ;;  %7784 = vst [vmem:[#allocation101_spill] sm:$0xff] %v6131_v56  ;;  %v3769_v45 = vld [vmem:[%s7495_s3 + $0x7c0] sm:$0xff]  ;;  %2445 = vmatpush.msra.mxu2 %v3848_v42  ;;  %v6179_v42 = vld [vmem:[#allocation2 + $0x29] sm:$0xff]  ;;  %v6183_v56 = vpop.f32.mrf.mxu1  ;;  %v6186_v30 = vpop.f32.mrf.mxu0  ;;  %v3788_v50 = vld [vmem:[%s7495_s3 + $0x818] sm:$0xff] }
 0x186   : > { %2146 = vmatpush.msra.mxu3 %v3769_v45  ;;  %v2381_v62 = vadd.f32 %v5976_v0, %v2369_v60  ;;  %v3768_v60 = vld [vmem:[%s7495_s3 + $0x7b8] sm:$0xff]  ;;  %v3847_v45 = vld [vmem:[%s7495_s3 + $0x970] sm:$0xff]  ;;  %7789 = vst [vmem:[#allocation102_spill] sm:$0xff] %v6186_v30  ;;  %2233 = vmatpush.msra.mxu0 %v3788_v50 }
 0x187   : > { %2446 = vmatpush.msra.mxu2 %v3847_v45  ;;  %v6214_v30 = vld [vmem:[#allocation2 + $0x3f] sm:$0xff] }
 0x188   : > { %2147 = vmatpush.msra.mxu3 %v3768_v60  ;;  %v2389_v44 = vmax.f32 %v2381_v62, 0.0  ;;  %v2353_v60 = vld [vmem:[%s4753_s13 + $0x8] sm:$0xff] }
 0x189   : > { %v3846_v62 = vld [vmem:[%s7495_s3 + $0x968] sm:$0xff] }
 0x18a   : > { %3662 = vmatmul.msk.f32.gmra.mxu2 %vm7785_vm8, %v5588_v51  ;;  %vm7787_vm8 = vcmp.eq.s32.totalorder %v5064_v32, 1  ;;  %v6181_v32 = vld [vmem:[#allocation2 + $0x31] sm:$0xff]  ;;  %2148 = vmatpush.msra.mxu3 %v3767_v16  ;;  %v2401_v45 = vsel %vm4784_vm10, %v2389_v44, 0.0  ;;  %v3766_v16 = vld [vmem:[%s7495_s3 + $0x7a8] sm:$0xff] }
 0x18b   : > { %3637 = vmatmul.msk.f32.gmra.mxu1 %vm7786_vm13, %v6046_v59  ;;  %vm7788_vm13 = vcmp.eq.s32.totalorder %v4748_v57, 1  ;;  %2408 = vst [vmem:[#allocation2 + $0x30] sm:$0xff] %v2400_v43  ;;  %v3824_v43 = vld [vmem:[%s7495_s3 + $0x8f8] sm:$0xff]  ;;  %v6200_v47 = vpop.f32.mrf.mxu3  ;;  %v3823_v44 = vld [vmem:[%s7495_s3 + $0x8f0] sm:$0xff]  ;;  %2447 = vmatpush.msra.mxu2 %v3846_v62  ;;  %v3822_v62 = vld [vmem:[%s7495_s3 + $0x8e8] sm:$0xff] }
 0x18c   : > { %3706 = vmatmul.msk.f32.gmra.mxu0 %vm7787_vm8, %v6015_v5  ;;  %v6188_v57 = vpop.f32.mrf.mxu2  ;;  %7790 = vst [vmem:[#allocation103_spill] sm:$0xff] %v6200_v47  ;;  %vm7791_vm8 = vcmp.eq.s32.totalorder %v5013_v2, 1  ;;  %2303 = vmatpush.msra.mxu1 %v3824_v43  ;;  %v2365_v2 = vmul.f32 %v5957_v17, %v2353_v60  ;;  %v6235_v43 = vld [vmem:[#allocation2 + $0x39] sm:$0xff]  ;;  %v3787_v60 = vld [vmem:[%s7495_s3 + $0x810] sm:$0xff] }
 0x18d   : > { %3682 = vmatmul.msk.f32.gmra.mxu3 %vm7788_vm13, %v6145_v63  ;;  %vm7792_vm13 = vcmp.eq.s32.totalorder %v5193_v12, 1  ;;  %2409 = vst [vmem:[#allocation2 + $0x38] sm:$0xff] %v2401_v45  ;;  %v2390_v12 = vmax.f32 %v2382_v25, 0.0  ;;  %2448 = vmatpush.msra.mxu2 %v3845_v58  ;;  %v6249_v47 = vpop.f32.mrf.mxu1  ;;  %v6254_v26 = vpop.f32.mrf.mxu0  ;;  %v3843_v58 = vld [vmem:[%s7495_s3 + $0x950] sm:$0xff] }
 0x18e   : > { %2149 = vmatpush.msra.mxu3 %v3766_v16  ;;  %2304 = vmatpush.msra.mxu1 %v3823_v44  ;;  %v2377_v16 = vadd.f32 %v5976_v0, %v2365_v2  ;;  %7795 = vst [vmem:[#allocation104_spill] sm:$0xff] %v6254_v26  ;;  %v6266_v2 = vld [vmem:[#allocation2 + $0x47] sm:$0xff]  ;;  %v7799_v44 = vld [vmem:[#allocation14_spill] sm:$0xff] }
 0x18f   : > { %2234 = vmatpush.msra.mxu0 %v3787_v60  ;;  %v2402_v25 = vsel %vm4784_vm10, %v2390_v12, 0.0  ;;  %v3821_v12 = vld [vmem:[%s7495_s3 + $0x8e0] sm:$0xff]  ;;  %v2355_v26 = vld [vmem:[%s4753_s13 + $0x18] sm:$0xff]  ;;  %s3416_s13 = sshll.u32 %s470_s18, 3 }
 0x190   : > { %2305 = vmatpush.msra.mxu1 %v3822_v62  ;;  %v2385_v45 = vmax.f32 %v2377_v16, 0.0  ;;  %v6286_v60 = vld [vmem:[#allocation2 + $0x41] sm:$0xff]  ;;  %v3763_v62 = vld [vmem:[%s7495_s3 + $0x790] sm:$0xff]  ;;  %s472_s15 = scalar_lea.vmem %s7500_s8, %s3416_s13 }
 0x191   : > { %v3785_v16 = vld [vmem:[%s7495_s3 + $0x800] sm:$0xff]  ;;  %2410 = vst [vmem:[#allocation2 + $0x40] sm:$0xff] %v2402_v25  ;;  %v3762_v25 = vld [vmem:[%s7495_s3 + $0x788] sm:$0xff] }
 0x192   : > { %3663 = vmatmul.msk.f32.gmra.mxu2 %vm7791_vm8, %v5600_v40  ;;  %vm7793_vm8 = vcmp.eq.s32.totalorder %v5235_v38, 1  ;;  %v3765_v38 = vld [vmem:[%s7495_s3 + $0x7a0] sm:$0xff]  ;;  %2306 = vmatpush.msra.mxu1 %v3821_v12 }
 0x193   : > { %3638 = vmatmul.msk.f32.gmra.mxu1 %vm7792_vm13, %v6159_v22  ;;  %vm7794_vm13 = vcmp.eq.s32.totalorder %v4976_v33, 1  ;;  %v3844_v33 = vld [vmem:[%s7495_s3 + $0x958] sm:$0xff]  ;;  %2150 = vmatpush.msra.mxu3 %v3765_v38  ;;  %v6256_v41 = vpop.f32.mrf.mxu3  ;;  %v3786_v38 = vld [vmem:[%s7495_s3 + $0x808] sm:$0xff] }
 0x194   : > { %3707 = vmatmul.msk.f32.gmra.mxu0 %vm7793_vm8, %v6044_v52  ;;  %v6252_v50 = vpop.f32.mrf.mxu2  ;;  %2449 = vmatpush.msra.mxu2 %v3844_v33  ;;  %vm7796_vm8 = vcmp.eq.s32.totalorder %v5045_v23, 1  ;;  %v3764_v33 = vld [vmem:[%s7495_s3 + $0x798] sm:$0xff] }
 0x195   : > { %3683 = vmatmul.msk.f32.gmra.mxu3 %vm7794_vm13, %v6048_v55  ;;  %vm7797_vm13 = vcmp.eq.s32.totalorder %v5049_v28, 1  ;;  %2235 = vmatpush.msra.mxu0 %v3786_v38  ;;  %v3820_v38 = vld [vmem:[%s7495_s3 + $0x8d8] sm:$0xff]  ;;  %v6300_v23 = vpop.f32.mrf.mxu1  ;;  %v6306_v12 = vpop.f32.mrf.mxu0 }
 0x196   : > { %2151 = vmatpush.msra.mxu3 %v3764_v33  ;;  %2450 = vmatpush.msra.mxu2 %v3843_v58  ;;  %v6304_v33 = vsel %vm4784_vm10, %v2385_v45, 0.0  ;;  %7801 = vst [vmem:[#allocation105_spill] sm:$0xff] %v6306_v12  ;;  %v3761_v45 = vld [vmem:[%s7495_s3 + $0x780] sm:$0xff]  ;;  %v6323_v58 = vld [vmem:[#allocation2 + $0x18] sm:$0xff] }
 0x197   : > { %2236 = vmatpush.msra.mxu0 %v3785_v16  ;;  %2307 = vmatpush.msra.mxu1 %v3820_v38  ;;  %v3896_v16 = vld [vmem:[%s7495_s3 + $0xa78] sm:$0xff]  ;;  %2405 = vst [vmem:[#allocation2 + $0x18] sm:$0xff] %v6304_v33  ;;  %v2367_v38 = vmul.f32 %v5957_v17, %v2355_v26  ;;  %v3895_v26 = vld [vmem:[%s7495_s3 + $0xa70] sm:$0xff] }
 0x198   : > { %2152 = vmatpush.msra.mxu3 %v3763_v62  ;;  %2451 = vmatpush.msra.mxu2 %v3842_v4  ;;  %v3841_v62 = vld [vmem:[%s7495_s3 + $0x940] sm:$0xff] }
 0x199   : > { %2609 = vmatpush.msrb.mxu0 %v3896_v16  ;;  %v2379_v17 = vadd.f32 %v5976_v0, %v2367_v38  ;;  %v7808_v16 = vld [vmem:[#allocation15_spill] sm:$0xff]  ;;  %v3872_v0 = vld [vmem:[%s7495_s3 + $0x9f8] sm:$0xff] }
 0x19a   : > { %3664 = vmatmul.msk.f32.gmra.mxu2 %vm7796_vm8, %v5670_v54  ;;  %vm7800_vm8 = vcmp.eq.s32.totalorder %v7799_v44, 1  ;;  %2153 = vmatpush.msra.mxu3 %v3762_v25  ;;  %v7805_v25 = vld [vmem:[#allocation18_spill] sm:$0xff] }
 0x19b   : > { %3639 = vmatmul.msk.f32.gmra.mxu1 %vm7797_vm13, %v6177_v27  ;;  %vm7803_vm13 = vcmp.eq.s32.totalorder %v5233_v35, 1  ;;  %v6325_v4 = vpop.f32.mrf.mxu3  ;;  %2452 = vmatpush.msra.mxu2 %v3841_v62  ;;  %v2387_v38 = vmax.f32 %v2379_v17, 0.0  ;;  %v3838_v17 = vld [vmem:[%s7495_s3 + $0x928] sm:$0xff] }
 0x19c   : > { %3708 = vmatmul.msk.f32.gmra.mxu0 %vm7798_vm11, %v6046_v59  ;;  %v6308_v44 = vpop.f32.mrf.mxu2  ;;  %vm7802_vm11 = vcmp.eq.s32.totalorder %v5389_v61, 1  ;;  %2154 = vmatpush.msra.mxu3 %v3761_v45  ;;  %v3840_v61 = vld [vmem:[%s7495_s3 + $0x938] sm:$0xff] }
 0x19d   : > { %3684 = vmatmul.msk.f32.gmra.mxu3 %vm7800_vm8, %v6072_v7  ;;  %vm7804_vm8 = vcmp.eq.s32.totalorder %v5345_v1, 1  ;;  %v3818_v1 = vld [vmem:[%s7495_s3 + $0x8c8] sm:$0xff]  ;;  %2453 = vmatpush.msra.mxu2 %v3840_v61  ;;  %v6359_v45 = vpop.f32.mrf.mxu0  ;;  %v3839_v61 = vld [vmem:[%s7495_s3 + $0x930] sm:$0xff] }
 0x19e   : > { %2610 = vmatpush.msrb.mxu0 %v3895_v26  ;;  %v7811_v26 = vld [vmem:[#allocation29_spill] sm:$0xff]  ;;  %2527 = vmatpush.msrb.mxu3 %v3872_v0 }
 0x19f   : > { %2454 = vmatpush.msra.mxu2 %v3839_v61  ;;  %v3893_v61 = vld [vmem:[%s7495_s3 + $0xa60] sm:$0xff] }
 0x1a1   : > { %2455 = vmatpush.msra.mxu2 %v3838_v17  ;;  %v3837_v17 = vld [vmem:[%s7495_s3 + $0x920] sm:$0xff] }
 0x1a2   : > { %3753 = vmatmul.msk.f32.vlgmr.msrb.gmra.mxu2 %vm7802_vm11, %v6145_v63  ;;  %v3819_v63 = vld [vmem:[%s7495_s3 + $0x8d0] sm:$0xff]  ;;  %vm7806_vm11 = vcmp.eq.s32.totalorder %v7805_v25, 1 }
 0x1a3   : > { %3640 = vmatmul.msk.f32.gmra.mxu1 %vm7803_vm13, %v6214_v30  ;;  %vm7807_vm13 = vcmp.eq.s32.totalorder %v5333_v46, 1  ;;  %v3816_v46 = vld [vmem:[%s7495_s3 + $0x8b8] sm:$0xff]  ;;  %2456 = vmatpush.msra.mxu2 %v3837_v17  ;;  %v7821_v17 = vld [vmem:[#allocation17_spill] sm:$0xff] }
 0x1a4   : > { %3709 = vmatmul.msk.f32.gmra.mxu0 %vm7804_vm8, %v6159_v22  ;;  %2308 = vmatpush.msra.mxu1 %v3819_v63  ;;  %v6354_v63 = vpop.f32.mrf.mxu1  ;;  %v6361_v62 = vpop.f32.mrf.mxu2  ;;  %vm7809_vm8 = vcmp.eq.s32.totalorder %v7808_v16, 1  ;;  %v6705_v16 = vld [vmem:[#allocation2 + $0xf] sm:$0xff] }
 0x1a5   : > { %3685 = vmatmul.msk.f32.gmra.mxu3 %vm7806_vm11, %v6179_v42  ;;  %vm7810_vm11 = vcmp.eq.s32.totalorder %v5365_v3, 1  ;;  %v6384_v3 = vpop.f32.mrf.mxu3  ;;  %v6409_v25 = vpop.f32.mrf.mxu0 }
 0x1a6   : > { %2309 = vmatpush.msra.mxu1 %v3818_v1  ;;  %v3817_v1 = vld [vmem:[%s7495_s3 + $0x8c0] sm:$0xff] }
 0x1a8   : > { %2310 = vmatpush.msra.mxu1 %v3817_v1  ;;  %v3871_v1 = vld [vmem:[%s7495_s3 + $0x9f0] sm:$0xff] }
 0x1a9   : > { %2528 = vmatpush.msrb.mxu3 %v3871_v1  ;;  %v3870_v1 = vld [vmem:[%s7495_s3 + $0x9e8] sm:$0xff] }
 0x1aa   : > { %3754 = vmatmul.msk.f32.gmra.mxu2 %vm7807_vm13, %v6048_v55  ;;  %vm7812_vm13 = vcmp.eq.s32.totalorder %v7811_v26, 1  ;;  %v6397_v26 = vsel %vm4784_vm10, %v2387_v38, 0.0  ;;  %2311 = vmatpush.msra.mxu1 %v3816_v46  ;;  %vm7816_vm10 = vcmp.eq.s32.totalorder %v7815_v20, 1  ;;  %v6414_v46 = vld [vmem:[#allocation2 + $0x28] sm:$0xff]  ;;  %v3815_v38 = vld [vmem:[%s7495_s3 + $0x8b0] sm:$0xff] }
 0x1ab   : > { %3729 = vmatmul.msk.f32.vlgmr.msrb.gmra.mxu1 %vm7809_vm8, %v6150_v21  ;;  %v3894_v21 = vld [vmem:[%s7495_s3 + $0xa68] sm:$0xff]  ;;  %7813 = vst [vmem:[#allocation106_spill] sm:$0xff] %v6397_v26  ;;  %vm7814_vm8 = vcmp.eq.s32.totalorder %v5502_v14, 1  ;;  %v3836_v14 = vld [vmem:[%s7495_s3 + $0x918] sm:$0xff]  ;;  %2529 = vmatpush.msrb.mxu3 %v3870_v1 }
 0x1ac   : > { %3710 = vmatmul.msk.f32.gmra.mxu0 %vm7810_vm11, %v6177_v27  ;;  %v6402_v0 = vpop.f32.mrf.mxu1  ;;  %vm7817_vm11 = vcmp.eq.s32.totalorder %v5384_v6, 1  ;;  %2407 = vst [vmem:[#allocation2 + $0x28] sm:$0xff] %v6397_v26  ;;  %2312 = vmatpush.msra.mxu1 %v3815_v38  ;;  %v3814_v6 = vld [vmem:[%s7495_s3 + $0x8a8] sm:$0xff]  ;;  %v3869_v38 = vld [vmem:[%s7495_s3 + $0x9e0] sm:$0xff] }
 0x1ad   : > { %3686 = vmatmul.msk.f32.gmra.mxu3 %vm7812_vm13, %v6181_v32  ;;  %2611 = vmatpush.msrb.mxu0 %v3894_v21  ;;  %v6407_v21 = vpop.f32.mrf.mxu2  ;;  %v6441_v20 = vpop.f32.mrf.mxu3 }
 0x1ae   : > { %2313 = vmatpush.msra.mxu1 %v3814_v6  ;;  %2457 = vmatpush.msra.mxu2 %v3836_v14  ;;  %v6462_v6 = vpop.f32.mrf.mxu0  ;;  %v3813_v14 = vld [vmem:[%s7495_s3 + $0x8a0] sm:$0xff] }
 0x1af   : > { %2612 = vmatpush.msrb.mxu0 %v3893_v61  ;;  %v3892_v61 = vld [vmem:[%s7495_s3 + $0xa58] sm:$0xff]  ;;  %2530 = vmatpush.msrb.mxu3 %v3869_v38  ;;  %v3890_v38 = vld [vmem:[%s7495_s3 + $0xa48] sm:$0xff] }
 0x1b0   : > { %2314 = vmatpush.msra.mxu1 %v3813_v14  ;;  %v3867_v14 = vld [vmem:[%s7495_s3 + $0x9d0] sm:$0xff] }
 0x1b1   : > { %2613 = vmatpush.msrb.mxu0 %v3892_v61  ;;  %v3868_v61 = vld [vmem:[%s7495_s3 + $0x9d8] sm:$0xff] }
 0x1b2   : > { %3755 = vmatmul.msk.f32.gmra.mxu2 %vm7814_vm8, %v6072_v7  ;;  %vm7820_vm8 = vcmp.eq.s32.totalorder %v5520_v11, 1  ;;  %2531 = vmatpush.msrb.mxu3 %v3868_v61 }
 0x1b3   : > { %3730 = vmatmul.msk.f32.gmra.mxu1 %vm7816_vm10, %v5968_v39  ;;  %v7818_v39 = vld [vmem:[#allocation25_spill] sm:$0xff]  ;;  %vm7822_vm10 = vcmp.eq.s32.totalorder %v7821_v17, 1  ;;  %v3888_v17 = vld [vmem:[%s7495_s3 + $0xa38] sm:$0xff] }
 0x1b4   : > { %3711 = vmatmul.msk.f32.gmra.mxu0 %vm7817_vm11, %v6214_v30  ;;  %vm7819_vm13 = vcmp.eq.s32.totalorder %v7818_v39, 1  ;;  %v3891_v39 = vld [vmem:[%s7495_s3 + $0xa50] sm:$0xff]  ;;  %v6457_v1 = vpop.f32.mrf.mxu1  ;;  %vm7823_vm11 = vcmp.eq.s32.totalorder %v5542_v37, 1  ;;  %v3834_v37 = vld [vmem:[%s7495_s3 + $0x908] sm:$0xff]  ;;  %2532 = vmatpush.msrb.mxu3 %v3867_v14 }
 0x1b5   : > { %3687 = vmatmul.msk.f32.gmra.mxu3 %vm7819_vm13, %v6235_v43  ;;  %2614 = vmatpush.msrb.mxu0 %v3891_v39  ;;  %v6452_v26 = vpop.f32.mrf.mxu2  ;;  %vm7824_vm13 = vcmp.eq.s32.totalorder %v5280_v8, 1  ;;  %v3835_v39 = vld [vmem:[%s7495_s3 + $0x910] sm:$0xff]  ;;  %v6482_v11 = vpop.f32.mrf.mxu3  ;;  %v3812_v8 = vld [vmem:[%s7495_s3 + $0x898] sm:$0xff] }
 0x1b6   : > { %2458 = vmatpush.msra.mxu2 %v3835_v39  ;;  %2315 = vmatpush.msra.mxu1 %v3812_v8  ;;  %v3889_v39 = vld [vmem:[%s7495_s3 + $0xa40] sm:$0xff]  ;;  %v3811_v8 = vld [vmem:[%s7495_s3 + $0x890] sm:$0xff] }
 0x1b7   : > { %2615 = vmatpush.msrb.mxu0 %v3890_v38  ;;  %v7826_v38 = vld [vmem:[#allocation28_spill] sm:$0xff] }
 0x1b8   : > { %2459 = vmatpush.msra.mxu2 %v3834_v37  ;;  %v3833_v37 = vld [vmem:[%s7495_s3 + $0x900] sm:$0xff]  ;;  %2316 = vmatpush.msra.mxu1 %v3811_v8  ;;  %v3886_v8 = vld [vmem:[%s7495_s3 + $0xa28] sm:$0xff] }
 0x1b9   : > { %2616 = vmatpush.msrb.mxu0 %v3889_v39 }
 0x1ba   : > { %3756 = vmatmul.msk.f32.gmra.mxu2 %vm7820_vm8, %v6179_v42  ;;  %vm7825_vm8 = vcmp.eq.s32.totalorder %v5525_v24, 1  ;;  %v3866_v24 = vld [vmem:[%s7495_s3 + $0x9c8] sm:$0xff] }
 0x1bb   : > { %3731 = vmatmul.msk.f32.gmra.mxu1 %vm7822_vm10, %v6028_v19  ;;  %vm7827_vm10 = vcmp.eq.s32.totalorder %v7826_v38, 1  ;;  %2460 = vmatpush.msra.mxu2 %v3833_v37  ;;  %v3810_v37 = vld [vmem:[%s7495_s3 + $0x888] sm:$0xff]  ;;  %v7854_v38 = vld [vmem:[#allocation65_spill] sm:$0xff] }
 0x1bc   : > { %3712 = vmatmul.msk.f32.gmra.mxu0 %vm7823_vm11, %v6266_v2  ;;  %vm7828_vm11 = vcmp.eq.s32.totalorder %v5493_v36, 1  ;;  %2533 = vmatpush.msrb.mxu3 %v3866_v24  ;;  %v3865_v36 = vld [vmem:[%s7495_s3 + $0x9c0] sm:$0xff]  ;;  %v3944_v24 = vld [vmem:[%s7495_s3 + $0xb78] sm:$0xff] }
 0x1bd   : > { %3688 = vmatmul.msk.f32.gmra.mxu3 %vm7824_vm13, %v6286_v60  ;;  %v6499_v61 = vpop.f32.mrf.mxu2  ;;  %vm7829_vm13 = vcmp.eq.s32.totalorder %v5071_v34, 1  ;;  %2617 = vmatpush.msrb.mxu0 %v3888_v17  ;;  %v3809_v17 = vld [vmem:[%s7495_s3 + $0x880] sm:$0xff] }
 0x1be   : > { %2317 = vmatpush.msra.mxu1 %v3810_v37  ;;  %2534 = vmatpush.msrb.mxu3 %v3865_v36  ;;  %v3864_v36 = vld [vmem:[%s7495_s3 + $0x9b8] sm:$0xff]  ;;  %v3943_v37 = vld [vmem:[%s7495_s3 + $0xb70] sm:$0xff] }
 0x1bf   : > { %2773 = vmatpush.msrb.mxu2 %v3944_v24  ;;  %v3863_v24 = vld [vmem:[%s7495_s3 + $0x9b0] sm:$0xff] }
 0x1c0   : > { %2318 = vmatpush.msra.mxu1 %v3809_v17  ;;  %2535 = vmatpush.msrb.mxu3 %v3864_v36  ;;  %v3942_v36 = vld [vmem:[%s7495_s3 + $0xb68] sm:$0xff] }
 0x1c1   : > { %2774 = vmatpush.msrb.mxu2 %v3943_v37  ;;  %v3862_v37 = vld [vmem:[%s7495_s3 + $0x9a8] sm:$0xff] }
 0x1c2   : > { %3757 = vmatmul.msk.f32.gmra.mxu2 %vm7825_vm8, %v6181_v32  ;;  %v6523_v14 = vpop.f32.mrf.mxu3  ;;  %vm7830_vm8 = vcmp.eq.s32.totalorder %v5727_v15, 1  ;;  %v7834_v15 = vld [vmem:[#allocation35_spill] sm:$0xff]  ;;  %2536 = vmatpush.msrb.mxu3 %v3863_v24  ;;  %v3884_v24 = vld [vmem:[%s7495_s3 + $0xa18] sm:$0xff] }
 0x1c3   : > { %3732 = vmatmul.msk.f32.gmra.mxu1 %vm7827_vm10, %v5549_v18  ;;  %v6519_v18 = vpop.f32.mrf.mxu1  ;;  %vm7832_vm10 = vcmp.eq.s32.totalorder %v5314_v13, 1  ;;  %2775 = vmatpush.msrb.mxu2 %v3942_v36  ;;  %v3918_v36 = vld [vmem:[%s7495_s3 + $0xae8] sm:$0xff]  ;;  %v7852_v13 = vld [vmem:[#allocation45_spill] sm:$0xff] }
 0x1c4   : > { %3801 = vmatmul.msk.f32.vlgmr.msra.gmra.mxu0 %vm7828_vm11, %v6323_v58  ;;  %v6521_v58 = vpop.f32.mrf.mxu0  ;;  %vm7833_vm11 = vcmp.eq.s32.totalorder %v5675_v53, 1  ;;  %v3885_v53 = vld [vmem:[%s7495_s3 + $0xa20] sm:$0xff]  ;;  %2537 = vmatpush.msrb.mxu3 %v3862_v37 }
 0x1c5   : > { %3777 = vmatmul.msk.f32.vlgmr.msra.gmra.mxu3 %vm7829_vm13, %v6015_v5  ;;  %v3887_v5 = vld [vmem:[%s7495_s3 + $0xa30] sm:$0xff]  ;;  %v6543_v39 = vpop.f32.mrf.mxu2  ;;  %vm7835_vm13 = vcmp.eq.s32.totalorder %v7834_v15, 1  ;;  %v7842_v37 = vld [vmem:[#allocation43_spill] sm:$0xff] }
 0x1c6   : > { %7831 = vst [vmem:[#allocation107_spill] sm:$0xff] %v6543_v39  ;;  %2618 = vmatpush.msrb.mxu0 %v3887_v5 }
 0x1c8   : > { %2619 = vmatpush.msrb.mxu0 %v3886_v8  ;;  %v7837_v8 = vld [vmem:[#allocation33_spill] sm:$0xff] }
 0x1ca   : > { %3758 = vmatmul.msk.f32.gmra.mxu2 %vm7830_vm8, %v6235_v43  ;;  %v6576_v17 = vpop.f32.mrf.mxu3  ;;  %vm7838_vm8 = vcmp.eq.s32.totalorder %v7837_v8, 1  ;;  %2620 = vmatpush.msrb.mxu0 %v3885_v53  ;;  %v7840_v53 = vld [vmem:[#allocation46_spill] sm:$0xff] }
 0x1cb   : > { %3733 = vmatmul.msk.f32.gmra.mxu1 %vm7832_vm10, %v5588_v51  ;;  %v6563_v5 = vpop.f32.mrf.mxu1  ;;  %vm7839_vm10 = vcmp.eq.s32.totalorder %v5696_v10, 1 }
 0x1cc   : > { %3802 = vmatmul.msk.f32.gmra.mxu0 %vm7833_vm11, %v6028_v19  ;;  %7836 = vst [vmem:[#allocation108_spill] sm:$0xff] %v6563_v5  ;;  %v6565_v19 = vpop.f32.mrf.mxu0  ;;  %vm7841_vm11 = vcmp.eq.s32.totalorder %v7840_v53, 1  ;;  %v3861_v53 = vld [vmem:[%s7495_s3 + $0x9a0] sm:$0xff]  ;;  %v6751_v5 = vld [vmem:[#allocation2 + $0x17] sm:$0xff] }
 0x1cd   : > { %3778 = vmatmul.msk.f32.gmra.mxu3 %vm7835_vm13, %v6044_v52  ;;  %v3920_v52 = vld [vmem:[%s7495_s3 + $0xaf8] sm:$0xff]  ;;  %v6599_v15 = vpop.f32.mrf.mxu2  ;;  %2621 = vmatpush.msrb.mxu0 %v3884_v24  ;;  %vm7843_vm13 = vcmp.eq.s32.totalorder %v7842_v37, 1 }
 0x1ce   : > { %2691 = vmatpush.msrb.mxu1 %v3920_v52  ;;  %v6607_v52 = vld [vmem:[#allocation2 + $0x49] sm:$0xff]  ;;  %2538 = vmatpush.msrb.mxu3 %v3861_v53  ;;  %v3860_v53 = vld [vmem:[%s7495_s3 + $0x998] sm:$0xff] }
 0x1cf   : > { %v7845_v37 = vld [vmem:[#allocation42_spill] sm:$0xff] }
 0x1d0   : > { %2692 = vmatpush.msrb.mxu1 %v3919_v9  ;;  %v3940_v9 = vld [vmem:[%s7495_s3 + $0xb58] sm:$0xff]  ;;  %2539 = vmatpush.msrb.mxu3 %v3860_v53 }
 0x1d1   : > { %v3916_v53 = vld [vmem:[%s7495_s3 + $0xad8] sm:$0xff] }
 0x1d2   : > { %3759 = vmatmul.msk.f32.gmra.mxu2 %vm1148_vm15, %v6286_v60  ;;  %v6631_v24 = vpop.f32.mrf.mxu3  ;;  %2693 = vmatpush.msrb.mxu1 %v3918_v36  ;;  %v6653_v36 = vld [vmem:[#allocation2 + $0x4f] sm:$0xff] }
 0x1d3   : > { %3734 = vmatmul.msk.f32.gmra.mxu1 %vm7838_vm8, %v5600_v40  ;;  %v6609_v10 = vpop.f32.mrf.mxu1  ;;  %vm7844_vm8 = vcmp.eq.s32.totalorder %v5725_v49, 1  ;;  %v7847_v49 = vld [vmem:[#allocation6_spill] sm:$0xff] }
 0x1d4   : > { %3803 = vmatmul.msk.f32.gmra.mxu0 %vm7839_vm10, %v6414_v46  ;;  %v3941_v46 = vld [vmem:[%s7495_s3 + $0xb60] sm:$0xff]  ;;  %v6611_v8 = vpop.f32.mrf.mxu0  ;;  %vm7846_vm10 = vcmp.eq.s32.totalorder %v7845_v37, 1  ;;  %2411 = vst [vmem:[#allocation2 + $0x48] sm:$0xff] %v7847_v49  ;;  %2694 = vmatpush.msrb.mxu1 %v3917_v29  ;;  %v3859_v37 = vld [vmem:[%s7495_s3 + $0x990] sm:$0xff]  ;;  %v3938_v29 = vld [vmem:[%s7495_s3 + $0xb48] sm:$0xff] }
 0x1d5   : > { %3779 = vmatmul.msk.f32.gmra.mxu3 %vm7841_vm11, %v6046_v59  ;;  %2776 = vmatpush.msrb.mxu2 %v3941_v46  ;;  %v3883_v59 = vld [vmem:[%s7495_s3 + $0xa10] sm:$0xff]  ;;  %v3882_v46 = vld [vmem:[%s7495_s3 + $0xa08] sm:$0xff]  ;;  %v7851_v49 = vld [vmem:[#allocation59_spill] sm:$0xff]  ;;  %vm7853_vm11 = vcmp.eq.s32.totalorder %v7852_v13, 1 }
 0x1d6   : > { %2622 = vmatpush.msrb.mxu0 %v3883_v59  ;;  %2540 = vmatpush.msrb.mxu3 %v3859_v37  ;;  %v3858_v37 = vld [vmem:[%s7495_s3 + $0x988] sm:$0xff]  ;;  %v7856_v13 = vld [vmem:[#allocation53_spill] sm:$0xff] }
 0x1d7   : > { %2777 = vmatpush.msrb.mxu2 %v3940_v9  ;;  %v3881_v9 = vld [vmem:[%s7495_s3 + $0xa00] sm:$0xff]  ;;  %2695 = vmatpush.msrb.mxu1 %v3916_v53 }
 0x1d8   : > { %2623 = vmatpush.msrb.mxu0 %v3882_v46  ;;  %v7849_v46 = vld [vmem:[#allocation79_spill] sm:$0xff]  ;;  %2541 = vmatpush.msrb.mxu3 %v3858_v37  ;;  %v3936_v37 = vld [vmem:[%s7495_s3 + $0xb38] sm:$0xff] }
 0x1d9   : > { %7859 = vst [vmem:[#allocation79_spill] sm:$0xff] %v6705_v16 }
 0x1da   : > { %3760 = vmatmul.msk.f32.gmra.mxu2 %vm1149_vm3, %v6607_v52  ;;  %2624 = vmatpush.msrb.mxu0 %v3881_v9  ;;  %v3937_v9 = vld [vmem:[%s7495_s3 + $0xb40] sm:$0xff]  ;;  %v6701_v53 = vpop.f32.mrf.mxu3 }
 0x1db   : > { %3735 = vmatmul.msk.f32.gmra.mxu1 %vm7843_vm13, %v5670_v54  ;;  %vm7855_vm13 = vcmp.eq.s32.totalorder %v7854_v38, 1  ;;  %v7858_v38 = vld [vmem:[#allocation77_spill] sm:$0xff] }
 0x1dc   : > { %3804 = vmatmul.msk.f32.gmra.mxu0 %vm7844_vm8, %v5588_v51  ;;  %v3939_v51 = vld [vmem:[%s7495_s3 + $0xb50] sm:$0xff]  ;;  %v763_v39 = vadd.f32 %v6183_v56, %v7858_v38 }
 0x1dd   : > { %v6645_v59 = vpop.f32.mrf.mxu2  ;;  %3780 = vmatmul.msk.f32.gmra.mxu3 %vm7846_vm10, %v6159_v22  ;;  %2778 = vmatpush.msrb.mxu2 %v3939_v51  ;;  %v6661_v22 = vpop.f32.mrf.mxu0  ;;  %v3915_v51 = vld [vmem:[%s7495_s3 + $0xad0] sm:$0xff] }
 0x1de   : > { %7848 = vst [vmem:[#allocation109_spill] sm:$0xff] %v6661_v22  ;;  %2696 = vmatpush.msrb.mxu1 %v3915_v51  ;;  %v3991_v56 = vld [vmem:[%s7495_s3 + $0xc70] sm:$0xff]  ;;  %v880_v38 = vadd.f32 %v6188_v57, %v763_v39  ;;  %v3968_v57 = vld [vmem:[%s7495_s3 + $0xbf8] sm:$0xff]  ;;  %v7865_v39 = vld [vmem:[#allocation63_spill] sm:$0xff] }
 0x1df   : > { %2779 = vmatpush.msrb.mxu2 %v3938_v29  ;;  %v3992_v29 = vld [vmem:[%s7495_s3 + $0xc78] sm:$0xff]  ;;  %v7866_v51 = vld [vmem:[#allocation68_spill] sm:$0xff] }
 0x1e0   : > { %v6656_v34 = vpop.f32.mrf.mxu1  ;;  %2937 = vmatpush.msra.mxu0 %v3992_v29  ;;  %v3990_v29 = vld [vmem:[%s7495_s3 + $0xc68] sm:$0xff] }
 0x1e1   : > { %2780 = vmatpush.msrb.mxu2 %v3937_v9  ;;  %v7862_v9 = vld [vmem:[#allocation44_spill] sm:$0xff] }
 0x1e2   : > { %3849 = vmatmul.msk.f32.vlgmr.msra.gmra.mxu2 %vm589_vm9, %v7849_v46  ;;  %vm7857_vm9 = vcmp.eq.s32.totalorder %v7856_v13, 1  ;;  %vm7863_vm8 = vcmp.eq.s32.totalorder %v7862_v9, 1  ;;  %2938 = vmatpush.msra.mxu0 %v3991_v56 }
 0x1e3   : > { %3736 = vmatmul.msk.f32.gmra.mxu1 %vm7853_vm11, %v7851_v49  ;;  %2781 = vmatpush.msrb.mxu2 %v3936_v37  ;;  %v994_v37 = vadd.f32 %v6384_v3, %v880_v38  ;;  %v6753_v3 = vpop.f32.mrf.mxu3 }
 0x1e4   : > { %3805 = vmatmul.msk.f32.gmra.mxu0 %vm7855_vm13, %v5600_v40  ;;  %v3857_v40 = vld [vmem:[%s7495_s3 + $0x980] sm:$0xff] }
 0x1e5   : > { %v6693_v46 = vpop.f32.mrf.mxu2  ;;  %3781 = vmatmul.msk.f32.gmra.mxu3 %vm7857_vm9, %v6177_v27  ;;  %v3914_v27 = vld [vmem:[%s7495_s3 + $0xac8] sm:$0xff]  ;;  %2939 = vmatpush.msra.mxu0 %v3990_v29 }
 0x1e6   : > { %2542 = vmatpush.msrb.mxu3 %v3857_v40  ;;  %2697 = vmatpush.msrb.mxu1 %v3914_v27  ;;  %v3913_v40 = vld [vmem:[%s7495_s3 + $0xac0] sm:$0xff]  ;;  %v3935_v27 = vld [vmem:[%s7495_s3 + $0xb30] sm:$0xff]  ;;  %v3934_v29 = vld [vmem:[%s7495_s3 + $0xb28] sm:$0xff] }
 0x1e7   : > { %2782 = vmatpush.msrb.mxu2 %v3935_v27  ;;  %v7874_v27 = vld [vmem:[#allocation74_spill] sm:$0xff] }
 0x1e8   : > { %v6707_v22 = vpop.f32.mrf.mxu1  ;;  %2698 = vmatpush.msrb.mxu1 %v3913_v40  ;;  %2855 = vmatpush.msra.mxu3 %v3968_v57  ;;  %v3967_v40 = vld [vmem:[%s7495_s3 + $0xbf0] sm:$0xff] }
 0x1e9   : > { %v6709_v13 = vpop.f32.mrf.mxu0  ;;  %2783 = vmatpush.msrb.mxu2 %v3934_v29 }
 0x1ea   : > { %7860 = vst [vmem:[#allocation3_spill] sm:$0xff] %v6709_v13  ;;  %3850 = vmatmul.msk.f32.gmra.mxu2 %vm590_vm7, %v6705_v16  ;;  %v7869_v16 = vld [vmem:[#allocation73_spill] sm:$0xff]  ;;  %2856 = vmatpush.msra.mxu3 %v3967_v40  ;;  %v3988_v40 = vld [vmem:[%s7495_s3 + $0xc58] sm:$0xff] }
 0x1eb   : > { %3825 = vmatmul.msk.f32.vlgmr.msra.gmra.mxu1 %vm7863_vm8, %v6048_v55  ;;  %v745_v55 = vadd.f32 %v7866_v51, %v7865_v39  ;;  %v7870_v39 = vld [vmem:[#allocation89_spill] sm:$0xff] }
 0x1ec   : > { %3806 = vmatmul.msk.f32.gmra.mxu0 %vm1375_vm0, %v5670_v54  ;;  %v7867_v54 = vld [vmem:[#allocation55_spill] sm:$0xff] }
 0x1ed   : > { %v6742_v9 = vpop.f32.mrf.mxu2  ;;  %vm7868_vm7 = vcmp.eq.s32.totalorder %v7867_v54, 1  ;;  %v874_v13 = vadd.f32 %v7869_v16, %v745_v55  ;;  %v1108_v54 = vadd.f32 %v6359_v45, %v994_v37  ;;  %v3912_v16 = vld [vmem:[%s7495_s3 + $0xab8] sm:$0xff]  ;;  %v7873_v45 = vld [vmem:[#allocation69_spill] sm:$0xff] }
 0x1ee   : > { %3782 = vmatmul.msk.f32.gmra.mxu3 %vm7868_vm7, %v6214_v30  ;;  %v7871_v30 = vld [vmem:[#allocation83_spill] sm:$0xff]  ;;  %2699 = vmatpush.msrb.mxu1 %v3912_v16  ;;  %v748_v57 = vadd.f32 %v7874_v27, %v7873_v45  ;;  %v3911_v16 = vld [vmem:[%s7495_s3 + $0xab0] sm:$0xff] }
 0x1ef   : > { %v988_v51 = vadd.f32 %v7870_v39, %v874_v13  ;;  %v766_v56 = vadd.f32 %v6249_v47, %v7871_v30  ;;  %v3989_v47 = vld [vmem:[%s7495_s3 + $0xc60] sm:$0xff]  ;;  %v1222_v37 = vadd.f32 %v6609_v10, %v1108_v54  ;;  %v7875_v39 = vld [vmem:[#allocation56_spill] sm:$0xff]  ;;  %v7881_v13 = vld [vmem:[#allocation78_spill] sm:$0xff] }
 0x1f0   : > { %v6755_v38 = vpop.f32.mrf.mxu1  ;;  %vm7876_vm10 = vcmp.eq.s32.totalorder %v7875_v39, 1  ;;  %v3966_v10 = vld [vmem:[%s7495_s3 + $0xbe8] sm:$0xff]  ;;  %v7878_v54 = vld [vmem:[#allocation87_spill] sm:$0xff]  ;;  %2940 = vmatpush.msra.mxu0 %v3989_v47  ;;  %2700 = vmatpush.msrb.mxu1 %v3911_v16  ;;  %v875_v45 = vadd.f32 %v7881_v13, %v748_v57  ;;  %v7886_v13 = vld [vmem:[#allocation93_spill] sm:$0xff] }
 0x1f1   : > { %v1552_v12 = vpop.f32.mrf.mxu0  ;;  %v881_v55 = vadd.f32 %v6252_v50, %v766_v56  ;;  %v3933_v50 = vld [vmem:[%s7495_s3 + $0xb20] sm:$0xff]  ;;  %2857 = vmatpush.msra.mxu3 %v3966_v10  ;;  %v3910_v57 = vld [vmem:[%s7495_s3 + $0xaa8] sm:$0xff] }
 0x1f2   : > { %3851 = vmatmul.msk.f32.gmra.mxu2 %vm591_vm5, %v6751_v5  ;;  %2941 = vmatpush.msra.mxu0 %v3988_v40 }
 0x1f3   : > { %3826 = vmatmul.msk.f32.gmra.mxu1 %vm7876_vm10, %v6072_v7  ;;  %v1102_v7 = vadd.f32 %v7878_v54, %v988_v51  ;;  %v995_v56 = vadd.f32 %v6441_v20, %v881_v55  ;;  %2784 = vmatpush.msrb.mxu2 %v3933_v50  ;;  %v1336_v51 = vadd.f32 %v6599_v15, %v1222_v37  ;;  %v6808_v20 = vld [vmem:[#allocation2 + $0x1f] sm:$0xff]  ;;  %v7883_v50 = vld [vmem:[#allocation80_spill] sm:$0xff] }
 0x1f4   : > { %3807 = vmatmul.msk.f32.gmra.mxu0 %vm1376_vm12, %v7851_v49  ;;  %v7879_v49 = vld [vmem:[#allocation54_spill] sm:$0xff]  ;;  %v3965_v15 = vld [vmem:[%s7495_s3 + $0xbe0] sm:$0xff]  ;;  %2701 = vmatpush.msrb.mxu1 %v3910_v57 }
 0x1f5   : > { %v6797_v29 = vpop.f32.mrf.mxu2  ;;  %vm7880_vm5 = vcmp.eq.s32.totalorder %v7879_v49, 1  ;;  %v1216_v27 = vadd.f32 %v6300_v23, %v1102_v7  ;;  %v1109_v47 = vadd.f32 %v6409_v25, %v995_v56  ;;  %v3932_v23 = vld [vmem:[%s7495_s3 + $0xb18] sm:$0xff]  ;;  %v7882_v37 = vld [vmem:[#allocation75_spill] sm:$0xff]  ;;  %v7884_v56 = vld [vmem:[#allocation52_spill] sm:$0xff]  ;;  %2858 = vmatpush.msra.mxu3 %v3965_v15 }
 0x1f6   : > { %3783 = vmatmul.msk.f32.gmra.mxu3 %vm7880_vm5, %v6266_v2  ;;  %v989_v2 = vadd.f32 %v6079_v31, %v875_v45  ;;  %v751_v10 = vadd.f32 %v7883_v50, %v7882_v37  ;;  %v3987_v31 = vld [vmem:[%s7495_s3 + $0xc50] sm:$0xff]  ;;  %vm7885_vm11 = vcmp.eq.s32.totalorder %v7884_v56, 1  ;;  %2785 = vmatpush.msrb.mxu2 %v3932_v23  ;;  %v6866_v15 = vld [vmem:[#allocation2 + $0x27] sm:$0xff]  ;;  %vm7917_vm5 = vcmp.eq.s32.totalorder %v5049_v28, 1 }
 0x1f7   : > { %v1330_v25 = vadd.f32 %v6308_v44, %v1216_v27  ;;  %v1223_v7 = vadd.f32 %v6656_v34, %v1109_v47  ;;  %v3931_v34 = vld [vmem:[%s7495_s3 + $0xb10] sm:$0xff]  ;;  %v7888_v44 = vld [vmem:[#allocation95_spill] sm:$0xff]  ;;  %2942 = vmatpush.msra.mxu0 %v3987_v31  ;;  %v3930_v47 = vld [vmem:[%s7495_s3 + $0xb08] sm:$0xff]  ;;  %2702 = vmatpush.msrb.mxu1 %v3909_v48 }
 0x1f8   : > { %v1438_v55 = vpop.f32.mrf.mxu3  ;;  %v6810_v54 = vpop.f32.mrf.mxu1  ;;  %2786 = vmatpush.msrb.mxu2 %v3931_v34  ;;  %v7891_v50 = vld [vmem:[#allocation100_spill] sm:$0xff]  ;;  %v7921_v28 = vld [vmem:[#allocation97_spill] sm:$0xff] }
 0x1f9   : > { %v1450_v30 = vadd.f32 %v1438_v55, %v1336_v51  ;;  %v1555_v16 = vpop.f32.mrf.mxu0  ;;  %v3986_v55 = vld [vmem:[%s7495_s3 + $0xc48] sm:$0xff]  ;;  %v1337_v23 = vadd.f32 %v6645_v59, %v1223_v7  ;;  %v3963_v59 = vld [vmem:[%s7495_s3 + $0xbd0] sm:$0xff]  ;;  %v7893_v7 = vld [vmem:[#allocation86_spill] sm:$0xff] }
 0x1fa   : > { %3852 = vmatmul.msk.f32.gmra.mxu2 %vm592_vm4, %v6808_v20  ;;  %2943 = vmatpush.msra.mxu0 %v3986_v55  ;;  %v2576_v34 = vld [vmem:[#allocation2 + $0x9] sm:$0xff] }
 0x1fb   : > { %3827 = vmatmul.msk.f32.gmra.mxu1 %vm7885_vm11, %v6179_v42  ;;  %v6836_v40 = vadd.f32 %v1552_v12, %v1450_v30  ;;  %v3964_v42 = vld [vmem:[%s7495_s3 + $0xbd8] sm:$0xff]  ;;  %v1103_v12 = vadd.f32 %v7888_v44, %v989_v2  ;;  %v1444_v30 = vadd.f32 %v6482_v11, %v1330_v25  ;;  %v7890_v2 = vld [vmem:[#allocation84_spill] sm:$0xff]  ;;  %2787 = vmatpush.msrb.mxu2 %v3930_v47  ;;  %v7894_v44 = vld [vmem:[#allocation21_spill] sm:$0xff] }
 0x1fc   : > { %3808 = vmatmul.msk.f32.gmra.mxu0 %vm1377_vm1, %v7886_v13  ;;  %v876_v57 = vadd.f32 %v7890_v2, %v751_v10  ;;  %2859 = vmatpush.msra.mxu3 %v3964_v42  ;;  %v7892_v10 = vld [vmem:[#allocation82_spill] sm:$0xff]  ;;  %vm7895_vm4 = vcmp.eq.s32.totalorder %v7894_v44, 1  ;;  %v7896_v2 = vld [vmem:[#allocation64_spill] sm:$0xff] }
 0x1fd   : > { %v6852_v27 = vpop.f32.mrf.mxu2  ;;  %v1217_v11 = vadd.f32 %v6354_v63, %v1103_v12  ;;  %v1558_v25 = vadd.f32 %v6462_v6, %v1444_v30  ;;  %v3908_v63 = vld [vmem:[%s7495_s3 + $0xa98] sm:$0xff]  ;;  %v754_v42 = vadd.f32 %v7893_v7, %v7892_v10  ;;  %v2494_v12 = vld [vmem:[#allocation2 + $0x8] sm:$0xff]  ;;  %v3985_v6 = vld [vmem:[%s7495_s3 + $0xc40] sm:$0xff]  ;;  %vm7897_vm13 = vcmp.eq.s32.totalorder %v7896_v2, 1 }
 0x1fe   : > { %3784 = vmatmul.msk.f32.gmra.mxu3 %vm1263_vm6, %v6653_v36  ;;  %v990_v31 = vadd.f32 %v7891_v50, %v876_v57  ;;  %2703 = vmatpush.msrb.mxu1 %v3908_v63  ;;  %v3929_v30 = vld [vmem:[%s7495_s3 + $0xb00] sm:$0xff]  ;;  %v6916_v10 = vld [vmem:[#allocation2 + $0x2f] sm:$0xff] }
 0x1ff   : > { %v1331_v55 = vadd.f32 %v6361_v62, %v1217_v11  ;;  %v1688_v47 = vadd.f32 %v6707_v22, %v1558_v25  ;;  %2860 = vmatpush.msra.mxu3 %v3963_v59  ;;  %2788 = vmatpush.msrb.mxu2 %v3929_v30  ;;  %v3962_v62 = vld [vmem:[%s7495_s3 + $0xbc8] sm:$0xff]  ;;  %v3984_v22 = vld [vmem:[%s7495_s3 + $0xc38] sm:$0xff] }
 0x200   : > { %v1441_v36 = vpop.f32.mrf.mxu3  ;;  %v6868_v37 = vpop.f32.mrf.mxu1  ;;  %v7900_v25 = vld [vmem:[#allocation8_spill] sm:$0xff]  ;;  %2944 = vmatpush.msra.mxu0 %v3985_v6  ;;  %v6920_v7 = vld [vmem:[#allocation2 + $0x11] sm:$0xff] }
 0x201   : > { %v1451_v13 = vadd.f32 %v1441_v36, %v1337_v23  ;;  %v1910_v48 = vpop.f32.mrf.mxu0  ;;  %v3907_v36 = vld [vmem:[%s7495_s3 + $0xa90] sm:$0xff]  ;;  %v1445_v11 = vadd.f32 %v6523_v14, %v1331_v55  ;;  %2861 = vmatpush.msra.mxu3 %v3962_v62  ;;  %v1770_v59 = vadd.f32 %v6693_v46, %v1688_v47  ;;  %v3906_v44 = vld [vmem:[%s7495_s3 + $0xa88] sm:$0xff]  ;;  %v3961_v46 = vld [vmem:[%s7495_s3 + $0xbc0] sm:$0xff] }
 0x202   : > { %3853 = vmatmul.msk.f32.gmra.mxu2 %vm7895_vm4, %v6866_v15  ;;  %2704 = vmatpush.msrb.mxu1 %v3907_v36  ;;  %v3983_v55 = vld [vmem:[%s7495_s3 + $0xc30] sm:$0xff]  ;;  %v6936_v47 = vld [vmem:[%s7495_s3 + $0xd78] sm:$0xff]  ;;  %v7904_v23 = vld [vmem:[#allocation31_spill] sm:$0xff] }
 0x203   : > { %3828 = vmatmul.msk.f32.gmra.mxu1 %vm7897_vm13, %v6181_v32  ;;  %v6894_v57 = vadd.f32 %v1555_v16, %v1451_v13  ;;  %v7899_v32 = vld [vmem:[#allocation98_spill] sm:$0xff]  ;;  %v7902_v13 = vld [vmem:[#allocation91_spill] sm:$0xff]  ;;  %2945 = vmatpush.msra.mxu0 %v3984_v22  ;;  %vm7905_vm9 = vcmp.eq.s32.totalorder %v7904_v23, 1 }
 0x204   : > { %3897 = vmatmul.msk.f32.vlgmr.msrb.gmra.mxu0 %vm800_vm14, %v2576_v34  ;;  %v1104_v16 = vadd.f32 %v7899_v32, %v990_v31  ;;  %vm7901_vm14 = vcmp.eq.s32.totalorder %v7900_v25, 1  ;;  %v877_v34 = vadd.f32 %v7902_v13, %v754_v42  ;;  %v1559_v42 = vadd.f32 %v6521_v58, %v1445_v11  ;;  %2705 = vmatpush.msrb.mxu1 %v3906_v44  ;;  %v3905_v58 = vld [vmem:[%s7495_s3 + $0xa80] sm:$0xff]  ;;  %v7909_v11 = vld [vmem:[#allocation94_spill] sm:$0xff]  ;;  %v7910_v13 = vld [vmem:[#allocation4_spill] sm:$0xff] }
 0x205   : > { %v6909_v50 = vpop.f32.mrf.mxu2  ;;  %2862 = vmatpush.msra.mxu3 %v3961_v46  ;;  %v7906_v22 = vld [vmem:[#allocation67_spill] sm:$0xff]  ;;  %2946 = vmatpush.msra.mxu0 %v3983_v55  ;;  %vm7911_vm7 = vcmp.eq.s32.totalorder %v7910_v13, 1 }
 0x206   : > { %3873 = vmatmul.msk.f32.vlgmr.msrb.gmra.mxu3 %vm7901_vm14, %v2494_v12  ;;  %v1218_v63 = vadd.f32 %v6402_v0, %v1104_v16  ;;  %v7903_v12 = vld [vmem:[#allocation103_spill] sm:$0xff]  ;;  %v1689_v62 = vadd.f32 %v6755_v38, %v1559_v42  ;;  %vm7907_vm8 = vcmp.eq.s32.totalorder %v7906_v22, 1  ;;  %v7908_v16 = vld [vmem:[#allocation66_spill] sm:$0xff]  ;;  %3101 = vmatpush.msra.mxu2 %v6936_v47  ;;  %v6966_v38 = vld [vmem:[%s7495_s3 + $0xd70] sm:$0xff]  ;;  %vm7928_vm14 = vcmp.eq.s32.totalorder %v5233_v35, 1 }
 0x207   : > { %v991_v6 = vadd.f32 %v7903_v12, %v877_v34  ;;  %v757_v25 = vadd.f32 %v7909_v11, %v7908_v16  ;;  %v7914_v44 = vld [vmem:[#allocation7_spill] sm:$0xff]  ;;  %2706 = vmatpush.msrb.mxu1 %v3905_v58  ;;  %v7931_v35 = vld [vmem:[#allocation14_spill] sm:$0xff] }
 0x208   : > { %v6918_v31 = vpop.f32.mrf.mxu1  ;;  %v1828_v14 = vpop.f32.mrf.mxu3  ;;  %v1332_v36 = vadd.f32 %v6407_v21, %v1218_v63  ;;  %v3960_v21 = vld [vmem:[%s7495_s3 + $0xbb8] sm:$0xff]  ;;  %vm7915_vm10 = vcmp.eq.s32.totalorder %v7914_v44, 1  ;;  %v1771_v42 = vadd.f32 %v6742_v9, %v1689_v62  ;;  %3102 = vmatpush.msra.mxu2 %v6966_v38  ;;  %v3981_v9 = vld [vmem:[%s7495_s3 + $0xc20] sm:$0xff] }
 0x209   : > { %v1852_v30 = vadd.f32 %v1828_v14, %v1770_v59  ;;  %v1913_v0 = vpop.f32.mrf.mxu0  ;;  %v7913_v14 = vld [vmem:[#allocation99_spill] sm:$0xff]  ;;  %2863 = vmatpush.msra.mxu3 %v3960_v21  ;;  %v6995_v62 = vld [vmem:[%s7495_s3 + $0xcf8] sm:$0xff]  ;;  %v7918_v21 = vld [vmem:[#allocation81_spill] sm:$0xff] }
 0x20a   : > { %3854 = vmatmul.msk.f32.gmra.mxu2 %vm7905_vm9, %v6916_v10  ;;  %v1446_v63 = vadd.f32 %v6576_v17, %v1332_v36  ;;  %v6983_v23 = vld [vmem:[#allocation2 + $0x19] sm:$0xff]  ;;  %vm7919_vm11 = vcmp.eq.s32.totalorder %v7918_v21, 1  ;;  %4069 = vmatpush.msra.mxu1 %v6995_v62 }
 0x20b   : > { %3829 = vmatmul.msk.f32.gmra.mxu1 %vm7907_vm8, %v6235_v43  ;;  %v6949_v32 = vadd.f32 %v1910_v48, %v1852_v30  ;;  %v3982_v43 = vld [vmem:[%s7495_s3 + $0xc28] sm:$0xff]  ;;  %v7912_v48 = vld [vmem:[#allocation102_spill] sm:$0xff]  ;;  %v7038_v44 = vld [vmem:[%s7495_s3 + $0xd60] sm:$0xff]  ;;  %vm7932_vm8 = vcmp.eq.s32.totalorder %v7931_v35, 1 }
 0x20c   : > { %3898 = vmatmul.msk.f32.gmra.mxu0 %vm7911_vm7, %v6920_v7  ;;  %v1105_v34 = vadd.f32 %v7912_v48, %v991_v6  ;;  %v6977_v30 = vld [vmem:[#allocation2 + $0x37] sm:$0xff]  ;;  %v7916_v6 = vld [vmem:[#allocation96_spill] sm:$0xff]  ;;  %v1560_v36 = vadd.f32 %v6565_v19, %v1446_v63 }
 0x20d   : > { %v6970_v59 = vpop.f32.mrf.mxu2  ;;  %2947 = vmatpush.msra.mxu0 %v3982_v43  ;;  %v878_v46 = vadd.f32 %v7916_v6, %v757_v25  ;;  %v7004_v19 = vld [vmem:[%s7495_s3 + $0xd68] sm:$0xff] }
 0x20e   : > { %3874 = vmatmul.msk.f32.gmra.mxu3 %vm7915_vm10, %v7913_v14  ;;  %v1219_v12 = vadd.f32 %v6457_v1, %v1105_v34  ;;  %v3959_v1 = vld [vmem:[%s7495_s3 + $0xbb0] sm:$0xff]  ;;  %v1690_v13 = vadd.f32 %v6810_v54, %v1560_v36  ;;  %v7922_v34 = vld [vmem:[#allocation16_spill] sm:$0xff]  ;;  %3103 = vmatpush.msra.mxu2 %v7004_v19 }
 0x20f   : > { %v992_v11 = vadd.f32 %v6256_v41, %v878_v46  ;;  %2864 = vmatpush.msra.mxu3 %v3959_v1  ;;  %2948 = vmatpush.msra.mxu0 %v3981_v9  ;;  %v7920_v41 = vld [vmem:[#allocation72_spill] sm:$0xff]  ;;  %vm7923_vm4 = vcmp.eq.s32.totalorder %v7922_v34, 1  ;;  %v7028_v54 = vld [vmem:[%s7495_s3 + $0xcf0] sm:$0xff]  ;;  %v7042_v46 = vld [vmem:[#allocation2 + $0x3f] sm:$0xff] }
 0x210   : > { %v6981_v17 = vpop.f32.mrf.mxu1  ;;  %v1831_v55 = vpop.f32.mrf.mxu3  ;;  %v1333_v25 = vadd.f32 %v6452_v26, %v1219_v12  ;;  %v760_v48 = vadd.f32 %v7921_v28, %v7920_v41  ;;  %v3958_v26 = vld [vmem:[%s7495_s3 + $0xba8] sm:$0xff]  ;;  %v7924_v14 = vld [vmem:[#allocation13_spill] sm:$0xff]  ;;  %v1772_v6 = vadd.f32 %v6797_v29, %v1690_v13  ;;  %4070 = vmatpush.msra.mxu1 %v7028_v54  ;;  %3104 = vmatpush.msra.mxu2 %v7038_v44  ;;  %v3957_v13 = vld [vmem:[%s7495_s3 + $0xba0] sm:$0xff] }
 0x211   : > { %v1853_v58 = vadd.f32 %v1831_v55, %v1771_v42  ;;  %v1916_v16 = vpop.f32.mrf.mxu0  ;;  %vm7925_vm13 = vcmp.eq.s32.totalorder %v7924_v14, 1  ;;  %v7926_v12 = vld [vmem:[#allocation104_spill] sm:$0xff]  ;;  %2865 = vmatpush.msra.mxu3 %v3958_v26  ;;  %v3979_v28 = vld [vmem:[%s7495_s3 + $0xc10] sm:$0xff] }
 0x212   : > { %3855 = vmatmul.msk.f32.gmra.mxu2 %vm7917_vm5, %v6977_v30  ;;  %v1106_v42 = vadd.f32 %v7926_v12, %v992_v11  ;;  %v7048_v9 = vld [vmem:[#allocation2 + $0x21] sm:$0xff]  ;;  %v7929_v26 = vld [vmem:[#allocation85_spill] sm:$0xff] }
 0x213   : > { %3830 = vmatmul.msk.f32.gmra.mxu1 %vm7919_vm11, %v6286_v60  ;;  %v7011_v43 = vadd.f32 %v1913_v0, %v1853_v58  ;;  %v3980_v60 = vld [vmem:[%s7495_s3 + $0xc18] sm:$0xff]  ;;  %v1447_v0 = vadd.f32 %v6631_v24, %v1333_v25  ;;  %v7927_v24 = vld [vmem:[#allocation101_spill] sm:$0xff]  ;;  %2866 = vmatpush.msra.mxu3 %v3957_v13  ;;  %vm7930_vm9 = vcmp.eq.s32.totalorder %v7929_v26, 1  ;;  %v7131_v35 = vld [vmem:[%s7495_s3 + $0xd48] sm:$0xff] }
 0x214   : > { %3899 = vmatmul.msk.f32.gmra.mxu0 %vm7923_vm4, %v6983_v23  ;;  %v879_v55 = vadd.f32 %v7927_v24, %v760_v48  ;;  %v1220_v36 = vadd.f32 %v6519_v18, %v1106_v42  ;;  %v7061_v18 = vld [vmem:[%s7495_s3 + $0xce8] sm:$0xff]  ;;  %v7106_v12 = vld [vmem:[%s7495_s3 + $0xd50] sm:$0xff] }
 0x215   : > { %v1764_v63 = vpop.f32.mrf.mxu2  ;;  %2949 = vmatpush.msra.mxu0 %v3980_v60  ;;  %v1561_v11 = vadd.f32 %v6611_v8, %v1447_v0  ;;  %4071 = vmatpush.msra.mxu1 %v7061_v18  ;;  %v7934_v42 = vld [vmem:[#allocation105_spill] sm:$0xff] }
 0x216   : > { %3875 = vmatmul.msk.f32.gmra.mxu3 %vm7925_vm13, %v6304_v33  ;;  %v993_v48 = vadd.f32 %v6325_v4, %v879_v55  ;;  %v1334_v8 = vadd.f32 %v6499_v61, %v1220_v36  ;;  %v3956_v61 = vld [vmem:[%s7495_s3 + $0xb98] sm:$0xff] }
 0x217   : > { %v1691_v34 = vadd.f32 %v6868_v37, %v1561_v11  ;;  %2950 = vmatpush.msra.mxu0 %v3979_v28  ;;  %v3978_v37 = vld [vmem:[%s7495_s3 + $0xc08] sm:$0xff]  ;;  %2867 = vmatpush.msra.mxu3 %v3956_v61  ;;  %v7112_v36 = vld [vmem:[#allocation2 + $0x51] sm:$0xff] }
 0x218   : > { %v1682_v58 = vpop.f32.mrf.mxu1  ;;  %v1834_v1 = vpop.f32.mrf.mxu3  ;;  %v7935_v11 = vld [vmem:[#allocation108_spill] sm:$0xff]  ;;  %v4225_v61 = vld [vmem:[#allocation2 + $0x10] sm:$0xff] }
 0x219   : > { %v1694_v25 = vadd.f32 %v1682_v58, %v6836_v40  ;;  %v1854_v41 = vadd.f32 %v1834_v1, %v1772_v6  ;;  %v1919_v29 = vpop.f32.mrf.mxu0  ;;  %v7071_v40 = vld [vmem:[%s7495_s3 + $0xd58] sm:$0xff]  ;;  %2951 = vmatpush.msra.mxu0 %v3978_v37  ;;  %v1107_v6 = vadd.f32 %v7934_v42, %v993_v48  ;;  %v7114_v58 = vld [vmem:[#allocation2 + $0x29] sm:$0xff]  ;;  %v7937_v37 = vld [vmem:[#allocation15_spill] sm:$0xff] }
 0x21a   : > { %3856 = vmatmul.msk.f32.gmra.mxu2 %vm7928_vm14, %v7042_v46  ;;  %v3955_v1 = vld [vmem:[%s7495_s3 + $0xb90] sm:$0xff] }
 0x21b   : > { %3831 = vmatmul.msk.f32.gmra.mxu1 %vm7930_vm9, %v6607_v52  ;;  %v7077_v60 = vadd.f32 %v1764_v63, %v1694_v25  ;;  %v7079_v4 = vadd.f32 %v1916_v16, %v1854_v41  ;;  %v7094_v52 = vld [vmem:[%s7495_s3 + $0xce0] sm:$0xff]  ;;  %v1448_v16 = vadd.f32 %v6701_v53, %v1334_v8  ;;  %3105 = vmatpush.msra.mxu2 %v7071_v40  ;;  %v7936_v41 = vld [vmem:[#allocation109_spill] sm:$0xff] }
 0x21c   : > { %3900 = vmatmul.msk.f32.gmra.mxu0 %vm7932_vm8, %v7048_v9  ;;  %v7097_v63 = vld [vmem:[#allocation2 + $0x20] sm:$0xff]  ;;  %v1773_v53 = vadd.f32 %v6852_v27, %v1691_v34  ;;  %4072 = vmatpush.msra.mxu1 %v7094_v52  ;;  %v1221_v25 = vadd.f32 %v7935_v11, %v1107_v6  ;;  %v4012_v34 = vld [vmem:[%s7495_s3 + $0xcd8] sm:$0xff]  ;;  %v3954_v6 = vld [vmem:[%s7495_s3 + $0xb88] sm:$0xff] }
 0x21d   : > { %v1767_v0 = vpop.f32.mrf.mxu2  ;;  %3106 = vmatpush.msra.mxu2 %v7106_v12  ;;  %v1562_v13 = vadd.f32 %v7936_v41, %v1448_v16  ;;  %2868 = vmatpush.msra.mxu3 %v3955_v1  ;;  %v3977_v8 = vld [vmem:[%s7495_s3 + $0xc00] sm:$0xff]  ;;  %v7939_v16 = vld [vmem:[#allocation90_spill] sm:$0xff] }
 0x21e   : > { %3876 = vmatmul.msk.f32.gmra.mxu3 %vm656_vm2, %v7097_v63  ;;  %vm7938_vm2 = vcmp.eq.s32.totalorder %v7937_v37, 1  ;;  %2952 = vmatpush.msra.mxu0 %v3977_v8  ;;  %vm7940_vm7 = vcmp.eq.s32.totalorder %v7939_v16, 1  ;;  %v7944_v1 = vld [vmem:[#allocation106_spill] sm:$0xff]  ;;  %v3953_v41 = vld [vmem:[%s7495_s3 + $0xb80] sm:$0xff] }
 0x21f   : > { %3107 = vmatpush.msra.mxu2 %v7131_v35  ;;  %4073 = vmatpush.msra.mxu1 %v4012_v34  ;;  %v7945_v11 = vld [vmem:[#allocation10_spill] sm:$0xff]  ;;  %v7947_v8 = vld [vmem:[#allocation3_spill] sm:$0xff] }
 0x220   : > { %v1685_v24 = vpop.f32.mrf.mxu1  ;;  %v1837_v55 = vpop.f32.mrf.mxu3  ;;  %vm7946_vm5 = vcmp.eq.s32.totalorder %v7945_v11, 1  ;;  %3019 = vmatpush.msrb.mxu0 %v6995_v62  ;;  %2869 = vmatpush.msra.mxu3 %v3954_v6  ;;  %v7175_v6 = vld [vmem:[#allocation2 + $0x31] sm:$0xff] }
 0x221   : > { %v1695_v27 = vadd.f32 %v1685_v24, %v6894_v57  ;;  %v1855_v28 = vadd.f32 %v1837_v55, %v1773_v53  ;;  %v1922_v48 = vpop.f32.mrf.mxu0  ;;  %v1692_v57 = vadd.f32 %v6918_v31, %v1562_v13  ;;  %v7941_v53 = vld [vmem:[#allocation18_spill] sm:$0xff]  ;;  %v7153_v31 = vld [vmem:[%s7495_s3 + $0xcd0] sm:$0xff] }
 0x222   : > { %3945 = vmatmul.msk.f32.vlgmr.msrb.gmra.mxu2 %vm7938_vm2, %v4225_v61  ;;  %vm7942_vm10 = vcmp.eq.s32.totalorder %v7941_v53, 1  ;;  %4074 = vmatpush.msra.mxu1 %v7153_v31 }
 0x223   : > { %3832 = vmatmul.msk.f32.gmra.mxu1 %vm7940_vm7, %v7112_v36  ;;  %v7139_v14 = vadd.f32 %v1767_v0, %v1695_v27  ;;  %v7141_v42 = vadd.f32 %v1919_v29, %v1855_v28  ;;  %v7158_v29 = vld [vmem:[%s7495_s3 + $0xd40] sm:$0xff]  ;;  %v1774_v27 = vadd.f32 %v6909_v50, %v1692_v57  ;;  %3020 = vmatpush.msrb.mxu0 %v7028_v54  ;;  %v7183_v50 = vld [vmem:[%s7495_s3 + $0xd38] sm:$0xff] }
 0x224   : > { %3901 = vmatmul.msk.f32.gmra.mxu0 %vm7942_vm10, %v7114_v58  ;;  %v7943_v0 = vld [vmem:[#allocation107_spill] sm:$0xff]  ;;  %3108 = vmatpush.msra.mxu2 %v7158_v29  ;;  %v7948_v54 = vld [vmem:[#allocation26_spill] sm:$0xff] }
 0x225   : > { %v1335_v24 = vadd.f32 %v7943_v0, %v1221_v25  ;;  %v2074_v55 = vpop.f32.mrf.mxu2  ;;  %2870 = vmatpush.msra.mxu3 %v3953_v41  ;;  %3021 = vmatpush.msrb.mxu0 %v7061_v18  ;;  %vm7949_vm11 = vcmp.eq.s32.totalorder %v7948_v54, 1  ;;  %v7950_v57 = vld [vmem:[#allocation79_spill] sm:$0xff]  ;;  %v7953_v18 = vld [vmem:[#allocation29_spill] sm:$0xff] }
 0x226   : > { %3877 = vmatmul.msk.f32.gmra.mxu3 %vm7946_vm5, %v7944_v1  ;;  %v7951_v0 = vld [vmem:[#allocation27_spill] sm:$0xff]  ;;  %3109 = vmatpush.msra.mxu2 %v7183_v50  ;;  %vm7954_vm13 = vcmp.eq.s32.totalorder %v7953_v18, 1 }
 0x227   : > { %v1449_v13 = vadd.f32 %v6753_v3, %v1335_v24  ;;  %v4010_v3 = vld [vmem:[%s7495_s3 + $0xcc8] sm:$0xff]  ;;  %4085 = vmatpush.msrb.mxu3 %v6936_v47  ;;  %vm7952_vm4 = vcmp.eq.s32.totalorder %v7951_v0, 1  ;;  %v7210_v47 = vld [vmem:[%s7495_s3 + $0xd30] sm:$0xff]  ;;  %3022 = vmatpush.msrb.mxu0 %v7094_v52  ;;  %v7963_v54 = vld [vmem:[#allocation19_spill] sm:$0xff] }
 0x228   : > { %v1840_v25 = vpop.f32.mrf.mxu3  ;;  %v1992_v28 = vpop.f32.mrf.mxu1  ;;  %4075 = vmatpush.msra.mxu1 %v4010_v3  ;;  %3110 = vmatpush.msra.mxu2 %v7210_v47  ;;  %v7232_v52 = vld [vmem:[%s7495_s3 + $0xd28] sm:$0xff]  ;;  %vm7964_vm7 = vcmp.eq.s32.totalorder %v7963_v54, 1  ;;  %v4025_v54 = vld [vmem:[%s7495_s3 + $0xd00] sm:$0xff] }
 0x229   : > { %v1563_v61 = vadd.f32 %v7947_v8, %v1449_v13  ;;  %v1856_v37 = vadd.f32 %v1840_v25, %v1774_v27  ;;  %v2016_v53 = vadd.f32 %v1992_v28, %v6949_v32  ;;  %v1925_v62 = vpop.f32.mrf.mxu0  ;;  %4086 = vmatpush.msrb.mxu3 %v6966_v38  ;;  %3023 = vmatpush.msrb.mxu0 %v4012_v34  ;;  %v7224_v8 = vld [vmem:[#allocation2 + $0x39] sm:$0xff] }
 0x22a   : > { %3946 = vmatmul.msk.f32.gmra.mxu2 %vm7949_vm11, %v6304_v33  ;;  %v7205_v33 = vld [vmem:[%s7495_s3 + $0xcc0] sm:$0xff] }
 0x22b   : > { %v1693_v32 = vadd.f32 %v6981_v17, %v1563_v61  ;;  %3921 = vmatmul.msk.f32.vlgmr.msrb.gmra.mxu1 %vm7952_vm4, %v7950_v57  ;;  %v7194_v24 = vadd.f32 %v1922_v48, %v1856_v37  ;;  %v7196_v11 = vadd.f32 %v2074_v55, %v2016_v53  ;;  %v7213_v48 = vld [vmem:[#allocation2 + $0x30] sm:$0xff]  ;;  %4087 = vmatpush.msrb.mxu3 %v7004_v19  ;;  %v4008_v61 = vld [vmem:[%s7495_s3 + $0xcb8] sm:$0xff]  ;;  %v7959_v19 = vld [vmem:[#allocation23_spill] sm:$0xff] }
 0x22c   : > { %3902 = vmatmul.msk.f32.gmra.mxu0 %vm7954_vm13, %v7175_v6  ;;  %v7955_v55 = vld [vmem:[#allocation5_spill] sm:$0xff]  ;;  %4076 = vmatpush.msra.mxu1 %v7205_v33  ;;  %vm7960_vm8 = vcmp.eq.s32.totalorder %v7959_v19, 1 }
 0x22d   : > { %v2077_v17 = vpop.f32.mrf.mxu2  ;;  %vm7956_vm14 = vcmp.eq.s32.totalorder %v7955_v55, 1  ;;  %v1775_v41 = vadd.f32 %v6970_v59, %v1693_v32  ;;  %4088 = vmatpush.msrb.mxu3 %v7038_v44  ;;  %v7957_v59 = vld [vmem:[#allocation17_spill] sm:$0xff]  ;;  %3111 = vmatpush.msra.mxu2 %v7232_v52  ;;  %v4006_v55 = vld [vmem:[%s7495_s3 + $0xca8] sm:$0xff] }
 0x22e   : > { %3878 = vmatmul.msk.f32.gmra.mxu3 %vm7956_vm14, %v7213_v48  ;;  %vm7958_vm9 = vcmp.eq.s32.totalorder %v7957_v59, 1  ;;  %4077 = vmatpush.msra.mxu1 %v4008_v61  ;;  %v7961_v37 = vld [vmem:[#allocation25_spill] sm:$0xff] }
 0x22f   : > { %vm7962_vm2 = vcmp.eq.s32.totalorder %v7961_v37, 1  ;;  %v4007_v44 = vld [vmem:[%s7495_s3 + $0xcb0] sm:$0xff]  ;;  %4089 = vmatpush.msrb.mxu3 %v7071_v40  ;;  %3024 = vmatpush.msrb.mxu0 %v7153_v31  ;;  %v4028_v31 = vld [vmem:[%s7495_s3 + $0xd18] sm:$0xff] }
 0x230   : > { %v1843_v13 = vpop.f32.mrf.mxu3  ;;  %v1995_v27 = vpop.f32.mrf.mxu1  ;;  %4078 = vmatpush.msra.mxu1 %v4007_v44 }
 0x231   : > { %v1857_v38 = vadd.f32 %v1843_v13, %v1775_v41  ;;  %v2017_v25 = vadd.f32 %v1995_v27, %v7011_v43  ;;  %v1928_v28 = vpop.f32.mrf.mxu0  ;;  %4090 = vmatpush.msrb.mxu3 %v7106_v12  ;;  %3025 = vmatpush.msrb.mxu0 %v4010_v3  ;;  %v7965_v12 = vld [vmem:[#allocation28_spill] sm:$0xff]  ;;  %v7969_v41 = vld [vmem:[#allocation34_spill] sm:$0xff]  ;;  %v7294_v27 = vld [vmem:[#allocation2 + $0x40] sm:$0xff] }
 0x232   : > { %3947 = vmatmul.msk.f32.gmra.mxu2 %vm7958_vm9, %v7097_v63  ;;  %v4029_v63 = vld [vmem:[%s7495_s3 + $0xd20] sm:$0xff]  ;;  %vm7966_vm10 = vcmp.eq.s32.totalorder %v7965_v12, 1  ;;  %4079 = vmatpush.msra.mxu1 %v4006_v55  ;;  %vm7970_vm11 = vcmp.eq.s32.totalorder %v7969_v41, 1 }
 0x233   : > { %3922 = vmatmul.msk.f32.gmra.mxu1 %vm7960_vm8, %v6751_v5  ;;  %v7241_v43 = vadd.f32 %v1925_v62, %v1857_v38  ;;  %v7243_v34 = vadd.f32 %v2077_v17, %v2017_v25  ;;  %v7256_v62 = vld [vmem:[#allocation2 + $0x38] sm:$0xff]  ;;  %3112 = vmatpush.msra.mxu2 %v4029_v63  ;;  %v7265_v17 = vld [vmem:[#allocation2 + $0x41] sm:$0xff] }
 0x234   : > { %3903 = vmatmul.msk.f32.gmra.mxu0 %vm7962_vm2, %v7224_v8  ;;  %4091 = vmatpush.msrb.mxu3 %v7131_v35  ;;  %v4005_v35 = vld [vmem:[%s7495_s3 + $0xca0] sm:$0xff]  ;;  %v7971_v38 = vld [vmem:[#allocation22_spill] sm:$0xff]  ;;  %v4026_v25 = vld [vmem:[%s7495_s3 + $0xd08] sm:$0xff] }
 0x235   : > { %v2080_v53 = vpop.f32.mrf.mxu2  ;;  %3113 = vmatpush.msra.mxu2 %v4028_v31  ;;  %vm7972_vm4 = vcmp.eq.s32.totalorder %v7971_v38, 1  ;;  %4080 = vmatpush.msra.mxu1 %v4005_v35 }
 0x236   : > { %3879 = vmatmul.msk.f32.gmra.mxu3 %vm7964_vm7, %v7256_v62  ;;  %3026 = vmatpush.msrb.mxu0 %v7205_v33 }
 0x237   : > { %4092 = vmatpush.msrb.mxu3 %v7158_v29 }
 0x238   : > { %v1846_v32 = vpop.f32.mrf.mxu3  ;;  %v1998_v57 = vpop.f32.mrf.mxu1  ;;  %3027 = vmatpush.msrb.mxu0 %v4008_v61  ;;  %v7977_v61 = vld [vmem:[#allocation24_spill] sm:$0xff] }
 0x239   : > { %v1858_v0 = vadd.f32 %v1846_v32, %v7077_v60  ;;  %v2018_v40 = vadd.f32 %v1998_v57, %v7079_v4  ;;  %v1931_v18 = vpop.f32.mrf.mxu0  ;;  %v7967_v60 = vld [vmem:[#allocation32_spill] sm:$0xff]  ;;  %4093 = vmatpush.msrb.mxu3 %v7183_v50  ;;  %vm7978_vm9 = vcmp.eq.s32.totalorder %v7977_v61, 1  ;;  %v7979_v57 = vld [vmem:[#allocation41_spill] sm:$0xff] }
 0x23a   : > { %3948 = vmatmul.msk.f32.gmra.mxu2 %vm7966_vm10, %v7944_v1  ;;  %vm7968_vm5 = vcmp.eq.s32.totalorder %v7967_v60, 1  ;;  %v4027_v1 = vld [vmem:[%s7495_s3 + $0xd10] sm:$0xff]  ;;  %v7973_v50 = vld [vmem:[#allocation36_spill] sm:$0xff]  ;;  %vm7980_vm8 = vcmp.eq.s32.totalorder %v7979_v57, 1  ;;  %3028 = vmatpush.msrb.mxu0 %v4007_v44  ;;  %v8002_v57 = vld [vmem:[#allocation42_spill] sm:$0xff] }
 0x23b   : > { %3923 = vmatmul.msk.f32.gmra.mxu1 %vm7968_vm5, %v6808_v20  ;;  %v7280_v4 = vadd.f32 %v1928_v28, %v1858_v0  ;;  %v7282_v3 = vadd.f32 %v2080_v53, %v2018_v40  ;;  %3114 = vmatpush.msra.mxu2 %v4027_v1  ;;  %v4004_v53 = vld [vmem:[%s7495_s3 + $0xc98] sm:$0xff]  ;;  %vm7974_vm13 = vcmp.eq.s32.totalorder %v7973_v50, 1  ;;  %v7981_v44 = vld [vmem:[#allocation33_spill] sm:$0xff] }
 0x23c   : > { %3904 = vmatmul.msk.f32.gmra.mxu0 %vm7970_vm11, %v7265_v17  ;;  %4094 = vmatpush.msrb.mxu3 %v7210_v47  ;;  %v4003_v47 = vld [vmem:[%s7495_s3 + $0xc90] sm:$0xff]  ;;  %vm7982_vm2 = vcmp.eq.s32.totalorder %v7981_v44, 1  ;;  %v8008_v44 = vld [vmem:[#allocation51_spill] sm:$0xff] }
 0x23d   : > { %v2083_v13 = vpop.f32.mrf.mxu2  ;;  %3115 = vmatpush.msra.mxu2 %v4026_v25  ;;  %4081 = vmatpush.msra.mxu1 %v4004_v53  ;;  %v7987_v60 = vld [vmem:[#allocation37_spill] sm:$0xff] }
 0x23e   : > { %3880 = vmatmul.msk.f32.gmra.mxu3 %vm7972_vm4, %v7294_v27  ;;  %3029 = vmatpush.msrb.mxu0 %v4006_v55  ;;  %vm7988_vm5 = vcmp.eq.s32.totalorder %v7987_v60, 1  ;;  %v7998_v61 = vld [vmem:[#allocation45_spill] sm:$0xff]  ;;  %v8012_v60 = vld [vmem:[#allocation50_spill] sm:$0xff] }
 0x23f   : > { %3116 = vmatpush.msra.mxu2 %v4025_v54  ;;  %4095 = vmatpush.msrb.mxu3 %v7232_v52 }
 0x240   : > { %v1849_v28 = vpop.f32.mrf.mxu3  ;;  %v2001_v59 = vpop.f32.mrf.mxu1  ;;  %4082 = vmatpush.msra.mxu1 %v4003_v47  ;;  %3030 = vmatpush.msrb.mxu0 %v4005_v35 }
 0x241   : > { %v1859_v29 = vadd.f32 %v1849_v28, %v7139_v14  ;;  %v2019_v19 = vadd.f32 %v2001_v59, %v7141_v42  ;;  %v2238_v37 = vpop.f32.mrf.mxu0  ;;  %v7975_v14 = vld [vmem:[#allocation30_spill] sm:$0xff]  ;;  %4096 = vmatpush.msrb.mxu3 %v4029_v63  ;;  %v7991_v28 = vld [vmem:[#allocation39_spill] sm:$0xff] }
 0x242   : > { %3949 = vmatmul.msk.f32.gmra.mxu2 %vm7974_vm13, %v7213_v48  ;;  %vm7976_vm14 = vcmp.eq.s32.totalorder %v7975_v14, 1  ;;  %v7983_v63 = vld [vmem:[#allocation38_spill] sm:$0xff]  ;;  %3031 = vmatpush.msrb.mxu0 %v4004_v53  ;;  %vm7992_vm4 = vcmp.eq.s32.totalorder %v7991_v28, 1 }
 0x243   : > { %3924 = vmatmul.msk.f32.gmra.mxu1 %vm7976_vm14, %v6866_v15  ;;  %v7319_v42 = vadd.f32 %v1931_v18, %v1859_v29  ;;  %v7321_v33 = vadd.f32 %v2083_v13, %v2019_v19  ;;  %4097 = vmatpush.msrb.mxu3 %v4028_v31  ;;  %vm7984_vm7 = vcmp.eq.s32.totalorder %v7983_v63, 1  ;;  %v7993_v29 = vld [vmem:[#allocation46_spill] sm:$0xff] }
 0x244   : > { %3993 = vmatmul.msk.f32.vlgmr.msra.gmra.mxu0 %vm7978_vm9, %v6751_v5  ;;  %v4002_v5 = vld [vmem:[%s7495_s3 + $0xc88] sm:$0xff]  ;;  %vm7994_vm13 = vcmp.eq.s32.totalorder %v7993_v29, 1  ;;  %v7997_v14 = vld [vmem:[#allocation6_spill] sm:$0xff]  ;;  %vm7999_vm9 = vcmp.eq.s32.totalorder %v7998_v61, 1 }
 0x245   : > { %v2086_v32 = vpop.f32.mrf.mxu2  ;;  %4083 = vmatpush.msra.mxu1 %v4002_v5  ;;  %4098 = vmatpush.msrb.mxu3 %v4027_v1  ;;  %v8019_v29 = vld [vmem:[#allocation62_spill] sm:$0xff] }
 0x246   : > { %3969 = vmatmul.msk.f32.vlgmr.msra.gmra.mxu3 %vm7980_vm8, %v6920_v7  ;;  %v4001_v7 = vld [vmem:[%s7495_s3 + $0xc80] sm:$0xff]  ;;  %3032 = vmatpush.msrb.mxu0 %v4003_v47  ;;  %v8000_v47 = vld [vmem:[#allocation40_spill] sm:$0xff] }
 0x247   : > { %4084 = vmatpush.msra.mxu1 %v4001_v7  ;;  %4099 = vmatpush.msrb.mxu3 %v4026_v25  ;;  %vm8001_vm8 = vcmp.eq.s32.totalorder %v8000_v47, 1 }
 0x248   : > { %v2004_v0 = vpop.f32.mrf.mxu1  ;;  %v2156_v40 = vpop.f32.mrf.mxu3  ;;  %3033 = vmatpush.msrb.mxu0 %v4002_v5  ;;  %v2665_v5 = vld [vmem:[#allocation2 + $0x47] sm:$0xff] }
 0x249   : > { %v2020_v18 = vadd.f32 %v2004_v0, %v7194_v24  ;;  %v2180_v52 = vadd.f32 %v2156_v40, %v7196_v11  ;;  %v2241_v12 = vpop.f32.mrf.mxu0  ;;  %v7985_v24 = vld [vmem:[#allocation35_spill] sm:$0xff]  ;;  %4100 = vmatpush.msrb.mxu3 %v4025_v54 }
 0x24a   : > { %3950 = vmatmul.msk.f32.gmra.mxu2 %vm7982_vm2, %v7256_v62  ;;  %vm7986_vm10 = vcmp.eq.s32.totalorder %v7985_v24, 1  ;;  %3034 = vmatpush.msrb.mxu0 %v4001_v7  ;;  %vm8003_vm2 = vcmp.eq.s32.totalorder %v8002_v57, 1  ;;  %v8006_v7 = vld [vmem:[#allocation44_spill] sm:$0xff]  ;;  %v8010_v24 = vld [vmem:[#allocation53_spill] sm:$0xff] }
 0x24b   : > { %3925 = vmatmul.msk.f32.gmra.mxu1 %vm7984_vm7, %v6916_v10  ;;  %v2102_v55 = vadd.f32 %v2086_v32, %v2020_v18  ;;  %v2262_v31 = vadd.f32 %v2238_v37, %v2180_v52 }
 0x24c   : > { %3994 = vmatmul.msk.f32.gmra.mxu0 %vm7986_vm10, %v6808_v20  ;;  %v7989_v20 = vld [vmem:[#allocation43_spill] sm:$0xff]  ;;  %vm8007_vm10 = vcmp.eq.s32.totalorder %v8006_v7, 1 }
 0x24d   : > { %v2089_v11 = vpop.f32.mrf.mxu2  ;;  %vm7990_vm11 = vcmp.eq.s32.totalorder %v7989_v20, 1  ;;  %v8017_v20 = vld [vmem:[#allocation55_spill] sm:$0xff] }
 0x24e   : > { %3970 = vmatmul.msk.f32.gmra.mxu3 %vm7988_vm5, %v6983_v23  ;;  %vm8009_vm5 = vcmp.eq.s32.totalorder %v8008_v44, 1 }
 0x250   : > { %v2007_v41 = vpop.f32.mrf.mxu1  ;;  %v2159_v35 = vpop.f32.mrf.mxu3 }
 0x251   : > { %v2021_v13 = vadd.f32 %v2007_v41, %v7241_v43  ;;  %v2181_v1 = vadd.f32 %v2159_v35, %v7243_v34  ;;  %v2244_v38 = vpop.f32.mrf.mxu0  ;;  %v7995_v34 = vld [vmem:[#allocation48_spill] sm:$0xff] }
 0x252   : > { %3951 = vmatmul.msk.f32.gmra.mxu2 %vm7990_vm11, %v7294_v27  ;;  %vm7996_vm14 = vcmp.eq.s32.totalorder %v7995_v34, 1  ;;  %vm8011_vm11 = vcmp.eq.s32.totalorder %v8010_v24, 1  ;;  %v8022_v34 = vld [vmem:[#allocation61_spill] sm:$0xff]  ;;  %v8037_v24 = vld [vmem:[#allocation58_spill] sm:$0xff] }
 0x253   : > { %3926 = vmatmul.msk.f32.gmra.mxu1 %vm7992_vm4, %v6977_v30  ;;  %v2103_v59 = vadd.f32 %v2089_v11, %v2021_v13  ;;  %v2263_v25 = vadd.f32 %v2241_v12, %v2181_v1  ;;  %vm8013_vm4 = vcmp.eq.s32.totalorder %v8012_v60, 1  ;;  %v8015_v1 = vld [vmem:[#allocation60_spill] sm:$0xff] }
 0x254   : > { %3995 = vmatmul.msk.f32.gmra.mxu0 %vm7994_vm13, %v6866_v15  ;;  %vm8014_vm13 = vcmp.eq.s32.totalorder %v7875_v39, 1 }
 0x255   : > { %v2092_v43 = vpop.f32.mrf.mxu2 }
 0x256   : > { %3971 = vmatmul.msk.f32.gmra.mxu3 %vm7996_vm14, %v7048_v9  ;;  %vm8016_vm14 = vcmp.eq.s32.totalorder %v8015_v1, 1 }
 0x258   : > { %v2010_v19 = vpop.f32.mrf.mxu1  ;;  %v2162_v37 = vpop.f32.mrf.mxu3 }
 0x259   : > { %v2022_v53 = vadd.f32 %v2010_v19, %v7280_v4  ;;  %v2182_v54 = vadd.f32 %v2162_v37, %v7282_v3  ;;  %v2247_v50 = vpop.f32.mrf.mxu0  ;;  %v8004_v4 = vld [vmem:[#allocation49_spill] sm:$0xff] }
 0x25a   : > { %3952 = vmatmul.msk.f32.gmra.mxu2 %vm7999_vm9, %v7997_v14  ;;  %vm8005_vm7 = vcmp.eq.s32.totalorder %v8004_v4, 1  ;;  %vm8018_vm9 = vcmp.eq.s32.totalorder %v8017_v20, 1  ;;  %v8027_v14 = vld [vmem:[#allocation65_spill] sm:$0xff] }
 0x25b   : > { %3927 = vmatmul.msk.f32.gmra.mxu1 %vm8001_vm8, %v7042_v46  ;;  %v2104_v15 = vadd.f32 %v2092_v43, %v2022_v53  ;;  %v2264_v32 = vadd.f32 %v2244_v38, %v2182_v54  ;;  %vm8020_vm8 = vcmp.eq.s32.totalorder %v8019_v29, 1 }
 0x25c   : > { %3996 = vmatmul.msk.f32.gmra.mxu0 %vm8003_vm2, %v6916_v10  ;;  %vm8021_vm2 = vcmp.eq.s32.totalorder %v7884_v56, 1 }
 0x25d   : > { %v2095_v0 = vpop.f32.mrf.mxu2 }
 0x25e   : > { %3972 = vmatmul.msk.f32.gmra.mxu3 %vm8005_vm7, %v7114_v58  ;;  %vm8023_vm7 = vcmp.eq.s32.totalorder %v8022_v34, 1 }
 0x260   : > { %v2013_v3 = vpop.f32.mrf.mxu1  ;;  %v2165_v40 = vpop.f32.mrf.mxu3 }
 0x261   : > { %v2023_v18 = vadd.f32 %v2013_v3, %v7319_v42  ;;  %v2183_v52 = vadd.f32 %v2165_v40, %v7321_v33  ;;  %v2250_v12 = vpop.f32.mrf.mxu0  ;;  %v8032_v40 = vld [vmem:[#allocation47_spill] sm:$0xff] }
 0x262   : > { %4041 = vmatmul.msk.f32.vlgmr.msra.gmra.mxu2 %vm8007_vm10, %v6983_v23  ;;  %v4229_v23 = vld [vmem:[#allocation2 + $0x28] sm:$0xff]  ;;  %vm8024_vm10 = vcmp.eq.s32.totalorder %v7879_v49, 1 }
 0x263   : > { %3928 = vmatmul.msk.f32.gmra.mxu1 %vm8009_vm5, %v2665_v5  ;;  %v2105_v10 = vadd.f32 %v2095_v0, %v2023_v18  ;;  %v2265_v63 = vadd.f32 %v2247_v50, %v2183_v52  ;;  %vm8026_vm5 = vcmp.eq.s32.totalorder %v7896_v2, 1 }
 0x264   : > { %3997 = vmatmul.msk.f32.gmra.mxu0 %vm8011_vm11, %v6977_v30  ;;  %vm8028_vm11 = vcmp.eq.s32.totalorder %v8027_v14, 1 }
 0x265   : > { %v2462_v11 = vpop.f32.mrf.mxu2 }
 0x266   : > { %3973 = vmatmul.msk.f32.gmra.mxu3 %vm8013_vm4, %v7175_v6  ;;  %vm8035_vm4 = vcmp.eq.s32.totalorder %v7918_v21, 1 }
 0x268   : > { %v2168_v42 = vpop.f32.mrf.mxu3  ;;  %v2320_v33 = vpop.f32.mrf.mxu1 }
 0x269   : > { %v2184_v41 = vadd.f32 %v2168_v42, %v2102_v55  ;;  %v2344_v35 = vadd.f32 %v2320_v33, %v2262_v31  ;;  %v2253_v13 = vpop.f32.mrf.mxu0  ;;  %v2993_v42 = vld [vmem:[#allocation2 + $0x50] sm:$0xff] }
 0x26a   : > { %4042 = vmatmul.msk.f32.gmra.mxu2 %vm8014_vm13, %v7048_v9  ;;  %vm8039_vm13 = vcmp.eq.s32.totalorder %v7939_v16, 1 }
 0x26b   : > { %4019 = vmatmul.msk.f32.vlgmr.msra.gmra.mxu1 %vm8016_vm14, %v4229_v23  ;;  %v2266_v38 = vadd.f32 %v2250_v12, %v2184_v41  ;;  %v2486_v30 = vadd.f32 %v2462_v11, %v2344_v35 }
 0x26c   : > { %3998 = vmatmul.msk.f32.gmra.mxu0 %vm8018_vm9, %v7042_v46 }
 0x26d   : > { %v2465_v28 = vpop.f32.mrf.mxu2 }
 0x26e   : > { %3974 = vmatmul.msk.f32.gmra.mxu3 %vm8020_vm8, %v7224_v8 }
 0x270   : > { %v2323_v31 = vpop.f32.mrf.mxu1 }
 0x271   : > { %v2171_v55 = vpop.f32.mrf.mxu3  ;;  %v2345_v39 = vadd.f32 %v2323_v31, %v2263_v25  ;;  %v2256_v9 = vpop.f32.mrf.mxu0 }
 0x272   : > { %v2185_v43 = vadd.f32 %v2171_v55, %v2103_v59  ;;  %4043 = vmatmul.msk.f32.gmra.mxu2 %vm8021_vm2, %v7114_v58  ;;  %v2911_v58 = vld [vmem:[#allocation2 + $0x4f] sm:$0xff] }
 0x273   : > { %4020 = vmatmul.msk.f32.gmra.mxu1 %vm8023_vm7, %v7213_v48  ;;  %v2487_v46 = vadd.f32 %v2465_v28, %v2345_v39  ;;  %v2829_v48 = vld [vmem:[#allocation2 + $0x49] sm:$0xff] }
 0x274   : > { %v2267_v19 = vadd.f32 %v2253_v13, %v2185_v43  ;;  %3999 = vmatmul.msk.f32.gmra.mxu0 %vm8024_vm10, %v2665_v5 }
 0x275   : > { %v2468_v37 = vpop.f32.mrf.mxu2 }
 0x276   : > { %3975 = vmatmul.msk.f32.gmra.mxu3 %vm1148_vm15, %v7265_v17  ;;  %vm8030_vm15 = vcmp.eq.s32.totalorder %v7906_v22, 1  ;;  %v2987_v22 = vld [vmem:[#allocation2 + $0x20] sm:$0xff] }
 0x278   : > { %v2326_v25 = vpop.f32.mrf.mxu1 }
 0x279   : > { %v2174_v59 = vpop.f32.mrf.mxu3  ;;  %v2346_v50 = vadd.f32 %v2326_v25, %v2264_v32  ;;  %v2259_v56 = vpop.f32.mrf.mxu0 }
 0x27a   : > { %v2186_v54 = vadd.f32 %v2174_v59, %v2104_v15  ;;  %4044 = vmatmul.msk.f32.gmra.mxu2 %vm8026_vm5, %v7175_v6  ;;  %v2986_v6 = vld [vmem:[#allocation2 + $0x18] sm:$0xff] }
 0x27b   : > { %4021 = vmatmul.msk.f32.gmra.mxu1 %vm8028_vm11, %v7256_v62  ;;  %v2488_v61 = vadd.f32 %v2468_v37, %v2346_v50 }
 0x27c   : > { %v2268_v49 = vadd.f32 %v2256_v9, %v2186_v54  ;;  %4000 = vmatmul.msk.f32.gmra.mxu0 %vm1263_vm6, %v2911_v58  ;;  %vm8033_vm6 = vcmp.eq.s32.totalorder %v8032_v40, 1 }
 0x27d   : > { %v2471_v47 = vpop.f32.mrf.mxu2 }
 0x27e   : > { %3976 = vmatmul.msk.f32.gmra.mxu3 %vm1149_vm3, %v2829_v48  ;;  %vm8034_vm3 = vcmp.eq.s32.totalorder %v7929_v26, 1 }
 0x280   : > { %v2329_v32 = vpop.f32.mrf.mxu1 }
 0x281   : > { %v2177_v15 = vpop.f32.mrf.mxu3  ;;  %v2347_v4 = vadd.f32 %v2329_v32, %v2265_v63  ;;  %v2626_v2 = vpop.f32.mrf.mxu0 }
 0x282   : > { %v2187_v0 = vadd.f32 %v2177_v15, %v2105_v10  ;;  %4045 = vmatmul.msk.f32.gmra.mxu2 %vm8030_vm15, %v7224_v8  ;;  %v4230_v8 = vld [vmem:[#allocation2 + $0x48] sm:$0xff] }
 0x283   : > { %4022 = vmatmul.msk.f32.gmra.mxu1 %vm1375_vm0, %v7294_v27  ;;  %v2489_v3 = vadd.f32 %v2471_v47, %v2347_v4  ;;  %vm8038_vm0 = vcmp.eq.s32.totalorder %v8037_v24, 1 }
 0x284   : > { %v2269_v51 = vadd.f32 %v2259_v56, %v2187_v0  ;;  %4017 = vmatmul.msk.f32.vlgmr.msrb.gmra.mxu0 %vm8033_vm6, %v2986_v6 }
 0x285   : > { %v2474_v5 = vpop.f32.mrf.mxu2 }
 0x286   : > { %4047 = vmatmul.msk.f32.vlgmr.msrb.gmra.mxu3 %vm8034_vm3, %v2829_v48 }
 0x288   : > { %v2332_v18 = vpop.f32.mrf.mxu1 }
 0x289   : > { %v2544_v52 = vpop.f32.mrf.mxu3  ;;  %v2348_v12 = vadd.f32 %v2332_v18, %v2266_v38  ;;  %v2629_v44 = vpop.f32.mrf.mxu0 }
 0x28a   : > { %v2568_v7 = vadd.f32 %v2544_v52, %v2486_v30  ;;  %4046 = vmatmul.msk.f32.gmra.mxu2 %vm8035_vm4, %v7265_v17 }
 0x28b   : > { %4023 = vmatmul.msk.f32.gmra.mxu1 %vm1376_vm12, %v4230_v8  ;;  %v2490_v10 = vadd.f32 %v2474_v5, %v2348_v12 }
 0x28c   : > { %v2650_v63 = vadd.f32 %v2626_v2, %v2568_v7  ;;  %4018 = vmatmul.msk.f32.gmra.mxu0 %vm8038_vm0, %v2987_v22 }
 0x28d   : > { %v2477_v26 = vpop.f32.mrf.mxu2 }
 0x28e   : > { %4048 = vmatmul.msk.f32.gmra.mxu3 %vm8039_vm13, %v7112_v36 }
 0x290   : > { %v2335_v11 = vpop.f32.mrf.mxu1 }
 0x291   : > { %v2547_v60 = vpop.f32.mrf.mxu3  ;;  %v2349_v33 = vadd.f32 %v2335_v11, %v2267_v19  ;;  %v2632_v17 = vpop.f32.mrf.mxu0 }
 0x292   : > { %v2569_v21 = vadd.f32 %v2547_v60, %v2487_v46 }
 0x293   : > { %4024 = vmatmul.msk.f32.gmra.mxu1 %vm1377_vm1, %v2993_v42  ;;  %v2491_v41 = vadd.f32 %v2477_v26, %v2349_v33 }
 0x294   : > { %v2651_v35 = vadd.f32 %v2629_v44, %v2569_v21 }
 0x295   : > { %v2480_v13 = vpop.f32.mrf.mxu2 }
 0x298   : > { %v2338_v23 = vpop.f32.mrf.mxu1 }
 0x299   : > { %v2550_v1 = vpop.f32.mrf.mxu3  ;;  %v2350_v38 = vadd.f32 %v2338_v23, %v2268_v49  ;;  %v2635_v20 = vpop.f32.mrf.mxu0 }
 0x29a   : > { %v2570_v30 = vadd.f32 %v2550_v1, %v2488_v61 }
 0x29b   : > { %v2492_v28 = vadd.f32 %v2480_v13, %v2350_v38 }
 0x29c   : > { %v2652_v16 = vadd.f32 %v2632_v17, %v2570_v30 }
 0x29d   : > { %v2483_v36 = vpop.f32.mrf.mxu2 }
 0x2a0   : > { %v2341_v29 = vpop.f32.mrf.mxu1 }
 0x2a1   : > { %v2553_v55 = vpop.f32.mrf.mxu3  ;;  %v2351_v31 = vadd.f32 %v2341_v29, %v2269_v51  ;;  %v2638_v39 = vpop.f32.mrf.mxu0 }
 0x2a2   : > { %v2571_v43 = vadd.f32 %v2553_v55, %v2489_v3 }
 0x2a3   : > { %v2493_v9 = vadd.f32 %v2483_v36, %v2351_v31 }
 0x2a4   : > { %v2653_v34 = vadd.f32 %v2635_v20, %v2571_v43 }
 0x2a5   : > { %v2790_v45 = vpop.f32.mrf.mxu2 }
 0x2a8   : > { %v2708_v46 = vpop.f32.mrf.mxu1 }
 0x2a9   : > { %v2556_v19 = vpop.f32.mrf.mxu3  ;;  %v2732_v53 = vadd.f32 %v2708_v46, %v2650_v63  ;;  %v2641_v59 = vpop.f32.mrf.mxu0 }
 0x2aa   : > { %v2572_v37 = vadd.f32 %v2556_v19, %v2490_v10 }
 0x2ab   : > { %v2814_v54 = vadd.f32 %v2790_v45, %v2732_v53 }
 0x2ac   : > { %v2654_v25 = vadd.f32 %v2638_v39, %v2572_v37 }
 0x2ad   : > { %v2793_v50 = vpop.f32.mrf.mxu2 }
 0x2b0   : > { %v2711_v58 = vpop.f32.mrf.mxu1 }
 0x2b1   : > { %v2559_v56 = vpop.f32.mrf.mxu3  ;;  %v2733_v14 = vadd.f32 %v2711_v58, %v2651_v35  ;;  %v2644_v49 = vpop.f32.mrf.mxu0 }
 0x2b2   : > { %v2573_v48 = vadd.f32 %v2559_v56, %v2491_v41 }
 0x2b3   : > { %v7448_v47 = vadd.f32 %v2793_v50, %v2733_v14 }
 0x2b4   : > { %v2655_v61 = vadd.f32 %v2641_v59, %v2573_v48 }
 0x2b5   : > { %v2796_v57 = vpop.f32.mrf.mxu2 }
 0x2b8   : > { %v2714_v32 = vpop.f32.mrf.mxu1 }
 0x2b9   : > { %v2562_v15 = vpop.f32.mrf.mxu3  ;;  %v2647_v4 = vpop.f32.mrf.mxu0  ;;  %v2734_v17 = vadd.f32 %v2714_v32, %v2652_v16 }
 0x2ba   : > { %v2574_v0 = vadd.f32 %v2562_v15, %v2492_v28 }
 0x2bb   : > { %v2816_v23 = vadd.f32 %v2796_v57, %v2734_v17 }
 0x2bc   : > { %v2656_v2 = vadd.f32 %v2644_v49, %v2574_v0 }
 0x2bd   : > { %v2799_v6 = vpop.f32.mrf.mxu2 }
 0x2c0   : > { %v2717_v51 = vpop.f32.mrf.mxu1 }
 0x2c1   : > { %v2565_v62 = vpop.f32.mrf.mxu3  ;;  %v2954_v40 = vpop.f32.mrf.mxu0  ;;  %v2735_v30 = vadd.f32 %v2717_v51, %v2653_v34 }
 0x2c2   : > { %v2575_v3 = vadd.f32 %v2565_v62, %v2493_v9 }
 0x2c3   : > { %v2817_v55 = vadd.f32 %v2799_v6, %v2735_v30 }
 0x2c4   : > { %v7450_v5 = vadd.f32 %v2647_v4, %v2575_v3 }
 0x2c5   : > { %v2802_v18 = vpop.f32.mrf.mxu2 }
 0x2c8   : > { %v2720_v52 = vpop.f32.mrf.mxu1 }
 0x2c9   : > { %v2872_v12 = vpop.f32.mrf.mxu3  ;;  %v7452_v7 = vpop.f32.mrf.mxu0  ;;  %v2736_v9 = vadd.f32 %v2720_v52, %v2654_v25 }
 0x2ca   : > { %v2896_v37 = vadd.f32 %v2872_v12, %v2814_v54 }
 0x2cb   : > { %v2818_v53 = vadd.f32 %v2802_v18, %v2736_v9 }
 0x2cc   : > { %v2978_v15 = vadd.f32 %v2954_v40, %v2896_v37 }
 0x2cd   : > { %v2805_v44 = vpop.f32.mrf.mxu2 }
 0x2d0   : > { %v2723_v22 = vpop.f32.mrf.mxu1 }
 0x2d1   : > { %v2875_v8 = vpop.f32.mrf.mxu3  ;;  %v2960_v27 = vpop.f32.mrf.mxu0  ;;  %v2737_v14 = vadd.f32 %v2723_v22, %v2655_v61 }
 0x2d2   : > { %v2897_v54 = vadd.f32 %v2875_v8, %v7448_v47 }
 0x2d3   : > { %v2819_v62 = vadd.f32 %v2805_v44, %v2737_v14 }
 0x2d5   : > { %v2808_v10 = vpop.f32.mrf.mxu2 }
 0x2d8   : > { %v2726_v63 = vpop.f32.mrf.mxu1 }
 0x2d9   : > { %v2878_v24 = vpop.f32.mrf.mxu3  ;;  %v2963_v26 = vpop.f32.mrf.mxu0  ;;  %v2738_v50 = vadd.f32 %v2726_v63, %v2656_v2 }
 0x2da   : > { %v2898_v38 = vadd.f32 %v2878_v24, %v2816_v23 }
 0x2db   : > { %v2820_v25 = vadd.f32 %v2808_v10, %v2738_v50 }
 0x2dc   : > { %v2980_v29 = vadd.f32 %v2960_v27, %v2898_v38  ;;  %v2979_v27 = vadd.f32 %v7452_v7, %v2897_v54 }
 0x2dd   : > { %v2811_v11 = vpop.f32.mrf.mxu2 }
 0x2e0   : > { %v2729_v60 = vpop.f32.mrf.mxu1 }
 0x2e1   : > { %v2881_v42 = vpop.f32.mrf.mxu3  ;;  %v2966_v33 = vpop.f32.mrf.mxu0  ;;  %v2739_v3 = vadd.f32 %v2729_v60, %v7450_v5 }
 0x2e2   : > { %v2899_v43 = vadd.f32 %v2881_v42, %v2817_v55 }
 0x2e3   : > { %v2821_v10 = vadd.f32 %v2811_v11, %v2739_v3 }
 0x2e4   : > { %v2981_v46 = vadd.f32 %v2963_v26, %v2899_v43 }
 0x2e5   : > { %v3118_v21 = vpop.f32.mrf.mxu2 }
 0x2e8   : > { %v3042_v35 = vpop.f32.mrf.mxu1 }
 0x2e9   : > { %v2884_v41 = vpop.f32.mrf.mxu3  ;;  %v2969_v13 = vpop.f32.mrf.mxu0  ;;  %v3062_v31 = vadd.f32 %v3042_v35, %v2980_v29 }
 0x2ea   : > { %v2900_v58 = vadd.f32 %v2884_v41, %v2818_v53 }
 0x2ec   : > { %v2982_v0 = vadd.f32 %v2966_v33, %v2900_v58  ;;  %v3158_v58 = vlaneseq }
 0x2ed   : > { %v3121_v1 = vpop.f32.mrf.mxu2 }
 0x2f0   : > { %v3045_v28 = vpop.f32.mrf.mxu1 }
 0x2f1   : > { %v2887_v20 = vpop.f32.mrf.mxu3  ;;  %v2972_v36 = vpop.f32.mrf.mxu0  ;;  %v3063_v59 = vadd.f32 %v3045_v28, %v2981_v46 }
 0x2f2   : > { %v2901_v61 = vadd.f32 %v2887_v20, %v2819_v62 }
 0x2f4   : > { %v2983_v44 = vadd.f32 %v2969_v13, %v2901_v61 }
 0x2f5   : > { %v3124_v16 = vpop.f32.mrf.mxu2 }
 0x2f6   : > { %v3144_v39 = vadd.f32 %v3124_v16, %v3062_v31 }
 0x2f8   : > { %3152 = vst [vmem:[%s7459_s23 + $0x10] sm:$0xff] %v3144_v39  ;;  %v3048_v45 = vpop.f32.mrf.mxu1  ;;  %v3175_v7 = vmul.f32 %v3144_v39, %v3144_v39 }
 0x2f9   : > { %v2890_v34 = vpop.f32.mrf.mxu3  ;;  %v2975_v19 = vpop.f32.mrf.mxu0  ;;  %v3064_v51 = vadd.f32 %v3048_v45, %v2982_v0 }
 0x2fa   : > { %v2902_v6 = vadd.f32 %v2890_v34, %v2820_v25 }
 0x2fc   : > { %v2984_v12 = vadd.f32 %v2972_v36, %v2902_v6 }
 0x2fd   : > { %v3127_v56 = vpop.f32.mrf.mxu2 }
 0x2fe   : > { %v3145_v48 = vadd.f32 %v3127_v56, %v3063_v59 }
 0x300   : > { %3153 = vst [vmem:[%s7459_s23 + $0x18] sm:$0xff] %v3145_v48  ;;  %v3051_v57 = vpop.f32.mrf.mxu1  ;;  %v3176_v30 = vmul.f32 %v3145_v48, %v3145_v48 }
 0x301   : > { %v2893_v49 = vpop.f32.mrf.mxu3  ;;  %v3036_v32 = vpop.f32.mrf.mxu0  ;;  %v3065_v26 = vadd.f32 %v3051_v57, %v2983_v44 }
 0x302   : > { %v3060_v4 = vadd.f32 %v3036_v32, %v2978_v15  ;;  %v2903_v24 = vadd.f32 %v2893_v49, %v2821_v10  ;;  %v3159_v15 = vshrl.u32 %v3158_v58, 7 }
 0x304   : > { %v3142_v2 = vadd.f32 %v3118_v21, %v3060_v4  ;;  %v2985_v35 = vadd.f32 %v2975_v19, %v2903_v24  ;;  %vm3195_vm12 = vcmp.eq.s32.totalorder %v3159_v15, 1  ;;  %vm3194_vm1 = vcmp.eq.s32.totalorder %v3159_v15, 0 }
 0x305   : > { %v3130_v18 = vpop.f32.mrf.mxu2 }
 0x306   : > { %3150 = vst [vmem:[%s7459_s23] sm:$0xff] %v3142_v2  ;;  %v3146_v52 = vadd.f32 %v3130_v18, %v3064_v51  ;;  %v3173_v33 = vmul.f32 %v3142_v2, %v3142_v2 }
 0x308   : > { %3154 = vst [vmem:[%s7459_s23 + $0x20] sm:$0xff] %v3146_v52  ;;  %v3054_v40 = vpop.f32.mrf.mxu1  ;;  %v3177_v29 = vmul.f32 %v3146_v52, %v3146_v52 }
 0x309   : > { %v3136_v22 = vpop.f32.mrf.mxu3  ;;  %v3066_v63 = vadd.f32 %v3054_v40, %v2984_v12  ;;  %v3039_v47 = vpop.f32.mrf.mxu0 }
 0x30a   : > { %v3061_v8 = vadd.f32 %v3039_v47, %v2979_v27 }
 0x30b   : > { %v3148_v5 = vadd.f32 %v3136_v22, %v3066_v63 }
 0x30c   : > { %v3143_v60 = vadd.f32 %v3121_v1, %v3061_v8 }
 0x30d   : > { %3156 = vst [vmem:[%s7459_s23 + $0x30] sm:$0xff] %v3148_v5  ;;  %v3133_v42 = vpop.f32.mrf.mxu2  ;;  %v3179_v34 = vmul.f32 %v3148_v5, %v3148_v5 }
 0x30e   : > { %3151 = vst [vmem:[%s7459_s23 + $0x8] sm:$0xff] %v3143_v60  ;;  %v3160_v21 = vadd.f32 %v3143_v60, %v3142_v2  ;;  %v3174_v17 = vmul.f32 %v3143_v60, %v3143_v60  ;;  %v3147_v41 = vadd.f32 %v3133_v42, %v3065_v26 }
 0x310   : > { %v3161_v11 = vadd.f32 %v3160_v21, %v3144_v39  ;;  %v3181_v23 = vadd.f32 %v3174_v17, %v3173_v33  ;;  %3155 = vst [vmem:[%s7459_s23 + $0x28] sm:$0xff] %v3147_v41  ;;  %v3057_v13 = vpop.f32.mrf.mxu1  ;;  %v3178_v43 = vmul.f32 %v3147_v41, %v3147_v41 }
 0x311   : > { %v3067_v38 = vadd.f32 %v3057_v13, %v2985_v35  ;;  %v3139_v36 = vpop.f32.mrf.mxu3 }
 0x312   : > { %v3182_v20 = vadd.f32 %v3181_v23, %v3175_v7  ;;  %v3162_v28 = vadd.f32 %v3161_v11, %v3145_v48 }
 0x313   : > { %v3149_v1 = vadd.f32 %v3139_v36, %v3067_v38 }
 0x314   : > { %v3163_v55 = vadd.f32 %v3162_v28, %v3146_v52  ;;  %v3183_v31 = vadd.f32 %v3182_v20, %v3176_v30 }
 0x315   : > { %3157 = vst [vmem:[%s7459_s23 + $0x38] sm:$0xff] %v3149_v1  ;;  %v3180_v46 = vmul.f32 %v3149_v1, %v3149_v1 }
 0x316   : > { %v3164_v16 = vadd.f32 %v3163_v55, %v3147_v41  ;;  %v3184_v9 = vadd.f32 %v3183_v31, %v3177_v29 }
 0x318   : > { %v3185_v39 = vadd.f32 %v3184_v9, %v3178_v43  ;;  %v3165_v45 = vadd.f32 %v3164_v16, %v3148_v5 }
 0x31a   : > { %v3166_v19 = vadd.f32 %v3165_v45, %v3149_v1  ;;  %v3186_v37 = vadd.f32 %v3185_v39, %v3179_v34 }
 0x31c   : > { %v3167_v53 = vrot.slane %v3166_v19, 4  ;;  %v3187_v59 = vadd.f32 %v3186_v37, %v3180_v46 }
 0x31e   : > { %v3168_v50 = vadd.f32 %v3167_v53, %v3166_v19  ;;  %v3188_v56 = vrot.slane %v3187_v59, 4 }
 0x320   : > { %v3169_v48 = vrot.slane %v3168_v50, 2  ;;  %v3189_v14 = vadd.f32 %v3188_v56, %v3187_v59 }
 0x322   : > { %v3170_v49 = vadd.f32 %v3169_v48, %v3168_v50  ;;  %v3190_v57 = vrot.slane %v3189_v14, 2 }
 0x324   : > { %v3191_v25 = vadd.f32 %v3190_v57, %v3189_v14  ;;  %v3171_v32 = vrot.slane %v3170_v49, 1 }
 0x326   : > { %v3192_v0 = vrot.slane %v3191_v25, 1  ;;  %v3172_v6 = vadd.f32 %v3171_v32, %v3170_v49 }
 0x328   : > { %v3193_v4 = vadd.f32 %v3192_v0, %v3191_v25 }
 0x32a   : > { %v3198_v54 = vsel %vm3195_vm12, %v3193_v4, 0.0 }
 0x32b   : > { %v3201_v62 = vsel %vm3194_vm1, %v3172_v6, %v3198_v54 }
 0x32c   : > { %3202 = vst [vmem:[%s472_s15] sm:$0xff] %v3201_v62 }
 0x32d PF: > { %s19_s9 = sadd.s32 1, %s4269_s9   ;;  %s8040_s27 = smov %s4261_s29 }
 0x32e   : > { %p16_p12 = scmp.ge.s32.totalorder %s19_s9, 18   ;;  %s8041_s28 = smov %s4265_s30 }
 0x32f   : > { %s8042_s29 = smov %s8045_s10  ;;  %s8043_s30 = smov %s8049_s11 }
 0x330   :  { %18 = sbr.rel (!%p16_p12) target bundleno = 3 (0x3), region = 122 }

// kernel: basic_decoder_block.4
= control target key start
LH: loop header
LB: loop body
LE: loop exit
PB: predicated region body
PF: predicated region fallthrough
CT: control target
= control target key end

     0   :  { %s4301_s27 = smov 0   ;;  %s4303_s28 = smov 0   ;;  %s7454_s0 = inlined_call_operand.vmem [shape: f32[2,8,64,128], index: 0, kind: input, shape index: {}, may-alias: {0,1,2}]   ;;  %s7455_s1 = inlined_call_operand.vmem [shape: f32[2,8,64,128], index: 1, kind: input, shape index: {}, may-alias: {0,1,2}]   ;;  %s7456_s2 = inlined_call_operand.vmem [shape: f32[2,8,64,128], index: 2, kind: input, shape index: {}, may-alias: {0,1,2}]   ;;  %s7457_s3 = inlined_call_operand.vmem [shape: f32[27,128,128], index: 3, kind: input, shape index: {}]   ;;  %s7458_s4 = inlined_call_operand.vmem [shape: f32[1,128], index: 4, kind: input, shape index: {}]   ;;  %s7459_s5 = inlined_call_operand.vmem [shape: f32[1,128], index: 5, kind: input, shape index: {}]   ;;  %s7460_s6 = inlined_call_operand.vmem [shape: f32[64,128], index: 6, kind: input, shape index: {}]   ;;  %s7461_s7 = inlined_call_operand.vmem [shape: f32[2,8,64,128], index: 7, kind: output, shape index: {0}]   ;;  %s7462_s8 = inlined_call_operand.vmem [shape: f32[2,8,8,128], index: 8, kind: output, shape index: {1}]  }
   0x1   :  { %s4305_s29 = smov 0   ;;  %s4307_s30 = smov 0  }
   0x2   :  { %s4309_s9 = smov 0  }
   0x3 LB: > { %s28_s10 = sadd.s32 1, %s4237_s29  ;;  %s31_s11 = sadd.s32 1, %s4241_s30  ;;  %s4245_s9 = sphi %s4309_s9, %s19_s9   ;;  %s4241_s30 = sphi %s4307_s30, %s8001_s30   ;;  %s4237_s29 = sphi %s4305_s29, %s8000_s29   ;;  %s4233_s28 = sphi %s4303_s28, %s7999_s28   ;;  %s4229_s27 = sphi %s4301_s27, %s7998_s27  }
   0x4   : > { %p29_p0 = scmp.ge.s32.totalorder %s28_s10, 8  ;;  %p3369_p1 = scmp.ge.s32.totalorder %s4245_s9, 1 }
   0x5   : > { %p343_p2 = scmp.lt.s32.totalorder %s4245_s9, 17 }
   0x6   : > { %s8003_s10 = smov (%p29_p0, %s28_s10), 0  ;;  %s8005_s11 = smov (!%p29_p0, %s31_s11), %s4241_s30 }
   0x7   : > { %p344_p3 = pnand %p3369_p1, %p343_p2  ;;  %p33_p4 = scmp.ge.s32.totalorder %s8005_s11, 2 }
   0x9   : > { %s8007_s11 = smov (%p33_p4, %s8005_s11), 0  ;;  %347 = sbr.rel (%p344_p3) target bundleno = 813 (0x32d), region = 48 }
   0xe   : > { %v474_v0 = vld [vmem:[%s7460_s6 + $0x8] sm:$0xff]  ;;  %v473_v1 = vld [vmem:[%s7460_s6] sm:$0xff]  ;;  %v4247_v2 = vmov 1   ;;  %v4248_v3 = vmov 0   ;;  %v475_v8 = vld [vmem:[%s7460_s6 + $0x10] sm:$0xff]  ;;  %v4249_v9 = vmov 2  }
   0xf   : > { %4128 = vset.pattern.permute.xlu1 %v4247_v2  ;;  %4126 = vset.pattern.permute.xlu0 %v4247_v2  ;;  %vm482_vm0 = vcmp.gt.f32.partialorder %v474_v0, 0.5  ;;  %vm481_vm1 = vcmp.gt.f32.partialorder %v473_v1, 0.5  ;;  %v477_v6 = vld [vmem:[%s7460_s6 + $0x20] sm:$0xff]  ;;  %v476_v10 = vld [vmem:[%s7460_s6 + $0x18] sm:$0xff]  ;;  %vm483_vm3 = vcmp.gt.f32.partialorder %v475_v8, 0.5  ;;  %v478_v11 = vld [vmem:[%s7460_s6 + $0x28] sm:$0xff] }
  0x10   : > { %v4342_v4 = vsel %vm482_vm0, 1, %v4248_v3  ;;  %v4345_v5 = vsel %vm481_vm1, 1, %v4248_v3  ;;  %4129 = vset.pattern.permute.xlu2 %v4248_v3  ;;  %vm485_vm2 = vcmp.gt.f32.partialorder %v477_v6, 0.5  ;;  %vm484_vm4 = vcmp.gt.f32.partialorder %v476_v10, 0.5  ;;  %v479_v16 = vld [vmem:[%s7460_s6 + $0x30] sm:$0xff]  ;;  %v480_v18 = vld [vmem:[%s7460_s6 + $0x38] sm:$0xff] }
  0x11   : > { %625 = vperm.xlu1 %4128, %v4342_v4   ;;  %622 = vperm.xlu0 %4126, %v4345_v5   ;;  %v4355_v7 = vsel %vm485_vm2, 1, %v4248_v3  ;;  %v4372_v12 = vsel %vm483_vm3, 1, %v4248_v3  ;;  %vm486_vm5 = vcmp.gt.f32.partialorder %v478_v11, 0.5  ;;  %v4375_v13 = vsel %vm484_vm4, 1, %v4248_v3  ;;  %v3408_v20 = vld [vmem:[%s7457_s3 + $0xf8] sm:$0xff]  ;;  %s4417_s15 = sadd.s32 4294967295, %s4229_s27 }
  0x12   : > { %558 = vperm.xlu2 %4129, %v4345_v5   ;;  %v4379_v14 = vsel %vm486_vm5, 1, %v4248_v3  ;;  %v4250_v15 = vmov 4   ;;  %vm487_vm6 = vcmp.gt.f32.partialorder %v479_v16, 0.5  ;;  %vm488_vm7 = vcmp.gt.f32.partialorder %v480_v18, 0.5  ;;  %678 = vmatpush.msra.mxu0 %v3408_v20  ;;  %v3407_v22 = vld [vmem:[%s7457_s3 + $0xf0] sm:$0xff]  ;;  %v3406_v23 = vld [vmem:[%s7457_s3 + $0xe8] sm:$0xff] }
  0x13   : > { %v4392_v17 = vsel %vm487_vm6, 1, %v4248_v3  ;;  %v4403_v19 = vsel %vm488_vm7, 1, %v4248_v3  ;;  %4029 = vmatpush.msra.mxu3 %v3408_v20  ;;  %v7468_v21 = vmov 6   ;;  %v612_v24 = vld [vmem:[%s7457_s3 + $0x78] sm:$0xff]  ;;  %p418_p5 = scmp.gt.s32.totalorder %s4417_s15, 0  ;;  %v3405_v25 = vld [vmem:[%s7457_s3 + $0xe0] sm:$0xff] }
  0x14   : > { %679 = vmatpush.msra.mxu0 %v3407_v22  ;;  %719 = vmatpush.msra.mxu1 %v612_v24  ;;  %v611_v26 = vld [vmem:[%s7457_s3 + $0x70] sm:$0xff]  ;;  %v3440_v27 = vld [vmem:[%s7457_s3 + $0x178] sm:$0xff]  ;;  %p420_p6 = scmp.lt.s32.totalorder %s4233_s28, 1  ;;  %p3371_p7 = scmp.lt.s32.totalorder %s4417_s15, 7  ;;  %v4252_v29 = vmov 3   ;;  %v610_v31 = vld [vmem:[%s7457_s3 + $0x68] sm:$0xff] }
  0x15   : > { %4030 = vmatpush.msra.mxu3 %v3407_v22  ;;  %825 = vmatpush.msra.mxu2 %v3440_v27  ;;  %v3404_v28 = vld [vmem:[%s7457_s3 + $0xd8] sm:$0xff]  ;;  %s419_s16 = scalar_select %p418_p5, %s4417_s15, 0  ;;  %v3403_v30 = vld [vmem:[%s7457_s3 + $0xd0] sm:$0xff]  ;;  %v3402_v33 = vld [vmem:[%s7457_s3 + $0xc8] sm:$0xff] }
  0x16   : > { %680 = vmatpush.msra.mxu0 %v3406_v23  ;;  %720 = vmatpush.msra.mxu1 %v611_v26  ;;  %s8009_s28 = smov (!%p420_p6, %s4233_s28), 1  ;;  %v3439_v32 = vld [vmem:[%s7457_s3 + $0x170] sm:$0xff]  ;;  %v609_v34 = vld [vmem:[%s7457_s3 + $0x60] sm:$0xff]  ;;  %v3438_v35 = vld [vmem:[%s7457_s3 + $0x168] sm:$0xff]  ;;  %s441_s18 = sadd.s32 1, %s4229_s27 }
  0x17   : > { %4031 = vmatpush.msra.mxu3 %v3406_v23  ;;  %s8011_s16 = smov (!%p3371_p7, %s419_s16), 7  ;;  %826 = vmatpush.msra.mxu2 %v3439_v32  ;;  %v3401_v36 = vld [vmem:[%s7457_s3 + $0xc0] sm:$0xff]  ;;  %v608_v37 = vld [vmem:[%s7457_s3 + $0x58] sm:$0xff]  ;;  %v607_v40 = vld [vmem:[%s7457_s3 + $0x50] sm:$0xff]  ;;  %s4496_s26 = sshll.u32 %s8009_s28, 6 }
  0x18   : > { %681 = vmatpush.msra.mxu0 %v3405_v25  ;;  %721 = vmatpush.msra.mxu1 %v610_v31  ;;  %v3437_v38 = vld [vmem:[%s7457_s3 + $0x160] sm:$0xff]  ;;  %v3400_v39 = vld [vmem:[%s7457_s3 + $0xb8] sm:$0xff]  ;;  %s3376_s25 = sshll.u32 %s8011_s16, 3  ;;  %v3399_v42 = vld [vmem:[%s7457_s3 + $0xb0] sm:$0xff]  ;;  %p521_p8 = scmp.ge.s32.totalorder %s4229_s27, 1 }
  0x19   : > { %634 = vperm.xlu1 %4128, %v4355_v7   ;;  %4127 = vset.pattern.permute.xlu0 %v4249_v9  ;;  %v3436_v41 = vld [vmem:[%s7457_s3 + $0x158] sm:$0xff]  ;;  %v606_v43 = vld [vmem:[%s7457_s3 + $0x48] sm:$0xff]  ;;  %v3435_v44 = vld [vmem:[%s7457_s3 + $0x150] sm:$0xff]  ;;  %s426_s20 = sadd.s32 %s4496_s26, %s3376_s25  ;;  %p434_p9 = scmp.lt.s32.totalorder %s4229_s27, 7 }
  0x1a   : > { %769 = vperm.xlu0 %4127, %v4345_v5   ;;  %4130 = vset.pattern.permute.xlu2 %v4249_v9  ;;  %v3398_v45 = vld [vmem:[%s7457_s3 + $0xa8] sm:$0xff]  ;;  %v605_v46 = vld [vmem:[%s7457_s3 + $0x40] sm:$0xff]  ;;  %s3378_s14 = sshll.u32 %s426_s20, 3  ;;  %v604_v49 = vld [vmem:[%s7457_s3 + $0x38] sm:$0xff]  ;;  %p4550_p10 = scmp.lt.s32.totalorder %s441_s18, 7 }
  0x1b   : > { %772 = vperm.xlu2 %4130, %v4342_v4   ;;  %682 = vmatpush.msra.mxu0 %v3404_v28  ;;  %v3434_v47 = vld [vmem:[%s7457_s3 + $0x148] sm:$0xff]  ;;  %v3397_v48 = vld [vmem:[%s7457_s3 + $0xa0] sm:$0xff]  ;;  %v3396_v51 = vld [vmem:[%s7457_s3 + $0x98] sm:$0xff]  ;;  %s4542_s12 = scalar_lea.vmem %s7454_s0, %s3378_s14  ;;  %p2368_p11 = scmp.le.s32.totalorder %s4229_s27, 6 }
  0x1c   : > { %4032 = vmatpush.msra.mxu3 %v3405_v25  ;;  %722 = vmatpush.msra.mxu1 %v609_v34  ;;  %v3433_v50 = vld [vmem:[%s7457_s3 + $0x140] sm:$0xff]  ;;  %v603_v52 = vld [vmem:[%s7457_s3 + $0x30] sm:$0xff]  ;;  %v3432_v53 = vld [vmem:[%s7457_s3 + $0x138] sm:$0xff]  ;;  %s522_s21 = scalar_select %p521_p8, 1, 0 }
  0x1d   : > { %683 = vmatpush.msra.mxu0 %v3403_v30  ;;  %827 = vmatpush.msra.mxu2 %v3438_v35  ;;  %v4561_v54 = vld [vmem:[%s7458_s4] ss:$0 sm:$0xff]  ;;  %v3395_v55 = vld [vmem:[%s7457_s3 + $0x90] sm:$0xff]  ;;  %s4571_s23 = scalar_select %p434_p9, %s4229_s27, 7  ;;  %v602_v57 = vld [vmem:[%s7457_s3 + $0x28] sm:$0xff] }
  0x1e   : > { %4033 = vmatpush.msra.mxu3 %v3404_v28  ;;  %723 = vmatpush.msra.mxu1 %v608_v37  ;;  %v489_v56 = vld [vmem:[%s4542_s12] sm:$0xff]  ;;  %v3431_v58 = vld [vmem:[%s7457_s3 + $0x130] sm:$0xff]  ;;  %v3394_v61 = vld [vmem:[%s7457_s3 + $0x88] sm:$0xff]  ;;  %s8013_s18 = smov (!%p4550_p10, %s441_s18), 7  ;;  %v523_v1 = vstv %s522_s21 }
  0x1f   : > { %684 = vmatpush.msra.mxu0 %v3402_v33  ;;  %828 = vmatpush.msra.mxu2 %v3437_v38  ;;  %v501_v59 = vmul.f32 %v4561_v54, %v489_v56  ;;  %v4585_v60 = vld [vmem:[%s7459_s5] ss:$0 sm:$0xff]  ;;  %v3430_v63 = vld [vmem:[%s7457_s3 + $0x128] sm:$0xff]  ;;  %s3379_s16 = sshll.u32 %s4571_s23, 3  ;;  %vm4605_vm8 = vcmp.eq.s32.totalorder %v523_v1, 1  ;;  %v600_v10 = vld [vmem:[%s7457_s3 + $0x18] sm:$0xff] }
  0x20   : > { %4034 = vmatpush.msra.mxu3 %v3403_v30  ;;  %724 = vmatpush.msra.mxu1 %v607_v40  ;;  %v601_v62 = vld [vmem:[%s7457_s3 + $0x20] sm:$0xff]  ;;  %s8015_s18 = smov (!%p4550_p10, %s8013_s18), 7  ;;  %s4628_s24 = sadd.s32 %s3379_s16, %s4496_s26  ;;  %v492_v16 = vld [vmem:[%s4542_s12 + $0x18] sm:$0xff]  ;;  %v599_v18 = vld [vmem:[%s7457_s3 + $0x10] sm:$0xff] }
  0x21   : > { %628 = vperm.xlu1 %4128, %v4372_v12   ;;  %685 = vmatpush.msra.mxu0 %v3401_v36  ;;  %v513_v0 = vadd.f32 %v4585_v60, %v501_v59  ;;  %v3393_v6 = vld [vmem:[%s7457_s3 + $0x80] sm:$0xff]  ;;  %v504_v20 = vmul.f32 %v4561_v54, %v492_v16  ;;  %v490_v22 = vld [vmem:[%s4542_s12 + $0x8] sm:$0xff]  ;;  %v3428_v23 = vld [vmem:[%s7457_s3 + $0x118] sm:$0xff]  ;;  %s3381_s21 = sshll.u32 %s4628_s24, 3  ;;  %s4646_s19 = sshll.u32 %s8015_s18, 3 }
  0x22   : > { %778 = vperm.xlu0 %4127, %v4375_v13   ;;  %829 = vmatpush.msra.mxu2 %v3436_v41  ;;  %v3429_v11 = vld [vmem:[%s7457_s3 + $0x120] sm:$0xff]  ;;  %v502_v24 = vmul.f32 %v4561_v54, %v490_v22  ;;  %v598_v25 = vld [vmem:[%s7457_s3 + $0x8] sm:$0xff]  ;;  %v3427_v27 = vld [vmem:[%s7457_s3 + $0x110] sm:$0xff]  ;;  %s4672_s14 = scalar_lea.vmem %s7455_s1, %s3381_s21  ;;  %s450_s20 = sadd.s32 %s4646_s19, %s4496_s26 }
  0x23   : > { %4131 = vset.pattern.permute.xlu2 %v4247_v2  ;;  %686 = vmatpush.msra.mxu0 %v3400_v39  ;;  %v4614_v8 = vsel %vm4605_vm8, %v513_v0, 0.0  ;;  %v516_v26 = vadd.f32 %v4585_v60, %v504_v20  ;;  %v597_v31 = vld [vmem:[%s7457_s3] sm:$0xff]  ;;  %v1563_v38 = vld [vmem:[%s4672_s14 + $0x28] sm:$0xff]  ;;  %s3387_s26 = sshll.u32 %s450_s20, 3  ;;  %v1565_v40 = vld [vmem:[%s4672_s14 + $0x38] sm:$0xff]  ;;  %s3391_s24 = sshll.u32 %s8009_s28, 3 }
  0x24   : > { %637 = vperm.xlu2 %4131, %v4379_v14   ;;  %725 = vmatpush.msra.mxu1 %v606_v43  ;;  %533 = vst [vmem:[#allocation2 + $0x10] sm:$0xff] %v4614_v8  ;;  %v514_v28 = vadd.f32 %v4585_v60, %v502_v24  ;;  %v541_v35 = vld [vmem:[#allocation2 + $0x7] sm:$0xff]  ;;  %v4693_v41 = vld [vmem:[%s7458_s4] ss:$0 sm:$0xff]  ;;  %s2369_s13 = scalar_select %p2368_p11, 1, 0 }
  0x25   : > { %687 = vmatpush.msra.mxu0 %v3399_v42  ;;  %830 = vmatpush.msra.mxu2 %v3435_v44  ;;  %v4661_v32 = vsel %vm4605_vm8, %v516_v26, 0.0  ;;  %v1562_v37 = vld [vmem:[%s4672_s14 + $0x20] sm:$0xff]  ;;  %s4716_s19 = scalar_lea.vmem %s7456_s2, %s3387_s26 }
  0x26   : > { %4035 = vmatpush.msra.mxu3 %v3402_v33  ;;  %726 = vmatpush.msra.mxu1 %v605_v46  ;;  %v3426_v33 = vld [vmem:[%s7457_s3 + $0x108] sm:$0xff]  ;;  %536 = vst [vmem:[#allocation2 + $0x28] sm:$0xff] %v4661_v32  ;;  %v4679_v34 = vsel %vm4605_vm8, %v514_v28, 0.0  ;;  %v1574_v43 = vmul.f32 %v4693_v41, %v1562_v37  ;;  %v3425_v46 = vld [vmem:[%s7457_s3 + $0x100] sm:$0xff] }
  0x27   : > { %688 = vmatpush.msra.mxu0 %v3398_v45  ;;  %831 = vmatpush.msra.mxu2 %v3434_v47  ;;  %534 = vst [vmem:[#allocation2 + $0x18] sm:$0xff] %v4679_v34  ;;  %v1577_v47 = vmul.f32 %v4693_v41, %v1565_v40  ;;  %v4193_v56 = vld [vmem:[%s7458_s4] ss:$0 sm:$0xff]  ;;  %v3482_v40 = vld [vmem:[%s7457_s3 + $0x248] sm:$0xff] }
  0x28   : > { %4036 = vmatpush.msra.mxu3 %v3401_v36  ;;  %727 = vmatpush.msra.mxu1 %v604_v49  ;;  %v1561_v36 = vld [vmem:[%s4672_s14 + $0x18] sm:$0xff]  ;;  %v493_v0 = vld [vmem:[%s4542_s12 + $0x20] sm:$0xff] }
  0x29   : > { %4132 = vset.pattern.permute.xlu1 %v4249_v9  ;;  %689 = vmatpush.msra.mxu0 %v3397_v48  ;;  %v505_v16 = vmul.f32 %v4561_v54, %v493_v0  ;;  %v3485_v24 = vld [vmem:[%s7457_s3 + $0x260] sm:$0xff] }
  0x2a   : > { %775 = vperm.xlu1 %4132, %v4372_v12   ;;  %4142 = vset.pattern.permute.xlu0 %v4250_v15 }
  0x2b   : > { %1003 = vperm.xlu0 %4142, %v4372_v12   ;;  %832 = vmatpush.msra.mxu2 %v3433_v50  ;;  %v517_v22 = vadd.f32 %v4585_v60, %v505_v16  ;;  %v1559_v16 = vld [vmem:[%s4672_s14 + $0x8] sm:$0xff] }
  0x2c   : > { %631 = vperm.xlu2 %4131, %v4375_v13   ;;  %4037 = vmatpush.msra.mxu3 %v3400_v39  ;;  %v1564_v39 = vld [vmem:[%s4672_s14 + $0x30] sm:$0xff] }
  0x2d   : > { %690 = vmatpush.msra.mxu0 %v3396_v51  ;;  %728 = vmatpush.msra.mxu1 %v603_v52  ;;  %v1576_v44 = vmul.f32 %v4693_v41, %v1564_v39  ;;  %v2343_v52 = vld [vmem:[%s4716_s19 + $0x38] sm:$0xff]  ;;  %v4794_v28 = vsel %vm4605_vm8, %v517_v22, 0.0 }
  0x2e   : > { %833 = vmatpush.msra.mxu2 %v3432_v53  ;;  %4038 = vmatpush.msra.mxu3 %v3399_v42  ;;  %v1573_v42 = vmul.f32 %v4693_v41, %v1561_v36  ;;  %v2355_v59 = vmul.f32 %v4193_v56, %v2343_v52  ;;  %537 = vst [vmem:[#allocation2 + $0x30] sm:$0xff] %v4794_v28  ;;  %v613_v36 = vld [vmem:[#allocation2 + $0x8] sm:$0xff]  ;;  %v3461_v52 = vld [vmem:[%s7457_s3 + $0x1e0] sm:$0xff]  ;;  %v3480_v56 = vld [vmem:[%s7457_s3 + $0x238] sm:$0xff] }
  0x2f   : > { %691 = vmatpush.msra.mxu0 %v3395_v55  ;;  %729 = vmatpush.msra.mxu1 %v602_v57  ;;  %v3488_v57 = vld [vmem:[%s7457_s3 + $0x278] sm:$0xff] }
  0x30   : > { %834 = vmatpush.msra.mxu2 %v3431_v58  ;;  %4039 = vmatpush.msra.mxu3 %v3398_v45  ;;  %v4705_v45 = vld [vmem:[%s7459_s5] ss:$0 sm:$0xff]  ;;  %v3487_v58 = vld [vmem:[%s7457_s3 + $0x270] sm:$0xff] }
  0x31   : > { %692 = vmatpush.msra.mxu0 %v3394_v61  ;;  %730 = vmatpush.msra.mxu1 %v601_v62  ;;  %v4724_v49 = vadd.f32 %v4705_v45, %v1574_v43  ;;  %v2370_v62 = vstv %s2369_s13  ;;  %v1558_v43 = vld [vmem:[%s4672_s14] sm:$0xff] }
  0x32   : > { %4133 = vset.pattern.permute.xlu1 %v4247_v2  ;;  %835 = vmatpush.msra.mxu2 %v3430_v63  ;;  %v491_v63 = vld [vmem:[%s4542_s12 + $0x10] sm:$0xff]  ;;  %vm4756_vm10 = vcmp.eq.s32.totalorder %v2370_v62, 1  ;;  %v3534_v2 = vld [vmem:[%s7457_s3 + $0x368] sm:$0xff] }
  0x33   : > { %640 = vperm.xlu1 %4133, %v4392_v17   ;;  %4143 = vset.pattern.permute.xlu0 %v4248_v3 }
  0x34   : > { %561 = vperm.xlu0 %4143, %v4342_v4   ;;  %4134 = vset.pattern.permute.xlu2 %v4248_v3 }
  0x35   : > { %564 = vperm.xlu2 %4134, %v4372_v12   ;;  %4040 = vmatpush.msra.mxu3 %v3397_v48  ;;  %v4721_v48 = vadd.f32 %v4705_v45, %v1573_v42 }
  0x36   : > { %693 = vmatpush.msra.mxu0 %v3393_v6  ;;  %731 = vmatpush.msra.mxu1 %v600_v10 }
  0x37   : > { %836 = vmatpush.msra.mxu2 %v3429_v11  ;;  %4041 = vmatpush.msra.mxu3 %v3396_v51  ;;  %v4730_v51 = vadd.f32 %v4705_v45, %v1576_v44  ;;  %v503_v11 = vmul.f32 %v4561_v54, %v491_v63  ;;  %v3462_v44 = vld [vmem:[%s7457_s3 + $0x1e8] sm:$0xff] }
  0x38   : > { %732 = vmatpush.msra.mxu1 %v599_v18  ;;  %1053 = vmatpush.msrb.mxu0 %v3488_v57  ;;  %v3486_v18 = vld [vmem:[%s7457_s3 + $0x268] sm:$0xff]  ;;  %v3460_v57 = vld [vmem:[%s7457_s3 + $0x1d8] sm:$0xff] }
  0x39   : > { %837 = vmatpush.msra.mxu2 %v3428_v23  ;;  %4042 = vmatpush.msra.mxu3 %v3395_v55  ;;  %v4736_v55 = vadd.f32 %v4705_v45, %v1577_v47  ;;  %v515_v20 = vadd.f32 %v4585_v60, %v503_v11  ;;  %v760_v63 = vld [vmem:[#allocation2 + $0x9] sm:$0xff] }
  0x3a   : > { %733 = vmatpush.msra.mxu1 %v598_v25  ;;  %1054 = vmatpush.msrb.mxu0 %v3487_v58  ;;  %v3464_v25 = vld [vmem:[%s7457_s3 + $0x1f8] sm:$0xff]  ;;  %v1570_v58 = vmul.f32 %v4693_v41, %v1558_v43  ;;  %v3459_v11 = vld [vmem:[%s7457_s3 + $0x1d0] sm:$0xff] }
  0x3b   : > { %643 = vperm.xlu1 %4133, %v4403_v19   ;;  %838 = vmatpush.msra.mxu2 %v3427_v27  ;;  %7642 = vst [vmem:[#allocation4_spill] sm:$0xff] %v4736_v55  ;;  %v4786_v26 = vsel %vm4605_vm8, %v515_v20, 0.0  ;;  %v3463_v27 = vld [vmem:[%s7457_s3 + $0x1f0] sm:$0xff]  ;;  %v3478_v20 = vld [vmem:[%s7457_s3 + $0x228] sm:$0xff] }
  0x3c   : > { %576 = vperm.xlu0 %4143, %v4392_v17   ;;  %4043 = vmatpush.msra.mxu3 %v3394_v61  ;;  %v4194_v61 = vld [vmem:[%s7459_s5] ss:$0 sm:$0xff]  ;;  %535 = vst [vmem:[#allocation2 + $0x20] sm:$0xff] %v4786_v26 }
  0x3d   : > { %4135 = vset.pattern.permute.xlu2 %v4250_v15  ;;  %734 = vmatpush.msra.mxu1 %v597_v31  ;;  %v2367_v1 = vadd.f32 %v4194_v61, %v2355_v59  ;;  %v3483_v31 = vld [vmem:[%s7457_s3 + $0x250] sm:$0xff] }
  0x3e   : > { %997 = vperm.xlu2 %4135, %v4345_v5   ;;  %839 = vmatpush.msra.mxu2 %v3426_v33  ;;  %v7473_v33 = vmov 5   ;;  %v3479_v59 = vld [vmem:[%s7457_s3 + $0x230] sm:$0xff] }
  0x3f   : > { %4044 = vmatpush.msra.mxu3 %v3393_v6  ;;  %v4762_v10 = vsel %vm4756_vm10, %v2367_v1, 0.0  ;;  %1055 = vmatpush.msrb.mxu0 %v3486_v18  ;;  %v495_v61 = vld [vmem:[%s4542_s12 + $0x30] sm:$0xff]  ;;  %v1582_v18 = vadd.f32 %v4705_v45, %v1570_v58 }
  0x40   : > { %840 = vmatpush.msra.mxu2 %v3425_v46  ;;  %7645 = vst [vmem:[#allocation5_spill] sm:$0xff] %v4762_v10  ;;  %v3481_v46 = vld [vmem:[%s7457_s3 + $0x240] sm:$0xff]  ;;  %v507_v0 = vmul.f32 %v4561_v54, %v495_v61  ;;  %v7674_v10 = vmov 6  }
  0x41   : > { %1056 = vmatpush.msrb.mxu0 %v3485_v24  ;;  %939 = vmatpush.msrb.mxu3 %v3464_v25  ;;  %v3458_v24 = vld [vmem:[%s7457_s3 + $0x1c8] sm:$0xff] }
  0x42   : > { %v519_v22 = vadd.f32 %v4585_v60, %v507_v0 }
  0x43   : > { %4136 = vset.pattern.permute.xlu1 %v4248_v3  ;;  %940 = vmatpush.msrb.mxu3 %v3463_v27  ;;  %v3477_v27 = vld [vmem:[%s7457_s3 + $0x220] sm:$0xff] }
  0x44   : > { %567 = vperm.xlu1 %4136, %v4375_v13   ;;  %4152 = vset.pattern.permute.xlu0 %v7468_v21  ;;  %v4933_v58 = vld [vmem:[#allocation2 + $0x19] sm:$0xff] }
  0x45   : > { %1225 = vperm.xlu0 %4152, %v4345_v5   ;;  %941 = vmatpush.msrb.mxu3 %v3462_v44  ;;  %v4939_v61 = vld [vmem:[#allocation2 + $0x1f] sm:$0xff] }
  0x46   : > { %4137 = vset.pattern.permute.xlu2 %v4249_v9 }
  0x47   : > { %781 = vperm.xlu2 %4137, %v4355_v7   ;;  %942 = vmatpush.msrb.mxu3 %v3461_v52  ;;  %v3456_v52 = vld [vmem:[%s7457_s3 + $0x1b8] sm:$0xff] }
  0x49   : > { %943 = vmatpush.msrb.mxu3 %v3460_v57  ;;  %v3475_v57 = vld [vmem:[%s7457_s3 + $0x210] sm:$0xff] }
  0x4b   : > { %944 = vmatpush.msrb.mxu3 %v3459_v11  ;;  %v3454_v11 = vld [vmem:[%s7457_s3 + $0x1a8] sm:$0xff] }
  0x4c   : > { %4138 = vset.pattern.permute.xlu1 %v4250_v15 }
  0x4d   : > { %1000 = vperm.xlu1 %4138, %v4342_v4   ;;  %4153 = vset.pattern.permute.xlu0 %v4252_v29 }
  0x4e   : > { %883 = vperm.xlu0 %4153, %v4345_v5   ;;  %945 = vmatpush.msrb.mxu3 %v3458_v24  ;;  %v4972_v24 = vld [vmem:[#allocation2 + $0x21] sm:$0xff] }
  0x4f   : > { %4139 = vset.pattern.permute.xlu2 %v4248_v3 }
  0x50   : > { %570 = vperm.xlu2 %4139, %v4355_v7  }
  0x55   : > { %4140 = vset.pattern.permute.xlu1 %v4249_v9 }
  0x56   : > { %784 = vperm.xlu1 %4140, %v4379_v14   ;;  %898 = vperm.xlu0 %4153, %v4379_v14  }
  0x58   : > { %4141 = vset.pattern.permute.xlu2 %v4252_v29 }
  0x59   : > { %886 = vperm.xlu2 %4141, %v4342_v4  }
  0x5e   : > { %4144 = vset.pattern.permute.xlu1 %v4248_v3  ;;  %4162 = vset.pattern.permute.xlu0 %v4250_v15 }
  0x5f   : > { %573 = vperm.xlu1 %4144, %v4379_v14   ;;  %1018 = vperm.xlu0 %4162, %v4403_v19  }
  0x61   : > { %4145 = vset.pattern.permute.xlu2 %v4249_v9 }
  0x62   : > { %787 = vperm.xlu2 %4145, %v4392_v17  }
  0x67   : > { %4146 = vset.pattern.permute.xlu1 %v4252_v29  ;;  %4167 = vset.pattern.permute.xlu0 %v7473_v33 }
  0x68   : > { %889 = vperm.xlu1 %4146, %v4372_v12   ;;  %1120 = vperm.xlu0 %4167, %v4375_v13  }
  0x6a   : > { %4147 = vset.pattern.permute.xlu2 %v4250_v15 }
  0x6b   : > { %1006 = vperm.xlu2 %4147, %v4375_v13  }
  0x6c   : > { %v4654_v30 = vpop.permute.xlu2 %558 }
  0x6d   : > { %vm581_vm9 = vcmp.eq.s32.totalorder %v4654_v30, 1  ;;  %v3891_v30 = vld [vmem:[%s7457_s3 + $0xad0] sm:$0xff] }
  0x6e   : > { %3417 = vmatmul.msk.f32.vlgmr.msra.gmra.mxu1 %vm581_vm9, %v541_v35  ;;  %v494_v35 = vld [vmem:[%s4542_s12 + $0x28] sm:$0xff] }
  0x6f   : > { %v506_v37 = vmul.f32 %v4561_v54, %v494_v35  ;;  %v1571_v35 = vmul.f32 %v4693_v41, %v1559_v16  ;;  %v3473_v16 = vld [vmem:[%s7457_s3 + $0x200] sm:$0xff] }
  0x70   : > { %4148 = vset.pattern.permute.xlu1 %v4249_v9  ;;  %v1575_v9 = vmul.f32 %v4693_v41, %v1563_v38  ;;  %4172 = vset.pattern.permute.xlu0 %v7468_v21 }
  0x71   : > { %790 = vperm.xlu1 %4148, %v4403_v19   ;;  %v518_v42 = vadd.f32 %v4585_v60, %v506_v37  ;;  %v4895_v37 = vld [vmem:[#allocation2 + $0x17] sm:$0xff]  ;;  %1240 = vperm.xlu0 %4172, %v4379_v14   ;;  %v1583_v44 = vadd.f32 %v4705_v45, %v1571_v35 }
  0x72   : > { %v4727_v50 = vadd.f32 %v4705_v45, %v1575_v9  ;;  %v3451_v35 = vld [vmem:[%s7457_s3 + $0x190] sm:$0xff] }
  0x73   : > { %4149 = vset.pattern.permute.xlu2 %v4252_v29  ;;  %v4830_v47 = vsel %vm4605_vm8, %v518_v42, 0.0  ;;  %v3476_v42 = vld [vmem:[%s7457_s3 + $0x218] sm:$0xff] }
  0x74   : > { %892 = vperm.xlu2 %4149, %v4375_v13   ;;  %538 = vst [vmem:[#allocation2 + $0x38] sm:$0xff] %v4830_v47 }
  0x75   : > { %v4733_v53 = vpop.permute.xlu2 %772 }
  0x76   : > { %7641 = vst [vmem:[#allocation3_spill] sm:$0xff] %v4733_v53  ;;  %vm7472_vm15 = vcmp.eq.s32.totalorder %v4733_v53, 1 }
  0x79   : > { %4150 = vset.pattern.permute.xlu1 %v4250_v15 }
  0x7a   : > { %1009 = vperm.xlu1 %4150, %v4355_v7  }
  0x7c   : > { %4151 = vset.pattern.permute.xlu2 %v4248_v3  ;;  %v3484_v3 = vld [vmem:[%s7457_s3 + $0x258] sm:$0xff] }
  0x7d   : > { %579 = vperm.xlu2 %4151, %v4403_v19   ;;  %1057 = vmatpush.msrb.mxu0 %v3484_v3  ;;  %v4879_v3 = vld [vmem:[#allocation2 + $0x11] sm:$0xff] }
  0x7e   : > { %v4773_v23 = vpop.permute.xlu2 %637  ;;  %1591 = vst [vmem:[#allocation2 + $0x18] sm:$0xff] %v1583_v44  ;;  %v7478_v44 = vmov 7  }
  0x7f   : > { %7646 = vst [vmem:[#allocation6_spill] sm:$0xff] %v4773_v23  ;;  %1058 = vmatpush.msrb.mxu0 %v3483_v31  ;;  %v4889_v31 = vsel %vm4605_vm8, %v519_v22, 0.0  ;;  %vm7559_vm0 = vcmp.eq.s32.totalorder %v4773_v23, 1  ;;  %4177 = vset.pattern.permute.xlu0 %v7478_v44 }
  0x80   : > { %539 = vst [vmem:[#allocation2 + $0x40] sm:$0xff] %v4889_v31  ;;  %1345 = vperm.xlu0 %4177, %v4372_v12  }
  0x81   : > { %1059 = vmatpush.msrb.mxu0 %v3482_v40  ;;  %v3457_v40 = vld [vmem:[%s7457_s3 + $0x1c0] sm:$0xff] }
  0x82   : > { %4154 = vset.pattern.permute.xlu1 %v4252_v29  ;;  %946 = vmatpush.msrb.mxu3 %v3457_v40 }
  0x83   : > { %895 = vperm.xlu1 %4154, %v4355_v7   ;;  %v4806_v38 = vpop.permute.xlu1 %625  ;;  %v4808_v39 = vpop.permute.xlu0 %622  ;;  %1060 = vmatpush.msrb.mxu0 %v3481_v46 }
  0x84   : > { %7647 = vst [vmem:[#allocation7_spill] sm:$0xff] %v4806_v38  ;;  %vm7571_vm11 = vcmp.eq.s32.totalorder %v4808_v39, 1  ;;  %vm7576_vm12 = vcmp.eq.s32.totalorder %v4806_v38, 1  ;;  %947 = vmatpush.msrb.mxu3 %v3456_v52 }
  0x85   : > { %7648 = vst [vmem:[#allocation8_spill] sm:$0xff] %v4808_v39  ;;  %3409 = vmatmul.msk.f32.vlgmr.msra.gmra.mxu0 %vm7571_vm11, %v613_v36  ;;  %4155 = vset.pattern.permute.xlu2 %v4250_v15  ;;  %v4892_v36 = vld [vmem:[#allocation2 + $0xf] sm:$0xff]  ;;  %v3776_v39 = vld [vmem:[%s7457_s3 + $0x878] sm:$0xff] }
  0x86   : > { %1012 = vperm.xlu2 %4155, %v4379_v14   ;;  %v4820_v9 = vpop.permute.xlu2 %631  ;;  %1061 = vmatpush.msrb.mxu0 %v3480_v56  ;;  %1590 = vst [vmem:[#allocation2 + $0x10] sm:$0xff] %v1582_v18  ;;  %v1560_v56 = vld [vmem:[%s4672_s14 + $0x10] sm:$0xff] }
  0x87   : > { %7649 = vst [vmem:[#allocation9_spill] sm:$0xff] %v4820_v9  ;;  %vm648_vm2 = vcmp.eq.s32.totalorder %v4820_v9, 1 }
  0x88   : > { %1062 = vmatpush.msrb.mxu0 %v3479_v59  ;;  %v3474_v59 = vld [vmem:[%s7457_s3 + $0x208] sm:$0xff] }
  0x8a   : > { %1063 = vmatpush.msrb.mxu0 %v3478_v20  ;;  %v3453_v20 = vld [vmem:[%s7457_s3 + $0x1a0] sm:$0xff] }
  0x8b   : > { %4156 = vset.pattern.permute.xlu1 %v7473_v33  ;;  %v4849_v62 = vpop.permute.xlu1 %634 }
  0x8c   : > { %7650 = vst [vmem:[#allocation10_spill] sm:$0xff] %v4849_v62  ;;  %vm7601_vm13 = vcmp.eq.s32.totalorder %v4849_v62, 1  ;;  %1111 = vperm.xlu1 %4156, %v4345_v5   ;;  %v4855_v1 = vpop.permute.xlu0 %769  ;;  %1064 = vmatpush.msrb.mxu0 %v3477_v27  ;;  %v4974_v27 = vld [vmem:[#allocation2 + $0x27] sm:$0xff] }
  0x8d   : > { %7651 = vst [vmem:[#allocation11_spill] sm:$0xff] %v4855_v1  ;;  %vm792_vm14 = vcmp.eq.s32.totalorder %v4855_v1, 1  ;;  %3410 = vmatmul.msk.f32.gmra.mxu0 %vm7576_vm12, %v4614_v8  ;;  %3413 = vmatmul.msk.f32.vlgmr.msra.gmra.mxu3 %vm7601_vm13, %v4661_v32 }
  0x8e   : > { %3441 = vmatmul.msk.f32.vlgmr.msra.gmra.mxu2 %vm792_vm14, %v760_v63  ;;  %4157 = vset.pattern.permute.xlu2 %v7468_v21  ;;  %v1572_v63 = vmul.f32 %v4693_v41, %v1560_v56  ;;  %v3449_v56 = vld [vmem:[%s7457_s3 + $0x180] sm:$0xff] }
  0x8f   : > { %1228 = vperm.xlu2 %4157, %v4342_v4   ;;  %v4882_v25 = vpop.permute.xlu2 %564  ;;  %1065 = vmatpush.msrb.mxu0 %v3476_v42  ;;  %v3450_v42 = vld [vmem:[%s7457_s3 + $0x188] sm:$0xff] }
  0x90   : > { %7652 = vst [vmem:[#allocation12_spill] sm:$0xff] %v4882_v25  ;;  %v1584_v41 = vadd.f32 %v4705_v45, %v1572_v63  ;;  %v3452_v45 = vld [vmem:[%s7457_s3 + $0x198] sm:$0xff] }
  0x91   : > { %1066 = vmatpush.msrb.mxu0 %v3475_v57 }
  0x92   : > { %1592 = vst [vmem:[#allocation2 + $0x20] sm:$0xff] %v1584_v41 }
  0x93   : > { %v4906_v43 = vpop.permute.xlu1 %628  ;;  %1067 = vmatpush.msrb.mxu0 %v3474_v59  ;;  %v7480_v59 = vmov 8  }
  0x94   : > { %7653 = vst [vmem:[#allocation13_spill] sm:$0xff] %v4906_v43  ;;  %vm7583_vm1 = vcmp.eq.s32.totalorder %v4906_v43, 1  ;;  %4158 = vset.pattern.permute.xlu1 %v4250_v15  ;;  %v4911_v46 = vpop.permute.xlu0 %778  ;;  %v3455_v15 = vld [vmem:[%s7457_s3 + $0x1b0] sm:$0xff]  ;;  %4182 = vset.pattern.permute.xlu0 %v7480_v59  ;;  %v3750_v43 = vld [vmem:[%s7457_s3 + $0x7e8] sm:$0xff] }
  0x95   : > { %7654 = vst [vmem:[#allocation14_spill] sm:$0xff] %v4911_v46  ;;  %1015 = vperm.xlu1 %4158, %v4392_v17   ;;  %3411 = vmatmul.msk.f32.gmra.mxu0 %vm7583_vm1, %v4679_v34  ;;  %vm7464_vm5 = vcmp.eq.s32.totalorder %v4911_v46, 1 }
  0x96   : > { %3442 = vmatmul.msk.f32.gmra.mxu2 %vm7472_vm15, %v4879_v3  ;;  %3414 = vmatmul.msk.f32.gmra.mxu3 %vm7559_vm0, %v4794_v28 }
  0x97   : > { %4159 = vset.pattern.permute.xlu2 %v7473_v33  ;;  %948 = vmatpush.msrb.mxu3 %v3455_v15  ;;  %v5018_v15 = vld [vmem:[#allocation2 + $0x29] sm:$0xff] }
  0x98   : > { %1114 = vperm.xlu2 %4159, %v4342_v4   ;;  %v4943_v0 = vpop.permute.xlu2 %997  ;;  %1068 = vmatpush.msrb.mxu0 %v3473_v16 }
  0x99   : > { %7655 = vst [vmem:[#allocation15_spill] sm:$0xff] %v4943_v0  ;;  %949 = vmatpush.msrb.mxu3 %v3454_v11  ;;  %vm7463_vm4 = vcmp.eq.s32.totalorder %v4943_v0, 1  ;;  %1465 = vperm.xlu0 %4182, %v4355_v7   ;;  %v5243_v0 = vld [vmem:[#allocation2 + $0x3f] sm:$0xff] }
  0x9b   : > { %950 = vmatpush.msrb.mxu3 %v3453_v20  ;;  %v496_v20 = vld [vmem:[%s4542_s12 + $0x38] sm:$0xff] }
  0x9c   : > { %v4953_v18 = vpop.permute.xlu1 %775 }
  0x9d   : > { %7656 = vst [vmem:[#allocation16_spill] sm:$0xff] %v4953_v18  ;;  %vm7465_vm3 = vcmp.eq.s32.totalorder %v4953_v18, 1  ;;  %4160 = vset.pattern.permute.xlu1 %v7468_v21  ;;  %v4960_v22 = vpop.permute.xlu0 %1003  ;;  %3412 = vmatmul.msk.f32.gmra.mxu0 %vm648_vm2, %v4786_v26 }
  0x9e   : > { %7657 = vst [vmem:[#allocation17_spill] sm:$0xff] %v4960_v22  ;;  %1231 = vperm.xlu1 %4160, %v4372_v12   ;;  %3443 = vmatmul.msk.f32.gmra.mxu2 %vm7465_vm3, %v4933_v58 }
  0x9f   : > { %951 = vmatpush.msrb.mxu3 %v3452_v45  ;;  %v508_v45 = vmul.f32 %v4561_v54, %v496_v20  ;;  %v3512_v54 = vld [vmem:[%s7457_s3 + $0x2f8] sm:$0xff] }
  0xa0   : > { %4161 = vset.pattern.permute.xlu2 %v4252_v29  ;;  %1167 = vmatpush.msrb.mxu1 %v3512_v54 }
  0xa1   : > { %901 = vperm.xlu2 %4161, %v4392_v17   ;;  %v4981_v40 = vpop.permute.xlu2 %781  ;;  %952 = vmatpush.msrb.mxu3 %v3451_v35  ;;  %v520_v35 = vadd.f32 %v4585_v60, %v508_v45  ;;  %v3511_v45 = vld [vmem:[%s7457_s3 + $0x2f0] sm:$0xff] }
  0xa2   : > { %7658 = vst [vmem:[#allocation18_spill] sm:$0xff] %v4981_v40  ;;  %1471 = vperm.xlu0 %4182, %v4392_v17   ;;  %1168 = vmatpush.msrb.mxu1 %v3511_v45  ;;  %v5122_v45 = vld [vmem:[#allocation2 + $0x31] sm:$0xff] }
  0xa3   : > { %953 = vmatpush.msrb.mxu3 %v3450_v42 }
  0xa5   : > { %v4990_v52 = vpop.permute.xlu1 %640  ;;  %3489 = vmatmul.msk.f32.vlgmr.msrb.gmra.mxu0 %vm7463_vm4, %v4614_v8  ;;  %954 = vmatpush.msrb.mxu3 %v3449_v56  ;;  %vm7466_vm4 = vcmp.eq.s32.totalorder %v4981_v40, 1  ;;  %v3536_v56 = vld [vmem:[%s7457_s3 + $0x378] sm:$0xff] }
  0xa6   : > { %7659 = vst [vmem:[#allocation19_spill] sm:$0xff] %v4990_v52  ;;  %vm7470_vm6 = vcmp.eq.s32.totalorder %v4990_v52, 1  ;;  %4163 = vset.pattern.permute.xlu1 %v7473_v33  ;;  %v5000_v57 = vpop.permute.xlu0 %561  ;;  %3444 = vmatmul.msk.f32.gmra.mxu2 %vm7464_vm5, %v4972_v24  ;;  %vm583_vm5 = vcmp.eq.s32.totalorder %v4882_v25, 1  ;;  %v3584_v40 = vld [vmem:[%s7457_s3 + $0x478] sm:$0xff]  ;;  %v3715_v25 = vld [vmem:[%s7457_s3 + $0x710] sm:$0xff] }
  0xa7   : > { %7660 = vst [vmem:[#allocation20_spill] sm:$0xff] %v5000_v57  ;;  %vm582_vm7 = vcmp.eq.s32.totalorder %v5000_v57, 1  ;;  %1117 = vperm.xlu1 %4163, %v4372_v12   ;;  %3415 = vmatmul.msk.f32.gmra.mxu3 %vm7470_vm6, %v4830_v47 }
  0xa8   : > { %3418 = vmatmul.msk.f32.gmra.mxu1 %vm582_vm7, %v4892_v36  ;;  %1281 = vmatpush.msrb.mxu2 %v3536_v56  ;;  %v3532_v56 = vld [vmem:[%s7457_s3 + $0x358] sm:$0xff] }
  0xa9   : > { %4164 = vset.pattern.permute.xlu2 %v7468_v21  ;;  %1509 = vmatpush.msra.mxu0 %v3584_v40  ;;  %v3583_v40 = vld [vmem:[%s7457_s3 + $0x470] sm:$0xff] }
  0xaa   : > { %1234 = vperm.xlu2 %4164, %v4375_v13   ;;  %v5015_v8 = vpop.permute.xlu2 %570  ;;  %4187 = vset.pattern.permute.xlu0 %v7478_v44 }
  0xab   : > { %7661 = vst [vmem:[#allocation21_spill] sm:$0xff] %v5015_v8  ;;  %1360 = vperm.xlu0 %4187, %v4403_v19   ;;  %1510 = vmatpush.msra.mxu0 %v3583_v40  ;;  %v3581_v40 = vld [vmem:[%s7457_s3 + $0x460] sm:$0xff] }
  0xad   : > { %v5022_v63 = vpop.permute.xlu1 %643 }
  0xae   : > { %7662 = vst [vmem:[#allocation22_spill] sm:$0xff] %v5022_v63  ;;  %vm7467_vm3 = vcmp.eq.s32.totalorder %v5022_v63, 1  ;;  %v5026_v11 = vpop.permute.xlu0 %576  ;;  %3445 = vmatmul.msk.f32.gmra.mxu2 %vm7466_vm4, %v5018_v15 }
  0xaf   : > { %4165 = vset.pattern.permute.xlu1 %v4252_v29  ;;  %3416 = vmatmul.msk.f32.gmra.mxu3 %vm7467_vm3, %v4889_v31  ;;  %vm7475_vm3 = vcmp.eq.s32.totalorder %v5015_v8, 1 }
  0xb0   : > { %904 = vperm.xlu1 %4165, %v4403_v19   ;;  %3419 = vmatmul.msk.f32.gmra.mxu1 %vm583_vm5, %v4895_v37 }
  0xb2   : > { %4166 = vset.pattern.permute.xlu2 %v7480_v59 }
  0xb3   : > { %1453 = vperm.xlu2 %4166, %v4345_v5   ;;  %v5041_v16 = vpop.permute.xlu2 %886  ;;  %4188 = vset.pattern.permute.xlu0 %v7480_v59 }
  0xb4   : > { %7663 = vst [vmem:[#allocation23_spill] sm:$0xff] %v5041_v16  ;;  %vm7482_vm15 = vcmp.eq.s32.totalorder %v5041_v16, 1 }
  0xb6   : > { %v5044_v41 = vpop.permute.xlu1 %567 }
  0xb7   : > { %7664 = vst [vmem:[#allocation24_spill] sm:$0xff] %v5044_v41  ;;  %vm584_vm4 = vcmp.eq.s32.totalorder %v5044_v41, 1  ;;  %v5047_v29 = vpop.permute.xlu0 %1225 }
  0xb8   : > { %7665 = vst [vmem:[#allocation25_spill] sm:$0xff] %v5047_v29  ;;  %4168 = vset.pattern.permute.xlu1 %v7468_v21  ;;  %3420 = vmatmul.msk.f32.gmra.mxu1 %vm584_vm4, %v4939_v61  ;;  %v3535_v21 = vld [vmem:[%s7457_s3 + $0x370] sm:$0xff] }
  0xb9   : > { %1237 = vperm.xlu1 %4168, %v4355_v7   ;;  %1282 = vmatpush.msrb.mxu2 %v3535_v21  ;;  %v3533_v21 = vld [vmem:[%s7457_s3 + $0x360] sm:$0xff] }
  0xbb   : > { %4169 = vset.pattern.permute.xlu2 %v7478_v44  ;;  %1283 = vmatpush.msrb.mxu2 %v3534_v2  ;;  %v3531_v2 = vld [vmem:[%s7457_s3 + $0x350] sm:$0xff] }
  0xbc   : > { %1339 = vperm.xlu2 %4169, %v4345_v5   ;;  %v5059_v42 = vpop.permute.xlu2 %787  ;;  %v5073_v5 = vsel %vm4605_vm8, %v520_v35, 0.0  ;;  %v3510_v35 = vld [vmem:[%s7457_s3 + $0x2e8] sm:$0xff] }
  0xbd   : > { %7666 = vst [vmem:[#allocation26_spill] sm:$0xff] %v5059_v42  ;;  %1284 = vmatpush.msrb.mxu2 %v3533_v21  ;;  %1169 = vmatpush.msrb.mxu1 %v3510_v35  ;;  %v3508_v21 = vld [vmem:[%s7457_s3 + $0x2d8] sm:$0xff]  ;;  %v3530_v35 = vld [vmem:[%s7457_s3 + $0x348] sm:$0xff] }
  0xbe   : > { %540 = vst [vmem:[#allocation2 + $0x48] sm:$0xff] %v5073_v5 }
  0xbf   : > { %v5078_v60 = vpop.permute.xlu1 %1000  ;;  %1285 = vmatpush.msrb.mxu2 %v3532_v56  ;;  %v3507_v56 = vld [vmem:[%s7457_s3 + $0x2d0] sm:$0xff] }
  0xc0   : > { %7667 = vst [vmem:[#allocation27_spill] sm:$0xff] %v5078_v60  ;;  %vm7471_vm6 = vcmp.eq.s32.totalorder %v5078_v60, 1  ;;  %v5081_v20 = vpop.permute.xlu0 %883  ;;  %3421 = vmatmul.msk.f32.gmra.mxu1 %vm7475_vm3, %v4974_v27  ;;  %v7676_v60 = vmov 8  }
  0xc1   : > { %7668 = vst [vmem:[#allocation28_spill] sm:$0xff] %v5081_v20  ;;  %vm7600_vm8 = vcmp.eq.s32.totalorder %v5081_v20, 1  ;;  %4170 = vset.pattern.permute.xlu1 %v7480_v59  ;;  %3490 = vmatmul.msk.f32.gmra.mxu0 %vm7471_vm6, %v4679_v34  ;;  %vm7476_vm6 = vcmp.eq.s32.totalorder %v4960_v22, 1 }
  0xc2   : > { %1456 = vperm.xlu1 %4170, %v4342_v4   ;;  %3465 = vmatmul.msk.f32.vlgmr.msrb.gmra.mxu3 %vm7600_vm8, %v4892_v36  ;;  %v3509_v36 = vld [vmem:[%s7457_s3 + $0x2e0] sm:$0xff] }
  0xc3   : > { %1170 = vmatpush.msrb.mxu1 %v3509_v36  ;;  %1286 = vmatpush.msrb.mxu2 %v3531_v2  ;;  %v3529_v36 = vld [vmem:[%s7457_s3 + $0x340] sm:$0xff]  ;;  %v3506_v2 = vld [vmem:[%s7457_s3 + $0x2c8] sm:$0xff] }
  0xc4   : > { %4171 = vset.pattern.permute.xlu2 %v7473_v33 }
  0xc5   : > { %1123 = vperm.xlu2 %4171, %v4355_v7   ;;  %v5112_v54 = vpop.permute.xlu2 %1006  ;;  %1171 = vmatpush.msrb.mxu1 %v3508_v21  ;;  %v3528_v21 = vld [vmem:[%s7457_s3 + $0x338] sm:$0xff] }
  0xc6   : > { %7669 = vst [vmem:[#allocation29_spill] sm:$0xff] %v5112_v54  ;;  %1287 = vmatpush.msrb.mxu2 %v3530_v35  ;;  %v5163_v35 = vld [vmem:[#allocation2 + $0x39] sm:$0xff] }
  0xc7   : > { %1172 = vmatpush.msrb.mxu1 %v3507_v56  ;;  %v3527_v56 = vld [vmem:[%s7457_s3 + $0x330] sm:$0xff]  ;;  %v7775_v6 = vld [vmem:[#allocation27_spill] sm:$0xff] }
  0xc8   : > { %v5125_v33 = vpop.permute.xlu1 %784  ;;  %1288 = vmatpush.msrb.mxu2 %v3529_v36  ;;  %v3504_v36 = vld [vmem:[%s7457_s3 + $0x2b8] sm:$0xff] }
  0xc9   : > { %7670 = vst [vmem:[#allocation30_spill] sm:$0xff] %v5125_v33  ;;  %vm7477_vm3 = vcmp.eq.s32.totalorder %v5125_v33, 1  ;;  %3491 = vmatmul.msk.f32.gmra.mxu0 %vm7476_vm6, %v4786_v26  ;;  %vm7486_vm6 = vcmp.eq.s32.totalorder %v5112_v54, 1  ;;  %1173 = vmatpush.msrb.mxu1 %v3506_v2  ;;  %v7673_v2 = vmov 5   ;;  %v3502_v54 = vld [vmem:[%s7457_s3 + $0x2a8] sm:$0xff]  ;;  %v3521_v33 = vld [vmem:[%s7457_s3 + $0x300] sm:$0xff] }
  0xca   : > { %4173 = vset.pattern.permute.xlu1 %v7478_v44  ;;  %3446 = vmatmul.msk.f32.gmra.mxu2 %vm7477_vm3, %v5122_v45  ;;  %vm7491_vm3 = vcmp.eq.s32.totalorder %v5059_v42, 1  ;;  %v3505_v44 = vld [vmem:[%s7457_s3 + $0x2c0] sm:$0xff] }
  0xcb   : > { %3466 = vmatmul.msk.f32.gmra.mxu3 %vm7482_vm15, %v4895_v37  ;;  %1342 = vperm.xlu1 %4173, %v4342_v4   ;;  %v3501_v42 = vld [vmem:[%s7457_s3 + $0x2a0] sm:$0xff] }
  0xcc   : > { %1289 = vmatpush.msrb.mxu2 %v3528_v21  ;;  %1174 = vmatpush.msrb.mxu1 %v3505_v44  ;;  %v3503_v44 = vld [vmem:[%s7457_s3 + $0x2b0] sm:$0xff]  ;;  %v3525_v21 = vld [vmem:[%s7457_s3 + $0x320] sm:$0xff] }
  0xcd   : > { %4174 = vset.pattern.permute.xlu2 %v7480_v59  ;;  %v5168_v59 = vld [vmem:[#allocation2 + $0x2f] sm:$0xff] }
  0xce   : > { %1459 = vperm.xlu2 %4174, %v4372_v12   ;;  %v5157_v4 = vpop.permute.xlu2 %892  ;;  %1290 = vmatpush.msrb.mxu2 %v3527_v56  ;;  %v3524_v56 = vld [vmem:[%s7457_s3 + $0x318] sm:$0xff] }
  0xcf   : > { %7671 = vst [vmem:[#allocation31_spill] sm:$0xff] %v5157_v4  ;;  %1175 = vmatpush.msrb.mxu1 %v3504_v36  ;;  %v5208_v36 = vld [vmem:[#allocation2 + $0x37] sm:$0xff] }
  0xd1   : > { %v5170_v12 = vpop.permute.xlu1 %573  ;;  %3492 = vmatmul.msk.f32.gmra.mxu0 %vm7486_vm6, %v4661_v32  ;;  %v3526_v32 = vld [vmem:[%s7457_s3 + $0x328] sm:$0xff]  ;;  %1176 = vmatpush.msrb.mxu1 %v3503_v44  ;;  %vm7496_vm6 = vcmp.eq.s32.totalorder %v5026_v11, 1  ;;  %v3523_v44 = vld [vmem:[%s7457_s3 + $0x310] sm:$0xff] }
  0xd2   : > { %7672 = vst [vmem:[#allocation32_spill] sm:$0xff] %v5170_v12  ;;  %vm7504_vm15 = vcmp.eq.s32.totalorder %v5170_v12, 1  ;;  %3447 = vmatmul.msk.f32.gmra.mxu2 %vm7491_vm3, %v5163_v35 }
  0xd3   : > { %4175 = vset.pattern.permute.xlu1 %v7673_v2  ;;  %3422 = vmatmul.msk.f32.gmra.mxu1 %vm7504_vm15, %v5168_v59 }
  0xd4   : > { %1126 = vperm.xlu1 %4175, %v4379_v14   ;;  %1291 = vmatpush.msrb.mxu2 %v3526_v32 }
  0xd5   : > { %1177 = vmatpush.msrb.mxu1 %v3502_v54  ;;  %v3500_v54 = vld [vmem:[%s7457_s3 + $0x298] sm:$0xff] }
  0xd6   : > { %4176 = vset.pattern.permute.xlu2 %v7674_v10  ;;  %1292 = vmatpush.msrb.mxu2 %v3525_v21  ;;  %v3522_v21 = vld [vmem:[%s7457_s3 + $0x308] sm:$0xff] }
  0xd7   : > { %1243 = vperm.xlu2 %4176, %v4392_v17   ;;  %v5210_v22 = vpop.permute.xlu2 %579  ;;  %1178 = vmatpush.msrb.mxu1 %v3501_v42 }
  0xd8   : > { %1293 = vmatpush.msrb.mxu2 %v3524_v56  ;;  %v3499_v56 = vld [vmem:[%s7457_s3 + $0x290] sm:$0xff] }
  0xd9   : > { %1179 = vmatpush.msrb.mxu1 %v3500_v54  ;;  %v5252_v54 = vld [vmem:[#allocation2 + $0x41] sm:$0xff] }
  0xda   : > { %v5212_v32 = vpop.permute.xlu1 %889  ;;  %1294 = vmatpush.msrb.mxu2 %v3523_v44  ;;  %v3498_v44 = vld [vmem:[%s7457_s3 + $0x288] sm:$0xff] }
  0xdb   : > { %7675 = vst [vmem:[#allocation33_spill] sm:$0xff] %v5212_v32  ;;  %vm7499_vm3 = vcmp.eq.s32.totalorder %v5212_v32, 1  ;;  %3423 = vmatmul.msk.f32.gmra.mxu1 %vm7496_vm6, %v5208_v36  ;;  %vm7505_vm6 = vcmp.eq.s32.totalorder %v5210_v22, 1 }
  0xdc   : > { %4178 = vset.pattern.permute.xlu1 %v7676_v60  ;;  %3467 = vmatmul.msk.f32.gmra.mxu3 %vm7499_vm3, %v4939_v61  ;;  %vm7509_vm3 = vcmp.eq.s32.totalorder %v5157_v4, 1 }
  0xdd   : > { %1462 = vperm.xlu1 %4178, %v4375_v13   ;;  %1295 = vmatpush.msrb.mxu2 %v3522_v21  ;;  %v3497_v21 = vld [vmem:[%s7457_s3 + $0x280] sm:$0xff] }
  0xde   : > { %1180 = vmatpush.msrb.mxu1 %v3499_v56 }
  0xdf   : > { %4179 = vset.pattern.permute.xlu2 %v7673_v2  ;;  %1296 = vmatpush.msrb.mxu2 %v3521_v33  ;;  %v7679_v33 = vmov 7  }
  0xe0   : > { %1129 = vperm.xlu2 %4179, %v4392_v17   ;;  %v5246_v42 = vpop.permute.xlu2 %1012  ;;  %1181 = vmatpush.msrb.mxu1 %v3498_v44  ;;  %v3582_v44 = vld [vmem:[%s7457_s3 + $0x468] sm:$0xff] }
  0xe1   : > { %7677 = vst [vmem:[#allocation34_spill] sm:$0xff] %v5246_v42  ;;  %1511 = vmatpush.msra.mxu0 %v3582_v44 }
  0xe2   : > { %1182 = vmatpush.msrb.mxu1 %v3497_v21  ;;  %v3559_v21 = vld [vmem:[%s7457_s3 + $0x3f0] sm:$0xff] }
  0xe3   : > { %v5257_v46 = vpop.permute.xlu1 %790  ;;  %3424 = vmatmul.msk.f32.gmra.mxu1 %vm7505_vm6, %v5243_v0  ;;  %vm7507_vm6 = vcmp.eq.s32.totalorder %v5047_v29, 1  ;;  %1512 = vmatpush.msra.mxu0 %v3581_v40  ;;  %v3579_v40 = vld [vmem:[%s7457_s3 + $0x450] sm:$0xff] }
  0xe4   : > { %7678 = vst [vmem:[#allocation35_spill] sm:$0xff] %v5257_v46  ;;  %vm7506_vm15 = vcmp.eq.s32.totalorder %v5257_v46, 1  ;;  %3468 = vmatmul.msk.f32.gmra.mxu3 %vm7509_vm3, %v4974_v27 }
  0xe5   : > { %4180 = vset.pattern.permute.xlu1 %v7674_v10  ;;  %3448 = vmatmul.msk.f32.gmra.mxu2 %vm7506_vm15, %v5252_v54  ;;  %v3560_v10 = vld [vmem:[%s7457_s3 + $0x3f8] sm:$0xff] }
  0xe6   : > { %1246 = vperm.xlu1 %4180, %v4403_v19   ;;  %1395 = vmatpush.msra.mxu3 %v3560_v10  ;;  %v3558_v10 = vld [vmem:[%s7457_s3 + $0x3e8] sm:$0xff] }
  0xe8   : > { %4181 = vset.pattern.permute.xlu2 %v7679_v33  ;;  %1396 = vmatpush.msra.mxu3 %v3559_v21  ;;  %v3555_v21 = vld [vmem:[%s7457_s3 + $0x3d0] sm:$0xff] }
  0xe9   : > { %1348 = vperm.xlu2 %4181, %v4375_v13   ;;  %v5279_v56 = vpop.permute.xlu2 %1228 }
  0xea   : > { %7680 = vst [vmem:[#allocation36_spill] sm:$0xff] %v5279_v56  ;;  %1397 = vmatpush.msra.mxu3 %v3558_v10  ;;  %v3578_v10 = vld [vmem:[%s7457_s3 + $0x448] sm:$0xff] }
  0xec   : > { %v5291_v13 = vpop.permute.xlu1 %1009 }
  0xed   : > { %7681 = vst [vmem:[#allocation37_spill] sm:$0xff] %v5291_v13  ;;  %vm7508_vm15 = vcmp.eq.s32.totalorder %v5291_v13, 1  ;;  %3537 = vmatmul.msk.f32.vlgmr.msrb.gmra.mxu2 %vm7507_vm6, %v4895_v37  ;;  %vm7511_vm6 = vcmp.eq.s32.totalorder %v5279_v56, 1  ;;  %v3676_v56 = vld [vmem:[%s7457_s3 + $0x658] sm:$0xff] }
  0xee   : > { %4183 = vset.pattern.permute.xlu1 %v7673_v2  ;;  %3493 = vmatmul.msk.f32.gmra.mxu0 %vm7508_vm15, %v4794_v28  ;;  %v3557_v28 = vld [vmem:[%s7457_s3 + $0x3e0] sm:$0xff]  ;;  %vm7510_vm15 = vcmp.eq.s32.totalorder %v5246_v42, 1  ;;  %v3556_v2 = vld [vmem:[%s7457_s3 + $0x3d8] sm:$0xff]  ;;  %v3654_v42 = vld [vmem:[%s7457_s3 + $0x5e8] sm:$0xff] }
  0xef   : > { %1132 = vperm.xlu1 %4183, %v4403_v19   ;;  %1398 = vmatpush.msra.mxu3 %v3557_v28  ;;  %v3553_v28 = vld [vmem:[%s7457_s3 + $0x3c0] sm:$0xff] }
  0xf1   : > { %1351 = vperm.xlu2 %4181, %v4355_v7   ;;  %v3580_v7 = vld [vmem:[%s7457_s3 + $0x458] sm:$0xff]  ;;  %1399 = vmatpush.msra.mxu3 %v3556_v2 }
  0xf2   : > { %v5310_v37 = vpop.permute.xlu2 %1114  ;;  %1513 = vmatpush.msra.mxu0 %v3580_v7  ;;  %v3577_v7 = vld [vmem:[%s7457_s3 + $0x440] sm:$0xff] }
  0xf3   : > { %7682 = vst [vmem:[#allocation38_spill] sm:$0xff] %v5310_v37  ;;  %1400 = vmatpush.msra.mxu3 %v3555_v21  ;;  %v3576_v21 = vld [vmem:[%s7457_s3 + $0x438] sm:$0xff] }
  0xf4   : > { %1514 = vmatpush.msra.mxu0 %v3579_v40 }
  0xf5   : > { %v5322_v44 = vpop.permute.xlu1 %895  ;;  %3538 = vmatmul.msk.f32.gmra.mxu2 %vm7511_vm6, %v4939_v61  ;;  %v5342_v61 = vpop.permute.xlu0 %898 }
  0xf6   : > { %7683 = vst [vmem:[#allocation39_spill] sm:$0xff] %v5322_v44  ;;  %vm7513_vm3 = vcmp.eq.s32.totalorder %v5322_v44, 1  ;;  %3494 = vmatmul.msk.f32.gmra.mxu0 %vm7510_vm15, %v4830_v47  ;;  %v3554_v47 = vld [vmem:[%s7457_s3 + $0x3c8] sm:$0xff]  ;;  %vm7512_vm15 = vcmp.eq.s32.totalorder %v5342_v61, 1 }
  0xf7   : > { %4184 = vset.pattern.permute.xlu1 %v7676_v60  ;;  %3469 = vmatmul.msk.f32.gmra.mxu3 %vm7513_vm3, %v5168_v59  ;;  %7684 = vst [vmem:[#allocation40_spill] sm:$0xff] %v5342_v61  ;;  %vm7517_vm3 = vcmp.eq.s32.totalorder %v5310_v37, 1 }
  0xf8   : > { %1468 = vperm.xlu1 %4184, %v4379_v14   ;;  %1401 = vmatpush.msra.mxu3 %v3554_v47  ;;  %v3551_v47 = vld [vmem:[%s7457_s3 + $0x3b0] sm:$0xff] }
  0xf9   : > { %1354 = vperm.xlu2 %4181, %v4379_v14   ;;  %1515 = vmatpush.msra.mxu0 %v3578_v10  ;;  %v3552_v14 = vld [vmem:[%s7457_s3 + $0x3b8] sm:$0xff]  ;;  %v3575_v10 = vld [vmem:[%s7457_s3 + $0x430] sm:$0xff] }
  0xfa   : > { %1402 = vmatpush.msra.mxu3 %v3553_v28  ;;  %v3550_v28 = vld [vmem:[%s7457_s3 + $0x3a8] sm:$0xff] }
  0xfb   : > { %v5361_v2 = vpop.permute.xlu2 %901  ;;  %1516 = vmatpush.msra.mxu0 %v3577_v7 }
  0xfc   : > { %7685 = vst [vmem:[#allocation41_spill] sm:$0xff] %v5361_v2  ;;  %1403 = vmatpush.msra.mxu3 %v3552_v14  ;;  %v3572_v14 = vld [vmem:[%s7457_s3 + $0x418] sm:$0xff] }
  0xfd   : > { %1517 = vmatpush.msra.mxu0 %v3576_v21  ;;  %v3547_v21 = vld [vmem:[%s7457_s3 + $0x390] sm:$0xff] }
  0xfe   : > { %v5366_v40 = vpop.permute.xlu1 %1111  ;;  %1404 = vmatpush.msra.mxu3 %v3551_v47  ;;  %v3632_v47 = vld [vmem:[%s7457_s3 + $0x578] sm:$0xff] }
  0xff   : > { %7686 = vst [vmem:[#allocation42_spill] sm:$0xff] %v5366_v40  ;;  %vm7514_vm6 = vcmp.eq.s32.totalorder %v5366_v40, 1  ;;  %3470 = vmatmul.msk.f32.gmra.mxu3 %vm7512_vm15, %v5208_v36  ;;  %1518 = vmatpush.msra.mxu0 %v3575_v10  ;;  %vm7516_vm15 = vcmp.eq.s32.totalorder %v5361_v2, 1  ;;  %v3571_v10 = vld [vmem:[%s7457_s3 + $0x410] sm:$0xff] }
 0x100   : > { %4185 = vset.pattern.permute.xlu1 %v7679_v33  ;;  %3513 = vmatmul.msk.f32.vlgmr.msrb.gmra.mxu1 %vm7514_vm6, %v4879_v3  ;;  %v3574_v33 = vld [vmem:[%s7457_s3 + $0x428] sm:$0xff]  ;;  %v3549_v3 = vld [vmem:[%s7457_s3 + $0x3a0] sm:$0xff] }
 0x101   : > { %1357 = vperm.xlu1 %4185, %v4392_v17   ;;  %4186 = vset.pattern.permute.xlu2 %v7676_v60  ;;  %v3573_v60 = vld [vmem:[%s7457_s3 + $0x420] sm:$0xff] }
 0x102   : > { %1474 = vperm.xlu2 %4186, %v4403_v19   ;;  %1405 = vmatpush.msra.mxu3 %v3550_v28  ;;  %v3548_v19 = vld [vmem:[%s7457_s3 + $0x398] sm:$0xff]  ;;  %v3546_v28 = vld [vmem:[%s7457_s3 + $0x388] sm:$0xff] }
 0x103   : > { %1519 = vmatpush.msra.mxu0 %v3574_v33  ;;  %1713 = vmatpush.msra.mxu2 %v3632_v47  ;;  %v3570_v33 = vld [vmem:[%s7457_s3 + $0x408] sm:$0xff] }
 0x104   : > { %v5395_v17 = vpop.permute.xlu2 %1234  ;;  %1406 = vmatpush.msra.mxu3 %v3549_v3  ;;  %v3545_v3 = vld [vmem:[%s7457_s3 + $0x380] sm:$0xff]  ;;  %v3630_v47 = vld [vmem:[%s7457_s3 + $0x568] sm:$0xff] }
 0x105   : > { %7687 = vst [vmem:[#allocation43_spill] sm:$0xff] %v5395_v17  ;;  %1520 = vmatpush.msra.mxu0 %v3573_v60 }
 0x106   : > { %1407 = vmatpush.msra.mxu3 %v3548_v19  ;;  %v5442_v19 = vpop.permute.xlu0 %1018 }
 0x107   : > { %v5404_v7 = vpop.permute.xlu1 %1015  ;;  %3471 = vmatmul.msk.f32.gmra.mxu3 %vm7516_vm15, %v5243_v0  ;;  %1521 = vmatpush.msra.mxu0 %v3572_v14  ;;  %7690 = vst [vmem:[#allocation46_spill] sm:$0xff] %v5442_v19  ;;  %v3569_v14 = vld [vmem:[%s7457_s3 + $0x400] sm:$0xff] }
 0x108   : > { %7688 = vst [vmem:[#allocation44_spill] sm:$0xff] %v5404_v7  ;;  %vm7515_vm6 = vcmp.eq.s32.totalorder %v5404_v7, 1  ;;  %3514 = vmatmul.msk.f32.gmra.mxu1 %vm7517_vm3, %v4933_v58  ;;  %1408 = vmatpush.msra.mxu3 %v3547_v21  ;;  %v3608_v21 = vld [vmem:[%s7457_s3 + $0x4f8] sm:$0xff] }
 0x109   : > { %3495 = vmatmul.msk.f32.gmra.mxu0 %vm7515_vm6, %v4889_v31  ;;  %v3631_v31 = vld [vmem:[%s7457_s3 + $0x570] sm:$0xff]  ;;  %vm7518_vm6 = vcmp.eq.s32.totalorder %v5442_v19, 1  ;;  %1631 = vmatpush.msra.mxu1 %v3608_v21  ;;  %v3605_v21 = vld [vmem:[%s7457_s3 + $0x4e0] sm:$0xff]  ;;  %v3656_v7 = vld [vmem:[%s7457_s3 + $0x5f8] sm:$0xff] }
 0x10a   : > { %1522 = vmatpush.msra.mxu0 %v3571_v10  ;;  %1409 = vmatpush.msra.mxu3 %v3546_v28  ;;  %v3607_v28 = vld [vmem:[%s7457_s3 + $0x4f0] sm:$0xff]  ;;  %v3601_v19 = vld [vmem:[%s7457_s3 + $0x4c0] sm:$0xff] }
 0x10b   : > { %1714 = vmatpush.msra.mxu2 %v3631_v31  ;;  %1632 = vmatpush.msra.mxu1 %v3607_v28  ;;  %v3628_v31 = vld [vmem:[%s7457_s3 + $0x558] sm:$0xff]  ;;  %v5500_v28 = vld [vmem:[#allocation2 + $0x47] sm:$0xff] }
 0x10c   : > { %1523 = vmatpush.msra.mxu0 %v3570_v33  ;;  %1410 = vmatpush.msra.mxu3 %v3545_v3  ;;  %v3629_v33 = vld [vmem:[%s7457_s3 + $0x560] sm:$0xff] }
 0x10d   : > { %v5440_v60 = vpop.permute.xlu2 %1453  ;;  %1715 = vmatpush.msra.mxu2 %v3630_v47  ;;  %v3627_v47 = vld [vmem:[%s7457_s3 + $0x550] sm:$0xff] }
 0x10e   : > { %7689 = vst [vmem:[#allocation45_spill] sm:$0xff] %v5440_v60  ;;  %1524 = vmatpush.msra.mxu0 %v3569_v14  ;;  %vm7520_vm3 = vcmp.eq.s32.totalorder %v5440_v60, 1  ;;  %1795 = vmatpush.msrb.mxu3 %v3656_v7  ;;  %v5568_v7 = vld [vmem:[#allocation2 + $0x30] sm:$0xff] }
 0x10f   : > { %1716 = vmatpush.msra.mxu2 %v3629_v33  ;;  %1594 = vst [vmem:[#allocation2 + $0x30] sm:$0xff] %v4724_v49 }
 0x110   : > { %v5454_v10 = vpop.permute.xlu1 %1231 }
 0x111   : > { %7691 = vst [vmem:[#allocation47_spill] sm:$0xff] %v5454_v10  ;;  %vm7519_vm15 = vcmp.eq.s32.totalorder %v5454_v10, 1  ;;  %3496 = vmatmul.msk.f32.gmra.mxu0 %vm7518_vm6, %v5073_v5  ;;  %vm7523_vm6 = vcmp.eq.s32.totalorder %v5395_v17, 1  ;;  %1717 = vmatpush.msra.mxu2 %v3628_v31  ;;  %v3603_v31 = vld [vmem:[%s7457_s3 + $0x4d0] sm:$0xff]  ;;  %v3678_v10 = vld [vmem:[%s7457_s3 + $0x668] sm:$0xff] }
 0x112   : > { %3539 = vmatmul.msk.f32.gmra.mxu2 %vm7519_vm15, %v4974_v27  ;;  %v3606_v27 = vld [vmem:[%s7457_s3 + $0x4e8] sm:$0xff]  ;;  %v3623_v17 = vld [vmem:[%s7457_s3 + $0x530] sm:$0xff] }
 0x113   : > { %1633 = vmatpush.msra.mxu1 %v3606_v27  ;;  %1718 = vmatpush.msra.mxu2 %v3627_v47  ;;  %v3626_v27 = vld [vmem:[%s7457_s3 + $0x548] sm:$0xff]  ;;  %v3680_v47 = vld [vmem:[%s7457_s3 + $0x678] sm:$0xff] }
 0x114   : > { %1877 = vmatpush.msrb.mxu0 %v3680_v47  ;;  %v3602_v47 = vld [vmem:[%s7457_s3 + $0x4c8] sm:$0xff] }
 0x115   : > { %1634 = vmatpush.msra.mxu1 %v3605_v21  ;;  %1719 = vmatpush.msra.mxu2 %v3626_v27  ;;  %v3625_v21 = vld [vmem:[%s7457_s3 + $0x540] sm:$0xff] }
 0x116   : > { %v5470_v3 = vpop.permute.xlu2 %1339 }
 0x117   : > { %7692 = vst [vmem:[#allocation48_spill] sm:$0xff] %v5470_v3  ;;  %1720 = vmatpush.msra.mxu2 %v3625_v21  ;;  %v3624_v21 = vld [vmem:[%s7457_s3 + $0x538] sm:$0xff] }
 0x119   : > { %v5479_v14 = vpop.permute.xlu1 %1117  ;;  %3585 = vmatmul.msk.f32.vlgmr.msra.gmra.mxu0 %vm7520_vm3, %v4933_v58  ;;  %v5497_v58 = vpop.permute.xlu0 %1120  ;;  %1721 = vmatpush.msra.mxu2 %v3624_v21 }
 0x11a   : > { %7693 = vst [vmem:[#allocation49_spill] sm:$0xff] %v5479_v14  ;;  %vm7524_vm15 = vcmp.eq.s32.totalorder %v5479_v14, 1  ;;  %3540 = vmatmul.msk.f32.gmra.mxu2 %vm7523_vm6, %v5168_v59  ;;  %vm7534_vm3 = vcmp.eq.s32.totalorder %v5497_v58, 1  ;;  %v3604_v59 = vld [vmem:[%s7457_s3 + $0x4d8] sm:$0xff] }
 0x11b   : > { %3515 = vmatmul.msk.f32.gmra.mxu1 %vm7524_vm15, %v4972_v24  ;;  %7694 = vst [vmem:[#allocation50_spill] sm:$0xff] %v5497_v58  ;;  %1722 = vmatpush.msra.mxu2 %v3623_v17  ;;  %v3600_v17 = vld [vmem:[%s7457_s3 + $0x4b8] sm:$0xff] }
 0x11c   : > { %1635 = vmatpush.msra.mxu1 %v3604_v59  ;;  %v5528_v59 = vld [vmem:[#allocation2 + $0x28] sm:$0xff] }
 0x11d   : > { %1593 = vst [vmem:[#allocation2 + $0x28] sm:$0xff] %v4721_v48 }
 0x11e   : > { %1636 = vmatpush.msra.mxu1 %v3603_v31  ;;  %v3679_v31 = vld [vmem:[%s7457_s3 + $0x670] sm:$0xff] }
 0x11f   : > { %v5502_v33 = vpop.permute.xlu2 %1123  ;;  %1878 = vmatpush.msrb.mxu0 %v3679_v31 }
 0x120   : > { %7695 = vst [vmem:[#allocation51_spill] sm:$0xff] %v5502_v33  ;;  %vm7545_vm15 = vcmp.eq.s32.totalorder %v5502_v33, 1  ;;  %1637 = vmatpush.msra.mxu1 %v3602_v47 }
 0x121   : > { %1879 = vmatpush.msrb.mxu0 %v3678_v10  ;;  %v5573_v31 = vpop.permute.xlu0 %1240  ;;  %v3599_v10 = vld [vmem:[%s7457_s3 + $0x4b0] sm:$0xff] }
 0x122   : > { %v5519_v60 = vpop.permute.xlu1 %904  ;;  %1638 = vmatpush.msra.mxu1 %v3601_v19  ;;  %7700 = vst [vmem:[#allocation56_spill] sm:$0xff] %v5573_v31  ;;  %v3677_v19 = vld [vmem:[%s7457_s3 + $0x660] sm:$0xff] }
 0x123   : > { %7696 = vst [vmem:[#allocation52_spill] sm:$0xff] %v5519_v60  ;;  %vm7525_vm6 = vcmp.eq.s32.totalorder %v5519_v60, 1  ;;  %3516 = vmatmul.msk.f32.gmra.mxu1 %vm7534_vm3, %v5018_v15  ;;  %1880 = vmatpush.msrb.mxu0 %v3677_v19  ;;  %v3653_v19 = vld [vmem:[%s7457_s3 + $0x5e0] sm:$0xff] }
 0x124   : > { %3472 = vmatmul.msk.f32.gmra.mxu3 %vm7525_vm6, %v5500_v28  ;;  %vm7542_vm6 = vcmp.eq.s32.totalorder %v5470_v3, 1  ;;  %1639 = vmatpush.msra.mxu1 %v3600_v17  ;;  %v5597_v17 = vld [vmem:[#allocation2 + $0x38] sm:$0xff]  ;;  %v6007_v9 = vld [vmem:[#allocation2 + $0x27] sm:$0xff] }
 0x125   : > { %1595 = vst [vmem:[#allocation2 + $0x38] sm:$0xff] %v4727_v50  ;;  %1881 = vmatpush.msrb.mxu0 %v3676_v56  ;;  %v3619_v56 = vld [vmem:[%s7457_s3 + $0x510] sm:$0xff] }
 0x126   : > { %1640 = vmatpush.msra.mxu1 %v3599_v10  ;;  %v3652_v10 = vld [vmem:[%s7457_s3 + $0x5d8] sm:$0xff] }
 0x128   : > { %v5531_v27 = vpop.permute.xlu2 %1459 }
 0x129   : > { %7697 = vst [vmem:[#allocation53_spill] sm:$0xff] %v5531_v27 }
 0x12b   : > { %v5556_v47 = vpop.permute.xlu1 %1237  ;;  %3517 = vmatmul.msk.f32.gmra.mxu1 %vm7545_vm15, %v5122_v45 }
 0x12c   : > { %7698 = vst [vmem:[#allocation54_spill] sm:$0xff] %v5556_v47  ;;  %vm7535_vm3 = vcmp.eq.s32.totalorder %v5556_v47, 1  ;;  %3561 = vmatmul.msk.f32.vlgmr.msra.gmra.mxu3 %vm7542_vm6, %v4679_v34  ;;  %v3622_v34 = vld [vmem:[%s7457_s3 + $0x528] sm:$0xff]  ;;  %v3621_v47 = vld [vmem:[%s7457_s3 + $0x520] sm:$0xff] }
 0x12d   : > { %3541 = vmatmul.msk.f32.gmra.mxu2 %vm7535_vm3, %v5208_v36  ;;  %v3655_v36 = vld [vmem:[%s7457_s3 + $0x5f0] sm:$0xff]  ;;  %vm7543_vm3 = vcmp.eq.s32.totalorder %v5573_v31, 1  ;;  %v3726_v31 = vld [vmem:[%s7457_s3 + $0x768] sm:$0xff] }
 0x12e   : > { %1723 = vmatpush.msra.mxu2 %v3622_v34  ;;  %1796 = vmatpush.msrb.mxu3 %v3655_v36  ;;  %v3620_v36 = vld [vmem:[%s7457_s3 + $0x518] sm:$0xff] }
 0x130   : > { %1724 = vmatpush.msra.mxu2 %v3621_v47  ;;  %1797 = vmatpush.msrb.mxu3 %v3654_v42  ;;  %v3598_v47 = vld [vmem:[%s7457_s3 + $0x4a8] sm:$0xff]  ;;  %v3597_v42 = vld [vmem:[%s7457_s3 + $0x4a0] sm:$0xff] }
 0x131   : > { %v5571_v21 = vpop.permute.xlu2 %1243  ;;  %1641 = vmatpush.msra.mxu1 %v3598_v47  ;;  %v3674_v47 = vld [vmem:[%s7457_s3 + $0x648] sm:$0xff] }
 0x132   : > { %7699 = vst [vmem:[#allocation55_spill] sm:$0xff] %v5571_v21  ;;  %1725 = vmatpush.msra.mxu2 %v3620_v36  ;;  %1798 = vmatpush.msrb.mxu3 %v3653_v19  ;;  %v5652_v19 = vld [vmem:[#allocation2 + $0x40] sm:$0xff] }
 0x133   : > { %1642 = vmatpush.msra.mxu1 %v3597_v42  ;;  %1596 = vst [vmem:[#allocation2 + $0x40] sm:$0xff] %v4730_v51  ;;  %v3673_v42 = vld [vmem:[%s7457_s3 + $0x640] sm:$0xff] }
 0x134   : > { %v5599_v34 = vpop.permute.xlu1 %1456  ;;  %1726 = vmatpush.msra.mxu2 %v3619_v56  ;;  %1799 = vmatpush.msrb.mxu3 %v3652_v10  ;;  %v5669_v56 = vld [vmem:[#allocation2 + $0x4f] sm:$0xff]  ;;  %v3617_v10 = vld [vmem:[%s7457_s3 + $0x500] sm:$0xff] }
 0x135   : > { %7701 = vst [vmem:[#allocation57_spill] sm:$0xff] %v5599_v34  ;;  %vm7544_vm6 = vcmp.eq.s32.totalorder %v5599_v34, 1  ;;  %3542 = vmatmul.msk.f32.gmra.mxu2 %vm7543_vm3, %v5243_v0  ;;  %vm7549_vm3 = vcmp.eq.s32.totalorder %v5571_v21, 1  ;;  %v3675_v0 = vld [vmem:[%s7457_s3 + $0x650] sm:$0xff]  ;;  %v3670_v21 = vld [vmem:[%s7457_s3 + $0x628] sm:$0xff]  ;;  %v3704_v34 = vld [vmem:[%s7457_s3 + $0x6f8] sm:$0xff] }
 0x136   : > { %3586 = vmatmul.msk.f32.gmra.mxu0 %vm7544_vm6, %v4972_v24  ;;  %vm7548_vm6 = vcmp.eq.s32.totalorder %v5531_v27, 1  ;;  %v3650_v27 = vld [vmem:[%s7457_s3 + $0x5c8] sm:$0xff] }
 0x137   : > { %1882 = vmatpush.msrb.mxu0 %v3675_v0  ;;  %v3618_v0 = vld [vmem:[%s7457_s3 + $0x508] sm:$0xff] }
 0x138   : > { %1727 = vmatpush.msra.mxu2 %v3618_v0  ;;  %v3595_v0 = vld [vmem:[%s7457_s3 + $0x490] sm:$0xff] }
 0x139   : > { %1883 = vmatpush.msrb.mxu0 %v3674_v47  ;;  %v5674_v47 = vld [vmem:[#allocation2 + $0x49] sm:$0xff] }
 0x13a   : > { %v5626_v24 = vpop.permute.xlu2 %1129  ;;  %1728 = vmatpush.msra.mxu2 %v3617_v10  ;;  %1597 = vst [vmem:[#allocation2 + $0x48] sm:$0xff] %v4736_v55  ;;  %v3594_v10 = vld [vmem:[%s7457_s3 + $0x488] sm:$0xff]  ;;  %v3748_v55 = vld [vmem:[%s7457_s3 + $0x7d8] sm:$0xff] }
 0x13b   : > { %7702 = vst [vmem:[#allocation58_spill] sm:$0xff] %v5626_v24  ;;  %1884 = vmatpush.msrb.mxu0 %v3673_v42 }
 0x13d   : > { %v5640_v36 = vpop.permute.xlu1 %1342  ;;  %3543 = vmatmul.msk.f32.gmra.mxu2 %vm7549_vm3, %v5500_v28  ;;  %v5658_v28 = vpop.permute.xlu0 %1345 }
 0x13e   : > { %7703 = vst [vmem:[#allocation59_spill] sm:$0xff] %v5640_v36  ;;  %vm7553_vm15 = vcmp.eq.s32.totalorder %v5640_v36, 1  ;;  %3587 = vmatmul.msk.f32.gmra.mxu0 %vm7548_vm6, %v5018_v15  ;;  %v3596_v15 = vld [vmem:[%s7457_s3 + $0x498] sm:$0xff]  ;;  %vm7550_vm6 = vcmp.eq.s32.totalorder %v5658_v28, 1 }
 0x13f   : > { %3562 = vmatmul.msk.f32.gmra.mxu3 %vm7553_vm15, %v4786_v26  ;;  %7704 = vst [vmem:[#allocation60_spill] sm:$0xff] %v5658_v28  ;;  %v3651_v26 = vld [vmem:[%s7457_s3 + $0x5d0] sm:$0xff]  ;;  %1643 = vmatpush.msra.mxu1 %v3596_v15  ;;  %v3672_v15 = vld [vmem:[%s7457_s3 + $0x638] sm:$0xff]  ;;  %vm1140_vm15 = vcmp.eq.s32.totalorder %v5626_v24, 1 }
 0x140   : > { %1800 = vmatpush.msrb.mxu3 %v3651_v26  ;;  %1885 = vmatpush.msrb.mxu0 %v3672_v15  ;;  %v3593_v15 = vld [vmem:[%s7457_s3 + $0x480] sm:$0xff]  ;;  %v3895_v24 = vld [vmem:[%s7457_s3 + $0xaf0] sm:$0xff] }
 0x141   : > { %1644 = vmatpush.msra.mxu1 %v3595_v0  ;;  %v3671_v0 = vld [vmem:[%s7457_s3 + $0x630] sm:$0xff] }
 0x142   : > { %1801 = vmatpush.msrb.mxu3 %v3650_v27  ;;  %v3649_v27 = vld [vmem:[%s7457_s3 + $0x5c0] sm:$0xff]  ;;  %1886 = vmatpush.msrb.mxu0 %v3671_v0  ;;  %v5723_v0 = vpop.f32.mrf.mxu0 }
 0x143   : > { %v5687_v26 = vpop.permute.xlu2 %1348  ;;  %1645 = vmatpush.msra.mxu1 %v3594_v10  ;;  %v3648_v10 = vld [vmem:[%s7457_s3 + $0x5b8] sm:$0xff]  ;;  %7707 = vst [vmem:[#allocation63_spill] sm:$0xff] %v5723_v0 }
 0x144   : > { %7705 = vst [vmem:[#allocation61_spill] sm:$0xff] %v5687_v26  ;;  %1802 = vmatpush.msrb.mxu3 %v3649_v27  ;;  %v3727_v27 = vld [vmem:[%s7457_s3 + $0x770] sm:$0xff]  ;;  %1887 = vmatpush.msrb.mxu0 %v3670_v21 }
 0x145   : > { %1646 = vmatpush.msra.mxu1 %v3593_v15  ;;  %v3669_v15 = vld [vmem:[%s7457_s3 + $0x620] sm:$0xff] }
 0x146   : > { %v5689_v42 = vpop.permute.xlu1 %1126  ;;  %1803 = vmatpush.msrb.mxu3 %v3648_v10  ;;  %1888 = vmatpush.msrb.mxu0 %v3669_v15  ;;  %v5764_v15 = vpop.permute.xlu0 %1465 }
 0x147   : > { %7706 = vst [vmem:[#allocation62_spill] sm:$0xff] %v5689_v42  ;;  %vm7558_vm3 = vcmp.eq.s32.totalorder %v5689_v42, 1  ;;  %3563 = vmatmul.msk.f32.gmra.mxu3 %vm7550_vm6, %v5528_v59  ;;  %v3728_v59 = vld [vmem:[%s7457_s3 + $0x778] sm:$0xff]  ;;  %vm7563_vm6 = vcmp.eq.s32.totalorder %v5687_v26, 1  ;;  %1959 = vmatpush.msrb.mxu1 %v3704_v34  ;;  %v5752_v34 = vpop.f32.mrf.mxu3 }
 0x148   : > { %3518 = vmatmul.msk.f32.gmra.mxu1 %vm7558_vm3, %v5163_v35  ;;  %2041 = vmatpush.msrb.mxu2 %v3728_v59  ;;  %v3647_v59 = vld [vmem:[%s7457_s3 + $0x5b0] sm:$0xff]  ;;  %7710 = vst [vmem:[#allocation66_spill] sm:$0xff] %v5752_v34 }
 0x149   : > { %1804 = vmatpush.msrb.mxu3 %v3647_v59  ;;  %v3703_v59 = vld [vmem:[%s7457_s3 + $0x6f0] sm:$0xff]  ;;  %7711 = vst [vmem:[#allocation67_spill] sm:$0xff] %v5764_v15 }
 0x14a   : > { %2042 = vmatpush.msrb.mxu2 %v3727_v27  ;;  %v3668_v27 = vld [vmem:[%s7457_s3 + $0x618] sm:$0xff]  ;;  %v3667_v34 = vld [vmem:[%s7457_s3 + $0x610] sm:$0xff]  ;;  %1960 = vmatpush.msrb.mxu1 %v3703_v59  ;;  %v5784_v0 = vpop.f32.mrf.mxu0 }
 0x14b   : > { %v5743_v21 = vpop.permute.xlu2 %1351  ;;  %1889 = vmatpush.msrb.mxu0 %v3668_v27  ;;  %v3724_v27 = vld [vmem:[%s7457_s3 + $0x758] sm:$0xff]  ;;  %7713 = vst [vmem:[#allocation69_spill] sm:$0xff] %v5784_v0 }
 0x14c   : > { %7709 = vst [vmem:[#allocation65_spill] sm:$0xff] %v5743_v21  ;;  %2043 = vmatpush.msrb.mxu2 %v3726_v31  ;;  %vm7564_vm0 = vcmp.eq.s32.totalorder %v5743_v21, 1  ;;  %v3645_v31 = vld [vmem:[%s7457_s3 + $0x5a0] sm:$0xff]  ;;  %v5924_v0 = vld [vmem:[#allocation2 + $0x18] sm:$0xff] }
 0x14d   : > { %1890 = vmatpush.msrb.mxu0 %v3667_v34  ;;  %v3644_v34 = vld [vmem:[%s7457_s3 + $0x598] sm:$0xff] }
 0x14e   : > { %v6009_v21 = vld [vmem:[#allocation2 + $0x19] sm:$0xff] }
 0x14f   : > { %v5738_v10 = vpop.permute.xlu1 %1462  ;;  %3564 = vmatmul.msk.f32.gmra.mxu3 %vm7563_vm6, %v5568_v7  ;;  %v3646_v7 = vld [vmem:[%s7457_s3 + $0x5a8] sm:$0xff] }
 0x150   : > { %7708 = vst [vmem:[#allocation64_spill] sm:$0xff] %v5738_v10  ;;  %vm7562_vm3 = vcmp.eq.s32.totalorder %v5738_v10, 1  ;;  %3519 = vmatmul.msk.f32.gmra.mxu1 %vm1140_vm15, %v5252_v54  ;;  %1805 = vmatpush.msrb.mxu3 %v3646_v7  ;;  %v5775_v10 = vpop.f32.mrf.mxu1  ;;  %v3702_v7 = vld [vmem:[%s7457_s3 + $0x6e8] sm:$0xff] }
 0x151   : > { %3588 = vmatmul.msk.f32.gmra.mxu0 %vm7562_vm3, %v5122_v45  ;;  %v3725_v45 = vld [vmem:[%s7457_s3 + $0x760] sm:$0xff]  ;;  %7712 = vst [vmem:[#allocation68_spill] sm:$0xff] %v5775_v10  ;;  %vm7567_vm3 = vcmp.eq.s32.totalorder %v5764_v15, 1  ;;  %1961 = vmatpush.msrb.mxu1 %v3702_v7 }
 0x152   : > { %2044 = vmatpush.msrb.mxu2 %v3725_v45  ;;  %1806 = vmatpush.msrb.mxu3 %v3645_v31  ;;  %v5797_v45 = vpop.f32.mrf.mxu3  ;;  %v3666_v31 = vld [vmem:[%s7457_s3 + $0x608] sm:$0xff]  ;;  %v5831_v15 = vpop.f32.mrf.mxu0 }
 0x153   : > { %v5792_v59 = vpop.permute.xlu2 %1354  ;;  %7716 = vst [vmem:[#allocation72_spill] sm:$0xff] %v5797_v45  ;;  %1891 = vmatpush.msrb.mxu0 %v3666_v31  ;;  %v3643_v45 = vld [vmem:[%s7457_s3 + $0x590] sm:$0xff]  ;;  %v3700_v31 = vld [vmem:[%s7457_s3 + $0x6d8] sm:$0xff] }
 0x154   : > { %7715 = vst [vmem:[#allocation71_spill] sm:$0xff] %v5792_v59  ;;  %2045 = vmatpush.msrb.mxu2 %v3724_v27  ;;  %1807 = vmatpush.msrb.mxu3 %v3644_v34  ;;  %v1680_v27 = vld [vmem:[#allocation2 + $0x8] sm:$0xff]  ;;  %v3665_v34 = vld [vmem:[%s7457_s3 + $0x600] sm:$0xff] }
 0x155   : > { %7719 = vst [vmem:[#allocation75_spill] sm:$0xff] %v5831_v15  ;;  %1892 = vmatpush.msrb.mxu0 %v3665_v34  ;;  %v3698_v15 = vld [vmem:[%s7457_s3 + $0x6c8] sm:$0xff] }
 0x156   : > { %1808 = vmatpush.msrb.mxu3 %v3643_v45  ;;  %v3641_v45 = vld [vmem:[%s7457_s3 + $0x580] sm:$0xff] }
 0x157   : > { %3565 = vmatmul.msk.f32.gmra.mxu3 %vm7564_vm0, %v5597_v17  ;;  %v5802_v17 = vpop.f32.mrf.mxu2  ;;  %vm1367_vm0 = vcmp.eq.s32.totalorder %v5792_v59, 1  ;;  %2205 = vmatpush.msra.mxu0 %v3776_v39  ;;  %v4195_v39 = vld [vmem:[#allocation2 + $0x10] sm:$0xff]  ;;  %v2336_v59 = vld [vmem:[%s4716_s19] sm:$0xff] }
 0x158   : > { %v5789_v10 = vpop.permute.xlu1 %1246  ;;  %7717 = vst [vmem:[#allocation73_spill] sm:$0xff] %v5802_v17  ;;  %v5817_v7 = vpop.f32.mrf.mxu1  ;;  %v3771_v17 = vld [vmem:[%s7457_s3 + $0x850] sm:$0xff] }
 0x159   : > { %7714 = vst [vmem:[#allocation70_spill] sm:$0xff] %v5789_v10  ;;  %vm1255_vm6 = vcmp.eq.s32.totalorder %v5789_v10, 1  ;;  %3589 = vmatmul.msk.f32.gmra.mxu0 %vm7567_vm3, %v5163_v35  ;;  %v3701_v35 = vld [vmem:[%s7457_s3 + $0x6e0] sm:$0xff] }
 0x15a   : > { %3544 = vmatmul.msk.f32.gmra.mxu2 %vm1255_vm6, %v5669_v56  ;;  %v3723_v56 = vld [vmem:[%s7457_s3 + $0x750] sm:$0xff]  ;;  %7718 = vst [vmem:[#allocation74_spill] sm:$0xff] %v5817_v7  ;;  %1962 = vmatpush.msrb.mxu1 %v3701_v35  ;;  %v5850_v34 = vpop.f32.mrf.mxu3  ;;  %v5863_v10 = vld [vmem:[#allocation2 + $0x7] sm:$0xff]  ;;  %v3720_v7 = vld [vmem:[%s7457_s3 + $0x738] sm:$0xff] }
 0x15b   : > { %2046 = vmatpush.msrb.mxu2 %v3723_v56  ;;  %v3642_v56 = vld [vmem:[%s7457_s3 + $0x588] sm:$0xff]  ;;  %7721 = vst [vmem:[#allocation77_spill] sm:$0xff] %v5850_v34  ;;  %v6005_v34 = vld [vmem:[#allocation2 + $0x1f] sm:$0xff] }
 0x15c   : > { %1963 = vmatpush.msrb.mxu1 %v3700_v31  ;;  %1809 = vmatpush.msrb.mxu3 %v3642_v56  ;;  %v3721_v31 = vld [vmem:[%s7457_s3 + $0x740] sm:$0xff] }
 0x15e   : > { %1810 = vmatpush.msrb.mxu3 %v3641_v45 }
 0x15f   : > { %3566 = vmatmul.msk.f32.gmra.mxu3 %vm1367_vm0, %v5652_v19  ;;  %v3722_v19 = vld [vmem:[%s7457_s3 + $0x748] sm:$0xff] }
 0x160   : > { %2047 = vmatpush.msrb.mxu2 %v3722_v19  ;;  %v5861_v19 = vpop.f32.mrf.mxu2  ;;  %v5865_v56 = vpop.f32.mrf.mxu1 }
 0x161   : > { %v5833_v35 = vpop.permute.xlu1 %1132  ;;  %7722 = vst [vmem:[#allocation78_spill] sm:$0xff] %v5861_v19  ;;  %v3775_v19 = vld [vmem:[%s7457_s3 + $0x870] sm:$0xff] }
 0x162   : > { %7720 = vst [vmem:[#allocation76_spill] sm:$0xff] %v5833_v35  ;;  %vm1141_vm3 = vcmp.eq.s32.totalorder %v5833_v35, 1  ;;  %3633 = vmatmul.msk.f32.vlgmr.msra.gmra.mxu2 %vm7571_vm11, %v1680_v27  ;;  %v3699_v27 = vld [vmem:[%s7457_s3 + $0x6d0] sm:$0xff]  ;;  %2206 = vmatpush.msra.mxu0 %v3775_v19  ;;  %v3774_v19 = vld [vmem:[%s7457_s3 + $0x868] sm:$0xff]  ;;  %v3893_v35 = vld [vmem:[%s7457_s3 + $0xae0] sm:$0xff] }
 0x163   : > { %3520 = vmatmul.msk.f32.gmra.mxu1 %vm1141_vm3, %v5674_v47  ;;  %2048 = vmatpush.msrb.mxu2 %v3721_v31  ;;  %7723 = vst [vmem:[#allocation79_spill] sm:$0xff] %v5865_v56  ;;  %v3752_v31 = vld [vmem:[%s7457_s3 + $0x7f8] sm:$0xff] }
 0x164   : > { %1964 = vmatpush.msrb.mxu1 %v3699_v27  ;;  %v5880_v27 = vpop.f32.mrf.mxu0  ;;  %2123 = vmatpush.msra.mxu3 %v3752_v31  ;;  %v2338_v31 = vld [vmem:[%s4716_s19 + $0x10] sm:$0xff] }
 0x165   : > { %2049 = vmatpush.msrb.mxu2 %v3720_v7  ;;  %7725 = vst [vmem:[#allocation81_spill] sm:$0xff] %v5880_v27  ;;  %v3719_v7 = vld [vmem:[%s7457_s3 + $0x730] sm:$0xff]  ;;  %2207 = vmatpush.msra.mxu0 %v3774_v19  ;;  %v5917_v27 = vpop.permute.xlu0 %1471 }
 0x166   : > { %1965 = vmatpush.msrb.mxu1 %v3698_v15  ;;  %v3697_v15 = vld [vmem:[%s7457_s3 + $0x6c0] sm:$0xff]  ;;  %7728 = vst [vmem:[#allocation84_spill] sm:$0xff] %v5917_v27  ;;  %v5920_v19 = vld [vmem:[#allocation2 + $0xf] sm:$0xff] }
 0x167   : > { %2050 = vmatpush.msrb.mxu2 %v3719_v7  ;;  %v3773_v7 = vld [vmem:[%s7457_s3 + $0x860] sm:$0xff] }
 0x168   : > { %1966 = vmatpush.msrb.mxu1 %v3697_v15  ;;  %v3751_v15 = vld [vmem:[%s7457_s3 + $0x7f0] sm:$0xff]  ;;  %v5915_v38 = vpop.f32.mrf.mxu2  ;;  %2208 = vmatpush.msra.mxu0 %v3773_v7  ;;  %v5922_v56 = vpop.f32.mrf.mxu1 }
 0x169   : > { %7727 = vst [vmem:[#allocation83_spill] sm:$0xff] %v5915_v38  ;;  %2124 = vmatpush.msra.mxu3 %v3751_v15  ;;  %v5932_v38 = vld [vmem:[%s7458_s4] ss:$0 sm:$0xff]  ;;  %v3695_v7 = vld [vmem:[%s7457_s3 + $0x6b0] sm:$0xff] }
 0x16a   : > { %v5876_v45 = vpop.permute.xlu1 %1468  ;;  %3634 = vmatmul.msk.f32.gmra.mxu2 %vm7576_vm12, %v4195_v39  ;;  %v5904_v39 = vpop.f32.mrf.mxu3  ;;  %7729 = vst [vmem:[#allocation85_spill] sm:$0xff] %v5922_v56 }
 0x16b   : > { %7724 = vst [vmem:[#allocation80_spill] sm:$0xff] %v5876_v45  ;;  %vm7575_vm11 = vcmp.eq.s32.totalorder %v5876_v45, 1  ;;  %3609 = vmatmul.msk.f32.vlgmr.msra.gmra.mxu1 %vm581_vm9, %v5863_v10  ;;  %v3718_v45 = vld [vmem:[%s7457_s3 + $0x728] sm:$0xff]  ;;  %v5964_v56 = vpop.permute.xlu2 %1474  ;;  %2125 = vmatpush.msra.mxu3 %v3750_v43 }
 0x16c   : > { %3590 = vmatmul.msk.f32.gmra.mxu0 %vm7575_vm11, %v5252_v54  ;;  %v3696_v54 = vld [vmem:[%s7457_s3 + $0x6b8] sm:$0xff]  ;;  %7726 = vst [vmem:[#allocation82_spill] sm:$0xff] %v5904_v39  ;;  %2051 = vmatpush.msrb.mxu2 %v3718_v45  ;;  %v2350_v45 = vmul.f32 %v5932_v38, %v2338_v31  ;;  %vm7582_vm11 = vcmp.eq.s32.totalorder %v5917_v27, 1  ;;  %v3717_v31 = vld [vmem:[%s7457_s3 + $0x720] sm:$0xff]  ;;  %v3694_v43 = vld [vmem:[%s7457_s3 + $0x6a8] sm:$0xff] }
 0x16d   : > { %1967 = vmatpush.msrb.mxu1 %v3696_v54  ;;  %v5935_v54 = vpop.f32.mrf.mxu0  ;;  %7733 = vst [vmem:[#allocation89_spill] sm:$0xff] %v5964_v56 }
 0x16e   : > { %7730 = vst [vmem:[#allocation86_spill] sm:$0xff] %v5935_v54  ;;  %2052 = vmatpush.msrb.mxu2 %v3717_v31  ;;  %v5969_v54 = vld [vmem:[%s7459_s5] ss:$0 sm:$0xff]  ;;  %v3716_v31 = vld [vmem:[%s7457_s3 + $0x718] sm:$0xff] }
 0x16f   : > { %1968 = vmatpush.msrb.mxu1 %v3695_v7  ;;  %v2362_v39 = vadd.f32 %v5969_v54, %v2350_v45  ;;  %v5974_v7 = vpop.permute.xlu0 %1360  ;;  %v3749_v45 = vld [vmem:[%s7457_s3 + $0x7e0] sm:$0xff] }
 0x170   : > { %7735 = vst [vmem:[#allocation91_spill] sm:$0xff] %v5974_v7  ;;  %2053 = vmatpush.msrb.mxu2 %v3716_v31  ;;  %2126 = vmatpush.msra.mxu3 %v3749_v45  ;;  %v6032_v45 = vld [vmem:[#allocation2 + $0x21] sm:$0xff] }
 0x171   : > { %1969 = vmatpush.msrb.mxu1 %v3694_v43  ;;  %v2374_v57 = vsel %vm4756_vm10, %v2362_v39, 0.0  ;;  %v6011_v43 = vpop.f32.mrf.mxu1  ;;  %v3693_v39 = vld [vmem:[%s7457_s3 + $0x6a0] sm:$0xff] }
 0x172   : > { %3635 = vmatmul.msk.f32.gmra.mxu2 %vm7583_vm1, %v5924_v0  ;;  %v5962_v27 = vpop.f32.mrf.mxu3  ;;  %vm1369_vm1 = vcmp.eq.s32.totalorder %v5974_v7, 1  ;;  %7737 = vst [vmem:[#allocation93_spill] sm:$0xff] %v6011_v43  ;;  %2127 = vmatpush.msra.mxu3 %v3748_v55  ;;  %v2340_v43 = vld [vmem:[%s4716_s19 + $0x20] sm:$0xff]  ;;  %v1762_v55 = vld [vmem:[#allocation2 + $0x9] sm:$0xff] }
 0x173   : > { %v5938_v15 = vpop.permute.xlu1 %1357  ;;  %3610 = vmatmul.msk.f32.gmra.mxu1 %vm582_vm7, %v5920_v19  ;;  %7732 = vst [vmem:[#allocation88_spill] sm:$0xff] %v5962_v27  ;;  %v1451_v27 = vld [vmem:[#allocation2 + $0x51] sm:$0xff]  ;;  %2054 = vmatpush.msrb.mxu2 %v3715_v25  ;;  %v3769_v25 = vld [vmem:[%s7457_s3 + $0x840] sm:$0xff] }
 0x174   : > { %7731 = vst [vmem:[#allocation87_spill] sm:$0xff] %v5938_v15  ;;  %vm1368_vm12 = vcmp.eq.s32.totalorder %v5938_v15, 1  ;;  %3591 = vmatmul.msk.f32.gmra.mxu0 %vm7582_vm11, %v5674_v47  ;;  %v3772_v47 = vld [vmem:[%s7457_s3 + $0x858] sm:$0xff]  ;;  %vm7613_vm11 = vcmp.eq.s32.totalorder %v5964_v56, 1  ;;  %v3714_v56 = vld [vmem:[%s7457_s3 + $0x708] sm:$0xff]  ;;  %1970 = vmatpush.msrb.mxu1 %v3693_v39  ;;  %v3747_v39 = vld [vmem:[%s7457_s3 + $0x7d0] sm:$0xff] }
 0x175   : > { %3567 = vmatmul.msk.f32.gmra.mxu3 %vm1368_vm12, %v5073_v5  ;;  %v5972_v5 = vpop.f32.mrf.mxu2  ;;  %2209 = vmatpush.msra.mxu0 %v3772_v47  ;;  %v5976_v15 = vld [vmem:[#allocation2 + $0x17] sm:$0xff]  ;;  %v6024_v31 = vpop.f32.mrf.mxu0 }
 0x176   : > { %7734 = vst [vmem:[#allocation90_spill] sm:$0xff] %v5972_v5  ;;  %v5988_v5 = vld [vmem:[#allocation2 + $0x20] sm:$0xff]  ;;  %v5994_v47 = vld [vmem:[#allocation2 + $0x50] sm:$0xff]  ;;  %2055 = vmatpush.msrb.mxu2 %v3714_v56  ;;  %2128 = vmatpush.msra.mxu3 %v3747_v39  ;;  %v3768_v39 = vld [vmem:[%s7457_s3 + $0x838] sm:$0xff] }
 0x177   : > { %7736 = vst [vmem:[#allocation92_spill] sm:$0xff] %v5994_v47  ;;  %2210 = vmatpush.msra.mxu0 %v3771_v17 }
 0x178   : > { %7738 = vst [vmem:[#allocation94_spill] sm:$0xff] %v6024_v31  ;;  %v2348_v31 = vmul.f32 %v5932_v38, %v2336_v59  ;;  %v2352_v59 = vmul.f32 %v5932_v38, %v2340_v43  ;;  %v3746_v43 = vld [vmem:[%s7457_s3 + $0x7c8] sm:$0xff] }
 0x179   : > { %2382 = vst [vmem:[#allocation2 + $0x20] sm:$0xff] %v2374_v57  ;;  %v3713_v57 = vld [vmem:[%s7457_s3 + $0x700] sm:$0xff]  ;;  %2129 = vmatpush.msra.mxu3 %v3746_v43 }
 0x17a   : > { %3636 = vmatmul.msk.f32.gmra.mxu2 %vm648_vm2, %v5988_v5  ;;  %v6039_v7 = vpop.f32.mrf.mxu3  ;;  %v2360_v56 = vadd.f32 %v5969_v54, %v2348_v31 }
 0x17b   : > { %3611 = vmatmul.msk.f32.gmra.mxu1 %vm583_vm5, %v5976_v15  ;;  %7739 = vst [vmem:[#allocation95_spill] sm:$0xff] %v6039_v7  ;;  %2056 = vmatpush.msrb.mxu2 %v3713_v57  ;;  %v2341_v57 = vld [vmem:[%s4716_s19 + $0x28] sm:$0xff] }
 0x17c   : > { %3592 = vmatmul.msk.f32.gmra.mxu0 %vm7613_vm11, %v1451_v27  ;;  %v3770_v27 = vld [vmem:[%s7457_s3 + $0x848] sm:$0xff]  ;;  %v6085_v20 = vsel %vm4756_vm10, %v2360_v56, 0.0  ;;  %v6106_v56 = vld [vmem:[#allocation2 + $0x11] sm:$0xff]  ;;  %v2353_v43 = vmul.f32 %v5932_v38, %v2341_v57  ;;  %vm7758_vm11 = vcmp.eq.s32.totalorder %v5157_v4, 1 }
 0x17d   : > { %3568 = vmatmul.msk.f32.gmra.mxu3 %vm1369_vm1, %v5994_v47  ;;  %2211 = vmatpush.msra.mxu0 %v3770_v27  ;;  %v6041_v17 = vpop.f32.mrf.mxu2  ;;  %v3692_v47 = vld [vmem:[%s7457_s3 + $0x698] sm:$0xff]  ;;  %v6063_v27 = vpop.f32.mrf.mxu1  ;;  %7743 = vst [vmem:[#allocation99_spill] sm:$0xff] %v6085_v20  ;;  %v3818_v4 = vld [vmem:[%s7457_s3 + $0x948] sm:$0xff] }
 0x17e   : > { %7740 = vst [vmem:[#allocation96_spill] sm:$0xff] %v6041_v17  ;;  %1971 = vmatpush.msrb.mxu1 %v3692_v47  ;;  %v3691_v47 = vld [vmem:[%s7457_s3 + $0x690] sm:$0xff]  ;;  %v6077_v31 = vpop.f32.mrf.mxu0  ;;  %v3744_v57 = vld [vmem:[%s7457_s3 + $0x7b8] sm:$0xff] }
 0x17f   : > { %7741 = vst [vmem:[#allocation97_spill] sm:$0xff] %v6063_v27  ;;  %2212 = vmatpush.msra.mxu0 %v3769_v25  ;;  %v3690_v27 = vld [vmem:[%s7457_s3 + $0x688] sm:$0xff]  ;;  %v3767_v25 = vld [vmem:[%s7457_s3 + $0x830] sm:$0xff] }
 0x180   : > { %7742 = vst [vmem:[#allocation98_spill] sm:$0xff] %v6077_v31  ;;  %1972 = vmatpush.msrb.mxu1 %v3691_v47  ;;  %v6111_v47 = vld [vmem:[#allocation2 + $0x10] sm:$0xff] }
 0x181   : > { %2213 = vmatpush.msra.mxu0 %v3768_v39  ;;  %2380 = vst [vmem:[#allocation2 + $0x10] sm:$0xff] %v6085_v20  ;;  %v2365_v20 = vadd.f32 %v5969_v54, %v2353_v43 }
 0x182   : > { %3637 = vmatmul.msk.f32.gmra.mxu2 %vm7601_vm13, %v4721_v48  ;;  %v6087_v62 = vpop.f32.mrf.mxu3  ;;  %1973 = vmatpush.msrb.mxu1 %v3690_v27  ;;  %v3689_v27 = vld [vmem:[%s7457_s3 + $0x680] sm:$0xff]  ;;  %vm7747_vm13 = vcmp.eq.s32.totalorder %v5015_v8, 1 }
 0x183   : > { %3612 = vmatmul.msk.f32.gmra.mxu1 %vm584_vm4, %v6005_v34  ;;  %7744 = vst [vmem:[#allocation100_spill] sm:$0xff] %v6087_v62  ;;  %2214 = vmatpush.msra.mxu0 %v3767_v25  ;;  %v6137_v25 = vld [vmem:[#allocation2 + $0x37] sm:$0xff]  ;;  %v3765_v8 = vld [vmem:[%s7457_s3 + $0x820] sm:$0xff] }
 0x184   : > { %3681 = vmatmul.msk.f32.vlgmr.msrb.gmra.mxu0 %vm7600_vm8, %v5920_v19  ;;  %v2364_v19 = vadd.f32 %v5969_v54, %v2352_v59  ;;  %v3824_v59 = vld [vmem:[%s7457_s3 + $0x978] sm:$0xff]  ;;  %vm7746_vm8 = vcmp.eq.s32.totalorder %v4773_v23, 1  ;;  %v6119_v23 = vld [vmem:[#allocation2 + $0x2f] sm:$0xff]  ;;  %1974 = vmatpush.msrb.mxu1 %v3689_v27 }
 0x185   : > { %3657 = vmatmul.msk.f32.vlgmr.msrb.gmra.mxu3 %vm792_vm14, %v1762_v55  ;;  %v6092_v17 = vpop.f32.mrf.mxu2  ;;  %v3745_v55 = vld [vmem:[%s7457_s3 + $0x7c0] sm:$0xff]  ;;  %2421 = vmatpush.msra.mxu2 %v3824_v59  ;;  %v6139_v59 = vld [vmem:[#allocation2 + $0x29] sm:$0xff] }
 0x186   : > { %7745 = vst [vmem:[#allocation101_spill] sm:$0xff] %v6092_v17  ;;  %2130 = vmatpush.msra.mxu3 %v3745_v55  ;;  %v2376_v39 = vsel %vm4756_vm10, %v2364_v19, 0.0  ;;  %v3766_v19 = vld [vmem:[%s7457_s3 + $0x828] sm:$0xff]  ;;  %v3823_v55 = vld [vmem:[%s7457_s3 + $0x970] sm:$0xff]  ;;  %v6143_v17 = vpop.f32.mrf.mxu1  ;;  %v6146_v31 = vpop.f32.mrf.mxu0 }
 0x187   : > { %2215 = vmatpush.msra.mxu0 %v3766_v19  ;;  %7750 = vst [vmem:[#allocation102_spill] sm:$0xff] %v6146_v31  ;;  %2422 = vmatpush.msra.mxu2 %v3823_v55  ;;  %v3743_v27 = vld [vmem:[%s7457_s3 + $0x7b0] sm:$0xff]  ;;  %v2377_v55 = vsel %vm4756_vm10, %v2365_v20, 0.0  ;;  %v6174_v31 = vld [vmem:[#allocation2 + $0x3f] sm:$0xff] }
 0x188   : > { %2131 = vmatpush.msra.mxu3 %v3744_v57  ;;  %v3822_v57 = vld [vmem:[%s7457_s3 + $0x968] sm:$0xff]  ;;  %v3764_v20 = vld [vmem:[%s7457_s3 + $0x818] sm:$0xff] }
 0x189   : > { %2216 = vmatpush.msra.mxu0 %v3765_v8  ;;  %2423 = vmatpush.msra.mxu2 %v3822_v57  ;;  %v3821_v8 = vld [vmem:[%s7457_s3 + $0x960] sm:$0xff]  ;;  %v3798_v57 = vld [vmem:[%s7457_s3 + $0x8e8] sm:$0xff] }
 0x18a   : > { %3638 = vmatmul.msk.f32.gmra.mxu2 %vm7746_vm8, %v4724_v49  ;;  %vm7748_vm8 = vcmp.eq.s32.totalorder %v5041_v16, 1  ;;  %v6141_v16 = vld [vmem:[#allocation2 + $0x31] sm:$0xff]  ;;  %v6160_v43 = vpop.f32.mrf.mxu3  ;;  %2132 = vmatpush.msra.mxu3 %v3743_v27 }
 0x18b   : > { %3613 = vmatmul.msk.f32.gmra.mxu1 %vm7747_vm13, %v6007_v9  ;;  %vm7749_vm13 = vcmp.eq.s32.totalorder %v4733_v53, 1  ;;  %2384 = vst [vmem:[#allocation2 + $0x30] sm:$0xff] %v2376_v39  ;;  %v2342_v53 = vld [vmem:[%s4716_s19 + $0x30] sm:$0xff]  ;;  %v3800_v39 = vld [vmem:[%s7457_s3 + $0x8f8] sm:$0xff]  ;;  %2217 = vmatpush.msra.mxu0 %v3764_v20 }
 0x18c   : > { %3682 = vmatmul.msk.f32.gmra.mxu0 %vm7748_vm8, %v5976_v15  ;;  %7751 = vst [vmem:[#allocation103_spill] sm:$0xff] %v6160_v43  ;;  %vm7752_vm8 = vcmp.eq.s32.totalorder %v4990_v52, 1  ;;  %v2354_v19 = vmul.f32 %v5932_v38, %v2342_v53  ;;  %v2337_v43 = vld [vmem:[%s4716_s19 + $0x8] sm:$0xff]  ;;  %2287 = vmatpush.msra.mxu1 %v3800_v39  ;;  %v3799_v27 = vld [vmem:[%s7457_s3 + $0x8f0] sm:$0xff]  ;;  %v6195_v39 = vld [vmem:[#allocation2 + $0x39] sm:$0xff] }
 0x18d   : > { %3658 = vmatmul.msk.f32.gmra.mxu3 %vm7749_vm13, %v6106_v56  ;;  %v6149_v1 = vpop.f32.mrf.mxu2  ;;  %vm7753_vm13 = vcmp.eq.s32.totalorder %v5170_v12, 1  ;;  %v3742_v53 = vld [vmem:[%s7457_s3 + $0x7a8] sm:$0xff]  ;;  %v3763_v52 = vld [vmem:[%s7457_s3 + $0x810] sm:$0xff]  ;;  %2385 = vst [vmem:[#allocation2 + $0x38] sm:$0xff] %v2377_v55  ;;  %2424 = vmatpush.msra.mxu2 %v3821_v8  ;;  %v7759_v55 = vld [vmem:[#allocation14_spill] sm:$0xff] }
 0x18e   : > { %2133 = vmatpush.msra.mxu3 %v3742_v53  ;;  %v2366_v12 = vadd.f32 %v5969_v54, %v2354_v19  ;;  %2288 = vmatpush.msra.mxu1 %v3799_v27  ;;  %v6210_v62 = vpop.f32.mrf.mxu1  ;;  %v2349_v53 = vmul.f32 %v5932_v38, %v2337_v43  ;;  %v6215_v41 = vpop.f32.mrf.mxu0  ;;  %v3819_v27 = vld [vmem:[%s7457_s3 + $0x950] sm:$0xff]  ;;  %v6248_v8 = vld [vmem:[#allocation2 + $0x41] sm:$0xff] }
 0x18f   : > { %2218 = vmatpush.msra.mxu0 %v3763_v52  ;;  %v6227_v52 = vld [vmem:[#allocation2 + $0x47] sm:$0xff] }
 0x190   : > { %2289 = vmatpush.msra.mxu1 %v3798_v57  ;;  %v2378_v19 = vsel %vm4756_vm10, %v2366_v12, 0.0  ;;  %v3797_v12 = vld [vmem:[%s7457_s3 + $0x8e0] sm:$0xff]  ;;  %v2361_v43 = vadd.f32 %v5969_v54, %v2349_v53  ;;  %v3739_v57 = vld [vmem:[%s7457_s3 + $0x790] sm:$0xff] }
 0x191   : > { %v3761_v53 = vld [vmem:[%s7457_s3 + $0x800] sm:$0xff]  ;;  %2386 = vst [vmem:[#allocation2 + $0x40] sm:$0xff] %v2378_v19  ;;  %v3738_v19 = vld [vmem:[%s7457_s3 + $0x788] sm:$0xff] }
 0x192   : > { %3639 = vmatmul.msk.f32.gmra.mxu2 %vm7752_vm8, %v4727_v50  ;;  %vm7754_vm8 = vcmp.eq.s32.totalorder %v5212_v32, 1  ;;  %v3741_v32 = vld [vmem:[%s7457_s3 + $0x7a0] sm:$0xff]  ;;  %v6217_v7 = vpop.f32.mrf.mxu3  ;;  %2290 = vmatpush.msra.mxu1 %v3797_v12 }
 0x193   : > { %3614 = vmatmul.msk.f32.gmra.mxu1 %vm7753_vm13, %v6119_v23  ;;  %vm7755_vm13 = vcmp.eq.s32.totalorder %v4953_v18, 1  ;;  %v3820_v18 = vld [vmem:[%s7457_s3 + $0x958] sm:$0xff]  ;;  %2134 = vmatpush.msra.mxu3 %v3741_v32  ;;  %v3762_v32 = vld [vmem:[%s7457_s3 + $0x808] sm:$0xff] }
 0x194   : > { %3683 = vmatmul.msk.f32.gmra.mxu0 %vm7754_vm8, %v6005_v34  ;;  %2425 = vmatpush.msra.mxu2 %v3820_v18  ;;  %vm7756_vm8 = vcmp.eq.s32.totalorder %v5022_v63, 1  ;;  %v3740_v18 = vld [vmem:[%s7457_s3 + $0x798] sm:$0xff] }
 0x195   : > { %3659 = vmatmul.msk.f32.gmra.mxu3 %vm7755_vm13, %v6009_v21  ;;  %v6213_v20 = vpop.f32.mrf.mxu2  ;;  %vm7757_vm13 = vcmp.eq.s32.totalorder %v5026_v11, 1  ;;  %2219 = vmatpush.msra.mxu0 %v3762_v32  ;;  %v3796_v32 = vld [vmem:[%s7457_s3 + $0x8d8] sm:$0xff] }
 0x196   : > { %2135 = vmatpush.msra.mxu3 %v3740_v18  ;;  %2426 = vmatpush.msra.mxu2 %v3819_v27  ;;  %v6262_v63 = vpop.f32.mrf.mxu1  ;;  %v6266_v18 = vsel %vm4756_vm10, %v2361_v43, 0.0  ;;  %v6268_v12 = vpop.f32.mrf.mxu0  ;;  %v3737_v43 = vld [vmem:[%s7457_s3 + $0x780] sm:$0xff]  ;;  %v6284_v27 = vld [vmem:[#allocation2 + $0x18] sm:$0xff] }
 0x197   : > { %2220 = vmatpush.msra.mxu0 %v3761_v53  ;;  %2291 = vmatpush.msra.mxu1 %v3796_v32  ;;  %7761 = vst [vmem:[#allocation104_spill] sm:$0xff] %v6268_v12  ;;  %v3872_v53 = vld [vmem:[%s7457_s3 + $0xa78] sm:$0xff]  ;;  %v3871_v12 = vld [vmem:[%s7457_s3 + $0xa70] sm:$0xff] }
 0x198   : > { %2136 = vmatpush.msra.mxu3 %v3739_v57  ;;  %2427 = vmatpush.msra.mxu2 %v3818_v4  ;;  %v3817_v57 = vld [vmem:[%s7457_s3 + $0x940] sm:$0xff]  ;;  %2381 = vst [vmem:[#allocation2 + $0x18] sm:$0xff] %v6266_v18  ;;  %v7765_v32 = vld [vmem:[#allocation18_spill] sm:$0xff] }
 0x199   : > { %2585 = vmatpush.msrb.mxu0 %v3872_v53  ;;  %v7768_v53 = vld [vmem:[#allocation15_spill] sm:$0xff] }
 0x19a   : > { %3640 = vmatmul.msk.f32.gmra.mxu2 %vm7756_vm8, %v4730_v51  ;;  %vm7760_vm8 = vcmp.eq.s32.totalorder %v7759_v55, 1  ;;  %2137 = vmatpush.msra.mxu3 %v3738_v19  ;;  %v6286_v4 = vpop.f32.mrf.mxu3  ;;  %v2339_v19 = vld [vmem:[%s4716_s19 + $0x18] sm:$0xff]  ;;  %s7421_s19 = scalar_lea.vmem %s7461_s7, %s3381_s21  ;;  %s470_s21 = sadd.s32 %s3391_s24, %s4571_s23 }
 0x19b   : > { %3615 = vmatmul.msk.f32.gmra.mxu1 %vm7757_vm13, %v6137_v25  ;;  %vm7763_vm13 = vcmp.eq.s32.totalorder %v5210_v22, 1  ;;  %2428 = vmatpush.msra.mxu2 %v3817_v57  ;;  %s3392_s20 = sshll.u32 %s470_s21, 3 }
 0x19c   : > { %3684 = vmatmul.msk.f32.gmra.mxu0 %vm7758_vm11, %v6007_v9  ;;  %vm7762_vm11 = vcmp.eq.s32.totalorder %v5366_v40, 1  ;;  %2138 = vmatpush.msra.mxu3 %v3737_v43  ;;  %v3816_v40 = vld [vmem:[%s7457_s3 + $0x938] sm:$0xff]  ;;  %s472_s26 = scalar_lea.vmem %s7462_s8, %s3392_s20 }
 0x19d   : > { %3660 = vmatmul.msk.f32.gmra.mxu3 %vm7760_vm8, %v6032_v45  ;;  %v6270_v55 = vpop.f32.mrf.mxu2  ;;  %vm7764_vm8 = vcmp.eq.s32.totalorder %v5322_v44, 1  ;;  %v3794_v44 = vld [vmem:[%s7457_s3 + $0x8c8] sm:$0xff]  ;;  %2429 = vmatpush.msra.mxu2 %v3816_v40  ;;  %v3848_v40 = vld [vmem:[%s7457_s3 + $0x9f8] sm:$0xff] }
 0x19e   : > { %2586 = vmatpush.msrb.mxu0 %v3871_v12  ;;  %v6320_v43 = vpop.f32.mrf.mxu0  ;;  %2503 = vmatpush.msrb.mxu3 %v3848_v40 }
 0x1a2   : > { %3729 = vmatmul.msk.f32.vlgmr.msrb.gmra.mxu2 %vm7762_vm11, %v6106_v56  ;;  %v3795_v56 = vld [vmem:[%s7457_s3 + $0x8d0] sm:$0xff]  ;;  %vm7766_vm11 = vcmp.eq.s32.totalorder %v7765_v32, 1  ;;  %v2351_v32 = vmul.f32 %v5932_v38, %v2339_v19  ;;  %v3793_v38 = vld [vmem:[%s7457_s3 + $0x8c0] sm:$0xff]  ;;  %v3870_v19 = vld [vmem:[%s7457_s3 + $0xa68] sm:$0xff] }
 0x1a3   : > { %3616 = vmatmul.msk.f32.gmra.mxu1 %vm7763_vm13, %v6174_v31  ;;  %vm7767_vm13 = vcmp.eq.s32.totalorder %v5310_v37, 1  ;;  %2587 = vmatpush.msrb.mxu0 %v3870_v19  ;;  %v3792_v37 = vld [vmem:[%s7457_s3 + $0x8b8] sm:$0xff] }
 0x1a4   : > { %3685 = vmatmul.msk.f32.gmra.mxu0 %vm7764_vm8, %v6119_v23  ;;  %2292 = vmatpush.msra.mxu1 %v3795_v56  ;;  %v6315_v56 = vpop.f32.mrf.mxu1  ;;  %vm7769_vm8 = vcmp.eq.s32.totalorder %v7768_v53, 1  ;;  %v2363_v12 = vadd.f32 %v5969_v54, %v2351_v32  ;;  %v3814_v54 = vld [vmem:[%s7457_s3 + $0x928] sm:$0xff]  ;;  %v3847_v32 = vld [vmem:[%s7457_s3 + $0x9f0] sm:$0xff] }
 0x1a5   : > { %3661 = vmatmul.msk.f32.gmra.mxu3 %vm7766_vm11, %v6139_v59  ;;  %v6322_v57 = vpop.f32.mrf.mxu2  ;;  %vm7770_vm11 = vcmp.eq.s32.totalorder %v5342_v61, 1  ;;  %v6346_v61 = vpop.f32.mrf.mxu3  ;;  %v6713_v53 = vld [vmem:[#allocation2 + $0x17] sm:$0xff] }
 0x1a6   : > { %2293 = vmatpush.msra.mxu1 %v3794_v44  ;;  %v3815_v44 = vld [vmem:[%s7457_s3 + $0x930] sm:$0xff]  ;;  %2504 = vmatpush.msrb.mxu3 %v3847_v32  ;;  %v3846_v32 = vld [vmem:[%s7457_s3 + $0x9e8] sm:$0xff] }
 0x1a7   : > { %2430 = vmatpush.msra.mxu2 %v3815_v44  ;;  %v3869_v44 = vld [vmem:[%s7457_s3 + $0xa60] sm:$0xff] }
 0x1a8   : > { %2294 = vmatpush.msra.mxu1 %v3793_v38  ;;  %v6359_v38 = vsel %vm4756_vm10, %v2363_v12, 0.0  ;;  %vm7776_vm10 = vcmp.eq.s32.totalorder %v7775_v6, 1  ;;  %2588 = vmatpush.msrb.mxu0 %v3869_v44  ;;  %v3791_v12 = vld [vmem:[%s7457_s3 + $0x8b0] sm:$0xff]  ;;  %v3868_v44 = vld [vmem:[%s7457_s3 + $0xa58] sm:$0xff] }
 0x1a9   : > { %7773 = vst [vmem:[#allocation105_spill] sm:$0xff] %v6359_v38  ;;  %2431 = vmatpush.msra.mxu2 %v3814_v54  ;;  %v3813_v54 = vld [vmem:[%s7457_s3 + $0x920] sm:$0xff]  ;;  %2505 = vmatpush.msrb.mxu3 %v3846_v32 }
 0x1aa   : > { %3730 = vmatmul.msk.f32.gmra.mxu2 %vm7767_vm13, %v6009_v21  ;;  %2295 = vmatpush.msra.mxu1 %v3792_v37  ;;  %v6376_v37 = vld [vmem:[#allocation2 + $0x28] sm:$0xff] }
 0x1ab   : > { %3705 = vmatmul.msk.f32.vlgmr.msrb.gmra.mxu1 %vm7769_vm8, %v6111_v47  ;;  %v7771_v47 = vld [vmem:[#allocation30_spill] sm:$0xff]  ;;  %vm7774_vm8 = vcmp.eq.s32.totalorder %v5479_v14, 1  ;;  %2383 = vst [vmem:[#allocation2 + $0x28] sm:$0xff] %v6359_v38  ;;  %2432 = vmatpush.msra.mxu2 %v3813_v54  ;;  %v7781_v54 = vld [vmem:[#allocation17_spill] sm:$0xff] }
 0x1ac   : > { %3686 = vmatmul.msk.f32.gmra.mxu0 %vm7770_vm11, %v6137_v25  ;;  %vm7772_vm13 = vcmp.eq.s32.totalorder %v7771_v47, 1  ;;  %v6364_v40 = vpop.f32.mrf.mxu1  ;;  %v6371_v47 = vpop.f32.mrf.mxu0  ;;  %vm7777_vm11 = vcmp.eq.s32.totalorder %v5361_v2, 1  ;;  %2296 = vmatpush.msra.mxu1 %v3791_v12  ;;  %v3790_v2 = vld [vmem:[%s7457_s3 + $0x8a8] sm:$0xff]  ;;  %v3812_v14 = vld [vmem:[%s7457_s3 + $0x918] sm:$0xff]  ;;  %v3845_v12 = vld [vmem:[%s7457_s3 + $0x9e0] sm:$0xff] }
 0x1ad   : > { %3662 = vmatmul.msk.f32.gmra.mxu3 %vm7772_vm13, %v6141_v16  ;;  %v6369_v19 = vpop.f32.mrf.mxu2  ;;  %v6403_v6 = vpop.f32.mrf.mxu3  ;;  %2589 = vmatpush.msrb.mxu0 %v3868_v44  ;;  %v3844_v44 = vld [vmem:[%s7457_s3 + $0x9d8] sm:$0xff] }
 0x1ae   : > { %2297 = vmatpush.msra.mxu1 %v3790_v2  ;;  %2433 = vmatpush.msra.mxu2 %v3812_v14  ;;  %v3789_v14 = vld [vmem:[%s7457_s3 + $0x8a0] sm:$0xff] }
 0x1af   : > { %2506 = vmatpush.msrb.mxu3 %v3845_v12  ;;  %v3866_v12 = vld [vmem:[%s7457_s3 + $0xa48] sm:$0xff] }
 0x1b0   : > { %2298 = vmatpush.msra.mxu1 %v3789_v14  ;;  %v3843_v14 = vld [vmem:[%s7457_s3 + $0x9d0] sm:$0xff] }
 0x1b1   : > { %2507 = vmatpush.msrb.mxu3 %v3844_v44 }
 0x1b2   : > { %3731 = vmatmul.msk.f32.gmra.mxu2 %vm7774_vm8, %v6032_v45  ;;  %vm7780_vm8 = vcmp.eq.s32.totalorder %v5497_v58, 1 }
 0x1b3   : > { %3706 = vmatmul.msk.f32.gmra.mxu1 %vm7776_vm10, %v5924_v0  ;;  %v7778_v0 = vld [vmem:[#allocation26_spill] sm:$0xff]  ;;  %vm7782_vm10 = vcmp.eq.s32.totalorder %v7781_v54, 1  ;;  %2508 = vmatpush.msrb.mxu3 %v3843_v14 }
 0x1b4   : > { %3687 = vmatmul.msk.f32.gmra.mxu0 %vm7777_vm11, %v6174_v31  ;;  %vm7779_vm13 = vcmp.eq.s32.totalorder %v7778_v0, 1  ;;  %v3867_v0 = vld [vmem:[%s7457_s3 + $0xa50] sm:$0xff]  ;;  %v6419_v32 = vpop.f32.mrf.mxu1  ;;  %vm7783_vm11 = vcmp.eq.s32.totalorder %v5519_v60, 1  ;;  %v6424_v2 = vpop.f32.mrf.mxu0  ;;  %v3810_v60 = vld [vmem:[%s7457_s3 + $0x908] sm:$0xff]  ;;  %v3864_v54 = vld [vmem:[%s7457_s3 + $0xa38] sm:$0xff] }
 0x1b5   : > { %3663 = vmatmul.msk.f32.gmra.mxu3 %vm7779_vm13, %v6195_v39  ;;  %2590 = vmatpush.msrb.mxu0 %v3867_v0  ;;  %v6414_v38 = vpop.f32.mrf.mxu2  ;;  %vm7784_vm13 = vcmp.eq.s32.totalorder %v5257_v46, 1  ;;  %v3811_v0 = vld [vmem:[%s7457_s3 + $0x910] sm:$0xff]  ;;  %v6444_v58 = vpop.f32.mrf.mxu3  ;;  %v3788_v46 = vld [vmem:[%s7457_s3 + $0x898] sm:$0xff] }
 0x1b6   : > { %2434 = vmatpush.msra.mxu2 %v3811_v0  ;;  %2299 = vmatpush.msra.mxu1 %v3788_v46  ;;  %v3865_v0 = vld [vmem:[%s7457_s3 + $0xa40] sm:$0xff]  ;;  %v3787_v46 = vld [vmem:[%s7457_s3 + $0x890] sm:$0xff] }
 0x1b7   : > { %2591 = vmatpush.msrb.mxu0 %v3866_v12  ;;  %v7786_v12 = vld [vmem:[#allocation29_spill] sm:$0xff] }
 0x1b8   : > { %2435 = vmatpush.msra.mxu2 %v3810_v60  ;;  %v3809_v60 = vld [vmem:[%s7457_s3 + $0x900] sm:$0xff]  ;;  %2300 = vmatpush.msra.mxu1 %v3787_v46  ;;  %v3862_v46 = vld [vmem:[%s7457_s3 + $0xa28] sm:$0xff] }
 0x1b9   : > { %2592 = vmatpush.msrb.mxu0 %v3865_v0 }
 0x1ba   : > { %3732 = vmatmul.msk.f32.gmra.mxu2 %vm7780_vm8, %v6139_v59  ;;  %vm7785_vm8 = vcmp.eq.s32.totalorder %v5502_v33, 1  ;;  %v3842_v33 = vld [vmem:[%s7457_s3 + $0x9c8] sm:$0xff] }
 0x1bb   : > { %3707 = vmatmul.msk.f32.gmra.mxu1 %vm7782_vm10, %v5988_v5  ;;  %vm7787_vm10 = vcmp.eq.s32.totalorder %v7786_v12, 1  ;;  %2436 = vmatpush.msra.mxu2 %v3809_v60  ;;  %v3786_v60 = vld [vmem:[%s7457_s3 + $0x888] sm:$0xff] }
 0x1bc   : > { %3688 = vmatmul.msk.f32.gmra.mxu0 %vm7783_vm11, %v6227_v52  ;;  %vm7788_vm11 = vcmp.eq.s32.totalorder %v5470_v3, 1  ;;  %2509 = vmatpush.msrb.mxu3 %v3842_v33  ;;  %v3841_v3 = vld [vmem:[%s7457_s3 + $0x9c0] sm:$0xff]  ;;  %v3920_v33 = vld [vmem:[%s7457_s3 + $0xb78] sm:$0xff]  ;;  %v6667_v12 = vld [vmem:[#allocation2 + $0xf] sm:$0xff] }
 0x1bd   : > { %3664 = vmatmul.msk.f32.gmra.mxu3 %vm7784_vm13, %v6248_v8  ;;  %v6461_v44 = vpop.f32.mrf.mxu2  ;;  %vm7789_vm13 = vcmp.eq.s32.totalorder %v5047_v29, 1  ;;  %2593 = vmatpush.msrb.mxu0 %v3864_v54  ;;  %v3785_v54 = vld [vmem:[%s7457_s3 + $0x880] sm:$0xff] }
 0x1be   : > { %2301 = vmatpush.msra.mxu1 %v3786_v60  ;;  %2510 = vmatpush.msrb.mxu3 %v3841_v3  ;;  %v3840_v3 = vld [vmem:[%s7457_s3 + $0x9b8] sm:$0xff]  ;;  %v3919_v60 = vld [vmem:[%s7457_s3 + $0xb70] sm:$0xff] }
 0x1bf   : > { %2749 = vmatpush.msrb.mxu2 %v3920_v33  ;;  %v3839_v33 = vld [vmem:[%s7457_s3 + $0x9b0] sm:$0xff] }
 0x1c0   : > { %2302 = vmatpush.msra.mxu1 %v3785_v54  ;;  %2511 = vmatpush.msrb.mxu3 %v3840_v3  ;;  %v3918_v3 = vld [vmem:[%s7457_s3 + $0xb68] sm:$0xff] }
 0x1c1   : > { %2750 = vmatpush.msrb.mxu2 %v3919_v60  ;;  %v3838_v60 = vld [vmem:[%s7457_s3 + $0x9a8] sm:$0xff] }
 0x1c2   : > { %3733 = vmatmul.msk.f32.gmra.mxu2 %vm7785_vm8, %v6141_v16  ;;  %v6485_v14 = vpop.f32.mrf.mxu3  ;;  %vm7790_vm8 = vcmp.eq.s32.totalorder %v5689_v42, 1  ;;  %v7794_v42 = vld [vmem:[#allocation36_spill] sm:$0xff]  ;;  %2512 = vmatpush.msrb.mxu3 %v3839_v33  ;;  %v3860_v33 = vld [vmem:[%s7457_s3 + $0xa18] sm:$0xff] }
 0x1c3   : > { %3708 = vmatmul.msk.f32.gmra.mxu1 %vm7787_vm10, %v4721_v48  ;;  %v6481_v48 = vpop.f32.mrf.mxu1  ;;  %vm7792_vm10 = vcmp.eq.s32.totalorder %v5291_v13, 1  ;;  %2751 = vmatpush.msrb.mxu2 %v3918_v3  ;;  %v3894_v3 = vld [vmem:[%s7457_s3 + $0xae8] sm:$0xff] }
 0x1c4   : > { %3777 = vmatmul.msk.f32.vlgmr.msra.gmra.mxu0 %vm7788_vm11, %v6284_v27  ;;  %v6483_v27 = vpop.f32.mrf.mxu0  ;;  %vm7793_vm11 = vcmp.eq.s32.totalorder %v5640_v36, 1  ;;  %v3861_v36 = vld [vmem:[%s7457_s3 + $0xa20] sm:$0xff]  ;;  %2513 = vmatpush.msrb.mxu3 %v3838_v60  ;;  %v7801_v60 = vld [vmem:[#allocation44_spill] sm:$0xff] }
 0x1c5   : > { %3753 = vmatmul.msk.f32.vlgmr.msra.gmra.mxu3 %vm7789_vm13, %v5976_v15  ;;  %v3863_v15 = vld [vmem:[%s7457_s3 + $0xa30] sm:$0xff]  ;;  %v6505_v0 = vpop.f32.mrf.mxu2  ;;  %vm7795_vm13 = vcmp.eq.s32.totalorder %v7794_v42, 1 }
 0x1c6   : > { %7791 = vst [vmem:[#allocation106_spill] sm:$0xff] %v6505_v0  ;;  %2594 = vmatpush.msrb.mxu0 %v3863_v15 }
 0x1c8   : > { %2595 = vmatpush.msrb.mxu0 %v3862_v46  ;;  %v7796_v46 = vld [vmem:[#allocation34_spill] sm:$0xff] }
 0x1ca   : > { %3734 = vmatmul.msk.f32.gmra.mxu2 %vm7790_vm8, %v6195_v39  ;;  %v6538_v54 = vpop.f32.mrf.mxu3  ;;  %vm7797_vm8 = vcmp.eq.s32.totalorder %v7796_v46, 1  ;;  %2596 = vmatpush.msrb.mxu0 %v3861_v36  ;;  %v7799_v36 = vld [vmem:[#allocation47_spill] sm:$0xff] }
 0x1cb   : > { %3709 = vmatmul.msk.f32.gmra.mxu1 %vm7792_vm10, %v4724_v49  ;;  %v6525_v15 = vpop.f32.mrf.mxu1  ;;  %vm7798_vm10 = vcmp.eq.s32.totalorder %v5658_v28, 1 }
 0x1cc   : > { %3778 = vmatmul.msk.f32.gmra.mxu0 %vm7793_vm11, %v5988_v5  ;;  %v6527_v5 = vpop.f32.mrf.mxu0  ;;  %vm7800_vm11 = vcmp.eq.s32.totalorder %v7799_v36, 1  ;;  %v3837_v36 = vld [vmem:[%s7457_s3 + $0x9a0] sm:$0xff] }
 0x1cd   : > { %3754 = vmatmul.msk.f32.gmra.mxu3 %vm7795_vm13, %v6005_v34  ;;  %v3896_v34 = vld [vmem:[%s7457_s3 + $0xaf8] sm:$0xff]  ;;  %v6561_v42 = vpop.f32.mrf.mxu2  ;;  %2597 = vmatpush.msrb.mxu0 %v3860_v33  ;;  %vm7802_vm13 = vcmp.eq.s32.totalorder %v7801_v60, 1  ;;  %v7804_v60 = vld [vmem:[#allocation43_spill] sm:$0xff] }
 0x1ce   : > { %2667 = vmatpush.msrb.mxu1 %v3896_v34  ;;  %v6569_v34 = vld [vmem:[#allocation2 + $0x49] sm:$0xff]  ;;  %2514 = vmatpush.msrb.mxu3 %v3837_v36  ;;  %v3836_v36 = vld [vmem:[%s7457_s3 + $0x998] sm:$0xff] }
 0x1d0   : > { %2668 = vmatpush.msrb.mxu1 %v3895_v24  ;;  %v3916_v24 = vld [vmem:[%s7457_s3 + $0xb58] sm:$0xff]  ;;  %2515 = vmatpush.msrb.mxu3 %v3836_v36 }
 0x1d1   : > { %v3892_v36 = vld [vmem:[%s7457_s3 + $0xad8] sm:$0xff] }
 0x1d2   : > { %3735 = vmatmul.msk.f32.gmra.mxu2 %vm1140_vm15, %v6248_v8  ;;  %v6593_v33 = vpop.f32.mrf.mxu3  ;;  %2669 = vmatpush.msrb.mxu1 %v3894_v3  ;;  %v6615_v3 = vld [vmem:[#allocation2 + $0x4f] sm:$0xff] }
 0x1d3   : > { %3710 = vmatmul.msk.f32.gmra.mxu1 %vm7797_vm8, %v4727_v50  ;;  %v6571_v28 = vpop.f32.mrf.mxu1  ;;  %vm7803_vm8 = vcmp.eq.s32.totalorder %v5687_v26, 1  ;;  %v7806_v26 = vld [vmem:[#allocation5_spill] sm:$0xff] }
 0x1d4   : > { %3779 = vmatmul.msk.f32.gmra.mxu0 %vm7798_vm10, %v6376_v37  ;;  %v3917_v37 = vld [vmem:[%s7457_s3 + $0xb60] sm:$0xff]  ;;  %v6573_v46 = vpop.f32.mrf.mxu0  ;;  %vm7805_vm10 = vcmp.eq.s32.totalorder %v7804_v60, 1  ;;  %2387 = vst [vmem:[#allocation2 + $0x48] sm:$0xff] %v7806_v26  ;;  %2670 = vmatpush.msrb.mxu1 %v3893_v35  ;;  %v3835_v60 = vld [vmem:[%s7457_s3 + $0x990] sm:$0xff]  ;;  %v3914_v35 = vld [vmem:[%s7457_s3 + $0xb48] sm:$0xff] }
 0x1d5   : > { %3755 = vmatmul.msk.f32.gmra.mxu3 %vm7800_vm11, %v6007_v9  ;;  %2752 = vmatpush.msrb.mxu2 %v3917_v37  ;;  %v3859_v9 = vld [vmem:[%s7457_s3 + $0xa10] sm:$0xff]  ;;  %v3858_v37 = vld [vmem:[%s7457_s3 + $0xa08] sm:$0xff] }
 0x1d6   : > { %2598 = vmatpush.msrb.mxu0 %v3859_v9  ;;  %2516 = vmatpush.msrb.mxu3 %v3835_v60  ;;  %v3834_v60 = vld [vmem:[%s7457_s3 + $0x988] sm:$0xff]  ;;  %v7811_v26 = vld [vmem:[#allocation65_spill] sm:$0xff] }
 0x1d7   : > { %2753 = vmatpush.msrb.mxu2 %v3916_v24  ;;  %v3857_v24 = vld [vmem:[%s7457_s3 + $0xa00] sm:$0xff]  ;;  %2671 = vmatpush.msrb.mxu1 %v3892_v36 }
 0x1d8   : > { %2599 = vmatpush.msrb.mxu0 %v3858_v37  ;;  %v7808_v37 = vld [vmem:[#allocation4_spill] sm:$0xff]  ;;  %2517 = vmatpush.msrb.mxu3 %v3834_v60  ;;  %v3912_v60 = vld [vmem:[%s7457_s3 + $0xb38] sm:$0xff] }
 0x1d9   : > { %2672 = vmatpush.msrb.mxu1 %v3891_v30  ;;  %7816 = vst [vmem:[#allocation4_spill] sm:$0xff] %v6667_v12  ;;  %v7823_v30 = vld [vmem:[#allocation68_spill] sm:$0xff] }
 0x1da   : > { %3736 = vmatmul.msk.f32.gmra.mxu2 %vm1141_vm3, %v6569_v34  ;;  %2600 = vmatpush.msrb.mxu0 %v3857_v24  ;;  %v3968_v24 = vld [vmem:[%s7457_s3 + $0xc78] sm:$0xff]  ;;  %v6663_v36 = vpop.f32.mrf.mxu3 }
 0x1db   : > { %3711 = vmatmul.msk.f32.gmra.mxu1 %vm7802_vm13, %v4730_v51  ;;  %vm7812_vm13 = vcmp.eq.s32.totalorder %v7811_v26, 1  ;;  %v7815_v26 = vld [vmem:[#allocation77_spill] sm:$0xff] }
 0x1dc   : > { %3780 = vmatmul.msk.f32.gmra.mxu0 %vm7803_vm8, %v4724_v49  ;;  %v3915_v49 = vld [vmem:[%s7457_s3 + $0xb50] sm:$0xff]  ;;  %v755_v13 = vadd.f32 %v6143_v17, %v7815_v26 }
 0x1dd   : > { %v6607_v9 = vpop.f32.mrf.mxu2  ;;  %3756 = vmatmul.msk.f32.gmra.mxu3 %vm7805_vm10, %v6119_v23  ;;  %2754 = vmatpush.msrb.mxu2 %v3915_v49  ;;  %v6623_v23 = vpop.f32.mrf.mxu0  ;;  %v7809_v49 = vld [vmem:[#allocation46_spill] sm:$0xff]  ;;  %v3967_v26 = vld [vmem:[%s7457_s3 + $0xc70] sm:$0xff] }
 0x1de   : > { %7807 = vst [vmem:[#allocation107_spill] sm:$0xff] %v6623_v23  ;;  %vm7810_vm11 = vcmp.eq.s32.totalorder %v7809_v49, 1  ;;  %v7813_v49 = vld [vmem:[#allocation54_spill] sm:$0xff]  ;;  %2913 = vmatpush.msra.mxu0 %v3968_v24  ;;  %v872_v17 = vadd.f32 %v6149_v1, %v755_v13  ;;  %v7822_v13 = vld [vmem:[#allocation63_spill] sm:$0xff]  ;;  %v3966_v24 = vld [vmem:[%s7457_s3 + $0xc68] sm:$0xff] }
 0x1df   : > { %2755 = vmatpush.msrb.mxu2 %v3914_v35  ;;  %v3944_v1 = vld [vmem:[%s7457_s3 + $0xbf8] sm:$0xff] }
 0x1e0   : > { %v6618_v29 = vpop.f32.mrf.mxu1  ;;  %2914 = vmatpush.msra.mxu0 %v3967_v26 }
 0x1e2   : > { %3825 = vmatmul.msk.f32.vlgmr.msra.gmra.mxu2 %vm581_vm9, %v5863_v10  ;;  %v3913_v10 = vld [vmem:[%s7457_s3 + $0xb40] sm:$0xff]  ;;  %vm7814_vm9 = vcmp.eq.s32.totalorder %v7813_v49, 1  ;;  %2915 = vmatpush.msra.mxu0 %v3966_v24  ;;  %v3910_v24 = vld [vmem:[%s7457_s3 + $0xb28] sm:$0xff] }
 0x1e3   : > { %3712 = vmatmul.msk.f32.gmra.mxu1 %vm7810_vm11, %v7808_v37  ;;  %2756 = vmatpush.msrb.mxu2 %v3913_v10  ;;  %v7819_v10 = vld [vmem:[#allocation45_spill] sm:$0xff] }
 0x1e4   : > { %3781 = vmatmul.msk.f32.gmra.mxu0 %vm7812_vm13, %v4727_v50  ;;  %v3833_v50 = vld [vmem:[%s7457_s3 + $0x980] sm:$0xff]  ;;  %vm7820_vm8 = vcmp.eq.s32.totalorder %v7819_v10, 1 }
 0x1e5   : > { %v6655_v35 = vpop.f32.mrf.mxu2  ;;  %3757 = vmatmul.msk.f32.gmra.mxu3 %vm7814_vm9, %v6137_v25  ;;  %v3890_v25 = vld [vmem:[%s7457_s3 + $0xac8] sm:$0xff]  ;;  %2757 = vmatpush.msrb.mxu2 %v3912_v60  ;;  %v986_v60 = vadd.f32 %v6346_v61, %v872_v17  ;;  %v6715_v61 = vpop.f32.mrf.mxu3 }
 0x1e6   : > { %2518 = vmatpush.msrb.mxu3 %v3833_v50  ;;  %2673 = vmatpush.msrb.mxu1 %v3890_v25  ;;  %v3889_v50 = vld [vmem:[%s7457_s3 + $0xac0] sm:$0xff]  ;;  %v3911_v25 = vld [vmem:[%s7457_s3 + $0xb30] sm:$0xff] }
 0x1e7   : > { %2758 = vmatpush.msrb.mxu2 %v3911_v25  ;;  %v7831_v25 = vld [vmem:[#allocation74_spill] sm:$0xff] }
 0x1e8   : > { %v6669_v0 = vpop.f32.mrf.mxu1  ;;  %2674 = vmatpush.msrb.mxu1 %v3889_v50  ;;  %2831 = vmatpush.msra.mxu3 %v3944_v1  ;;  %v3943_v50 = vld [vmem:[%s7457_s3 + $0xbf0] sm:$0xff] }
 0x1e9   : > { %v6671_v49 = vpop.f32.mrf.mxu0  ;;  %2759 = vmatpush.msrb.mxu2 %v3910_v24 }
 0x1ea   : > { %7817 = vst [vmem:[#allocation77_spill] sm:$0xff] %v6671_v49  ;;  %3826 = vmatmul.msk.f32.gmra.mxu2 %vm582_vm7, %v6667_v12  ;;  %v7826_v12 = vld [vmem:[#allocation73_spill] sm:$0xff]  ;;  %2832 = vmatpush.msra.mxu3 %v3943_v50  ;;  %v3964_v50 = vld [vmem:[%s7457_s3 + $0xc58] sm:$0xff] }
 0x1eb   : > { %3801 = vmatmul.msk.f32.vlgmr.msra.gmra.mxu1 %vm7820_vm8, %v6009_v21  ;;  %v737_v21 = vadd.f32 %v7823_v30, %v7822_v13  ;;  %v7827_v13 = vld [vmem:[#allocation88_spill] sm:$0xff] }
 0x1ec   : > { %3782 = vmatmul.msk.f32.gmra.mxu0 %vm1367_vm0, %v4730_v51  ;;  %v7824_v51 = vld [vmem:[#allocation56_spill] sm:$0xff] }
 0x1ed   : > { %v6704_v10 = vpop.f32.mrf.mxu2  ;;  %vm7825_vm7 = vcmp.eq.s32.totalorder %v7824_v51, 1  ;;  %v866_v49 = vadd.f32 %v7826_v12, %v737_v21  ;;  %v1100_v51 = vadd.f32 %v6320_v43, %v986_v60  ;;  %v3888_v12 = vld [vmem:[%s7457_s3 + $0xab8] sm:$0xff]  ;;  %v7830_v43 = vld [vmem:[#allocation69_spill] sm:$0xff] }
 0x1ee   : > { %3758 = vmatmul.msk.f32.gmra.mxu3 %vm7825_vm7, %v6174_v31  ;;  %v7828_v31 = vld [vmem:[#allocation82_spill] sm:$0xff]  ;;  %2675 = vmatpush.msrb.mxu1 %v3888_v12  ;;  %v740_v1 = vadd.f32 %v7831_v25, %v7830_v43  ;;  %v3887_v12 = vld [vmem:[%s7457_s3 + $0xab0] sm:$0xff] }
 0x1ef   : > { %v980_v30 = vadd.f32 %v7827_v13, %v866_v49  ;;  %v758_v26 = vadd.f32 %v6210_v62, %v7828_v31  ;;  %v3965_v62 = vld [vmem:[%s7457_s3 + $0xc60] sm:$0xff]  ;;  %v1214_v60 = vadd.f32 %v6571_v28, %v1100_v51  ;;  %v7832_v13 = vld [vmem:[#allocation57_spill] sm:$0xff]  ;;  %v3942_v28 = vld [vmem:[%s7457_s3 + $0xbe8] sm:$0xff] }
 0x1f0   : > { %v6717_v17 = vpop.f32.mrf.mxu1  ;;  %vm7833_vm10 = vcmp.eq.s32.totalorder %v7832_v13, 1  ;;  %v7835_v51 = vld [vmem:[#allocation86_spill] sm:$0xff]  ;;  %2916 = vmatpush.msra.mxu0 %v3965_v62  ;;  %2676 = vmatpush.msrb.mxu1 %v3887_v12 }
 0x1f1   : > { %v1544_v23 = vpop.f32.mrf.mxu0  ;;  %v873_v21 = vadd.f32 %v6213_v20, %v758_v26  ;;  %v3909_v20 = vld [vmem:[%s7457_s3 + $0xb20] sm:$0xff]  ;;  %v7838_v49 = vld [vmem:[#allocation78_spill] sm:$0xff]  ;;  %2833 = vmatpush.msra.mxu3 %v3942_v28 }
 0x1f2   : > { %3827 = vmatmul.msk.f32.gmra.mxu2 %vm583_vm5, %v6713_v53  ;;  %v867_v43 = vadd.f32 %v7838_v49, %v740_v1  ;;  %2917 = vmatpush.msra.mxu0 %v3964_v50  ;;  %v3886_v1 = vld [vmem:[%s7457_s3 + $0xaa8] sm:$0xff]  ;;  %v7843_v49 = vld [vmem:[#allocation53_spill] sm:$0xff] }
 0x1f3   : > { %3802 = vmatmul.msk.f32.gmra.mxu1 %vm7833_vm10, %v6032_v45  ;;  %v1094_v45 = vadd.f32 %v7835_v51, %v980_v30  ;;  %v987_v26 = vadd.f32 %v6403_v6, %v873_v21  ;;  %2760 = vmatpush.msrb.mxu2 %v3909_v20  ;;  %v1328_v30 = vadd.f32 %v6561_v42, %v1214_v60  ;;  %v6770_v6 = vld [vmem:[#allocation2 + $0x1f] sm:$0xff]  ;;  %vm7844_vm11 = vcmp.eq.s32.totalorder %v7843_v49, 1 }
 0x1f4   : > { %3783 = vmatmul.msk.f32.gmra.mxu0 %vm1368_vm12, %v7808_v37  ;;  %v7836_v37 = vld [vmem:[#allocation55_spill] sm:$0xff]  ;;  %2677 = vmatpush.msrb.mxu1 %v3886_v1  ;;  %v3962_v1 = vld [vmem:[%s7457_s3 + $0xc48] sm:$0xff] }
 0x1f5   : > { %v6759_v24 = vpop.f32.mrf.mxu2  ;;  %vm7837_vm5 = vcmp.eq.s32.totalorder %v7836_v37, 1  ;;  %v1208_v25 = vadd.f32 %v6262_v63, %v1094_v45  ;;  %v1101_v31 = vadd.f32 %v6371_v47, %v987_v26  ;;  %v3908_v63 = vld [vmem:[%s7457_s3 + $0xb18] sm:$0xff]  ;;  %v3941_v42 = vld [vmem:[%s7457_s3 + $0xbe0] sm:$0xff]  ;;  %v3963_v47 = vld [vmem:[%s7457_s3 + $0xc50] sm:$0xff] }
 0x1f6   : > { %3759 = vmatmul.msk.f32.gmra.mxu3 %vm7837_vm5, %v6227_v52  ;;  %v7839_v52 = vld [vmem:[#allocation95_spill] sm:$0xff]  ;;  %2761 = vmatpush.msrb.mxu2 %v3908_v63  ;;  %v3906_v63 = vld [vmem:[%s7457_s3 + $0xb08] sm:$0xff]  ;;  %vm7876_vm5 = vcmp.eq.s32.totalorder %v5026_v11, 1  ;;  %v7880_v11 = vld [vmem:[#allocation97_spill] sm:$0xff] }
 0x1f7   : > { %v981_v62 = vadd.f32 %v7839_v52, %v867_v43  ;;  %v7840_v60 = vld [vmem:[#allocation75_spill] sm:$0xff]  ;;  %v1322_v26 = vadd.f32 %v6270_v55, %v1208_v25  ;;  %v1215_v50 = vadd.f32 %v6618_v29, %v1101_v31  ;;  %2834 = vmatpush.msra.mxu3 %v3941_v42  ;;  %v3907_v29 = vld [vmem:[%s7457_s3 + $0xb10] sm:$0xff]  ;;  %v7847_v55 = vld [vmem:[#allocation94_spill] sm:$0xff]  ;;  %2918 = vmatpush.msra.mxu0 %v3963_v47 }
 0x1f8   : > { %v1430_v21 = vpop.f32.mrf.mxu3  ;;  %v6772_v51 = vpop.f32.mrf.mxu1  ;;  %v7841_v20 = vld [vmem:[#allocation79_spill] sm:$0xff]  ;;  %2762 = vmatpush.msrb.mxu2 %v3907_v29  ;;  %v7850_v47 = vld [vmem:[#allocation100_spill] sm:$0xff] }
 0x1f9   : > { %v1442_v37 = vadd.f32 %v1430_v21, %v1328_v30  ;;  %v1547_v12 = vpop.f32.mrf.mxu0  ;;  %v743_v28 = vadd.f32 %v7841_v20, %v7840_v60  ;;  %v7845_v30 = vld [vmem:[#allocation92_spill] sm:$0xff]  ;;  %v3885_v52 = vld [vmem:[%s7457_s3 + $0xaa0] sm:$0xff]  ;;  %v1436_v31 = vadd.f32 %v6444_v58, %v1322_v26  ;;  %v1329_v60 = vadd.f32 %v6607_v9, %v1215_v50  ;;  %2919 = vmatpush.msra.mxu0 %v3962_v1  ;;  %v3939_v9 = vld [vmem:[%s7457_s3 + $0xbd0] sm:$0xff] }
 0x1fa   : > { %3828 = vmatmul.msk.f32.gmra.mxu2 %vm584_vm4, %v6770_v6  ;;  %2678 = vmatpush.msrb.mxu1 %v3885_v52  ;;  %v6828_v20 = vld [vmem:[#allocation2 + $0x27] sm:$0xff]  ;;  %v7852_v50 = vld [vmem:[#allocation85_spill] sm:$0xff] }
 0x1fb   : > { %3803 = vmatmul.msk.f32.gmra.mxu1 %vm7844_vm11, %v6139_v59  ;;  %v6798_v43 = vadd.f32 %v1544_v23, %v1442_v37  ;;  %v3940_v59 = vld [vmem:[%s7457_s3 + $0xbd8] sm:$0xff]  ;;  %v1095_v23 = vadd.f32 %v7847_v55, %v981_v62  ;;  %v7849_v62 = vld [vmem:[#allocation83_spill] sm:$0xff]  ;;  %2763 = vmatpush.msrb.mxu2 %v3906_v63  ;;  %v2552_v55 = vld [vmem:[#allocation2 + $0x9] sm:$0xff] }
 0x1fc   : > { %3784 = vmatmul.msk.f32.gmra.mxu0 %vm1369_vm1, %v7845_v30  ;;  %v868_v42 = vadd.f32 %v7849_v62, %v743_v28  ;;  %2835 = vmatpush.msra.mxu3 %v3940_v59  ;;  %v1550_v30 = vadd.f32 %v6424_v2, %v1436_v31  ;;  %v7851_v28 = vld [vmem:[#allocation81_spill] sm:$0xff]  ;;  %v2470_v1 = vld [vmem:[#allocation2 + $0x8] sm:$0xff]  ;;  %v3961_v2 = vld [vmem:[%s7457_s3 + $0xc40] sm:$0xff] }
 0x1fd   : > { %v6814_v37 = vpop.f32.mrf.mxu2  ;;  %v1209_v58 = vadd.f32 %v6315_v56, %v1095_v23  ;;  %v3884_v56 = vld [vmem:[%s7457_s3 + $0xa98] sm:$0xff]  ;;  %v746_v59 = vadd.f32 %v7852_v50, %v7851_v28  ;;  %v7853_v23 = vld [vmem:[#allocation21_spill] sm:$0xff]  ;;  %v3905_v31 = vld [vmem:[%s7457_s3 + $0xb00] sm:$0xff]  ;;  %2920 = vmatpush.msra.mxu0 %v3961_v2 }
 0x1fe   : > { %3760 = vmatmul.msk.f32.gmra.mxu3 %vm1255_vm6, %v6615_v3  ;;  %v982_v26 = vadd.f32 %v7850_v47, %v868_v42  ;;  %vm7854_vm4 = vcmp.eq.s32.totalorder %v7853_v23, 1  ;;  %2679 = vmatpush.msrb.mxu1 %v3884_v56  ;;  %v1672_v62 = vadd.f32 %v6669_v0, %v1550_v30  ;;  %v7855_v42 = vld [vmem:[#allocation64_spill] sm:$0xff]  ;;  %v3883_v47 = vld [vmem:[%s7457_s3 + $0xa90] sm:$0xff]  ;;  %v3960_v0 = vld [vmem:[%s7457_s3 + $0xc38] sm:$0xff] }
 0x1ff   : > { %v1323_v63 = vadd.f32 %v6322_v57, %v1209_v58  ;;  %vm7856_vm13 = vcmp.eq.s32.totalorder %v7855_v42, 1  ;;  %2836 = vmatpush.msra.mxu3 %v3939_v9  ;;  %2764 = vmatpush.msrb.mxu2 %v3905_v31  ;;  %v3938_v57 = vld [vmem:[%s7457_s3 + $0xbc8] sm:$0xff]  ;;  %v6882_v23 = vld [vmem:[#allocation2 + $0x11] sm:$0xff]  ;;  %v7862_v2 = vld [vmem:[#allocation103_spill] sm:$0xff] }
 0x200   : > { %v1433_v3 = vpop.f32.mrf.mxu3  ;;  %v6830_v45 = vpop.f32.mrf.mxu1  ;;  %2680 = vmatpush.msrb.mxu1 %v3883_v47  ;;  %v1754_v28 = vadd.f32 %v6655_v35, %v1672_v62  ;;  %v6878_v50 = vld [vmem:[#allocation2 + $0x2f] sm:$0xff]  ;;  %2921 = vmatpush.msra.mxu0 %v3960_v0  ;;  %v3937_v35 = vld [vmem:[%s7457_s3 + $0xbc0] sm:$0xff] }
 0x201   : > { %v1443_v52 = vadd.f32 %v1433_v3, %v1329_v60  ;;  %v1894_v29 = vpop.f32.mrf.mxu0  ;;  %v1437_v58 = vadd.f32 %v6485_v14, %v1323_v63  ;;  %2837 = vmatpush.msra.mxu3 %v3938_v57  ;;  %v3959_v62 = vld [vmem:[%s7457_s3 + $0xc30] sm:$0xff]  ;;  %v6898_v3 = vld [vmem:[%s7457_s3 + $0xd78] sm:$0xff]  ;;  %v7863_v47 = vld [vmem:[#allocation32_spill] sm:$0xff] }
 0x202   : > { %3829 = vmatmul.msk.f32.gmra.mxu2 %vm7854_vm4, %v6828_v20  ;;  %vm7864_vm9 = vcmp.eq.s32.totalorder %v7863_v47, 1  ;;  %2922 = vmatpush.msra.mxu0 %v3959_v62 }
 0x203   : > { %3804 = vmatmul.msk.f32.gmra.mxu1 %vm7856_vm13, %v6141_v16  ;;  %v6856_v60 = vadd.f32 %v1547_v12, %v1443_v52  ;;  %v7858_v16 = vld [vmem:[#allocation98_spill] sm:$0xff]  ;;  %v7859_v52 = vld [vmem:[#allocation8_spill] sm:$0xff]  ;;  %2838 = vmatpush.msra.mxu3 %v3937_v35 }
 0x204   : > { %3873 = vmatmul.msk.f32.vlgmr.msrb.gmra.mxu0 %vm792_vm14, %v2552_v55  ;;  %v1096_v12 = vadd.f32 %v7858_v16, %v982_v26  ;;  %vm7860_vm14 = vcmp.eq.s32.totalorder %v7859_v52, 1  ;;  %v7861_v55 = vld [vmem:[#allocation90_spill] sm:$0xff]  ;;  %v7865_v16 = vld [vmem:[#allocation67_spill] sm:$0xff]  ;;  %v7868_v52 = vld [vmem:[#allocation93_spill] sm:$0xff]  ;;  %3077 = vmatpush.msra.mxu2 %v6898_v3 }
 0x205   : > { %v6871_v30 = vpop.f32.mrf.mxu2  ;;  %v869_v56 = vadd.f32 %v7861_v55, %v746_v59  ;;  %v1551_v59 = vadd.f32 %v6483_v27, %v1437_v58  ;;  %v3881_v27 = vld [vmem:[%s7457_s3 + $0xa80] sm:$0xff]  ;;  %vm7866_vm8 = vcmp.eq.s32.totalorder %v7865_v16, 1  ;;  %v7867_v58 = vld [vmem:[#allocation66_spill] sm:$0xff] }
 0x206   : > { %3849 = vmatmul.msk.f32.vlgmr.msrb.gmra.mxu3 %vm7860_vm14, %v2470_v1  ;;  %v1210_v9 = vadd.f32 %v6364_v40, %v1096_v12  ;;  %v3882_v1 = vld [vmem:[%s7457_s3 + $0xa88] sm:$0xff]  ;;  %v749_v55 = vadd.f32 %v7868_v52, %v7867_v58  ;;  %v6939_v35 = vld [vmem:[#allocation2 + $0x37] sm:$0xff]  ;;  %vm7886_vm14 = vcmp.eq.s32.totalorder %v5210_v22, 1 }
 0x207   : > { %v983_v31 = vadd.f32 %v7862_v2, %v869_v56  ;;  %2681 = vmatpush.msrb.mxu1 %v3882_v1  ;;  %v1673_v0 = vadd.f32 %v6717_v17, %v1551_v59  ;;  %v7869_v56 = vld [vmem:[#allocation3_spill] sm:$0xff]  ;;  %v6928_v17 = vld [vmem:[%s7457_s3 + $0xd70] sm:$0xff]  ;;  %v7889_v22 = vld [vmem:[#allocation14_spill] sm:$0xff] }
 0x208   : > { %v6880_v26 = vpop.f32.mrf.mxu1  ;;  %v1812_v14 = vpop.f32.mrf.mxu3  ;;  %v1324_v57 = vadd.f32 %v6369_v19, %v1210_v9  ;;  %vm7870_vm7 = vcmp.eq.s32.totalorder %v7869_v56, 1  ;;  %v3936_v19 = vld [vmem:[%s7457_s3 + $0xbb8] sm:$0xff]  ;;  %v7872_v1 = vld [vmem:[#allocation99_spill] sm:$0xff]  ;;  %3078 = vmatpush.msra.mxu2 %v6928_v17 }
 0x209   : > { %v1836_v63 = vadd.f32 %v1812_v14, %v1754_v28  ;;  %v1897_v40 = vpop.f32.mrf.mxu0  ;;  %v7873_v2 = vld [vmem:[#allocation7_spill] sm:$0xff]  ;;  %2682 = vmatpush.msrb.mxu1 %v3881_v27  ;;  %2839 = vmatpush.msra.mxu3 %v3936_v19 }
 0x20a   : > { %3830 = vmatmul.msk.f32.gmra.mxu2 %vm7864_vm9, %v6878_v50  ;;  %v1438_v28 = vadd.f32 %v6538_v54, %v1324_v57  ;;  %vm7874_vm10 = vcmp.eq.s32.totalorder %v7873_v2, 1  ;;  %v6945_v57 = vld [vmem:[#allocation2 + $0x19] sm:$0xff]  ;;  %v7883_v2 = vld [vmem:[#allocation13_spill] sm:$0xff] }
 0x20b   : > { %3805 = vmatmul.msk.f32.gmra.mxu1 %vm7866_vm8, %v6195_v39  ;;  %v6911_v12 = vadd.f32 %v1894_v29, %v1836_v63  ;;  %v3958_v39 = vld [vmem:[%s7457_s3 + $0xc28] sm:$0xff]  ;;  %v7871_v29 = vld [vmem:[#allocation102_spill] sm:$0xff]  ;;  %v1755_v63 = vadd.f32 %v6704_v10, %v1673_v0  ;;  %v3957_v10 = vld [vmem:[%s7457_s3 + $0xc20] sm:$0xff]  ;;  %vm7884_vm13 = vcmp.eq.s32.totalorder %v7883_v2, 1  ;;  %vm7890_vm8 = vcmp.eq.s32.totalorder %v7889_v22, 1 }
 0x20c   : > { %3874 = vmatmul.msk.f32.gmra.mxu0 %vm7870_vm7, %v6882_v23  ;;  %v1097_v9 = vadd.f32 %v7871_v29, %v983_v31  ;;  %v7875_v31 = vld [vmem:[#allocation96_spill] sm:$0xff]  ;;  %v1552_v58 = vadd.f32 %v6527_v5, %v1438_v28  ;;  %v6957_v0 = vld [vmem:[%s7457_s3 + $0xcf8] sm:$0xff]  ;;  %v7068_v2 = vld [vmem:[%s7457_s3 + $0xd50] sm:$0xff] }
 0x20d   : > { %v6932_v14 = vpop.f32.mrf.mxu2  ;;  %2923 = vmatpush.msra.mxu0 %v3958_v39  ;;  %v870_v62 = vadd.f32 %v7875_v31, %v749_v55  ;;  %v6966_v5 = vld [vmem:[%s7457_s3 + $0xd68] sm:$0xff]  ;;  %4045 = vmatpush.msra.mxu1 %v6957_v0  ;;  %v7894_v22 = vld [vmem:[#allocation15_spill] sm:$0xff] }
 0x20e   : > { %3850 = vmatmul.msk.f32.gmra.mxu3 %vm7874_vm10, %v7872_v1  ;;  %v1211_v59 = vadd.f32 %v6419_v32, %v1097_v9  ;;  %v3935_v32 = vld [vmem:[%s7457_s3 + $0xbb0] sm:$0xff]  ;;  %v1674_v19 = vadd.f32 %v6772_v51, %v1552_v58  ;;  %v7877_v39 = vld [vmem:[#allocation80_spill] sm:$0xff]  ;;  %3079 = vmatpush.msra.mxu2 %v6966_v5 }
 0x20f   : > { %v984_v55 = vadd.f32 %v6217_v7, %v870_v62  ;;  %2840 = vmatpush.msra.mxu3 %v3935_v32  ;;  %vm7878_vm11 = vcmp.eq.s32.totalorder %v7877_v39, 1  ;;  %2924 = vmatpush.msra.mxu0 %v3957_v10  ;;  %v7879_v7 = vld [vmem:[#allocation72_spill] sm:$0xff]  ;;  %v6990_v51 = vld [vmem:[%s7457_s3 + $0xcf0] sm:$0xff]  ;;  %v7004_v62 = vld [vmem:[#allocation2 + $0x3f] sm:$0xff] }
 0x210   : > { %v6943_v54 = vpop.f32.mrf.mxu1  ;;  %v1815_v47 = vpop.f32.mrf.mxu3  ;;  %v1325_v56 = vadd.f32 %v6414_v38, %v1211_v59  ;;  %v752_v9 = vadd.f32 %v7880_v11, %v7879_v7  ;;  %v7881_v28 = vld [vmem:[#allocation16_spill] sm:$0xff]  ;;  %v7000_v59 = vld [vmem:[%s7457_s3 + $0xd60] sm:$0xff]  ;;  %v1756_v31 = vadd.f32 %v6759_v24, %v1674_v19  ;;  %4046 = vmatpush.msra.mxu1 %v6990_v51  ;;  %v3955_v7 = vld [vmem:[%s7457_s3 + $0xc10] sm:$0xff] }
 0x211   : > { %v1837_v27 = vadd.f32 %v1815_v47, %v1755_v63  ;;  %v1900_v52 = vpop.f32.mrf.mxu0  ;;  %vm7882_vm4 = vcmp.eq.s32.totalorder %v7881_v28, 1  ;;  %v3934_v38 = vld [vmem:[%s7457_s3 + $0xba8] sm:$0xff]  ;;  %v1098_v63 = vadd.f32 %v6215_v41, %v984_v55  ;;  %3080 = vmatpush.msra.mxu2 %v7000_v59  ;;  %v3933_v19 = vld [vmem:[%s7457_s3 + $0xba0] sm:$0xff] }
 0x212   : > { %3831 = vmatmul.msk.f32.gmra.mxu2 %vm7876_vm5, %v6939_v35  ;;  %2841 = vmatpush.msra.mxu3 %v3934_v38  ;;  %v7010_v10 = vld [vmem:[#allocation2 + $0x21] sm:$0xff] }
 0x213   : > { %3806 = vmatmul.msk.f32.gmra.mxu1 %vm7878_vm11, %v6248_v8  ;;  %v6973_v29 = vadd.f32 %v1897_v40, %v1837_v27  ;;  %v3956_v8 = vld [vmem:[%s7457_s3 + $0xc18] sm:$0xff]  ;;  %v1439_v40 = vadd.f32 %v6593_v33, %v1325_v56  ;;  %v7885_v33 = vld [vmem:[#allocation101_spill] sm:$0xff]  ;;  %v1212_v58 = vadd.f32 %v6481_v48, %v1098_v63  ;;  %v7023_v48 = vld [vmem:[%s7457_s3 + $0xce8] sm:$0xff] }
 0x214   : > { %3875 = vmatmul.msk.f32.gmra.mxu0 %vm7882_vm4, %v6945_v57  ;;  %v871_v47 = vadd.f32 %v7885_v33, %v752_v9  ;;  %2842 = vmatpush.msra.mxu3 %v3933_v19  ;;  %v7887_v28 = vld [vmem:[#allocation84_spill] sm:$0xff] }
 0x215   : > { %v1748_v1 = vpop.f32.mrf.mxu2  ;;  %2925 = vmatpush.msra.mxu0 %v3956_v8  ;;  %v1553_v41 = vadd.f32 %v6573_v46, %v1439_v40  ;;  %v1326_v46 = vadd.f32 %v6461_v44, %v1212_v58  ;;  %vm7888_vm9 = vcmp.eq.s32.totalorder %v7887_v28, 1  ;;  %4047 = vmatpush.msra.mxu1 %v7023_v48  ;;  %v3932_v44 = vld [vmem:[%s7457_s3 + $0xb98] sm:$0xff]  ;;  %v7059_v40 = vld [vmem:[#allocation2 + $0x20] sm:$0xff]  ;;  %v7892_v63 = vld [vmem:[#allocation104_spill] sm:$0xff] }
 0x216   : > { %3851 = vmatmul.msk.f32.gmra.mxu3 %vm7884_vm13, %v6266_v18  ;;  %v985_v11 = vadd.f32 %v6286_v4, %v871_v47  ;;  %v7074_v58 = vld [vmem:[#allocation2 + $0x51] sm:$0xff] }
 0x217   : > { %v1675_v9 = vadd.f32 %v6830_v45, %v1553_v41  ;;  %2926 = vmatpush.msra.mxu0 %v3955_v7  ;;  %v3954_v45 = vld [vmem:[%s7457_s3 + $0xc08] sm:$0xff]  ;;  %2843 = vmatpush.msra.mxu3 %v3932_v44  ;;  %v7896_v44 = vld [vmem:[#allocation89_spill] sm:$0xff] }
 0x218   : > { %v1666_v27 = vpop.f32.mrf.mxu1  ;;  %v1818_v32 = vpop.f32.mrf.mxu3  ;;  %vm7897_vm7 = vcmp.eq.s32.totalorder %v7896_v44, 1 }
 0x219   : > { %v1678_v55 = vadd.f32 %v1666_v27, %v6798_v43  ;;  %v1838_v56 = vadd.f32 %v1818_v32, %v1756_v31  ;;  %v1903_v24 = vpop.f32.mrf.mxu0  ;;  %v7033_v43 = vld [vmem:[%s7457_s3 + $0xd58] sm:$0xff]  ;;  %2927 = vmatpush.msra.mxu0 %v3954_v45  ;;  %v1099_v31 = vadd.f32 %v7892_v63, %v985_v11  ;;  %v7076_v27 = vld [vmem:[#allocation2 + $0x29] sm:$0xff]  ;;  %v3953_v11 = vld [vmem:[%s7457_s3 + $0xc00] sm:$0xff] }
 0x21a   : > { %3832 = vmatmul.msk.f32.gmra.mxu2 %vm7886_vm14, %v7004_v62  ;;  %v3931_v32 = vld [vmem:[%s7457_s3 + $0xb90] sm:$0xff]  ;;  %v7898_v63 = vld [vmem:[#allocation18_spill] sm:$0xff] }
 0x21b   : > { %3807 = vmatmul.msk.f32.gmra.mxu1 %vm7888_vm9, %v6569_v34  ;;  %v7039_v38 = vadd.f32 %v1748_v1, %v1678_v55  ;;  %v7041_v4 = vadd.f32 %v1900_v52, %v1838_v56  ;;  %v7056_v34 = vld [vmem:[%s7457_s3 + $0xce0] sm:$0xff]  ;;  %v1440_v52 = vadd.f32 %v6663_v36, %v1326_v46  ;;  %3081 = vmatpush.msra.mxu2 %v7033_v43  ;;  %v3988_v46 = vld [vmem:[%s7457_s3 + $0xcd8] sm:$0xff]  ;;  %v3930_v1 = vld [vmem:[%s7457_s3 + $0xb88] sm:$0xff]  ;;  %vm7899_vm10 = vcmp.eq.s32.totalorder %v7898_v63, 1 }
 0x21c   : > { %3876 = vmatmul.msk.f32.gmra.mxu0 %vm7890_vm8, %v7010_v10  ;;  %v1757_v36 = vadd.f32 %v6814_v37, %v1675_v9  ;;  %4048 = vmatpush.msra.mxu1 %v7056_v34  ;;  %v1213_v41 = vadd.f32 %v6525_v15, %v1099_v31  ;;  %v7893_v55 = vld [vmem:[#allocation107_spill] sm:$0xff]  ;;  %v7093_v9 = vld [vmem:[%s7457_s3 + $0xd48] sm:$0xff]  ;;  %v4201_v15 = vld [vmem:[#allocation2 + $0x10] sm:$0xff] }
 0x21d   : > { %v1751_v8 = vpop.f32.mrf.mxu2  ;;  %3082 = vmatpush.msra.mxu2 %v7068_v2  ;;  %v1554_v56 = vadd.f32 %v7893_v55, %v1440_v52  ;;  %2844 = vmatpush.msra.mxu3 %v3931_v32  ;;  %v3929_v32 = vld [vmem:[%s7457_s3 + $0xb80] sm:$0xff]  ;;  %v7908_v63 = vld [vmem:[#allocation28_spill] sm:$0xff] }
 0x21e   : > { %3852 = vmatmul.msk.f32.gmra.mxu3 %vm648_vm2, %v7059_v40  ;;  %vm7895_vm2 = vcmp.eq.s32.totalorder %v7894_v22, 1  ;;  %2928 = vmatpush.msra.mxu0 %v3953_v11  ;;  %vm7909_vm4 = vcmp.eq.s32.totalorder %v7908_v63, 1 }
 0x21f   : > { %3083 = vmatpush.msra.mxu2 %v7093_v9  ;;  %4049 = vmatpush.msra.mxu1 %v3988_v46 }
 0x220   : > { %v1669_v33 = vpop.f32.mrf.mxu1  ;;  %v1821_v47 = vpop.f32.mrf.mxu3  ;;  %2995 = vmatpush.msrb.mxu0 %v6957_v0  ;;  %2845 = vmatpush.msra.mxu3 %v3930_v1  ;;  %v7137_v1 = vld [vmem:[#allocation2 + $0x31] sm:$0xff] }
 0x221   : > { %v1679_v37 = vadd.f32 %v1669_v33, %v6856_v60  ;;  %v1839_v19 = vadd.f32 %v1821_v47, %v1757_v36  ;;  %v1906_v7 = vpop.f32.mrf.mxu0  ;;  %v1676_v60 = vadd.f32 %v6880_v26, %v1554_v56  ;;  %v7115_v26 = vld [vmem:[%s7457_s3 + $0xcd0] sm:$0xff]  ;;  %v7902_v47 = vld [vmem:[#allocation10_spill] sm:$0xff] }
 0x222   : > { %3921 = vmatmul.msk.f32.vlgmr.msrb.gmra.mxu2 %vm7895_vm2, %v4201_v15  ;;  %v7901_v33 = vld [vmem:[#allocation105_spill] sm:$0xff]  ;;  %vm7903_vm5 = vcmp.eq.s32.totalorder %v7902_v47, 1  ;;  %4050 = vmatpush.msra.mxu1 %v7115_v26 }
 0x223   : > { %3808 = vmatmul.msk.f32.gmra.mxu1 %vm7897_vm7, %v7074_v58  ;;  %v7101_v45 = vadd.f32 %v1751_v8, %v1679_v37  ;;  %v7103_v52 = vadd.f32 %v1903_v24, %v1839_v19  ;;  %v7120_v24 = vld [vmem:[%s7457_s3 + $0xd40] sm:$0xff]  ;;  %v7900_v8 = vld [vmem:[#allocation106_spill] sm:$0xff]  ;;  %v1758_v56 = vadd.f32 %v6871_v30, %v1676_v60  ;;  %2996 = vmatpush.msrb.mxu0 %v6990_v51  ;;  %v7904_v19 = vld [vmem:[#allocation77_spill] sm:$0xff] }
 0x224   : > { %3877 = vmatmul.msk.f32.gmra.mxu0 %vm7899_vm10, %v7076_v27  ;;  %v1327_v31 = vadd.f32 %v7900_v8, %v1213_v41  ;;  %3084 = vmatpush.msra.mxu2 %v7120_v24  ;;  %v7145_v30 = vld [vmem:[%s7457_s3 + $0xd38] sm:$0xff]  ;;  %v7905_v51 = vld [vmem:[#allocation27_spill] sm:$0xff]  ;;  %v7907_v60 = vld [vmem:[#allocation4_spill] sm:$0xff] }
 0x225   : > { %v2058_v36 = vpop.f32.mrf.mxu2  ;;  %2846 = vmatpush.msra.mxu3 %v3929_v32  ;;  %2997 = vmatpush.msrb.mxu0 %v7023_v48  ;;  %vm7906_vm11 = vcmp.eq.s32.totalorder %v7905_v51, 1  ;;  %v7910_v48 = vld [vmem:[#allocation30_spill] sm:$0xff] }
 0x226   : > { %3853 = vmatmul.msk.f32.gmra.mxu3 %vm7903_vm5, %v7901_v33  ;;  %v1441_v55 = vadd.f32 %v6715_v61, %v1327_v31  ;;  %v3986_v61 = vld [vmem:[%s7457_s3 + $0xcc8] sm:$0xff]  ;;  %3085 = vmatpush.msra.mxu2 %v7145_v30  ;;  %vm7911_vm13 = vcmp.eq.s32.totalorder %v7910_v48, 1 }
 0x227   : > { %4061 = vmatpush.msrb.mxu3 %v6898_v3  ;;  %4051 = vmatpush.msra.mxu1 %v3986_v61  ;;  %v7172_v3 = vld [vmem:[%s7457_s3 + $0xd30] sm:$0xff]  ;;  %v7227_v48 = vld [vmem:[#allocation2 + $0x41] sm:$0xff] }
 0x228   : > { %v1824_v41 = vpop.f32.mrf.mxu3  ;;  %v1976_v37 = vpop.f32.mrf.mxu1  ;;  %v1555_v11 = vadd.f32 %v7904_v19, %v1441_v55  ;;  %3086 = vmatpush.msra.mxu2 %v7172_v3  ;;  %2998 = vmatpush.msrb.mxu0 %v7056_v34  ;;  %v3984_v19 = vld [vmem:[%s7457_s3 + $0xcb8] sm:$0xff]  ;;  %v7194_v34 = vld [vmem:[%s7457_s3 + $0xd28] sm:$0xff] }
 0x229   : > { %v1840_v15 = vadd.f32 %v1824_v41, %v1758_v56  ;;  %v2000_v22 = vadd.f32 %v1976_v37, %v6911_v12  ;;  %v1909_v0 = vpop.f32.mrf.mxu0  ;;  %4062 = vmatpush.msrb.mxu3 %v6928_v17  ;;  %v7186_v37 = vld [vmem:[#allocation2 + $0x39] sm:$0xff] }
 0x22a   : > { %3922 = vmatmul.msk.f32.gmra.mxu2 %vm7906_vm11, %v6266_v18  ;;  %v1677_v12 = vadd.f32 %v6943_v54, %v1555_v11  ;;  %v7167_v18 = vld [vmem:[%s7457_s3 + $0xcc0] sm:$0xff]  ;;  %2999 = vmatpush.msrb.mxu0 %v3988_v46  ;;  %v7918_v11 = vld [vmem:[#allocation26_spill] sm:$0xff] }
 0x22b   : > { %3897 = vmatmul.msk.f32.vlgmr.msrb.gmra.mxu1 %vm7909_vm4, %v7907_v60  ;;  %v7156_v8 = vadd.f32 %v1906_v7, %v1840_v15  ;;  %v7158_v31 = vadd.f32 %v2058_v36, %v2000_v22  ;;  %v7175_v7 = vld [vmem:[#allocation2 + $0x30] sm:$0xff]  ;;  %v7912_v36 = vld [vmem:[#allocation6_spill] sm:$0xff]  ;;  %4063 = vmatpush.msrb.mxu3 %v6966_v5  ;;  %v7916_v5 = vld [vmem:[#allocation23_spill] sm:$0xff]  ;;  %vm7919_vm2 = vcmp.eq.s32.totalorder %v7918_v11, 1 }
 0x22c   : > { %3878 = vmatmul.msk.f32.gmra.mxu0 %vm7911_vm13, %v7137_v1  ;;  %vm7913_vm14 = vcmp.eq.s32.totalorder %v7912_v36, 1  ;;  %4052 = vmatpush.msra.mxu1 %v7167_v18  ;;  %v1759_v47 = vadd.f32 %v6932_v14, %v1677_v12  ;;  %v7914_v14 = vld [vmem:[#allocation17_spill] sm:$0xff]  ;;  %vm7917_vm8 = vcmp.eq.s32.totalorder %v7916_v5, 1  ;;  %v7218_v22 = vld [vmem:[#allocation2 + $0x38] sm:$0xff]  ;;  %v7926_v36 = vld [vmem:[#allocation35_spill] sm:$0xff] }
 0x22d   : > { %v2061_v54 = vpop.f32.mrf.mxu2  ;;  %4064 = vmatpush.msrb.mxu3 %v7000_v59  ;;  %vm7915_vm9 = vcmp.eq.s32.totalorder %v7914_v14, 1  ;;  %3087 = vmatpush.msra.mxu2 %v7194_v34  ;;  %v3983_v59 = vld [vmem:[%s7457_s3 + $0xcb0] sm:$0xff]  ;;  %vm7927_vm11 = vcmp.eq.s32.totalorder %v7926_v36, 1  ;;  %v3980_v11 = vld [vmem:[%s7457_s3 + $0xc98] sm:$0xff] }
 0x22e   : > { %3854 = vmatmul.msk.f32.gmra.mxu3 %vm7913_vm14, %v7175_v7  ;;  %4053 = vmatpush.msra.mxu1 %v3984_v19 }
 0x22f   : > { %4065 = vmatpush.msrb.mxu3 %v7033_v43  ;;  %3000 = vmatpush.msrb.mxu0 %v7115_v26  ;;  %v4004_v26 = vld [vmem:[%s7457_s3 + $0xd18] sm:$0xff] }
 0x230   : > { %v1827_v32 = vpop.f32.mrf.mxu3  ;;  %v1979_v55 = vpop.f32.mrf.mxu1  ;;  %4054 = vmatpush.msra.mxu1 %v3983_v59 }
 0x231   : > { %v1841_v17 = vadd.f32 %v1827_v32, %v1759_v47  ;;  %v2001_v56 = vadd.f32 %v1979_v55, %v6973_v29  ;;  %v1912_v41 = vpop.f32.mrf.mxu0  ;;  %4066 = vmatpush.msrb.mxu3 %v7068_v2  ;;  %3001 = vmatpush.msrb.mxu0 %v3986_v61  ;;  %v7922_v2 = vld [vmem:[#allocation29_spill] sm:$0xff]  ;;  %v7256_v32 = vld [vmem:[#allocation2 + $0x40] sm:$0xff]  ;;  %v7928_v55 = vld [vmem:[#allocation22_spill] sm:$0xff] }
 0x232   : > { %3923 = vmatmul.msk.f32.gmra.mxu2 %vm7915_vm9, %v7059_v40  ;;  %v4005_v40 = vld [vmem:[%s7457_s3 + $0xd20] sm:$0xff]  ;;  %vm7923_vm10 = vcmp.eq.s32.totalorder %v7922_v2, 1  ;;  %vm7929_vm4 = vcmp.eq.s32.totalorder %v7928_v55, 1  ;;  %v7944_v2 = vld [vmem:[#allocation38_spill] sm:$0xff]  ;;  %v7948_v55 = vld [vmem:[#allocation40_spill] sm:$0xff] }
 0x233   : > { %3898 = vmatmul.msk.f32.gmra.mxu1 %vm7917_vm8, %v6713_v53  ;;  %v7203_v29 = vadd.f32 %v1909_v0, %v1841_v17  ;;  %v7205_v46 = vadd.f32 %v2061_v54, %v2001_v56  ;;  %v7920_v0 = vld [vmem:[#allocation19_spill] sm:$0xff]  ;;  %3088 = vmatpush.msra.mxu2 %v4005_v40  ;;  %v3982_v54 = vld [vmem:[%s7457_s3 + $0xca8] sm:$0xff] }
 0x234   : > { %3879 = vmatmul.msk.f32.gmra.mxu0 %vm7919_vm2, %v7186_v37  ;;  %vm7921_vm7 = vcmp.eq.s32.totalorder %v7920_v0, 1  ;;  %4067 = vmatpush.msrb.mxu3 %v7093_v9  ;;  %v3981_v9 = vld [vmem:[%s7457_s3 + $0xca0] sm:$0xff]  ;;  %v4002_v17 = vld [vmem:[%s7457_s3 + $0xd08] sm:$0xff] }
 0x235   : > { %v2064_v15 = vpop.f32.mrf.mxu2  ;;  %4055 = vmatpush.msra.mxu1 %v3982_v54  ;;  %3089 = vmatpush.msra.mxu2 %v4004_v26 }
 0x236   : > { %3855 = vmatmul.msk.f32.gmra.mxu3 %vm7921_vm7, %v7218_v22  ;;  %3002 = vmatpush.msrb.mxu0 %v7167_v18 }
 0x237   : > { %4068 = vmatpush.msrb.mxu3 %v7120_v24  ;;  %4056 = vmatpush.msra.mxu1 %v3981_v9 }
 0x238   : > { %v1830_v51 = vpop.f32.mrf.mxu3  ;;  %v1982_v12 = vpop.f32.mrf.mxu1  ;;  %3003 = vmatpush.msrb.mxu0 %v3984_v19  ;;  %v7934_v19 = vld [vmem:[#allocation25_spill] sm:$0xff] }
 0x239   : > { %v1842_v60 = vadd.f32 %v1830_v51, %v7039_v38  ;;  %v2002_v43 = vadd.f32 %v1982_v12, %v7041_v4  ;;  %v1915_v63 = vpop.f32.mrf.mxu0  ;;  %v7924_v38 = vld [vmem:[#allocation33_spill] sm:$0xff]  ;;  %4069 = vmatpush.msrb.mxu3 %v7145_v30  ;;  %4057 = vmatpush.msra.mxu1 %v3980_v11  ;;  %vm7935_vm9 = vcmp.eq.s32.totalorder %v7934_v19, 1  ;;  %v7936_v51 = vld [vmem:[#allocation42_spill] sm:$0xff] }
 0x23a   : > { %3924 = vmatmul.msk.f32.gmra.mxu2 %vm7923_vm10, %v7901_v33  ;;  %vm7925_vm5 = vcmp.eq.s32.totalorder %v7924_v38, 1  ;;  %v4003_v33 = vld [vmem:[%s7457_s3 + $0xd10] sm:$0xff]  ;;  %vm7937_vm8 = vcmp.eq.s32.totalorder %v7936_v51, 1  ;;  %3004 = vmatpush.msrb.mxu0 %v3983_v59  ;;  %v7938_v59 = vld [vmem:[#allocation34_spill] sm:$0xff] }
 0x23b   : > { %3899 = vmatmul.msk.f32.gmra.mxu1 %vm7925_vm5, %v6770_v6  ;;  %v7242_v4 = vadd.f32 %v1912_v41, %v1842_v60  ;;  %v7244_v61 = vadd.f32 %v2064_v15, %v2002_v43  ;;  %3090 = vmatpush.msra.mxu2 %v4003_v33  ;;  %v4001_v15 = vld [vmem:[%s7457_s3 + $0xd00] sm:$0xff]  ;;  %v7930_v30 = vld [vmem:[#allocation37_spill] sm:$0xff]  ;;  %vm7939_vm2 = vcmp.eq.s32.totalorder %v7938_v59, 1  ;;  %vm7945_vm5 = vcmp.eq.s32.totalorder %v7944_v2, 1 }
 0x23c   : > { %3880 = vmatmul.msk.f32.gmra.mxu0 %vm7927_vm11, %v7227_v48  ;;  %4070 = vmatpush.msrb.mxu3 %v7172_v3  ;;  %vm7931_vm13 = vcmp.eq.s32.totalorder %v7930_v30, 1  ;;  %v3979_v3 = vld [vmem:[%s7457_s3 + $0xc90] sm:$0xff] }
 0x23d   : > { %v2067_v47 = vpop.f32.mrf.mxu2  ;;  %3091 = vmatpush.msra.mxu2 %v4002_v17  ;;  %4058 = vmatpush.msra.mxu1 %v3979_v3  ;;  %v7954_v30 = vld [vmem:[#allocation5_spill] sm:$0xff] }
 0x23e   : > { %3856 = vmatmul.msk.f32.gmra.mxu3 %vm7929_vm4, %v7256_v32  ;;  %3005 = vmatpush.msrb.mxu0 %v3982_v54  ;;  %vm7949_vm4 = vcmp.eq.s32.totalorder %v7948_v55, 1  ;;  %v7957_v19 = vld [vmem:[#allocation41_spill] sm:$0xff]  ;;  %v7976_v55 = vld [vmem:[#allocation62_spill] sm:$0xff] }
 0x23f   : > { %3092 = vmatpush.msra.mxu2 %v4001_v15  ;;  %4071 = vmatpush.msrb.mxu3 %v7194_v34 }
 0x240   : > { %v1833_v56 = vpop.f32.mrf.mxu3  ;;  %v1985_v41 = vpop.f32.mrf.mxu1  ;;  %3006 = vmatpush.msrb.mxu0 %v3981_v9 }
 0x241   : > { %v1843_v24 = vadd.f32 %v1833_v56, %v7101_v45  ;;  %v2003_v14 = vadd.f32 %v1985_v41, %v7103_v52  ;;  %v2222_v5 = vpop.f32.mrf.mxu0  ;;  %v7932_v45 = vld [vmem:[#allocation31_spill] sm:$0xff]  ;;  %4072 = vmatpush.msrb.mxu3 %v4005_v40 }
 0x242   : > { %3925 = vmatmul.msk.f32.gmra.mxu2 %vm7931_vm13, %v7175_v7  ;;  %vm7933_vm14 = vcmp.eq.s32.totalorder %v7932_v45, 1  ;;  %v7940_v40 = vld [vmem:[#allocation39_spill] sm:$0xff]  ;;  %3007 = vmatpush.msrb.mxu0 %v3980_v11  ;;  %v7955_v45 = vld [vmem:[#allocation46_spill] sm:$0xff] }
 0x243   : > { %3900 = vmatmul.msk.f32.gmra.mxu1 %vm7933_vm14, %v6828_v20  ;;  %v7281_v52 = vadd.f32 %v1915_v63, %v1843_v24  ;;  %v7283_v18 = vadd.f32 %v2067_v47, %v2003_v14  ;;  %4073 = vmatpush.msrb.mxu3 %v4004_v26  ;;  %vm7941_vm7 = vcmp.eq.s32.totalorder %v7940_v40, 1  ;;  %v7950_v41 = vld [vmem:[#allocation47_spill] sm:$0xff]  ;;  %v7967_v40 = vld [vmem:[#allocation54_spill] sm:$0xff] }
 0x244   : > { %3969 = vmatmul.msk.f32.vlgmr.msra.gmra.mxu0 %vm7935_vm9, %v6713_v53  ;;  %v3978_v53 = vld [vmem:[%s7457_s3 + $0xc88] sm:$0xff]  ;;  %vm7951_vm13 = vcmp.eq.s32.totalorder %v7950_v41, 1  ;;  %vm7956_vm9 = vcmp.eq.s32.totalorder %v7955_v45, 1 }
 0x245   : > { %v2070_v0 = vpop.f32.mrf.mxu2  ;;  %4059 = vmatpush.msra.mxu1 %v3978_v53  ;;  %4074 = vmatpush.msrb.mxu3 %v4003_v33 }
 0x246   : > { %3945 = vmatmul.msk.f32.vlgmr.msra.gmra.mxu3 %vm7937_vm8, %v6882_v23  ;;  %v3977_v23 = vld [vmem:[%s7457_s3 + $0xc80] sm:$0xff]  ;;  %3008 = vmatpush.msrb.mxu0 %v3979_v3  ;;  %vm7958_vm8 = vcmp.eq.s32.totalorder %v7957_v19, 1 }
 0x247   : > { %4060 = vmatpush.msra.mxu1 %v3977_v23  ;;  %4075 = vmatpush.msrb.mxu3 %v4002_v17 }
 0x248   : > { %v1988_v12 = vpop.f32.mrf.mxu1  ;;  %v2140_v60 = vpop.f32.mrf.mxu3  ;;  %3009 = vmatpush.msrb.mxu0 %v3978_v53 }
 0x249   : > { %v2004_v43 = vadd.f32 %v1988_v12, %v7156_v8  ;;  %v2164_v34 = vadd.f32 %v2140_v60, %v7158_v31  ;;  %v2225_v63 = vpop.f32.mrf.mxu0  ;;  %v7942_v8 = vld [vmem:[#allocation36_spill] sm:$0xff]  ;;  %4076 = vmatpush.msrb.mxu3 %v4001_v15 }
 0x24a   : > { %3926 = vmatmul.msk.f32.gmra.mxu2 %vm7939_vm2, %v7218_v22  ;;  %vm7943_vm10 = vcmp.eq.s32.totalorder %v7942_v8, 1  ;;  %3010 = vmatpush.msrb.mxu0 %v3977_v23  ;;  %v2641_v60 = vld [vmem:[#allocation2 + $0x47] sm:$0xff] }
 0x24b   : > { %3901 = vmatmul.msk.f32.gmra.mxu1 %vm7941_vm7, %v6878_v50  ;;  %v2086_v54 = vadd.f32 %v2070_v0, %v2004_v43  ;;  %v2246_v26 = vadd.f32 %v2222_v5, %v2164_v34  ;;  %v7959_v0 = vld [vmem:[#allocation43_spill] sm:$0xff]  ;;  %v7965_v23 = vld [vmem:[#allocation52_spill] sm:$0xff] }
 0x24c   : > { %3970 = vmatmul.msk.f32.gmra.mxu0 %vm7943_vm10, %v6770_v6  ;;  %v7946_v6 = vld [vmem:[#allocation44_spill] sm:$0xff]  ;;  %vm7960_vm2 = vcmp.eq.s32.totalorder %v7959_v0, 1 }
 0x24d   : > { %v2073_v31 = vpop.f32.mrf.mxu2  ;;  %vm7947_vm11 = vcmp.eq.s32.totalorder %v7946_v6, 1 }
 0x24e   : > { %3946 = vmatmul.msk.f32.gmra.mxu3 %vm7945_vm5, %v6945_v57  ;;  %vm7966_vm5 = vcmp.eq.s32.totalorder %v7965_v23, 1 }
 0x250   : > { %v1991_v38 = vpop.f32.mrf.mxu1  ;;  %v2143_v36 = vpop.f32.mrf.mxu3 }
 0x251   : > { %v2005_v9 = vadd.f32 %v1991_v38, %v7203_v29  ;;  %v2165_v33 = vadd.f32 %v2143_v36, %v7205_v46  ;;  %v2228_v47 = vpop.f32.mrf.mxu0  ;;  %v7952_v46 = vld [vmem:[#allocation49_spill] sm:$0xff] }
 0x252   : > { %3927 = vmatmul.msk.f32.gmra.mxu2 %vm7947_vm11, %v7256_v32  ;;  %vm7953_vm14 = vcmp.eq.s32.totalorder %v7952_v46, 1  ;;  %vm7968_vm11 = vcmp.eq.s32.totalorder %v7967_v40, 1 }
 0x253   : > { %3902 = vmatmul.msk.f32.gmra.mxu1 %vm7949_vm4, %v6939_v35  ;;  %v2087_v56 = vadd.f32 %v2073_v31, %v2005_v9  ;;  %v2247_v17 = vadd.f32 %v2225_v63, %v2165_v33  ;;  %v7963_v63 = vld [vmem:[#allocation45_spill] sm:$0xff]  ;;  %v7969_v31 = vld [vmem:[#allocation51_spill] sm:$0xff]  ;;  %v7972_v9 = vld [vmem:[#allocation60_spill] sm:$0xff] }
 0x254   : > { %3971 = vmatmul.msk.f32.gmra.mxu0 %vm7951_vm13, %v6828_v20  ;;  %vm7964_vm10 = vcmp.eq.s32.totalorder %v7963_v63, 1  ;;  %vm7970_vm4 = vcmp.eq.s32.totalorder %v7969_v31, 1  ;;  %vm7971_vm13 = vcmp.eq.s32.totalorder %v7832_v13, 1 }
 0x255   : > { %v2076_v29 = vpop.f32.mrf.mxu2 }
 0x256   : > { %3947 = vmatmul.msk.f32.gmra.mxu3 %vm7953_vm14, %v7010_v10  ;;  %vm7973_vm14 = vcmp.eq.s32.totalorder %v7972_v9, 1 }
 0x258   : > { %v1994_v24 = vpop.f32.mrf.mxu1  ;;  %v2146_v14 = vpop.f32.mrf.mxu3 }
 0x259   : > { %v2006_v5 = vadd.f32 %v1994_v24, %v7242_v4  ;;  %v2166_v11 = vadd.f32 %v2146_v14, %v7244_v61  ;;  %v2231_v15 = vpop.f32.mrf.mxu0  ;;  %v7961_v4 = vld [vmem:[#allocation50_spill] sm:$0xff]  ;;  %v7981_v24 = vld [vmem:[#allocation55_spill] sm:$0xff] }
 0x25a   : > { %3928 = vmatmul.msk.f32.gmra.mxu2 %vm7956_vm9, %v7954_v30  ;;  %vm7962_vm7 = vcmp.eq.s32.totalorder %v7961_v4, 1  ;;  %v7985_v30 = vld [vmem:[#allocation65_spill] sm:$0xff] }
 0x25b   : > { %3903 = vmatmul.msk.f32.gmra.mxu1 %vm7958_vm8, %v7004_v62  ;;  %v2088_v20 = vadd.f32 %v2076_v29, %v2006_v5  ;;  %v2248_v3 = vadd.f32 %v2228_v47, %v2166_v11  ;;  %v7974_v47 = vld [vmem:[#allocation56_spill] sm:$0xff]  ;;  %vm7977_vm8 = vcmp.eq.s32.totalorder %v7976_v55, 1  ;;  %v7979_v29 = vld [vmem:[#allocation61_spill] sm:$0xff] }
 0x25c   : > { %3972 = vmatmul.msk.f32.gmra.mxu0 %vm7960_vm2, %v6878_v50  ;;  %vm7975_vm9 = vcmp.eq.s32.totalorder %v7974_v47, 1  ;;  %vm7978_vm2 = vcmp.eq.s32.totalorder %v7843_v49, 1 }
 0x25d   : > { %v2079_v51 = vpop.f32.mrf.mxu2 }
 0x25e   : > { %3948 = vmatmul.msk.f32.gmra.mxu3 %vm7962_vm7, %v7076_v27  ;;  %vm7980_vm7 = vcmp.eq.s32.totalorder %v7979_v29, 1 }
 0x260   : > { %v1997_v61 = vpop.f32.mrf.mxu1  ;;  %v2149_v12 = vpop.f32.mrf.mxu3 }
 0x261   : > { %v2007_v53 = vadd.f32 %v1997_v61, %v7281_v52  ;;  %v2167_v43 = vadd.f32 %v2149_v12, %v7283_v18  ;;  %v2234_v34 = vpop.f32.mrf.mxu0 }
 0x262   : > { %4017 = vmatmul.msk.f32.vlgmr.msra.gmra.mxu2 %vm7964_vm10, %v6945_v57  ;;  %v4205_v57 = vld [vmem:[#allocation2 + $0x28] sm:$0xff]  ;;  %vm7982_vm10 = vcmp.eq.s32.totalorder %v7981_v24, 1 }
 0x263   : > { %3904 = vmatmul.msk.f32.gmra.mxu1 %vm7966_vm5, %v2641_v60  ;;  %v2089_v50 = vadd.f32 %v2079_v51, %v2007_v53  ;;  %v2249_v59 = vadd.f32 %v2231_v15, %v2167_v43  ;;  %vm7984_vm5 = vcmp.eq.s32.totalorder %v7855_v42, 1 }
 0x264   : > { %3973 = vmatmul.msk.f32.gmra.mxu0 %vm7968_vm11, %v6939_v35  ;;  %vm7986_vm11 = vcmp.eq.s32.totalorder %v7985_v30, 1 }
 0x265   : > { %v2438_v8 = vpop.f32.mrf.mxu2 }
 0x266   : > { %3949 = vmatmul.msk.f32.gmra.mxu3 %vm7970_vm4, %v7137_v1  ;;  %vm7993_vm4 = vcmp.eq.s32.totalorder %v7877_v39, 1 }
 0x268   : > { %v2152_v52 = vpop.f32.mrf.mxu3  ;;  %v2304_v18 = vpop.f32.mrf.mxu1 }
 0x269   : > { %v2168_v2 = vadd.f32 %v2152_v52, %v2086_v54  ;;  %v2328_v38 = vadd.f32 %v2304_v18, %v2246_v26  ;;  %v2237_v36 = vpop.f32.mrf.mxu0  ;;  %v2969_v18 = vld [vmem:[#allocation2 + $0x50] sm:$0xff] }
 0x26a   : > { %4018 = vmatmul.msk.f32.gmra.mxu2 %vm7971_vm13, %v7010_v10  ;;  %vm7997_vm13 = vcmp.eq.s32.totalorder %v7896_v44, 1 }
 0x26b   : > { %3995 = vmatmul.msk.f32.vlgmr.msra.gmra.mxu1 %vm7973_vm14, %v4205_v57  ;;  %v2250_v33 = vadd.f32 %v2234_v34, %v2168_v2  ;;  %v2462_v35 = vadd.f32 %v2438_v8, %v2328_v38  ;;  %v7995_v8 = vld [vmem:[#allocation59_spill] sm:$0xff] }
 0x26c   : > { %3974 = vmatmul.msk.f32.gmra.mxu0 %vm7975_vm9, %v7004_v62 }
 0x26d   : > { %v2441_v6 = vpop.f32.mrf.mxu2 }
 0x26e   : > { %3950 = vmatmul.msk.f32.gmra.mxu3 %vm7977_vm8, %v7186_v37 }
 0x270   : > { %v2307_v26 = vpop.f32.mrf.mxu1 }
 0x271   : > { %v2155_v54 = vpop.f32.mrf.mxu3  ;;  %v2329_v13 = vadd.f32 %v2307_v26, %v2247_v17  ;;  %v2240_v10 = vpop.f32.mrf.mxu0 }
 0x272   : > { %v2169_v41 = vadd.f32 %v2155_v54, %v2087_v56  ;;  %4019 = vmatmul.msk.f32.gmra.mxu2 %vm7978_vm2, %v7076_v27  ;;  %v2887_v27 = vld [vmem:[#allocation2 + $0x4f] sm:$0xff] }
 0x273   : > { %3996 = vmatmul.msk.f32.gmra.mxu1 %vm7980_vm7, %v7175_v7  ;;  %v2463_v62 = vadd.f32 %v2441_v6, %v2329_v13  ;;  %v2805_v7 = vld [vmem:[#allocation2 + $0x49] sm:$0xff] }
 0x274   : > { %v2251_v46 = vadd.f32 %v2237_v36, %v2169_v41  ;;  %3975 = vmatmul.msk.f32.gmra.mxu0 %vm7982_vm10, %v2641_v60  ;;  %v7990_v60 = vld [vmem:[#allocation48_spill] sm:$0xff] }
 0x275   : > { %v2444_v14 = vpop.f32.mrf.mxu2 }
 0x276   : > { %3951 = vmatmul.msk.f32.gmra.mxu3 %vm1140_vm15, %v7227_v48  ;;  %vm7988_vm15 = vcmp.eq.s32.totalorder %v7865_v16, 1  ;;  %v2963_v16 = vld [vmem:[#allocation2 + $0x20] sm:$0xff] }
 0x278   : > { %v2310_v17 = vpop.f32.mrf.mxu1 }
 0x279   : > { %v2158_v56 = vpop.f32.mrf.mxu3  ;;  %v2330_v15 = vadd.f32 %v2310_v17, %v2248_v3  ;;  %v2243_v49 = vpop.f32.mrf.mxu0 }
 0x27a   : > { %v2170_v11 = vadd.f32 %v2158_v56, %v2088_v20  ;;  %4020 = vmatmul.msk.f32.gmra.mxu2 %vm7984_vm5, %v7137_v1  ;;  %v2962_v1 = vld [vmem:[#allocation2 + $0x18] sm:$0xff] }
 0x27b   : > { %3997 = vmatmul.msk.f32.gmra.mxu1 %vm7986_vm11, %v7218_v22  ;;  %v2464_v19 = vadd.f32 %v2444_v14, %v2330_v15 }
 0x27c   : > { %v2252_v45 = vadd.f32 %v2240_v10, %v2170_v11  ;;  %3976 = vmatmul.msk.f32.gmra.mxu0 %vm1255_vm6, %v2887_v27  ;;  %vm7991_vm6 = vcmp.eq.s32.totalorder %v7990_v60, 1 }
 0x27d   : > { %v2447_v0 = vpop.f32.mrf.mxu2 }
 0x27e   : > { %3952 = vmatmul.msk.f32.gmra.mxu3 %vm1141_vm3, %v2805_v7  ;;  %vm7992_vm3 = vcmp.eq.s32.totalorder %v7887_v28, 1 }
 0x280   : > { %v2313_v3 = vpop.f32.mrf.mxu1 }
 0x281   : > { %v2161_v20 = vpop.f32.mrf.mxu3  ;;  %v2331_v61 = vadd.f32 %v2313_v3, %v2249_v59  ;;  %v2602_v42 = vpop.f32.mrf.mxu0 }
 0x282   : > { %v2171_v4 = vadd.f32 %v2161_v20, %v2089_v50  ;;  %4021 = vmatmul.msk.f32.gmra.mxu2 %vm7988_vm15, %v7186_v37  ;;  %v4206_v37 = vld [vmem:[#allocation2 + $0x48] sm:$0xff] }
 0x283   : > { %3998 = vmatmul.msk.f32.gmra.mxu1 %vm1367_vm0, %v7256_v32  ;;  %v2465_v12 = vadd.f32 %v2447_v0, %v2331_v61  ;;  %vm7996_vm0 = vcmp.eq.s32.totalorder %v7995_v8, 1 }
 0x284   : > { %v2253_v25 = vadd.f32 %v2243_v49, %v2171_v4  ;;  %3993 = vmatmul.msk.f32.vlgmr.msrb.gmra.mxu0 %vm7991_vm6, %v2962_v1 }
 0x285   : > { %v2450_v53 = vpop.f32.mrf.mxu2 }
 0x286   : > { %4023 = vmatmul.msk.f32.vlgmr.msrb.gmra.mxu3 %vm7992_vm3, %v2805_v7 }
 0x288   : > { %v2316_v43 = vpop.f32.mrf.mxu1 }
 0x289   : > { %v2520_v34 = vpop.f32.mrf.mxu3  ;;  %v2332_v63 = vadd.f32 %v2316_v43, %v2250_v33  ;;  %v2605_v50 = vpop.f32.mrf.mxu0 }
 0x28a   : > { %v2544_v23 = vadd.f32 %v2520_v34, %v2462_v35  ;;  %4022 = vmatmul.msk.f32.gmra.mxu2 %vm7993_vm4, %v7227_v48 }
 0x28b   : > { %3999 = vmatmul.msk.f32.gmra.mxu1 %vm1368_vm12, %v4206_v37  ;;  %v2466_v59 = vadd.f32 %v2450_v53, %v2332_v63 }
 0x28c   : > { %v2626_v40 = vadd.f32 %v2602_v42, %v2544_v23  ;;  %3994 = vmatmul.msk.f32.gmra.mxu0 %vm7996_vm0, %v2963_v16 }
 0x28d   : > { %v2453_v28 = vpop.f32.mrf.mxu2 }
 0x28e   : > { %4024 = vmatmul.msk.f32.gmra.mxu3 %vm7997_vm13, %v7074_v58 }
 0x290   : > { %v2319_v31 = vpop.f32.mrf.mxu1 }
 0x291   : > { %v2523_v52 = vpop.f32.mrf.mxu3  ;;  %v2333_v2 = vadd.f32 %v2319_v31, %v2251_v46  ;;  %v2608_v48 = vpop.f32.mrf.mxu0 }
 0x292   : > { %v2545_v39 = vadd.f32 %v2523_v52, %v2463_v62 }
 0x293   : > { %4000 = vmatmul.msk.f32.gmra.mxu1 %vm1369_vm1, %v2969_v18  ;;  %v2467_v38 = vadd.f32 %v2453_v28, %v2333_v2 }
 0x294   : > { %v2627_v36 = vadd.f32 %v2605_v50, %v2545_v39 }
 0x295   : > { %v2456_v57 = vpop.f32.mrf.mxu2 }
 0x298   : > { %v2322_v9 = vpop.f32.mrf.mxu1 }
 0x299   : > { %v2526_v33 = vpop.f32.mrf.mxu3  ;;  %v2334_v35 = vadd.f32 %v2322_v9, %v2252_v45  ;;  %v2611_v6 = vpop.f32.mrf.mxu0 }
 0x29a   : > { %v2546_v47 = vadd.f32 %v2526_v33, %v2464_v19 }
 0x29b   : > { %v2468_v55 = vadd.f32 %v2456_v57, %v2334_v35 }
 0x29c   : > { %v2628_v44 = vadd.f32 %v2608_v48, %v2546_v47 }
 0x29d   : > { %v2459_v58 = vpop.f32.mrf.mxu2 }
 0x2a0   : > { %v2325_v54 = vpop.f32.mrf.mxu1 }
 0x2a1   : > { %v2529_v26 = vpop.f32.mrf.mxu3  ;;  %v2335_v41 = vadd.f32 %v2325_v54, %v2253_v25  ;;  %v2614_v10 = vpop.f32.mrf.mxu0 }
 0x2a2   : > { %v2547_v13 = vadd.f32 %v2529_v26, %v2465_v12 }
 0x2a3   : > { %v2469_v29 = vadd.f32 %v2459_v58, %v2335_v41 }
 0x2a4   : > { %v2629_v46 = vadd.f32 %v2611_v6, %v2547_v13 }
 0x2a5   : > { %v2766_v21 = vpop.f32.mrf.mxu2 }
 0x2a8   : > { %v2684_v24 = vpop.f32.mrf.mxu1 }
 0x2a9   : > { %v2532_v62 = vpop.f32.mrf.mxu3  ;;  %v2708_v5 = vadd.f32 %v2684_v24, %v2626_v40  ;;  %v2617_v56 = vpop.f32.mrf.mxu0 }
 0x2aa   : > { %v2548_v14 = vadd.f32 %v2532_v62, %v2466_v59 }
 0x2ab   : > { %v2790_v11 = vadd.f32 %v2766_v21, %v2708_v5 }
 0x2ac   : > { %v2630_v17 = vadd.f32 %v2614_v10, %v2548_v14 }
 0x2ad   : > { %v2769_v15 = vpop.f32.mrf.mxu2 }
 0x2b0   : > { %v2687_v27 = vpop.f32.mrf.mxu1 }
 0x2b1   : > { %v2535_v49 = vpop.f32.mrf.mxu3  ;;  %v2709_v30 = vadd.f32 %v2687_v27, %v2627_v36  ;;  %v2620_v45 = vpop.f32.mrf.mxu0 }
 0x2b2   : > { %v2549_v7 = vadd.f32 %v2535_v49, %v2467_v38 }
 0x2b3   : > { %v7410_v0 = vadd.f32 %v2769_v15, %v2709_v30 }
 0x2b4   : > { %v2631_v19 = vadd.f32 %v2617_v56, %v2549_v7 }
 0x2b5   : > { %v2772_v51 = vpop.f32.mrf.mxu2 }
 0x2b8   : > { %v2690_v3 = vpop.f32.mrf.mxu1 }
 0x2b9   : > { %v2538_v20 = vpop.f32.mrf.mxu3  ;;  %v2623_v61 = vpop.f32.mrf.mxu0  ;;  %v2710_v48 = vadd.f32 %v2690_v3, %v2628_v44 }
 0x2ba   : > { %v2550_v4 = vadd.f32 %v2538_v20, %v2468_v55 }
 0x2bb   : > { %v2792_v9 = vadd.f32 %v2772_v51, %v2710_v48 }
 0x2bc   : > { %v2632_v42 = vadd.f32 %v2620_v45, %v2550_v4 }
 0x2bd   : > { %v2775_v1 = vpop.f32.mrf.mxu2 }
 0x2c0   : > { %v2693_v25 = vpop.f32.mrf.mxu1 }
 0x2c1   : > { %v2541_v22 = vpop.f32.mrf.mxu3  ;;  %v2930_v60 = vpop.f32.mrf.mxu0  ;;  %v2711_v47 = vadd.f32 %v2693_v25, %v2629_v46 }
 0x2c2   : > { %v2551_v12 = vadd.f32 %v2541_v22, %v2469_v29 }
 0x2c3   : > { %v2793_v26 = vadd.f32 %v2775_v1, %v2711_v47 }
 0x2c4   : > { %v7412_v53 = vadd.f32 %v2623_v61, %v2551_v12 }
 0x2c5   : > { %v2778_v43 = vpop.f32.mrf.mxu2 }
 0x2c8   : > { %v2696_v34 = vpop.f32.mrf.mxu1 }
 0x2c9   : > { %v2848_v63 = vpop.f32.mrf.mxu3  ;;  %v7414_v23 = vpop.f32.mrf.mxu0  ;;  %v2712_v29 = vadd.f32 %v2696_v34, %v2630_v17 }
 0x2ca   : > { %v2872_v14 = vadd.f32 %v2848_v63, %v2790_v11 }
 0x2cb   : > { %v2794_v5 = vadd.f32 %v2778_v43, %v2712_v29 }
 0x2cc   : > { %v2954_v20 = vadd.f32 %v2930_v60, %v2872_v14 }
 0x2cd   : > { %v2781_v50 = vpop.f32.mrf.mxu2 }
 0x2d0   : > { %v2699_v16 = vpop.f32.mrf.mxu1 }
 0x2d1   : > { %v2851_v37 = vpop.f32.mrf.mxu3  ;;  %v2936_v32 = vpop.f32.mrf.mxu0  ;;  %v2713_v30 = vadd.f32 %v2699_v16, %v2631_v19 }
 0x2d2   : > { %v2873_v11 = vadd.f32 %v2851_v37, %v7410_v0 }
 0x2d3   : > { %v2795_v22 = vadd.f32 %v2781_v50, %v2713_v30 }
 0x2d5   : > { %v2784_v59 = vpop.f32.mrf.mxu2 }
 0x2d8   : > { %v2702_v40 = vpop.f32.mrf.mxu1 }
 0x2d9   : > { %v2854_v8 = vpop.f32.mrf.mxu3  ;;  %v2939_v28 = vpop.f32.mrf.mxu0  ;;  %v2714_v15 = vadd.f32 %v2702_v40, %v2632_v42 }
 0x2da   : > { %v2874_v35 = vadd.f32 %v2854_v8, %v2792_v9 }
 0x2db   : > { %v2796_v17 = vadd.f32 %v2784_v59, %v2714_v15 }
 0x2dc   : > { %v2956_v54 = vadd.f32 %v2936_v32, %v2874_v35  ;;  %v2955_v32 = vadd.f32 %v7414_v23, %v2873_v11 }
 0x2dd   : > { %v2787_v31 = vpop.f32.mrf.mxu2 }
 0x2e0   : > { %v2705_v52 = vpop.f32.mrf.mxu1 }
 0x2e1   : > { %v2857_v18 = vpop.f32.mrf.mxu3  ;;  %v2942_v2 = vpop.f32.mrf.mxu0  ;;  %v2715_v12 = vadd.f32 %v2705_v52, %v7412_v53 }
 0x2e2   : > { %v2875_v13 = vadd.f32 %v2857_v18, %v2793_v26 }
 0x2e3   : > { %v2797_v59 = vadd.f32 %v2787_v31, %v2715_v12 }
 0x2e4   : > { %v2957_v24 = vadd.f32 %v2939_v28, %v2875_v13 }
 0x2e5   : > { %v3094_v39 = vpop.f32.mrf.mxu2 }
 0x2e8   : > { %v3018_v36 = vpop.f32.mrf.mxu1 }
 0x2e9   : > { %v2860_v38 = vpop.f32.mrf.mxu3  ;;  %v2945_v57 = vpop.f32.mrf.mxu0  ;;  %v3038_v41 = vadd.f32 %v3018_v36, %v2956_v54 }
 0x2ea   : > { %v2876_v27 = vadd.f32 %v2860_v38, %v2794_v5 }
 0x2ec   : > { %v2958_v4 = vadd.f32 %v2942_v2, %v2876_v27  ;;  %v3134_v27 = vlaneseq }
 0x2ed   : > { %v3097_v33 = vpop.f32.mrf.mxu2 }
 0x2f0   : > { %v3021_v55 = vpop.f32.mrf.mxu1 }
 0x2f1   : > { %v2863_v6 = vpop.f32.mrf.mxu3  ;;  %v2948_v58 = vpop.f32.mrf.mxu0  ;;  %v3039_v56 = vadd.f32 %v3021_v55, %v2957_v24 }
 0x2f2   : > { %v2877_v19 = vadd.f32 %v2863_v6, %v2795_v22 }
 0x2f4   : > { %v2959_v50 = vadd.f32 %v2945_v57, %v2877_v19 }
 0x2f5   : > { %v3100_v44 = vpop.f32.mrf.mxu2 }
 0x2f6   : > { %v3120_v10 = vadd.f32 %v3100_v44, %v3038_v41 }
 0x2f8   : > { %3128 = vst [vmem:[%s7421_s19 + $0x10] sm:$0xff] %v3120_v10  ;;  %v3024_v21 = vpop.f32.mrf.mxu1  ;;  %v3151_v23 = vmul.f32 %v3120_v10, %v3120_v10 }
 0x2f9   : > { %v2866_v46 = vpop.f32.mrf.mxu3  ;;  %v2951_v62 = vpop.f32.mrf.mxu0  ;;  %v3040_v25 = vadd.f32 %v3024_v21, %v2958_v4 }
 0x2fa   : > { %v2878_v1 = vadd.f32 %v2866_v46, %v2796_v17 }
 0x2fc   : > { %v2960_v63 = vadd.f32 %v2948_v58, %v2878_v1 }
 0x2fd   : > { %v3103_v49 = vpop.f32.mrf.mxu2 }
 0x2fe   : > { %v3121_v7 = vadd.f32 %v3103_v49, %v3039_v56 }
 0x300   : > { %3129 = vst [vmem:[%s7421_s19 + $0x18] sm:$0xff] %v3121_v7  ;;  %v3027_v51 = vpop.f32.mrf.mxu1  ;;  %v3152_v47 = vmul.f32 %v3121_v7, %v3121_v7 }
 0x301   : > { %v2869_v45 = vpop.f32.mrf.mxu3  ;;  %v3012_v3 = vpop.f32.mrf.mxu0  ;;  %v3041_v28 = vadd.f32 %v3027_v51, %v2959_v50 }
 0x302   : > { %v3036_v61 = vadd.f32 %v3012_v3, %v2954_v20  ;;  %v2879_v8 = vadd.f32 %v2869_v45, %v2797_v59  ;;  %v3135_v20 = vshrl.u32 %v3134_v27, 7 }
 0x304   : > { %v3118_v42 = vadd.f32 %v3094_v39, %v3036_v61  ;;  %v2961_v36 = vadd.f32 %v2951_v62, %v2879_v8  ;;  %vm3171_vm12 = vcmp.eq.s32.totalorder %v3135_v20, 1  ;;  %vm3170_vm1 = vcmp.eq.s32.totalorder %v3135_v20, 0 }
 0x305   : > { %v3106_v43 = vpop.f32.mrf.mxu2 }
 0x306   : > { %3126 = vst [vmem:[%s7421_s19] sm:$0xff] %v3118_v42  ;;  %v3122_v34 = vadd.f32 %v3106_v43, %v3040_v25  ;;  %v3149_v2 = vmul.f32 %v3118_v42, %v3118_v42 }
 0x308   : > { %3130 = vst [vmem:[%s7421_s19 + $0x20] sm:$0xff] %v3122_v34  ;;  %v3030_v60 = vpop.f32.mrf.mxu1  ;;  %v3153_v54 = vmul.f32 %v3122_v34, %v3122_v34 }
 0x309   : > { %v3112_v16 = vpop.f32.mrf.mxu3  ;;  %v3042_v40 = vadd.f32 %v3030_v60, %v2960_v63  ;;  %v3015_v0 = vpop.f32.mrf.mxu0 }
 0x30a   : > { %v3037_v37 = vadd.f32 %v3015_v0, %v2955_v32 }
 0x30b   : > { %v3124_v53 = vadd.f32 %v3112_v16, %v3042_v40 }
 0x30c   : > { %v3119_v52 = vadd.f32 %v3097_v33, %v3037_v37 }
 0x30d   : > { %3132 = vst [vmem:[%s7421_s19 + $0x30] sm:$0xff] %v3124_v53  ;;  %v3109_v18 = vpop.f32.mrf.mxu2  ;;  %v3155_v46 = vmul.f32 %v3124_v53, %v3124_v53 }
 0x30e   : > { %3127 = vst [vmem:[%s7421_s19 + $0x8] sm:$0xff] %v3119_v52  ;;  %v3136_v39 = vadd.f32 %v3119_v52, %v3118_v42  ;;  %v3150_v48 = vmul.f32 %v3119_v52, %v3119_v52  ;;  %v3123_v38 = vadd.f32 %v3109_v18, %v3041_v28 }
 0x310   : > { %v3137_v31 = vadd.f32 %v3136_v39, %v3120_v10  ;;  %v3157_v9 = vadd.f32 %v3150_v48, %v3149_v2  ;;  %3131 = vst [vmem:[%s7421_s19 + $0x28] sm:$0xff] %v3123_v38  ;;  %v3033_v57 = vpop.f32.mrf.mxu1  ;;  %v3154_v13 = vmul.f32 %v3123_v38, %v3123_v38 }
 0x311   : > { %v3043_v35 = vadd.f32 %v3033_v57, %v2961_v36  ;;  %v3115_v58 = vpop.f32.mrf.mxu3 }
 0x312   : > { %v3158_v6 = vadd.f32 %v3157_v9, %v3151_v23  ;;  %v3138_v55 = vadd.f32 %v3137_v31, %v3121_v7 }
 0x313   : > { %v3125_v33 = vadd.f32 %v3115_v58, %v3043_v35 }
 0x314   : > { %v3139_v26 = vadd.f32 %v3138_v55, %v3122_v34  ;;  %v3159_v41 = vadd.f32 %v3158_v6, %v3152_v47 }
 0x315   : > { %3133 = vst [vmem:[%s7421_s19 + $0x38] sm:$0xff] %v3125_v33  ;;  %v3156_v24 = vmul.f32 %v3125_v33, %v3125_v33 }
 0x316   : > { %v3140_v44 = vadd.f32 %v3139_v26, %v3123_v38  ;;  %v3160_v29 = vadd.f32 %v3159_v41, %v3153_v54 }
 0x318   : > { %v3161_v10 = vadd.f32 %v3160_v29, %v3154_v13  ;;  %v3141_v21 = vadd.f32 %v3140_v44, %v3124_v53 }
 0x31a   : > { %v3142_v62 = vadd.f32 %v3141_v21, %v3125_v33  ;;  %v3162_v14 = vadd.f32 %v3161_v10, %v3155_v46 }
 0x31c   : > { %v3143_v5 = vrot.slane %v3142_v62, 4  ;;  %v3163_v56 = vadd.f32 %v3162_v14, %v3156_v24 }
 0x31e   : > { %v3144_v15 = vadd.f32 %v3143_v5, %v3142_v62  ;;  %v3164_v49 = vrot.slane %v3163_v56, 4 }
 0x320   : > { %v3145_v7 = vrot.slane %v3144_v15, 2  ;;  %v3165_v30 = vadd.f32 %v3164_v49, %v3163_v56 }
 0x322   : > { %v3146_v45 = vadd.f32 %v3145_v7, %v3144_v15  ;;  %v3166_v51 = vrot.slane %v3165_v30, 2 }
 0x324   : > { %v3167_v17 = vadd.f32 %v3166_v51, %v3165_v30  ;;  %v3147_v3 = vrot.slane %v3146_v45, 1 }
 0x326   : > { %v3168_v4 = vrot.slane %v3167_v17, 1  ;;  %v3148_v1 = vadd.f32 %v3147_v3, %v3146_v45 }
 0x328   : > { %v3169_v61 = vadd.f32 %v3168_v4, %v3167_v17 }
 0x32a   : > { %v3174_v11 = vsel %vm3171_vm12, %v3169_v61, 0.0 }
 0x32b   : > { %v3177_v22 = vsel %vm3170_vm1, %v3148_v1, %v3174_v11 }
 0x32c   : > { %3178 = vst [vmem:[%s472_s26] sm:$0xff] %v3177_v22 }
 0x32d PF: > { %s19_s9 = sadd.s32 1, %s4245_s9   ;;  %s7998_s27 = smov %s4237_s29 }
 0x32e   : > { %p16_p12 = scmp.ge.s32.totalorder %s19_s9, 18   ;;  %s7999_s28 = smov %s4241_s30 }
 0x32f   : > { %s8000_s29 = smov %s8003_s10  ;;  %s8001_s30 = smov %s8007_s11 }
 0x330   :  { %18 = sbr.rel (!%p16_p12) target bundleno = 3 (0x3), region = 122 }

</bundles_post_ra>
